<compile_context>
chip_gen: v5e
topology: v5e:2x2
jax: 0.10.0
libtpu: 0.0.40
codegen_flags: <defaults>
</compile_context>

<pallas_src>
import functools

import jax
import jax.numpy as jnp
from jax.experimental import pallas as pl
from jax.experimental.pallas import tpu as pltpu

_EPS = 1e-5  # PyTorch BatchNorm2d default.


# ------------------------------ Pallas kernel -------------------------------

def _fused_encoder_kernel(
        x_ref,      # (C_in, R)          channels-major input, lane r = n*H*W + y*W + x
        m_ref,      # (9, R)             per-tap boundary masks (zero 'same' padding)
        w1_ref,     # (9, C_hid, C_in)   per-tap transposed conv1 weights
        w2_ref,     # (9, C_hid, C_hid)
        w3_ref,     # (9, C_hid, C_hid)
        w4_ref,     # (9, C_out, C_hid)
        vec_ref,    # (C_hid, 10)        columns: b1,g1,be1,b2,g2,be2,b3,g3,be3,b4(pad)
        o_ref,      # (C_out, R)         sigmoid output (channels-major, lane-dense)
        *, W, R, eps):
    f32 = jnp.float32

    # Hoist the 9 mask rows once; reused by all 4 layers.
    masks = [m_ref[t:t + 1, :] for t in range(9)]

    # Static lane shifts for the 9 taps: source lane = r + oy*W + ox.
    shifts = [(dy - 1) * W + (dx - 1) for dy in range(3) for dx in range(3)]

    def conv(h, w_ref, b):
        # 9 accumulating MXU matmuls; RHS = lane-rolled + boundary-masked h.
        acc = None
        for t, s in enumerate(shifts):
            src = h if s == 0 else masks[t] * pltpu.roll(h, (-s) % R, axis=1)
            term = jnp.dot(w_ref[t], src, preferred_element_type=f32)
            acc = term if acc is None else acc + term
        return acc + b

    def bn_relu(y, g, be):
        # Train-mode BatchNorm2d: one-pass biased batch stats over (N, H, W),
        # i.e. over the lane axis of the channels-major layout.
        mean = jnp.sum(y, axis=1, keepdims=True) * (1.0 / R)
        var = jnp.sum(y * y, axis=1, keepdims=True) * (1.0 / R) - mean * mean
        scale = g * jax.lax.rsqrt(var + eps)
        shift = be - mean * scale
        return jnp.maximum(y * scale + shift, 0.0)

    v = vec_ref
    h = bn_relu(conv(x_ref[...], w1_ref, v[:, 0:1]), v[:, 1:2], v[:, 2:3])
    h = bn_relu(conv(h, w2_ref, v[:, 3:4]), v[:, 4:5], v[:, 5:6])
    h = bn_relu(conv(h, w3_ref, v[:, 6:7]), v[:, 7:8], v[:, 8:9])
    c_out = o_ref.shape[0]
    o_ref[...] = jax.nn.sigmoid(conv(h, w4_ref, v[0:c_out, 9:10]))


# ------------------------------- JAX wrapper ---------------------------------

def _full_block(shape):
    rank = len(shape)
    return pl.BlockSpec(shape, lambda i, _r=rank: (0,) * _r)


def encoder_cnn_large_forward(obs_nchw, params, eps=_EPS):
    """Forward matching EncoderCNNLarge(act_fn='sigmoid', act_fn_hid='relu').

    obs_nchw: (N, C, H, W) float32 (PyTorch convention).
    Returns:  (N, num_objects, H, W) float32.
    BatchNorm uses training-mode batch statistics (biased variance, eps=1e-5).
    """
    N, C_in, H, W = obs_nchw.shape
    C_hid = params["w1"].shape[-1]
    C_out = params["w4"].shape[-1]
    R = N * H * W

    # Channels-major, lane-dense input slab: (C_in, N*H*W).
    x_t = jnp.transpose(obs_nchw.astype(jnp.float32), (1, 0, 2, 3)).reshape(C_in, R)

    # Per-tap boundary masks (shape-only constants): mask[t, r] == 1 iff output
    # pixel r reads its (dy,dx) tap from inside the image (zero 'same' padding).
    r = jnp.arange(R, dtype=jnp.int32)
    xc = r % W
    yc = (r // W) % H
    mask_rows = []
    for t in range(9):
        dy, dx = divmod(t, 3)
        oy, ox = dy - 1, dx - 1
        ok = (yc + oy >= 0) & (yc + oy < H) & (xc + ox >= 0) & (xc + ox < W)
        mask_rows.append(ok)
    mask9 = jnp.stack(mask_rows, axis=0).astype(jnp.float32)          # (9, R)

    def wtaps(w):   # HWIO (3,3,Cin,Cout) -> (9, Cout, Cin), tap t = dy*3 + dx
        cin, cout = w.shape[2], w.shape[3]
        return jnp.transpose(w.astype(jnp.float32).reshape(9, cin, cout), (0, 2, 1))

    def col(v):     # (C,) -> zero-padded (C_hid, 1) column
        v = v.astype(jnp.float32)
        return jnp.pad(v, (0, C_hid - v.shape[0])).reshape(C_hid, 1)

    vecs = jnp.concatenate(
        [col(params[k]) for k in
         ("b1", "g1", "be1", "b2", "g2", "be2", "b3", "g3", "be3", "b4")],
        axis=1)                                                       # (C_hid, 10)

    args = (x_t, mask9, wtaps(params["w1"]), wtaps(params["w2"]),
            wtaps(params["w3"]), wtaps(params["w4"]), vecs)

    kernel = functools.partial(_fused_encoder_kernel, W=W, R=R, eps=eps)

    out_t = pl.pallas_call(
        kernel,
        out_shape=jax.ShapeDtypeStruct((C_out, R), jnp.float32),
        grid=(1,),
        in_specs=[_full_block(a.shape) for a in args],
        out_specs=_full_block((C_out, R)),
        compiler_params=pltpu.CompilerParams(
            dimension_semantics=("arbitrary",)),
    )(*args)

    # Channels-major -> NCHW: one cheap leading-axis transpose (8 KiB), XLA-side.
    return jnp.transpose(out_t.reshape(C_out, N, H, W), (1, 0, 2, 3))


# ------------------------- pure-JAX reference (check) ------------------------

def _reference_forward(obs_nchw, params, eps=_EPS):
    x = jnp.transpose(obs_nchw.astype(jnp.float32), (0, 2, 3, 1))

    def conv(h, w, b):
        y = jax.lax.conv_general_dilated(
            h, w.astype(jnp.float32), window_strides=(1, 1), padding="SAME",
            dimension_numbers=("NHWC", "HWIO", "NHWC"),
            precision=jax.lax.Precision.HIGHEST)
        return y + b

    def bn_relu(y, g, be):
        mean = jnp.mean(y, axis=(0, 1, 2))
        var = jnp.var(y, axis=(0, 1, 2))   # biased, like torch train-mode BN
        return jnp.maximum((y - mean) * (g * jax.lax.rsqrt(var + eps)) + be, 0.0)

    h = bn_relu(conv(x, params["w1"], params["b1"]), params["g1"], params["be1"])
    h = bn_relu(conv(h, params["w2"], params["b2"]), params["g2"], params["be2"])
    h = bn_relu(conv(h, params["w3"], params["b3"]), params["g3"], params["be3"])
    h = jax.nn.sigmoid(conv(h, params["w4"], params["b4"]))
    return jnp.transpose(h, (0, 3, 1, 2))


# ---------------------------------- params -----------------------------------

def init_params(key, input_dim, hidden_dim, num_objects):
    """Deterministic synthetic weights (HWIO conv layout), BN gamma=1, beta=0."""
    ks = jax.random.split(key, 8)

    def conv_w(k, cin, cout):
        return 0.1 * jax.random.normal(k, (3, 3, cin, cout), jnp.float32)

    def conv_b(k, cout):
        return 0.05 * jax.random.normal(k, (cout,), jnp.float32)

    return {
        "w1": conv_w(ks[0], input_dim, hidden_dim), "b1": conv_b(ks[1], hidden_dim),
        "g1": jnp.ones((hidden_dim,), jnp.float32), "be1": jnp.zeros((hidden_dim,), jnp.float32),
        "w2": conv_w(ks[2], hidden_dim, hidden_dim), "b2": conv_b(ks[3], hidden_dim),
        "g2": jnp.ones((hidden_dim,), jnp.float32), "be2": jnp.zeros((hidden_dim,), jnp.float32),
        "w3": conv_w(ks[4], hidden_dim, hidden_dim), "b3": conv_b(ks[5], hidden_dim),
        "g3": jnp.ones((hidden_dim,), jnp.float32), "be3": jnp.zeros((hidden_dim,), jnp.float32),
        "w4": conv_w(ks[6], hidden_dim, num_objects), "b4": conv_b(ks[7], num_objects),
    }


if __name__ == "__main__":
    key = jax.random.PRNGKey(0)
    k_in, k_par = jax.random.split(key)

    N, input_dim, H, W = 2, 4, 16, 16
    hidden_dim, num_objects = 32, 4

    obs = jax.random.normal(k_in, (N, input_dim, H, W), jnp.float32)
    params = init_params(k_par, input_dim, hidden_dim, num_objects)

    fwd = jax.jit(encoder_cnn_large_forward)
    out = jax.block_until_ready(fwd(obs, params))

    assert out.shape == (N, num_objects, H, W), out.shape
    assert bool(jnp.all(jnp.isfinite(out)))
    assert bool(jnp.all((out >= 0.0) & (out <= 1.0)))  # sigmoid output range

    ref = jax.block_until_ready(_reference_forward(obs, params))
    max_err = float(jnp.max(jnp.abs(out - ref)))
    assert max_err < 1e-4, f"mismatch vs reference: max_err={max_err}"

    print("KERNEL_OK")
</pallas_src>

<mosaic_0001>
module attributes {stable_mosaic.version = 11 : i64} {
  func.func @_fused_encoder_kernel(%arg0: i32, %arg1: memref<4x512xf32, #tpu.memory_space<vmem>>, %arg2: memref<9x512xf32, #tpu.memory_space<vmem>>, %arg3: memref<9x32x4xf32, #tpu.memory_space<vmem>>, %arg4: memref<9x32x32xf32, #tpu.memory_space<vmem>>, %arg5: memref<9x32x32xf32, #tpu.memory_space<vmem>>, %arg6: memref<9x4x32xf32, #tpu.memory_space<vmem>>, %arg7: memref<32x10xf32, #tpu.memory_space<vmem>>, %arg8: memref<4x512xf32, #tpu.memory_space<vmem>>) attributes {dimension_semantics = [#tpu.dimension_semantics<arbitrary>], iteration_bounds = array<i64: 1>, scalar_prefetch = 0 : i64, scratch_operands = 0 : i64, tpu.core_type = #tpu.core_type<tc>, window_params = [{pipeline_mode = #tpu.pipeline_mode<synchronous>, transform_indices = @transform_0, window_bounds = array<i64: 4, 512>}, {pipeline_mode = #tpu.pipeline_mode<synchronous>, transform_indices = @transform_1, window_bounds = array<i64: 9, 512>}, {pipeline_mode = #tpu.pipeline_mode<synchronous>, transform_indices = @transform_2, window_bounds = array<i64: 9, 32, 4>}, {pipeline_mode = #tpu.pipeline_mode<synchronous>, transform_indices = @transform_3, window_bounds = array<i64: 9, 32, 32>}, {pipeline_mode = #tpu.pipeline_mode<synchronous>, transform_indices = @transform_4, window_bounds = array<i64: 9, 32, 32>}, {pipeline_mode = #tpu.pipeline_mode<synchronous>, transform_indices = @transform_5, window_bounds = array<i64: 9, 4, 32>}, {pipeline_mode = #tpu.pipeline_mode<synchronous>, transform_indices = @transform_6, window_bounds = array<i64: 32, 10>}, {pipeline_mode = #tpu.pipeline_mode<synchronous>, transform_indices = @transform_7, window_bounds = array<i64: 4, 512>}]} {
    %c0 = arith.constant 0 : index
    %c0_0 = arith.constant 0 : index
    %0 = vector.load %arg2[%c0, %c0_0] : memref<9x512xf32, #tpu.memory_space<vmem>>, vector<1x512xf32>
    %c1 = arith.constant 1 : index
    %c0_1 = arith.constant 0 : index
    %1 = vector.load %arg2[%c1, %c0_1] : memref<9x512xf32, #tpu.memory_space<vmem>>, vector<1x512xf32>
    %c2 = arith.constant 2 : index
    %c0_2 = arith.constant 0 : index
    %2 = vector.load %arg2[%c2, %c0_2] : memref<9x512xf32, #tpu.memory_space<vmem>>, vector<1x512xf32>
    %c3 = arith.constant 3 : index
    %c0_3 = arith.constant 0 : index
    %3 = vector.load %arg2[%c3, %c0_3] : memref<9x512xf32, #tpu.memory_space<vmem>>, vector<1x512xf32>
    %c5 = arith.constant 5 : index
    %c0_4 = arith.constant 0 : index
    %4 = vector.load %arg2[%c5, %c0_4] : memref<9x512xf32, #tpu.memory_space<vmem>>, vector<1x512xf32>
    %c6 = arith.constant 6 : index
    %c0_5 = arith.constant 0 : index
    %5 = vector.load %arg2[%c6, %c0_5] : memref<9x512xf32, #tpu.memory_space<vmem>>, vector<1x512xf32>
    %c7 = arith.constant 7 : index
    %c0_6 = arith.constant 0 : index
    %6 = vector.load %arg2[%c7, %c0_6] : memref<9x512xf32, #tpu.memory_space<vmem>>, vector<1x512xf32>
    %c8 = arith.constant 8 : index
    %c0_7 = arith.constant 0 : index
    %7 = vector.load %arg2[%c8, %c0_7] : memref<9x512xf32, #tpu.memory_space<vmem>>, vector<1x512xf32>
    %c0_8 = arith.constant 0 : index
    %c0_9 = arith.constant 0 : index
    %8 = vector.load %arg1[%c0_8, %c0_9] : memref<4x512xf32, #tpu.memory_space<vmem>>, vector<4x512xf32>
    %c0_10 = arith.constant 0 : index
    %c0_11 = arith.constant 0 : index
    %9 = vector.load %arg7[%c0_10, %c0_11] : memref<32x10xf32, #tpu.memory_space<vmem>>, vector<32x1xf32>
    %c17_i32 = arith.constant 17 : i32
    %10 = tpu.dynamic_rotate %8 by %c17_i32 dim 1 : vector<4x512xf32>, i32 -> vector<4x512xf32>
    %11 = vector.broadcast %0 : vector<1x512xf32> to vector<4x512xf32>
    %12 = arith.mulf %11, %10 : vector<4x512xf32>
    %c0_12 = arith.constant 0 : index
    %c0_13 = arith.constant 0 : index
    %c0_14 = arith.constant 0 : index
    %13 = vector.load %arg3[%c0_12, %c0_13, %c0_14] : memref<9x32x4xf32, #tpu.memory_space<vmem>>, vector<1x32x4xf32>
    %14 = vector.shape_cast %13 : vector<1x32x4xf32> to vector<32x4xf32>
    %cst = arith.constant dense<0.000000e+00> : vector<32x512xf32>
    %15 = tpu.matmul %14, %12, %cst {dimension_numbers = #tpu.dot_dimension_numbers<[1], [0], [0], [1], [0, 0, 1, 1], [], []>} : vector<32x4xf32>, vector<4x512xf32>, vector<32x512xf32> -> vector<32x512xf32>
    %c16_i32 = arith.constant 16 : i32
    %16 = tpu.dynamic_rotate %8 by %c16_i32 dim 1 : vector<4x512xf32>, i32 -> vector<4x512xf32>
    %17 = vector.broadcast %1 : vector<1x512xf32> to vector<4x512xf32>
    %18 = arith.mulf %17, %16 : vector<4x512xf32>
    %c1_15 = arith.constant 1 : index
    %c0_16 = arith.constant 0 : index
    %c0_17 = arith.constant 0 : index
    %19 = vector.load %arg3[%c1_15, %c0_16, %c0_17] : memref<9x32x4xf32, #tpu.memory_space<vmem>>, vector<1x32x4xf32>
    %20 = vector.shape_cast %19 : vector<1x32x4xf32> to vector<32x4xf32>
    %cst_18 = arith.constant dense<0.000000e+00> : vector<32x512xf32>
    %21 = tpu.matmul %20, %18, %cst_18 {dimension_numbers = #tpu.dot_dimension_numbers<[1], [0], [0], [1], [0, 0, 1, 1], [], []>} : vector<32x4xf32>, vector<4x512xf32>, vector<32x512xf32> -> vector<32x512xf32>
    %22 = arith.addf %15, %21 : vector<32x512xf32>
    %c15_i32 = arith.constant 15 : i32
    %23 = tpu.dynamic_rotate %8 by %c15_i32 dim 1 : vector<4x512xf32>, i32 -> vector<4x512xf32>
    %24 = vector.broadcast %2 : vector<1x512xf32> to vector<4x512xf32>
    %25 = arith.mulf %24, %23 : vector<4x512xf32>
    %c2_19 = arith.constant 2 : index
    %c0_20 = arith.constant 0 : index
    %c0_21 = arith.constant 0 : index
    %26 = vector.load %arg3[%c2_19, %c0_20, %c0_21] : memref<9x32x4xf32, #tpu.memory_space<vmem>>, vector<1x32x4xf32>
    %27 = vector.shape_cast %26 : vector<1x32x4xf32> to vector<32x4xf32>
    %cst_22 = arith.constant dense<0.000000e+00> : vector<32x512xf32>
    %28 = tpu.matmul %27, %25, %cst_22 {dimension_numbers = #tpu.dot_dimension_numbers<[1], [0], [0], [1], [0, 0, 1, 1], [], []>} : vector<32x4xf32>, vector<4x512xf32>, vector<32x512xf32> -> vector<32x512xf32>
    %29 = arith.addf %22, %28 : vector<32x512xf32>
    %c1_i32 = arith.constant 1 : i32
    %30 = tpu.dynamic_rotate %8 by %c1_i32 dim 1 : vector<4x512xf32>, i32 -> vector<4x512xf32>
    %31 = vector.broadcast %3 : vector<1x512xf32> to vector<4x512xf32>
    %32 = arith.mulf %31, %30 : vector<4x512xf32>
    %c3_23 = arith.constant 3 : index
    %c0_24 = arith.constant 0 : index
    %c0_25 = arith.constant 0 : index
    %33 = vector.load %arg3[%c3_23, %c0_24, %c0_25] : memref<9x32x4xf32, #tpu.memory_space<vmem>>, vector<1x32x4xf32>
    %34 = vector.shape_cast %33 : vector<1x32x4xf32> to vector<32x4xf32>
    %cst_26 = arith.constant dense<0.000000e+00> : vector<32x512xf32>
    %35 = tpu.matmul %34, %32, %cst_26 {dimension_numbers = #tpu.dot_dimension_numbers<[1], [0], [0], [1], [0, 0, 1, 1], [], []>} : vector<32x4xf32>, vector<4x512xf32>, vector<32x512xf32> -> vector<32x512xf32>
    %36 = arith.addf %29, %35 : vector<32x512xf32>
    %c4 = arith.constant 4 : index
    %c0_27 = arith.constant 0 : index
    %c0_28 = arith.constant 0 : index
    %37 = vector.load %arg3[%c4, %c0_27, %c0_28] : memref<9x32x4xf32, #tpu.memory_space<vmem>>, vector<1x32x4xf32>
    %38 = vector.shape_cast %37 : vector<1x32x4xf32> to vector<32x4xf32>
    %cst_29 = arith.constant dense<0.000000e+00> : vector<32x512xf32>
    %39 = tpu.matmul %38, %8, %cst_29 {dimension_numbers = #tpu.dot_dimension_numbers<[1], [0], [0], [1], [0, 0, 1, 1], [], []>} : vector<32x4xf32>, vector<4x512xf32>, vector<32x512xf32> -> vector<32x512xf32>
    %40 = arith.addf %36, %39 : vector<32x512xf32>
    %c511_i32 = arith.constant 511 : i32
    %41 = tpu.dynamic_rotate %8 by %c511_i32 dim 1 : vector<4x512xf32>, i32 -> vector<4x512xf32>
    %42 = vector.broadcast %4 : vector<1x512xf32> to vector<4x512xf32>
    %43 = arith.mulf %42, %41 : vector<4x512xf32>
    %c5_30 = arith.constant 5 : index
    %c0_31 = arith.constant 0 : index
    %c0_32 = arith.constant 0 : index
    %44 = vector.load %arg3[%c5_30, %c0_31, %c0_32] : memref<9x32x4xf32, #tpu.memory_space<vmem>>, vector<1x32x4xf32>
    %45 = vector.shape_cast %44 : vector<1x32x4xf32> to vector<32x4xf32>
    %cst_33 = arith.constant dense<0.000000e+00> : vector<32x512xf32>
    %46 = tpu.matmul %45, %43, %cst_33 {dimension_numbers = #tpu.dot_dimension_numbers<[1], [0], [0], [1], [0, 0, 1, 1], [], []>} : vector<32x4xf32>, vector<4x512xf32>, vector<32x512xf32> -> vector<32x512xf32>
    %47 = arith.addf %40, %46 : vector<32x512xf32>
    %c497_i32 = arith.constant 497 : i32
    %48 = tpu.dynamic_rotate %8 by %c497_i32 dim 1 : vector<4x512xf32>, i32 -> vector<4x512xf32>
    %49 = vector.broadcast %5 : vector<1x512xf32> to vector<4x512xf32>
    %50 = arith.mulf %49, %48 : vector<4x512xf32>
    %c6_34 = arith.constant 6 : index
    %c0_35 = arith.constant 0 : index
    %c0_36 = arith.constant 0 : index
    %51 = vector.load %arg3[%c6_34, %c0_35, %c0_36] : memref<9x32x4xf32, #tpu.memory_space<vmem>>, vector<1x32x4xf32>
    %52 = vector.shape_cast %51 : vector<1x32x4xf32> to vector<32x4xf32>
    %cst_37 = arith.constant dense<0.000000e+00> : vector<32x512xf32>
    %53 = tpu.matmul %52, %50, %cst_37 {dimension_numbers = #tpu.dot_dimension_numbers<[1], [0], [0], [1], [0, 0, 1, 1], [], []>} : vector<32x4xf32>, vector<4x512xf32>, vector<32x512xf32> -> vector<32x512xf32>
    %54 = arith.addf %47, %53 : vector<32x512xf32>
    %c496_i32 = arith.constant 496 : i32
    %55 = tpu.dynamic_rotate %8 by %c496_i32 dim 1 : vector<4x512xf32>, i32 -> vector<4x512xf32>
    %56 = vector.broadcast %6 : vector<1x512xf32> to vector<4x512xf32>
    %57 = arith.mulf %56, %55 : vector<4x512xf32>
    %c7_38 = arith.constant 7 : index
    %c0_39 = arith.constant 0 : index
    %c0_40 = arith.constant 0 : index
    %58 = vector.load %arg3[%c7_38, %c0_39, %c0_40] : memref<9x32x4xf32, #tpu.memory_space<vmem>>, vector<1x32x4xf32>
    %59 = vector.shape_cast %58 : vector<1x32x4xf32> to vector<32x4xf32>
    %cst_41 = arith.constant dense<0.000000e+00> : vector<32x512xf32>
    %60 = tpu.matmul %59, %57, %cst_41 {dimension_numbers = #tpu.dot_dimension_numbers<[1], [0], [0], [1], [0, 0, 1, 1], [], []>} : vector<32x4xf32>, vector<4x512xf32>, vector<32x512xf32> -> vector<32x512xf32>
    %61 = arith.addf %54, %60 : vector<32x512xf32>
    %c495_i32 = arith.constant 495 : i32
    %62 = tpu.dynamic_rotate %8 by %c495_i32 dim 1 : vector<4x512xf32>, i32 -> vector<4x512xf32>
    %63 = vector.broadcast %7 : vector<1x512xf32> to vector<4x512xf32>
    %64 = arith.mulf %63, %62 : vector<4x512xf32>
    %c8_42 = arith.constant 8 : index
    %c0_43 = arith.constant 0 : index
    %c0_44 = arith.constant 0 : index
    %65 = vector.load %arg3[%c8_42, %c0_43, %c0_44] : memref<9x32x4xf32, #tpu.memory_space<vmem>>, vector<1x32x4xf32>
    %66 = vector.shape_cast %65 : vector<1x32x4xf32> to vector<32x4xf32>
    %cst_45 = arith.constant dense<0.000000e+00> : vector<32x512xf32>
    %67 = tpu.matmul %66, %64, %cst_45 {dimension_numbers = #tpu.dot_dimension_numbers<[1], [0], [0], [1], [0, 0, 1, 1], [], []>} : vector<32x4xf32>, vector<4x512xf32>, vector<32x512xf32> -> vector<32x512xf32>
    %68 = arith.addf %61, %67 : vector<32x512xf32>
    %69 = vector.broadcast %9 : vector<32x1xf32> to vector<32x512xf32>
    %70 = arith.addf %68, %69 : vector<32x512xf32>
    %c0_46 = arith.constant 0 : index
    %c1_47 = arith.constant 1 : index
    %71 = vector.load %arg7[%c0_46, %c1_47] : memref<32x10xf32, #tpu.memory_space<vmem>>, vector<32x1xf32>
    %c0_48 = arith.constant 0 : index
    %c2_49 = arith.constant 2 : index
    %72 = vector.load %arg7[%c0_48, %c2_49] : memref<32x10xf32, #tpu.memory_space<vmem>>, vector<32x1xf32>
    %cst_50 = arith.constant dense<0.000000e+00> : vector<32xf32>
    %73 = vector.multi_reduction <add>, %70, %cst_50 [1] : vector<32x512xf32> to vector<32xf32>
    %74 = vector.shape_cast %73 : vector<32xf32> to vector<32x1xf32>
    %cst_51 = arith.constant 0.001953125 : f32
    %75 = vector.broadcast %cst_51 : f32 to vector<32x1xf32>
    %76 = arith.mulf %74, %75 : vector<32x1xf32>
    %77 = arith.mulf %70, %70 : vector<32x512xf32>
    %cst_52 = arith.constant dense<0.000000e+00> : vector<32xf32>
    %78 = vector.multi_reduction <add>, %77, %cst_52 [1] : vector<32x512xf32> to vector<32xf32>
    %79 = vector.shape_cast %78 : vector<32xf32> to vector<32x1xf32>
    %cst_53 = arith.constant 0.001953125 : f32
    %80 = vector.broadcast %cst_53 : f32 to vector<32x1xf32>
    %81 = arith.mulf %79, %80 : vector<32x1xf32>
    %82 = arith.mulf %76, %76 : vector<32x1xf32>
    %83 = arith.subf %81, %82 : vector<32x1xf32>
    %cst_54 = arith.constant 9.99999974E-6 : f32
    %84 = vector.broadcast %cst_54 : f32 to vector<32x1xf32>
    %85 = arith.addf %83, %84 : vector<32x1xf32>
    %86 = math.rsqrt %85 : vector<32x1xf32>
    %87 = arith.mulf %71, %86 : vector<32x1xf32>
    %88 = arith.mulf %76, %87 : vector<32x1xf32>
    %89 = arith.subf %72, %88 : vector<32x1xf32>
    %90 = vector.broadcast %87 : vector<32x1xf32> to vector<32x512xf32>
    %91 = arith.mulf %70, %90 : vector<32x512xf32>
    %92 = vector.broadcast %89 : vector<32x1xf32> to vector<32x512xf32>
    %93 = arith.addf %91, %92 : vector<32x512xf32>
    %cst_55 = arith.constant 0.000000e+00 : f32
    %94 = vector.broadcast %cst_55 : f32 to vector<32x512xf32>
    %95 = arith.maximumf %93, %94 : vector<32x512xf32>
    %c0_56 = arith.constant 0 : index
    %c3_57 = arith.constant 3 : index
    %96 = vector.load %arg7[%c0_56, %c3_57] : memref<32x10xf32, #tpu.memory_space<vmem>>, vector<32x1xf32>
    %c17_i32_58 = arith.constant 17 : i32
    %97 = tpu.dynamic_rotate %95 by %c17_i32_58 dim 1 : vector<32x512xf32>, i32 -> vector<32x512xf32>
    %98 = vector.broadcast %0 : vector<1x512xf32> to vector<32x512xf32>
    %99 = arith.mulf %98, %97 : vector<32x512xf32>
    %c0_59 = arith.constant 0 : index
    %c0_60 = arith.constant 0 : index
    %c0_61 = arith.constant 0 : index
    %100 = vector.load %arg4[%c0_59, %c0_60, %c0_61] : memref<9x32x32xf32, #tpu.memory_space<vmem>>, vector<1x32x32xf32>
    %101 = vector.shape_cast %100 : vector<1x32x32xf32> to vector<32x32xf32>
    %cst_62 = arith.constant dense<0.000000e+00> : vector<32x512xf32>
    %102 = tpu.matmul %101, %99, %cst_62 {dimension_numbers = #tpu.dot_dimension_numbers<[1], [0], [0], [1], [0, 0, 1, 1], [], []>} : vector<32x32xf32>, vector<32x512xf32>, vector<32x512xf32> -> vector<32x512xf32>
    %c16_i32_63 = arith.constant 16 : i32
    %103 = tpu.dynamic_rotate %95 by %c16_i32_63 dim 1 : vector<32x512xf32>, i32 -> vector<32x512xf32>
    %104 = vector.broadcast %1 : vector<1x512xf32> to vector<32x512xf32>
    %105 = arith.mulf %104, %103 : vector<32x512xf32>
    %c1_64 = arith.constant 1 : index
    %c0_65 = arith.constant 0 : index
    %c0_66 = arith.constant 0 : index
    %106 = vector.load %arg4[%c1_64, %c0_65, %c0_66] : memref<9x32x32xf32, #tpu.memory_space<vmem>>, vector<1x32x32xf32>
    %107 = vector.shape_cast %106 : vector<1x32x32xf32> to vector<32x32xf32>
    %cst_67 = arith.constant dense<0.000000e+00> : vector<32x512xf32>
    %108 = tpu.matmul %107, %105, %cst_67 {dimension_numbers = #tpu.dot_dimension_numbers<[1], [0], [0], [1], [0, 0, 1, 1], [], []>} : vector<32x32xf32>, vector<32x512xf32>, vector<32x512xf32> -> vector<32x512xf32>
    %109 = arith.addf %102, %108 : vector<32x512xf32>
    %c15_i32_68 = arith.constant 15 : i32
    %110 = tpu.dynamic_rotate %95 by %c15_i32_68 dim 1 : vector<32x512xf32>, i32 -> vector<32x512xf32>
    %111 = vector.broadcast %2 : vector<1x512xf32> to vector<32x512xf32>
    %112 = arith.mulf %111, %110 : vector<32x512xf32>
    %c2_69 = arith.constant 2 : index
    %c0_70 = arith.constant 0 : index
    %c0_71 = arith.constant 0 : index
    %113 = vector.load %arg4[%c2_69, %c0_70, %c0_71] : memref<9x32x32xf32, #tpu.memory_space<vmem>>, vector<1x32x32xf32>
    %114 = vector.shape_cast %113 : vector<1x32x32xf32> to vector<32x32xf32>
    %cst_72 = arith.constant dense<0.000000e+00> : vector<32x512xf32>
    %115 = tpu.matmul %114, %112, %cst_72 {dimension_numbers = #tpu.dot_dimension_numbers<[1], [0], [0], [1], [0, 0, 1, 1], [], []>} : vector<32x32xf32>, vector<32x512xf32>, vector<32x512xf32> -> vector<32x512xf32>
    %116 = arith.addf %109, %115 : vector<32x512xf32>
    %c1_i32_73 = arith.constant 1 : i32
    %117 = tpu.dynamic_rotate %95 by %c1_i32_73 dim 1 : vector<32x512xf32>, i32 -> vector<32x512xf32>
    %118 = vector.broadcast %3 : vector<1x512xf32> to vector<32x512xf32>
    %119 = arith.mulf %118, %117 : vector<32x512xf32>
    %c3_74 = arith.constant 3 : index
    %c0_75 = arith.constant 0 : index
    %c0_76 = arith.constant 0 : index
    %120 = vector.load %arg4[%c3_74, %c0_75, %c0_76] : memref<9x32x32xf32, #tpu.memory_space<vmem>>, vector<1x32x32xf32>
    %121 = vector.shape_cast %120 : vector<1x32x32xf32> to vector<32x32xf32>
    %cst_77 = arith.constant dense<0.000000e+00> : vector<32x512xf32>
    %122 = tpu.matmul %121, %119, %cst_77 {dimension_numbers = #tpu.dot_dimension_numbers<[1], [0], [0], [1], [0, 0, 1, 1], [], []>} : vector<32x32xf32>, vector<32x512xf32>, vector<32x512xf32> -> vector<32x512xf32>
    %123 = arith.addf %116, %122 : vector<32x512xf32>
    %c4_78 = arith.constant 4 : index
    %c0_79 = arith.constant 0 : index
    %c0_80 = arith.constant 0 : index
    %124 = vector.load %arg4[%c4_78, %c0_79, %c0_80] : memref<9x32x32xf32, #tpu.memory_space<vmem>>, vector<1x32x32xf32>
    %125 = vector.shape_cast %124 : vector<1x32x32xf32> to vector<32x32xf32>
    %cst_81 = arith.constant dense<0.000000e+00> : vector<32x512xf32>
    %126 = tpu.matmul %125, %95, %cst_81 {dimension_numbers = #tpu.dot_dimension_numbers<[1], [0], [0], [1], [0, 0, 1, 1], [], []>} : vector<32x32xf32>, vector<32x512xf32>, vector<32x512xf32> -> vector<32x512xf32>
    %127 = arith.addf %123, %126 : vector<32x512xf32>
    %c511_i32_82 = arith.constant 511 : i32
    %128 = tpu.dynamic_rotate %95 by %c511_i32_82 dim 1 : vector<32x512xf32>, i32 -> vector<32x512xf32>
    %129 = vector.broadcast %4 : vector<1x512xf32> to vector<32x512xf32>
    %130 = arith.mulf %129, %128 : vector<32x512xf32>
    %c5_83 = arith.constant 5 : index
    %c0_84 = arith.constant 0 : index
    %c0_85 = arith.constant 0 : index
    %131 = vector.load %arg4[%c5_83, %c0_84, %c0_85] : memref<9x32x32xf32, #tpu.memory_space<vmem>>, vector<1x32x32xf32>
    %132 = vector.shape_cast %131 : vector<1x32x32xf32> to vector<32x32xf32>
    %cst_86 = arith.constant dense<0.000000e+00> : vector<32x512xf32>
    %133 = tpu.matmul %132, %130, %cst_86 {dimension_numbers = #tpu.dot_dimension_numbers<[1], [0], [0], [1], [0, 0, 1, 1], [], []>} : vector<32x32xf32>, vector<32x512xf32>, vector<32x512xf32> -> vector<32x512xf32>
    %134 = arith.addf %127, %133 : vector<32x512xf32>
    %c497_i32_87 = arith.constant 497 : i32
    %135 = tpu.dynamic_rotate %95 by %c497_i32_87 dim 1 : vector<32x512xf32>, i32 -> vector<32x512xf32>
    %136 = vector.broadcast %5 : vector<1x512xf32> to vector<32x512xf32>
    %137 = arith.mulf %136, %135 : vector<32x512xf32>
    %c6_88 = arith.constant 6 : index
    %c0_89 = arith.constant 0 : index
    %c0_90 = arith.constant 0 : index
    %138 = vector.load %arg4[%c6_88, %c0_89, %c0_90] : memref<9x32x32xf32, #tpu.memory_space<vmem>>, vector<1x32x32xf32>
    %139 = vector.shape_cast %138 : vector<1x32x32xf32> to vector<32x32xf32>
    %cst_91 = arith.constant dense<0.000000e+00> : vector<32x512xf32>
    %140 = tpu.matmul %139, %137, %cst_91 {dimension_numbers = #tpu.dot_dimension_numbers<[1], [0], [0], [1], [0, 0, 1, 1], [], []>} : vector<32x32xf32>, vector<32x512xf32>, vector<32x512xf32> -> vector<32x512xf32>
    %141 = arith.addf %134, %140 : vector<32x512xf32>
    %c496_i32_92 = arith.constant 496 : i32
    %142 = tpu.dynamic_rotate %95 by %c496_i32_92 dim 1 : vector<32x512xf32>, i32 -> vector<32x512xf32>
    %143 = vector.broadcast %6 : vector<1x512xf32> to vector<32x512xf32>
    %144 = arith.mulf %143, %142 : vector<32x512xf32>
    %c7_93 = arith.constant 7 : index
    %c0_94 = arith.constant 0 : index
    %c0_95 = arith.constant 0 : index
    %145 = vector.load %arg4[%c7_93, %c0_94, %c0_95] : memref<9x32x32xf32, #tpu.memory_space<vmem>>, vector<1x32x32xf32>
    %146 = vector.shape_cast %145 : vector<1x32x32xf32> to vector<32x32xf32>
    %cst_96 = arith.constant dense<0.000000e+00> : vector<32x512xf32>
    %147 = tpu.matmul %146, %144, %cst_96 {dimension_numbers = #tpu.dot_dimension_numbers<[1], [0], [0], [1], [0, 0, 1, 1], [], []>} : vector<32x32xf32>, vector<32x512xf32>, vector<32x512xf32> -> vector<32x512xf32>
    %148 = arith.addf %141, %147 : vector<32x512xf32>
    %c495_i32_97 = arith.constant 495 : i32
    %149 = tpu.dynamic_rotate %95 by %c495_i32_97 dim 1 : vector<32x512xf32>, i32 -> vector<32x512xf32>
    %150 = vector.broadcast %7 : vector<1x512xf32> to vector<32x512xf32>
    %151 = arith.mulf %150, %149 : vector<32x512xf32>
    %c8_98 = arith.constant 8 : index
    %c0_99 = arith.constant 0 : index
    %c0_100 = arith.constant 0 : index
    %152 = vector.load %arg4[%c8_98, %c0_99, %c0_100] : memref<9x32x32xf32, #tpu.memory_space<vmem>>, vector<1x32x32xf32>
    %153 = vector.shape_cast %152 : vector<1x32x32xf32> to vector<32x32xf32>
    %cst_101 = arith.constant dense<0.000000e+00> : vector<32x512xf32>
    %154 = tpu.matmul %153, %151, %cst_101 {dimension_numbers = #tpu.dot_dimension_numbers<[1], [0], [0], [1], [0, 0, 1, 1], [], []>} : vector<32x32xf32>, vector<32x512xf32>, vector<32x512xf32> -> vector<32x512xf32>
    %155 = arith.addf %148, %154 : vector<32x512xf32>
    %156 = vector.broadcast %96 : vector<32x1xf32> to vector<32x512xf32>
    %157 = arith.addf %155, %156 : vector<32x512xf32>
    %c0_102 = arith.constant 0 : index
    %c4_103 = arith.constant 4 : index
    %158 = vector.load %arg7[%c0_102, %c4_103] : memref<32x10xf32, #tpu.memory_space<vmem>>, vector<32x1xf32>
    %c0_104 = arith.constant 0 : index
    %c5_105 = arith.constant 5 : index
    %159 = vector.load %arg7[%c0_104, %c5_105] : memref<32x10xf32, #tpu.memory_space<vmem>>, vector<32x1xf32>
    %cst_106 = arith.constant dense<0.000000e+00> : vector<32xf32>
    %160 = vector.multi_reduction <add>, %157, %cst_106 [1] : vector<32x512xf32> to vector<32xf32>
    %161 = vector.shape_cast %160 : vector<32xf32> to vector<32x1xf32>
    %cst_107 = arith.constant 0.001953125 : f32
    %162 = vector.broadcast %cst_107 : f32 to vector<32x1xf32>
    %163 = arith.mulf %161, %162 : vector<32x1xf32>
    %164 = arith.mulf %157, %157 : vector<32x512xf32>
    %cst_108 = arith.constant dense<0.000000e+00> : vector<32xf32>
    %165 = vector.multi_reduction <add>, %164, %cst_108 [1] : vector<32x512xf32> to vector<32xf32>
    %166 = vector.shape_cast %165 : vector<32xf32> to vector<32x1xf32>
    %cst_109 = arith.constant 0.001953125 : f32
    %167 = vector.broadcast %cst_109 : f32 to vector<32x1xf32>
    %168 = arith.mulf %166, %167 : vector<32x1xf32>
    %169 = arith.mulf %163, %163 : vector<32x1xf32>
    %170 = arith.subf %168, %169 : vector<32x1xf32>
    %cst_110 = arith.constant 9.99999974E-6 : f32
    %171 = vector.broadcast %cst_110 : f32 to vector<32x1xf32>
    %172 = arith.addf %170, %171 : vector<32x1xf32>
    %173 = math.rsqrt %172 : vector<32x1xf32>
    %174 = arith.mulf %158, %173 : vector<32x1xf32>
    %175 = arith.mulf %163, %174 : vector<32x1xf32>
    %176 = arith.subf %159, %175 : vector<32x1xf32>
    %177 = vector.broadcast %174 : vector<32x1xf32> to vector<32x512xf32>
    %178 = arith.mulf %157, %177 : vector<32x512xf32>
    %179 = vector.broadcast %176 : vector<32x1xf32> to vector<32x512xf32>
    %180 = arith.addf %178, %179 : vector<32x512xf32>
    %cst_111 = arith.constant 0.000000e+00 : f32
    %181 = vector.broadcast %cst_111 : f32 to vector<32x512xf32>
    %182 = arith.maximumf %180, %181 : vector<32x512xf32>
    %c0_112 = arith.constant 0 : index
    %c6_113 = arith.constant 6 : index
    %183 = vector.load %arg7[%c0_112, %c6_113] : memref<32x10xf32, #tpu.memory_space<vmem>>, vector<32x1xf32>
    %c17_i32_114 = arith.constant 17 : i32
    %184 = tpu.dynamic_rotate %182 by %c17_i32_114 dim 1 : vector<32x512xf32>, i32 -> vector<32x512xf32>
    %185 = vector.broadcast %0 : vector<1x512xf32> to vector<32x512xf32>
    %186 = arith.mulf %185, %184 : vector<32x512xf32>
    %c0_115 = arith.constant 0 : index
    %c0_116 = arith.constant 0 : index
    %c0_117 = arith.constant 0 : index
    %187 = vector.load %arg5[%c0_115, %c0_116, %c0_117] : memref<9x32x32xf32, #tpu.memory_space<vmem>>, vector<1x32x32xf32>
    %188 = vector.shape_cast %187 : vector<1x32x32xf32> to vector<32x32xf32>
    %cst_118 = arith.constant dense<0.000000e+00> : vector<32x512xf32>
    %189 = tpu.matmul %188, %186, %cst_118 {dimension_numbers = #tpu.dot_dimension_numbers<[1], [0], [0], [1], [0, 0, 1, 1], [], []>} : vector<32x32xf32>, vector<32x512xf32>, vector<32x512xf32> -> vector<32x512xf32>
    %c16_i32_119 = arith.constant 16 : i32
    %190 = tpu.dynamic_rotate %182 by %c16_i32_119 dim 1 : vector<32x512xf32>, i32 -> vector<32x512xf32>
    %191 = vector.broadcast %1 : vector<1x512xf32> to vector<32x512xf32>
    %192 = arith.mulf %191, %190 : vector<32x512xf32>
    %c1_120 = arith.constant 1 : index
    %c0_121 = arith.constant 0 : index
    %c0_122 = arith.constant 0 : index
    %193 = vector.load %arg5[%c1_120, %c0_121, %c0_122] : memref<9x32x32xf32, #tpu.memory_space<vmem>>, vector<1x32x32xf32>
    %194 = vector.shape_cast %193 : vector<1x32x32xf32> to vector<32x32xf32>
    %cst_123 = arith.constant dense<0.000000e+00> : vector<32x512xf32>
    %195 = tpu.matmul %194, %192, %cst_123 {dimension_numbers = #tpu.dot_dimension_numbers<[1], [0], [0], [1], [0, 0, 1, 1], [], []>} : vector<32x32xf32>, vector<32x512xf32>, vector<32x512xf32> -> vector<32x512xf32>
    %196 = arith.addf %189, %195 : vector<32x512xf32>
    %c15_i32_124 = arith.constant 15 : i32
    %197 = tpu.dynamic_rotate %182 by %c15_i32_124 dim 1 : vector<32x512xf32>, i32 -> vector<32x512xf32>
    %198 = vector.broadcast %2 : vector<1x512xf32> to vector<32x512xf32>
    %199 = arith.mulf %198, %197 : vector<32x512xf32>
    %c2_125 = arith.constant 2 : index
    %c0_126 = arith.constant 0 : index
    %c0_127 = arith.constant 0 : index
    %200 = vector.load %arg5[%c2_125, %c0_126, %c0_127] : memref<9x32x32xf32, #tpu.memory_space<vmem>>, vector<1x32x32xf32>
    %201 = vector.shape_cast %200 : vector<1x32x32xf32> to vector<32x32xf32>
    %cst_128 = arith.constant dense<0.000000e+00> : vector<32x512xf32>
    %202 = tpu.matmul %201, %199, %cst_128 {dimension_numbers = #tpu.dot_dimension_numbers<[1], [0], [0], [1], [0, 0, 1, 1], [], []>} : vector<32x32xf32>, vector<32x512xf32>, vector<32x512xf32> -> vector<32x512xf32>
    %203 = arith.addf %196, %202 : vector<32x512xf32>
    %c1_i32_129 = arith.constant 1 : i32
    %204 = tpu.dynamic_rotate %182 by %c1_i32_129 dim 1 : vector<32x512xf32>, i32 -> vector<32x512xf32>
    %205 = vector.broadcast %3 : vector<1x512xf32> to vector<32x512xf32>
    %206 = arith.mulf %205, %204 : vector<32x512xf32>
    %c3_130 = arith.constant 3 : index
    %c0_131 = arith.constant 0 : index
    %c0_132 = arith.constant 0 : index
    %207 = vector.load %arg5[%c3_130, %c0_131, %c0_132] : memref<9x32x32xf32, #tpu.memory_space<vmem>>, vector<1x32x32xf32>
    %208 = vector.shape_cast %207 : vector<1x32x32xf32> to vector<32x32xf32>
    %cst_133 = arith.constant dense<0.000000e+00> : vector<32x512xf32>
    %209 = tpu.matmul %208, %206, %cst_133 {dimension_numbers = #tpu.dot_dimension_numbers<[1], [0], [0], [1], [0, 0, 1, 1], [], []>} : vector<32x32xf32>, vector<32x512xf32>, vector<32x512xf32> -> vector<32x512xf32>
    %210 = arith.addf %203, %209 : vector<32x512xf32>
    %c4_134 = arith.constant 4 : index
    %c0_135 = arith.constant 0 : index
    %c0_136 = arith.constant 0 : index
    %211 = vector.load %arg5[%c4_134, %c0_135, %c0_136] : memref<9x32x32xf32, #tpu.memory_space<vmem>>, vector<1x32x32xf32>
    %212 = vector.shape_cast %211 : vector<1x32x32xf32> to vector<32x32xf32>
    %cst_137 = arith.constant dense<0.000000e+00> : vector<32x512xf32>
    %213 = tpu.matmul %212, %182, %cst_137 {dimension_numbers = #tpu.dot_dimension_numbers<[1], [0], [0], [1], [0, 0, 1, 1], [], []>} : vector<32x32xf32>, vector<32x512xf32>, vector<32x512xf32> -> vector<32x512xf32>
    %214 = arith.addf %210, %213 : vector<32x512xf32>
    %c511_i32_138 = arith.constant 511 : i32
    %215 = tpu.dynamic_rotate %182 by %c511_i32_138 dim 1 : vector<32x512xf32>, i32 -> vector<32x512xf32>
    %216 = vector.broadcast %4 : vector<1x512xf32> to vector<32x512xf32>
    %217 = arith.mulf %216, %215 : vector<32x512xf32>
    %c5_139 = arith.constant 5 : index
    %c0_140 = arith.constant 0 : index
    %c0_141 = arith.constant 0 : index
    %218 = vector.load %arg5[%c5_139, %c0_140, %c0_141] : memref<9x32x32xf32, #tpu.memory_space<vmem>>, vector<1x32x32xf32>
    %219 = vector.shape_cast %218 : vector<1x32x32xf32> to vector<32x32xf32>
    %cst_142 = arith.constant dense<0.000000e+00> : vector<32x512xf32>
    %220 = tpu.matmul %219, %217, %cst_142 {dimension_numbers = #tpu.dot_dimension_numbers<[1], [0], [0], [1], [0, 0, 1, 1], [], []>} : vector<32x32xf32>, vector<32x512xf32>, vector<32x512xf32> -> vector<32x512xf32>
    %221 = arith.addf %214, %220 : vector<32x512xf32>
    %c497_i32_143 = arith.constant 497 : i32
    %222 = tpu.dynamic_rotate %182 by %c497_i32_143 dim 1 : vector<32x512xf32>, i32 -> vector<32x512xf32>
    %223 = vector.broadcast %5 : vector<1x512xf32> to vector<32x512xf32>
    %224 = arith.mulf %223, %222 : vector<32x512xf32>
    %c6_144 = arith.constant 6 : index
    %c0_145 = arith.constant 0 : index
    %c0_146 = arith.constant 0 : index
    %225 = vector.load %arg5[%c6_144, %c0_145, %c0_146] : memref<9x32x32xf32, #tpu.memory_space<vmem>>, vector<1x32x32xf32>
    %226 = vector.shape_cast %225 : vector<1x32x32xf32> to vector<32x32xf32>
    %cst_147 = arith.constant dense<0.000000e+00> : vector<32x512xf32>
    %227 = tpu.matmul %226, %224, %cst_147 {dimension_numbers = #tpu.dot_dimension_numbers<[1], [0], [0], [1], [0, 0, 1, 1], [], []>} : vector<32x32xf32>, vector<32x512xf32>, vector<32x512xf32> -> vector<32x512xf32>
    %228 = arith.addf %221, %227 : vector<32x512xf32>
    %c496_i32_148 = arith.constant 496 : i32
    %229 = tpu.dynamic_rotate %182 by %c496_i32_148 dim 1 : vector<32x512xf32>, i32 -> vector<32x512xf32>
    %230 = vector.broadcast %6 : vector<1x512xf32> to vector<32x512xf32>
    %231 = arith.mulf %230, %229 : vector<32x512xf32>
    %c7_149 = arith.constant 7 : index
    %c0_150 = arith.constant 0 : index
    %c0_151 = arith.constant 0 : index
    %232 = vector.load %arg5[%c7_149, %c0_150, %c0_151] : memref<9x32x32xf32, #tpu.memory_space<vmem>>, vector<1x32x32xf32>
    %233 = vector.shape_cast %232 : vector<1x32x32xf32> to vector<32x32xf32>
    %cst_152 = arith.constant dense<0.000000e+00> : vector<32x512xf32>
    %234 = tpu.matmul %233, %231, %cst_152 {dimension_numbers = #tpu.dot_dimension_numbers<[1], [0], [0], [1], [0, 0, 1, 1], [], []>} : vector<32x32xf32>, vector<32x512xf32>, vector<32x512xf32> -> vector<32x512xf32>
    %235 = arith.addf %228, %234 : vector<32x512xf32>
    %c495_i32_153 = arith.constant 495 : i32
    %236 = tpu.dynamic_rotate %182 by %c495_i32_153 dim 1 : vector<32x512xf32>, i32 -> vector<32x512xf32>
    %237 = vector.broadcast %7 : vector<1x512xf32> to vector<32x512xf32>
    %238 = arith.mulf %237, %236 : vector<32x512xf32>
    %c8_154 = arith.constant 8 : index
    %c0_155 = arith.constant 0 : index
    %c0_156 = arith.constant 0 : index
    %239 = vector.load %arg5[%c8_154, %c0_155, %c0_156] : memref<9x32x32xf32, #tpu.memory_space<vmem>>, vector<1x32x32xf32>
    %240 = vector.shape_cast %239 : vector<1x32x32xf32> to vector<32x32xf32>
    %cst_157 = arith.constant dense<0.000000e+00> : vector<32x512xf32>
    %241 = tpu.matmul %240, %238, %cst_157 {dimension_numbers = #tpu.dot_dimension_numbers<[1], [0], [0], [1], [0, 0, 1, 1], [], []>} : vector<32x32xf32>, vector<32x512xf32>, vector<32x512xf32> -> vector<32x512xf32>
    %242 = arith.addf %235, %241 : vector<32x512xf32>
    %243 = vector.broadcast %183 : vector<32x1xf32> to vector<32x512xf32>
    %244 = arith.addf %242, %243 : vector<32x512xf32>
    %c0_158 = arith.constant 0 : index
    %c7_159 = arith.constant 7 : index
    %245 = vector.load %arg7[%c0_158, %c7_159] : memref<32x10xf32, #tpu.memory_space<vmem>>, vector<32x1xf32>
    %c0_160 = arith.constant 0 : index
    %c8_161 = arith.constant 8 : index
    %246 = vector.load %arg7[%c0_160, %c8_161] : memref<32x10xf32, #tpu.memory_space<vmem>>, vector<32x1xf32>
    %cst_162 = arith.constant dense<0.000000e+00> : vector<32xf32>
    %247 = vector.multi_reduction <add>, %244, %cst_162 [1] : vector<32x512xf32> to vector<32xf32>
    %248 = vector.shape_cast %247 : vector<32xf32> to vector<32x1xf32>
    %cst_163 = arith.constant 0.001953125 : f32
    %249 = vector.broadcast %cst_163 : f32 to vector<32x1xf32>
    %250 = arith.mulf %248, %249 : vector<32x1xf32>
    %251 = arith.mulf %244, %244 : vector<32x512xf32>
    %cst_164 = arith.constant dense<0.000000e+00> : vector<32xf32>
    %252 = vector.multi_reduction <add>, %251, %cst_164 [1] : vector<32x512xf32> to vector<32xf32>
    %253 = vector.shape_cast %252 : vector<32xf32> to vector<32x1xf32>
    %cst_165 = arith.constant 0.001953125 : f32
    %254 = vector.broadcast %cst_165 : f32 to vector<32x1xf32>
    %255 = arith.mulf %253, %254 : vector<32x1xf32>
    %256 = arith.mulf %250, %250 : vector<32x1xf32>
    %257 = arith.subf %255, %256 : vector<32x1xf32>
    %cst_166 = arith.constant 9.99999974E-6 : f32
    %258 = vector.broadcast %cst_166 : f32 to vector<32x1xf32>
    %259 = arith.addf %257, %258 : vector<32x1xf32>
    %260 = math.rsqrt %259 : vector<32x1xf32>
    %261 = arith.mulf %245, %260 : vector<32x1xf32>
    %262 = arith.mulf %250, %261 : vector<32x1xf32>
    %263 = arith.subf %246, %262 : vector<32x1xf32>
    %264 = vector.broadcast %261 : vector<32x1xf32> to vector<32x512xf32>
    %265 = arith.mulf %244, %264 : vector<32x512xf32>
    %266 = vector.broadcast %263 : vector<32x1xf32> to vector<32x512xf32>
    %267 = arith.addf %265, %266 : vector<32x512xf32>
    %cst_167 = arith.constant 0.000000e+00 : f32
    %268 = vector.broadcast %cst_167 : f32 to vector<32x512xf32>
    %269 = arith.maximumf %267, %268 : vector<32x512xf32>
    %c0_168 = arith.constant 0 : index
    %c9 = arith.constant 9 : index
    %270 = vector.load %arg7[%c0_168, %c9] : memref<32x10xf32, #tpu.memory_space<vmem>>, vector<4x1xf32>
    %c17_i32_169 = arith.constant 17 : i32
    %271 = tpu.dynamic_rotate %269 by %c17_i32_169 dim 1 : vector<32x512xf32>, i32 -> vector<32x512xf32>
    %272 = vector.broadcast %0 : vector<1x512xf32> to vector<32x512xf32>
    %273 = arith.mulf %272, %271 : vector<32x512xf32>
    %c0_170 = arith.constant 0 : index
    %c0_171 = arith.constant 0 : index
    %c0_172 = arith.constant 0 : index
    %274 = vector.load %arg6[%c0_170, %c0_171, %c0_172] : memref<9x4x32xf32, #tpu.memory_space<vmem>>, vector<1x4x32xf32>
    %275 = vector.shape_cast %274 : vector<1x4x32xf32> to vector<4x32xf32>
    %cst_173 = arith.constant dense<0.000000e+00> : vector<4x512xf32>
    %276 = tpu.matmul %275, %273, %cst_173 {dimension_numbers = #tpu.dot_dimension_numbers<[1], [0], [0], [1], [0, 0, 1, 1], [], []>} : vector<4x32xf32>, vector<32x512xf32>, vector<4x512xf32> -> vector<4x512xf32>
    %c16_i32_174 = arith.constant 16 : i32
    %277 = tpu.dynamic_rotate %269 by %c16_i32_174 dim 1 : vector<32x512xf32>, i32 -> vector<32x512xf32>
    %278 = vector.broadcast %1 : vector<1x512xf32> to vector<32x512xf32>
    %279 = arith.mulf %278, %277 : vector<32x512xf32>
    %c1_175 = arith.constant 1 : index
    %c0_176 = arith.constant 0 : index
    %c0_177 = arith.constant 0 : index
    %280 = vector.load %arg6[%c1_175, %c0_176, %c0_177] : memref<9x4x32xf32, #tpu.memory_space<vmem>>, vector<1x4x32xf32>
    %281 = vector.shape_cast %280 : vector<1x4x32xf32> to vector<4x32xf32>
    %cst_178 = arith.constant dense<0.000000e+00> : vector<4x512xf32>
    %282 = tpu.matmul %281, %279, %cst_178 {dimension_numbers = #tpu.dot_dimension_numbers<[1], [0], [0], [1], [0, 0, 1, 1], [], []>} : vector<4x32xf32>, vector<32x512xf32>, vector<4x512xf32> -> vector<4x512xf32>
    %283 = arith.addf %276, %282 : vector<4x512xf32>
    %c15_i32_179 = arith.constant 15 : i32
    %284 = tpu.dynamic_rotate %269 by %c15_i32_179 dim 1 : vector<32x512xf32>, i32 -> vector<32x512xf32>
    %285 = vector.broadcast %2 : vector<1x512xf32> to vector<32x512xf32>
    %286 = arith.mulf %285, %284 : vector<32x512xf32>
    %c2_180 = arith.constant 2 : index
    %c0_181 = arith.constant 0 : index
    %c0_182 = arith.constant 0 : index
    %287 = vector.load %arg6[%c2_180, %c0_181, %c0_182] : memref<9x4x32xf32, #tpu.memory_space<vmem>>, vector<1x4x32xf32>
    %288 = vector.shape_cast %287 : vector<1x4x32xf32> to vector<4x32xf32>
    %cst_183 = arith.constant dense<0.000000e+00> : vector<4x512xf32>
    %289 = tpu.matmul %288, %286, %cst_183 {dimension_numbers = #tpu.dot_dimension_numbers<[1], [0], [0], [1], [0, 0, 1, 1], [], []>} : vector<4x32xf32>, vector<32x512xf32>, vector<4x512xf32> -> vector<4x512xf32>
    %290 = arith.addf %283, %289 : vector<4x512xf32>
    %c1_i32_184 = arith.constant 1 : i32
    %291 = tpu.dynamic_rotate %269 by %c1_i32_184 dim 1 : vector<32x512xf32>, i32 -> vector<32x512xf32>
    %292 = vector.broadcast %3 : vector<1x512xf32> to vector<32x512xf32>
    %293 = arith.mulf %292, %291 : vector<32x512xf32>
    %c3_185 = arith.constant 3 : index
    %c0_186 = arith.constant 0 : index
    %c0_187 = arith.constant 0 : index
    %294 = vector.load %arg6[%c3_185, %c0_186, %c0_187] : memref<9x4x32xf32, #tpu.memory_space<vmem>>, vector<1x4x32xf32>
    %295 = vector.shape_cast %294 : vector<1x4x32xf32> to vector<4x32xf32>
    %cst_188 = arith.constant dense<0.000000e+00> : vector<4x512xf32>
    %296 = tpu.matmul %295, %293, %cst_188 {dimension_numbers = #tpu.dot_dimension_numbers<[1], [0], [0], [1], [0, 0, 1, 1], [], []>} : vector<4x32xf32>, vector<32x512xf32>, vector<4x512xf32> -> vector<4x512xf32>
    %297 = arith.addf %290, %296 : vector<4x512xf32>
    %c4_189 = arith.constant 4 : index
    %c0_190 = arith.constant 0 : index
    %c0_191 = arith.constant 0 : index
    %298 = vector.load %arg6[%c4_189, %c0_190, %c0_191] : memref<9x4x32xf32, #tpu.memory_space<vmem>>, vector<1x4x32xf32>
    %299 = vector.shape_cast %298 : vector<1x4x32xf32> to vector<4x32xf32>
    %cst_192 = arith.constant dense<0.000000e+00> : vector<4x512xf32>
    %300 = tpu.matmul %299, %269, %cst_192 {dimension_numbers = #tpu.dot_dimension_numbers<[1], [0], [0], [1], [0, 0, 1, 1], [], []>} : vector<4x32xf32>, vector<32x512xf32>, vector<4x512xf32> -> vector<4x512xf32>
    %301 = arith.addf %297, %300 : vector<4x512xf32>
    %c511_i32_193 = arith.constant 511 : i32
    %302 = tpu.dynamic_rotate %269 by %c511_i32_193 dim 1 : vector<32x512xf32>, i32 -> vector<32x512xf32>
    %303 = vector.broadcast %4 : vector<1x512xf32> to vector<32x512xf32>
    %304 = arith.mulf %303, %302 : vector<32x512xf32>
    %c5_194 = arith.constant 5 : index
    %c0_195 = arith.constant 0 : index
    %c0_196 = arith.constant 0 : index
    %305 = vector.load %arg6[%c5_194, %c0_195, %c0_196] : memref<9x4x32xf32, #tpu.memory_space<vmem>>, vector<1x4x32xf32>
    %306 = vector.shape_cast %305 : vector<1x4x32xf32> to vector<4x32xf32>
    %cst_197 = arith.constant dense<0.000000e+00> : vector<4x512xf32>
    %307 = tpu.matmul %306, %304, %cst_197 {dimension_numbers = #tpu.dot_dimension_numbers<[1], [0], [0], [1], [0, 0, 1, 1], [], []>} : vector<4x32xf32>, vector<32x512xf32>, vector<4x512xf32> -> vector<4x512xf32>
    %308 = arith.addf %301, %307 : vector<4x512xf32>
    %c497_i32_198 = arith.constant 497 : i32
    %309 = tpu.dynamic_rotate %269 by %c497_i32_198 dim 1 : vector<32x512xf32>, i32 -> vector<32x512xf32>
    %310 = vector.broadcast %5 : vector<1x512xf32> to vector<32x512xf32>
    %311 = arith.mulf %310, %309 : vector<32x512xf32>
    %c6_199 = arith.constant 6 : index
    %c0_200 = arith.constant 0 : index
    %c0_201 = arith.constant 0 : index
    %312 = vector.load %arg6[%c6_199, %c0_200, %c0_201] : memref<9x4x32xf32, #tpu.memory_space<vmem>>, vector<1x4x32xf32>
    %313 = vector.shape_cast %312 : vector<1x4x32xf32> to vector<4x32xf32>
    %cst_202 = arith.constant dense<0.000000e+00> : vector<4x512xf32>
    %314 = tpu.matmul %313, %311, %cst_202 {dimension_numbers = #tpu.dot_dimension_numbers<[1], [0], [0], [1], [0, 0, 1, 1], [], []>} : vector<4x32xf32>, vector<32x512xf32>, vector<4x512xf32> -> vector<4x512xf32>
    %315 = arith.addf %308, %314 : vector<4x512xf32>
    %c496_i32_203 = arith.constant 496 : i32
    %316 = tpu.dynamic_rotate %269 by %c496_i32_203 dim 1 : vector<32x512xf32>, i32 -> vector<32x512xf32>
    %317 = vector.broadcast %6 : vector<1x512xf32> to vector<32x512xf32>
    %318 = arith.mulf %317, %316 : vector<32x512xf32>
    %c7_204 = arith.constant 7 : index
    %c0_205 = arith.constant 0 : index
    %c0_206 = arith.constant 0 : index
    %319 = vector.load %arg6[%c7_204, %c0_205, %c0_206] : memref<9x4x32xf32, #tpu.memory_space<vmem>>, vector<1x4x32xf32>
    %320 = vector.shape_cast %319 : vector<1x4x32xf32> to vector<4x32xf32>
    %cst_207 = arith.constant dense<0.000000e+00> : vector<4x512xf32>
    %321 = tpu.matmul %320, %318, %cst_207 {dimension_numbers = #tpu.dot_dimension_numbers<[1], [0], [0], [1], [0, 0, 1, 1], [], []>} : vector<4x32xf32>, vector<32x512xf32>, vector<4x512xf32> -> vector<4x512xf32>
    %322 = arith.addf %315, %321 : vector<4x512xf32>
    %c495_i32_208 = arith.constant 495 : i32
    %323 = tpu.dynamic_rotate %269 by %c495_i32_208 dim 1 : vector<32x512xf32>, i32 -> vector<32x512xf32>
    %324 = vector.broadcast %7 : vector<1x512xf32> to vector<32x512xf32>
    %325 = arith.mulf %324, %323 : vector<32x512xf32>
    %c8_209 = arith.constant 8 : index
    %c0_210 = arith.constant 0 : index
    %c0_211 = arith.constant 0 : index
    %326 = vector.load %arg6[%c8_209, %c0_210, %c0_211] : memref<9x4x32xf32, #tpu.memory_space<vmem>>, vector<1x4x32xf32>
    %327 = vector.shape_cast %326 : vector<1x4x32xf32> to vector<4x32xf32>
    %cst_212 = arith.constant dense<0.000000e+00> : vector<4x512xf32>
    %328 = tpu.matmul %327, %325, %cst_212 {dimension_numbers = #tpu.dot_dimension_numbers<[1], [0], [0], [1], [0, 0, 1, 1], [], []>} : vector<4x32xf32>, vector<32x512xf32>, vector<4x512xf32> -> vector<4x512xf32>
    %329 = arith.addf %322, %328 : vector<4x512xf32>
    %330 = vector.broadcast %270 : vector<4x1xf32> to vector<4x512xf32>
    %331 = arith.addf %329, %330 : vector<4x512xf32>
    %332 = arith.negf %331 : vector<4x512xf32>
    %333 = math.exp %332 : vector<4x512xf32>
    %cst_213 = arith.constant 1.000000e+00 : f32
    %334 = vector.broadcast %cst_213 : f32 to vector<4x512xf32>
    %335 = arith.addf %334, %333 : vector<4x512xf32>
    %336 = arith.divf %334, %335 : vector<4x512xf32>
    %c0_214 = arith.constant 0 : index
    %c0_215 = arith.constant 0 : index
    %337 = vector.load %arg8[%c0_214, %c0_215] : memref<4x512xf32, #tpu.memory_space<vmem>>, vector<4x512xf32>
    tpu.vector_store %arg8[%c0_214, %c0_215], %336 {strides = array<i32>} : memref<4x512xf32, #tpu.memory_space<vmem>>, vector<4x512xf32>,
    return
  }
  func.func @transform_0(%arg0: i32) -> (i32, i32) {
    %c0_i32 = arith.constant 0 : i32
    %c0_i32_0 = arith.constant 0 : i32
    %c0_i32_1 = arith.constant 0 : i32
    return %c0_i32, %c0_i32_0 : i32, i32
  }
  func.func @transform_1(%arg0: i32) -> (i32, i32) {
    %c0_i32 = arith.constant 0 : i32
    %c0_i32_0 = arith.constant 0 : i32
    %c0_i32_1 = arith.constant 0 : i32
    return %c0_i32, %c0_i32_0 : i32, i32
  }
  func.func @transform_2(%arg0: i32) -> (i32, i32, i32) {
    %c0_i32 = arith.constant 0 : i32
    %c0_i32_0 = arith.constant 0 : i32
    %c0_i32_1 = arith.constant 0 : i32
    %c0_i32_2 = arith.constant 0 : i32
    return %c0_i32, %c0_i32_0, %c0_i32_1 : i32, i32, i32
  }
  func.func @transform_3(%arg0: i32) -> (i32, i32, i32) {
    %c0_i32 = arith.constant 0 : i32
    %c0_i32_0 = arith.constant 0 : i32
    %c0_i32_1 = arith.constant 0 : i32
    %c0_i32_2 = arith.constant 0 : i32
    return %c0_i32, %c0_i32_0, %c0_i32_1 : i32, i32, i32
  }
  func.func @transform_4(%arg0: i32) -> (i32, i32, i32) {
    %c0_i32 = arith.constant 0 : i32
    %c0_i32_0 = arith.constant 0 : i32
    %c0_i32_1 = arith.constant 0 : i32
    %c0_i32_2 = arith.constant 0 : i32
    return %c0_i32, %c0_i32_0, %c0_i32_1 : i32, i32, i32
  }
  func.func @transform_5(%arg0: i32) -> (i32, i32, i32) {
    %c0_i32 = arith.constant 0 : i32
    %c0_i32_0 = arith.constant 0 : i32
    %c0_i32_1 = arith.constant 0 : i32
    %c0_i32_2 = arith.constant 0 : i32
    return %c0_i32, %c0_i32_0, %c0_i32_1 : i32, i32, i32
  }
  func.func @transform_6(%arg0: i32) -> (i32, i32) {
    %c0_i32 = arith.constant 0 : i32
    %c0_i32_0 = arith.constant 0 : i32
    %c0_i32_1 = arith.constant 0 : i32
    return %c0_i32, %c0_i32_0 : i32, i32
  }
  func.func @transform_7(%arg0: i32) -> (i32, i32) {
    %c0_i32 = arith.constant 0 : i32
    %c0_i32_0 = arith.constant 0 : i32
    %c0_i32_1 = arith.constant 0 : i32
    return %c0_i32, %c0_i32_0 : i32, i32
  }
}

</mosaic_0001>

<bundles_post_ra>
// kernel: encoder_cnn_large_forward.1
= control target key start
LH: loop header
LB: loop body
LE: loop exit
PB: predicated region body
PF: predicated region fallthrough
CT: control target
= control target key end

     0   :  { %s8333_s28 = smov 17   ;;  %s8334_s29 = smov 16   ;;  %v68_v23 = vlaneseq  ;;  %vm14365_vm2 = vcmask 1043456   ;;  %vm134_vm3 = vcmask 31744   ;;  %s14283_s0 = inlined_call_operand.vmem [shape: f32[4,512], index: 0, kind: input, shape index: {}]   ;;  %s14284_s1 = inlined_call_operand.vmem [shape: f32[9,512], index: 1, kind: input, shape index: {}]   ;;  %s14285_s2 = inlined_call_operand.vmem [shape: f32[9,32,4], index: 2, kind: input, shape index: {}]   ;;  %s14286_s6 = inlined_call_operand.vmem [shape: f32[32,10], index: 6, kind: input, shape index: {}]   ;;  %s14287_s3 = inlined_call_operand.vmem [shape: f32[9,32,32], index: 3, kind: input, shape index: {}]   ;;  %s14288_s4 = inlined_call_operand.vmem [shape: f32[9,32,32], index: 4, kind: input, shape index: {}]   ;;  %s14289_s5 = inlined_call_operand.vmem [shape: f32[9,4,32], index: 5, kind: input, shape index: {}]   ;;  %s14290_s7 = inlined_call_operand.vmem [shape: f32[4,512], index: 7, kind: output, shape index: {}]  }
   0x1   :  { %v8394_v0 = vld [vmem:[%s14283_s0 + $0x8] sm:$0xff]  ;;  %v8399_v1 = vld [vmem:[%s14283_s0] sm:$0xff]  ;;  %s8335_s0 = smov 15   ;;  %s8336_s30 = smov 1  }
   0x2   :  { %51 = vst [vmem:[#allocation1 + $0x10] ss:$2 sm:$0xff] %v8394_v0  ;;  %s8337_s8 = smov 127   ;;  %v8438_v27 = vand.u32 127, %v68_v23  ;;  %v7626_v44 = vld [vmem:[%s14285_s2 + $0x20] sm:$0xff]  ;;  %v7627_v56 = vld [vmem:[%s14285_s2 + $0x28] sm:$0xff] }
   0x3   :  { %49 = vst [vmem:[#allocation1] ss:$2 sm:$0xff] %v8399_v1  ;;  %v7619_v28 = vld [vmem:[%s14284_s1 + $0x1] ss:$8 sm:$0xf]  ;;  %s8338_s23 = smov 113  }
   0x4   :  { %14472 = vst [vmem:[#allocation2_spill] sm:$0xff] %v8438_v27  ;;  %v26_v29 = vld [vmem:[%s14284_s1] ss:$8 sm:$0xf]  ;;  %vm111_vm0 = vcmp.lt.s32.totalorder %v8438_v27, 16  ;;  %v8447_v30 = vperm.slane %v7619_v28, 0 }
   0x5   :  { %v8449_v31 = vperm.slane %v7619_v28, 1  ;;  %vm70_vm1 = vcmp.lt.s32.totalorder %v8438_v27, 17  ;;  %v8452_v35 = vperm.slane %v7619_v28, 2  ;;  %v8454_v36 = vperm.slane %v7619_v28, 3  ;;  %s8339_s13 = smov 112   ;;  %s8340_s22 = smov 111  }
   0x6   :  { %14473 = vst [vmem:[#allocation3_spill] sm:$0xff] %v8447_v30  ;;  %v8456_v37 = vperm.slane %v26_v29, 2  ;;  %v8483_v50 = vperm.slane %v26_v29, 1  ;;  %v8488_v53 = vperm.slane %v26_v29, 3  ;;  %v8490_v54 = vperm.slane %v26_v29, 0  ;;  %v89_v29 = vld [vmem:[%s14285_s2 + $0x8] sm:$0xff] }
   0x7   :  { %14474 = vst [vmem:[#allocation4_spill] sm:$0xff] %v8449_v31  ;;  %vm435_vm4 = vcmp.lt.s32.totalorder %v8438_v27, 15  ;;  %vm633_vm5 = vcmp.lt.s32.totalorder %v8438_v27, 1  ;;  %vm14369_vm6 = vcmp.lt.s32.totalorder %v8438_v27, 127  ;;  %vm14368_vm7 = vcmp.lt.s32.totalorder %v8438_v27, 113 }
   0x8   :  { %14475 = vst [vmem:[#allocation5_spill] sm:$0xff] %v8452_v35  ;;  %vm14367_vm8 = vcmp.lt.s32.totalorder %v8438_v27, 112  ;;  %vm14366_vm9 = vcmp.lt.s32.totalorder %v8438_v27, 111 }
   0x9   :  { %v54_v2 = vld.sshfl [vmem:[#allocation1 + $0x10] sm:$0xff pattern:$0x75316420]  ;;  %v55_v3 = vld.sshfl [vmem:[#allocation1 + $0x18] sm:$0xff pattern:$0x75316420] }
   0xa   :  { %94 = vst [vmem:[#allocation1 + $0x10] ss:$2 sm:$0xff] %v8394_v0  ;;  %v52_v4 = vld.sshfl [vmem:[#allocation1] sm:$0xff pattern:$0x75316420] }
   0xb   :  { %v53_v5 = vld.sshfl [vmem:[#allocation1 + $0x8] sm:$0xff pattern:$0x75316420]  ;;  %14476 = vst [vmem:[#allocation6_spill] sm:$0xff] %v8454_v36 }
   0xc   :  { %92 = vst [vmem:[#allocation1] ss:$2 sm:$0xff] %v8399_v1  ;;  %62 = vrot.lane.b32.xlu2 %v53_v5, %s8333_s28 }
   0xd   :  { %14477 = vst [vmem:[#allocation7_spill] sm:$0xff] %v8456_v37 }
   0xe   :  { %14478 = vst [vmem:[#allocation8_spill] sm:$0xff] %v8483_v50 }
   0xf   :  { %14479 = vst [vmem:[#allocation9_spill] sm:$0xff] %v8488_v53 }
  0x10   :  { %14480 = vst [vmem:[#allocation10_spill] sm:$0xff] %v8490_v54 }
  0x11   :  { %v98_v6 = vld.sshfl [vmem:[#allocation1 + $0x18] sm:$0xff pattern:$0x75316420]  ;;  %v97_v7 = vld.sshfl [vmem:[#allocation1 + $0x10] sm:$0xff pattern:$0x75316420] }
  0x12   :  { %109 = vrot.lane.b32.xlu1 %v98_v6, %s8334_s29  ;;  %418 = vst [vmem:[#allocation1 + $0x10] ss:$2 sm:$0xff] %v8394_v0 }
  0x13   :  { %v96_v8 = vld.sshfl [vmem:[#allocation1 + $0x8] sm:$0xff pattern:$0x75316420]  ;;  %v95_v9 = vld.sshfl [vmem:[#allocation1] sm:$0xff pattern:$0x75316420] }
  0x14   :  { %105 = vrot.lane.b32.xlu0 %v96_v8, %s8334_s29  ;;  %416 = vst [vmem:[#allocation1] ss:$2 sm:$0xff] %v8399_v1  ;;  %64 = vrot.lane.b32.xlu2 %v54_v2, %s8333_s28  ;;  %v7628_v2 = vld [vmem:[%s14285_s2 + $0x30] sm:$0xff] }
  0x19   :  { %v421_v10 = vld.sshfl [vmem:[#allocation1 + $0x10] sm:$0xff pattern:$0x75316420]  ;;  %v422_v11 = vld.sshfl [vmem:[#allocation1 + $0x18] sm:$0xff pattern:$0x75316420] }
  0x1a   :  { %103 = vrot.lane.b32.xlu1 %v95_v9, %s8334_s29  ;;  %616 = vst [vmem:[#allocation1 + $0x10] ss:$2 sm:$0xff] %v8394_v0 }
  0x1b   :  { %v420_v12 = vld.sshfl [vmem:[#allocation1 + $0x8] sm:$0xff pattern:$0x75316420]  ;;  %v419_v13 = vld.sshfl [vmem:[#allocation1] sm:$0xff pattern:$0x75316420] }
  0x1c   :  { %107 = vrot.lane.b32.xlu0 %v97_v7, %s8334_s29  ;;  %429 = vrot.lane.b32.xlu2 %v420_v12, %s8335_s0  ;;  %614 = vst [vmem:[#allocation1] ss:$2 sm:$0xff] %v8399_v1 }
  0x21   :  { %v619_v18 = vld.sshfl [vmem:[#allocation1 + $0x10] sm:$0xff pattern:$0x75316420]  ;;  %v620_v19 = vld.sshfl [vmem:[#allocation1 + $0x18] sm:$0xff pattern:$0x75316420] }
  0x22   :  { %60 = vrot.lane.b32.xlu1 %v52_v4, %s8333_s28  ;;  %819 = vst [vmem:[#allocation1 + $0x10] ss:$2 sm:$0xff] %v8394_v0 }
  0x23   :  { %v618_v14 = vld.sshfl [vmem:[#allocation1 + $0x8] sm:$0xff pattern:$0x75316420]  ;;  %v617_v15 = vld.sshfl [vmem:[#allocation1] sm:$0xff pattern:$0x75316420] }
  0x24   :  { %66 = vrot.lane.b32.xlu0 %v55_v3, %s8333_s28  ;;  %427 = vrot.lane.b32.xlu2 %v419_v13, %s8335_s0  ;;  %817 = vst [vmem:[#allocation1] ss:$2 sm:$0xff] %v8399_v1  ;;  %v7620_v3 = vld [vmem:[%s14284_s1 + $0x2] ss:$8 sm:$0xf] }
  0x25   :  { %v8524_v6 = vperm.slane %v7620_v3, 2  ;;  %v8528_v8 = vperm.slane %v7620_v3, 1  ;;  %v8532_v12 = vperm.slane %v7620_v3, 0  ;;  %v8534_v13 = vperm.slane %v7620_v3, 3  ;;  %v7695_v3 = vld [vmem:[%s14285_s2 + $0x68] sm:$0xff] }
  0x27   :  { %14481 = vst [vmem:[#allocation11_spill] sm:$0xff] %v8524_v6 }
  0x28   :  { %14482 = vst [vmem:[#allocation12_spill] sm:$0xff] %v8528_v8 }
  0x29   :  { %v8432_v20 = vld.sshfl [vmem:[#allocation1 + $0x10] sm:$0xff pattern:$0x75316420]  ;;  %v8434_v21 = vld.sshfl [vmem:[#allocation1 + $0x18] sm:$0xff pattern:$0x75316420] }
  0x2a   :  { %433 = vrot.lane.b32.xlu1 %v422_v11, %s8335_s0  ;;  %978 = vst [vmem:[#allocation1 + $0x10] ss:$2 sm:$0xff] %v8394_v0 }
  0x2b   :  { %v8421_v16 = vld.sshfl [vmem:[#allocation1] sm:$0xff pattern:$0x75316420]  ;;  %v8423_v17 = vld.sshfl [vmem:[#allocation1 + $0x8] sm:$0xff pattern:$0x75316420] }
  0x2c   :  { %431 = vrot.lane.b32.xlu0 %v421_v10, %s8335_s0  ;;  %976 = vst [vmem:[#allocation1] ss:$2 sm:$0xff] %v8399_v1  ;;  %631 = vrot.lane.b32.xlu2 %v620_v19, %s8336_s30 }
  0x2d   :  { %14483 = vst [vmem:[#allocation13_spill] sm:$0xff] %v8532_v12 }
  0x2e   :  { %14484 = vst [vmem:[#allocation14_spill] sm:$0xff] %v8534_v13 }
  0x31   :  { %v981_v24 = vld.sshfl [vmem:[#allocation1 + $0x10] sm:$0xff pattern:$0x75316420]  ;;  %v982_v11 = vld.sshfl [vmem:[#allocation1 + $0x18] sm:$0xff pattern:$0x75316420] }
  0x32   :  { %629 = vrot.lane.b32.xlu1 %v619_v18, %s8336_s30  ;;  %1176 = vst [vmem:[#allocation1 + $0x10] ss:$2 sm:$0xff] %v8394_v0  ;;  %v7629_v18 = vld [vmem:[%s14285_s2 + $0x38] sm:$0xff] }
  0x33   :  { %v980_v33 = vld.sshfl [vmem:[#allocation1 + $0x8] sm:$0xff pattern:$0x75316420]  ;;  %v979_v51 = vld.sshfl [vmem:[#allocation1] sm:$0xff pattern:$0x75316420] }
  0x34   :  { %627 = vrot.lane.b32.xlu0 %v618_v14, %s8336_s30  ;;  %1174 = vst [vmem:[#allocation1] ss:$2 sm:$0xff] %v8399_v1  ;;  %993 = vrot.lane.b32.xlu2 %v982_v11, %s8337_s8 }
  0x3a   :  { %991 = vrot.lane.b32.xlu1 %v981_v24, %s8337_s8 }
  0x3b   :  { %v1177_v28 = vld.sshfl [vmem:[#allocation1] sm:$0xff pattern:$0x75316420] }
  0x3c   :  { %625 = vrot.lane.b32.xlu0 %v617_v15, %s8336_s30 }
  0x42   :  { %989 = vrot.lane.b32.xlu1 %v980_v33, %s8337_s8  ;;  %v1179_v33 = vld.sshfl [vmem:[#allocation1 + $0x10] sm:$0xff pattern:$0x75316420] }
  0x43   :  { %1189 = vrot.lane.b32.xlu2 %v1179_v33, %s8338_s23 }
  0x44   :  { %987 = vrot.lane.b32.xlu0 %v979_v51, %s8337_s8 }
  0x4a   :  { %1185 = vrot.lane.b32.xlu1 %v1177_v28, %s8338_s23 }
  0x66   :  { %v63_v22 = vpop.permute.xlu2 %62 }
  0x6e   :  { %v65_v32 = vpop.permute.xlu2 %64 }
  0x6f   :  { %v72_v40 = vsel %vm70_vm1, %v63_v22, %v65_v32 }
  0x70   :  { %v86_v49 = vmul.f32 %v8456_v37, %v72_v40 }
  0x76   :  { %v430_v63 = vpop.permute.xlu2 %429 }
  0x7e   :  { %v428_v5 = vpop.permute.xlu2 %427 }
  0x7f   :  { %v438_v9 = vsel %vm435_vm4, %v428_v5, %v430_v63 }
  0x84   :  { %v110_v25 = vpop.permute.xlu1 %109 }
  0x86   :  { %v106_v26 = vpop.permute.xlu0 %105 }
  0x8c   :  { %v104_v34 = vpop.permute.xlu1 %103 }
  0x8d   :  { %v115_v38 = vsel %vm111_vm0, %v110_v25, %v104_v34  ;;  %v114_v39 = vsel %vm111_vm0, %v104_v34, %v106_v26  ;;  %v90_v34 = vld [vmem:[%s14285_s2 + $0x10] sm:$0xff] }
  0x8e   :  { %v108_v41 = vpop.permute.xlu0 %107  ;;  %v125_v42 = vmul.f32 %v8447_v30, %v115_v38  ;;  %v126_v43 = vmul.f32 %v8449_v31, %v114_v39  ;;  %v7621_v38 = vld [vmem:[%s14284_s1 + $0x3] ss:$8 sm:$0xf] }
  0x8f   :  { %v113_v45 = vsel %vm111_vm0, %v106_v26, %v108_v41  ;;  %v112_v46 = vsel %vm111_vm0, %v108_v41, %v110_v25  ;;  %v1180_v25 = vld.sshfl [vmem:[#allocation1 + $0x18] sm:$0xff pattern:$0x75316420]  ;;  %v88_v26 = vld [vmem:[%s14285_s2] sm:$0xff]  ;;  %v8586_v41 = vperm.slane %v7621_v38, 2  ;;  %v8602_v51 = vperm.slane %v7621_v38, 0 }
  0x90   :  { %7630 = vmatpush.msk.msra.mxu0 %vm14365_vm2, %v125_v42  ;;  %7635 = vmatpush.msk.msra.mxu1 %vm14365_vm2, %v126_v43  ;;  %v127_v47 = vmul.f32 %v8452_v35, %v113_v45  ;;  %v128_v48 = vmul.f32 %v8454_v36, %v112_v46  ;;  %1374 = vst [vmem:[#allocation1 + $0x10] ss:$2 sm:$0xff] %v8394_v0  ;;  %v8590_v43 = vperm.slane %v7621_v38, 1  ;;  %v1178_v46 = vld.sshfl [vmem:[#allocation1 + $0x8] sm:$0xff pattern:$0x75316420] }
  0x91   :  { %7631 = vmatmul.msk.f32.vlgmr.msra.gmra.mxu0 %vm134_vm3, %v7626_v44  ;;  %7636 = vmatmul.msk.f32.vlgmr.msra.gmra.mxu1 %vm134_vm3, %v7626_v44  ;;  %14485 = vst [vmem:[#allocation15_spill] sm:$0xff] %v8586_v41  ;;  %v9098_v36 = vld [vmem:[%s14286_s6] sm:$0xff]  ;;  %v7816_v35 = vld [vmem:[%s14285_s2 + $0x110] sm:$0xff] }
  0x92   :  { %7640 = vmatpush.msk.msra.mxu2 %vm14365_vm2, %v127_v47  ;;  %7645 = vmatpush.msk.msra.mxu3 %vm14365_vm2, %v128_v48  ;;  %14486 = vst [vmem:[#allocation16_spill] sm:$0xff] %v8590_v43  ;;  %v91_v47 = vld [vmem:[%s14285_s2 + $0x18] sm:$0xff] }
  0x93   :  { %7641 = vmatmul.msk.f32.vlgmr.msra.gmra.mxu2 %vm134_vm3, %v7626_v44  ;;  %7646 = vmatmul.msk.f32.vlgmr.msra.gmra.mxu3 %vm134_vm3, %v7626_v44  ;;  %1372 = vst [vmem:[#allocation1] ss:$2 sm:$0xff] %v8399_v1 }
  0x94   :  { %v61_v52 = vpop.permute.xlu1 %60  ;;  %7660 = vmatpush.msk.msrb.mxu2 %vm14365_vm2, %v86_v49  ;;  %1191 = vrot.lane.b32.xlu0 %v1180_v25, %s8338_s23  ;;  %14487 = vst [vmem:[#allocation17_spill] sm:$0xff] %v8602_v51 }
  0x95   :  { %v73_v55 = vsel %vm70_vm1, %v61_v52, %v63_v22  ;;  %v450_v22 = vmul.f32 %v8528_v8, %v438_v9  ;;  %1187 = vrot.lane.b32.xlu2 %v1178_v46, %s8338_s23  ;;  %v7814_v8 = vld [vmem:[%s14285_s2 + $0x100] sm:$0xff]  ;;  %14512 = vst [vmem:[#allocation42_spill] sm:$0xff] %v9098_v36 }
  0x96   :  { %v85_v57 = vmul.f32 %v8483_v50, %v73_v55  ;;  %v67_v58 = vpop.permute.xlu0 %66  ;;  %v632_v55 = vpop.permute.xlu2 %631  ;;  %v7815_v50 = vld [vmem:[%s14285_s2 + $0x108] sm:$0xff] }
  0x97   :  { %v71_v59 = vsel %vm70_vm1, %v65_v32, %v67_v58  ;;  %v74_v60 = vsel %vm70_vm1, %v67_v58, %v61_v52  ;;  %v1377_v45 = vld.sshfl [vmem:[#allocation1 + $0x10] sm:$0xff pattern:$0x75316420]  ;;  %v8604_v52 = vperm.slane %v7621_v38, 3 }
  0x98   :  { %7655 = vmatpush.msk.msrb.mxu1 %vm14365_vm2, %v85_v57  ;;  %v87_v61 = vmul.f32 %v8488_v53, %v71_v59  ;;  %v84_v62 = vmul.f32 %v8490_v54, %v74_v60  ;;  %v1378_v60 = vld.sshfl [vmem:[#allocation1 + $0x18] sm:$0xff pattern:$0x75316420] }
  0x99   :  { %7632 = vmatmul.msk.f32.gmra.mxu0 %vm134_vm3, %v7627_v56  ;;  %7637 = vmatmul.msk.f32.gmra.mxu1 %vm134_vm3, %v7627_v56  ;;  %14488 = vst [vmem:[#allocation18_spill] sm:$0xff] %v8604_v52 }
  0x9a   :  { %7665 = vmatpush.msk.msrb.mxu3 %vm14365_vm2, %v87_v61  ;;  %7650 = vmatpush.msk.msrb.mxu0 %vm14365_vm2, %v84_v62  ;;  %1572 = vst [vmem:[#allocation1 + $0x10] ss:$2 sm:$0xff] %v8394_v0  ;;  %v1376_v61 = vld.sshfl [vmem:[#allocation1 + $0x8] sm:$0xff pattern:$0x75316420]  ;;  %v7670_v62 = vld [vmem:[%s14285_s2 + $0x40] sm:$0xff] }
  0x9b   :  { %7642 = vmatmul.msk.f32.gmra.mxu2 %vm134_vm3, %v7627_v56  ;;  %7647 = vmatmul.msk.f32.gmra.mxu3 %vm134_vm3, %v7627_v56  ;;  %v7671_v0 = vld [vmem:[%s14285_s2 + $0x48] sm:$0xff] }
  0x9c   :  { %v434_v10 = vpop.permute.xlu1 %433  ;;  %7679 = vmatpush.msk.msra.mxu1 %vm14365_vm2, %v450_v22  ;;  %1387 = vrot.lane.b32.xlu0 %v1377_v45, %s8339_s13  ;;  %v7719_v45 = vld [vmem:[%s14285_s2 + $0x88] sm:$0xff] }
  0x9d   :  { %v439_v15 = vsel %vm435_vm4, %v434_v10, %v428_v5  ;;  %1389 = vrot.lane.b32.xlu1 %v1378_v60, %s8339_s13  ;;  %v7696_v5 = vld [vmem:[%s14285_s2 + $0x70] sm:$0xff] }
  0x9e   :  { %v432_v4 = vpop.permute.xlu0 %431  ;;  %v449_v23 = vmul.f32 %v8532_v12, %v439_v15  ;;  %v994_v9 = vpop.permute.xlu2 %993 }
  0x9f   :  { %v437_v7 = vsel %vm435_vm4, %v430_v63, %v432_v4  ;;  %v436_v14 = vsel %vm435_vm4, %v432_v4, %v434_v10  ;;  %v7694_v63 = vld [vmem:[%s14285_s2 + $0x60] sm:$0xff] }
  0xa0   :  { %v451_v19 = vmul.f32 %v8524_v6, %v437_v7  ;;  %v452_v24 = vmul.f32 %v8534_v13, %v436_v14  ;;  %7674 = vmatpush.msk.msra.mxu0 %vm14365_vm2, %v449_v23  ;;  %v7622_v7 = vld [vmem:[%s14284_s1 + $0x5] ss:$8 sm:$0xf] }
  0xa1   :  { %7633 = vmatmul.msk.f32.gmra.mxu0 %vm134_vm3, %v7628_v2  ;;  %7638 = vmatmul.msk.f32.gmra.mxu1 %vm134_vm3, %v7628_v2  ;;  %v8689_v11 = vperm.slane %v7622_v7, 2  ;;  %v8693_v15 = vperm.slane %v7622_v7, 1  ;;  %v8704_v25 = vperm.slane %v7622_v7, 3  ;;  %v1576_v28 = vld.sshfl [vmem:[#allocation1 + $0x18] sm:$0xff pattern:$0x75316420] }
  0xa2   :  { %7684 = vmatpush.msk.msra.mxu2 %vm14365_vm2, %v451_v19  ;;  %7689 = vmatpush.msk.msra.mxu3 %vm14365_vm2, %v452_v24  ;;  %v7697_v19 = vld [vmem:[%s14285_s2 + $0x78] sm:$0xff]  ;;  %v8702_v24 = vperm.slane %v7622_v7, 0 }
  0xa3   :  { %7643 = vmatmul.msk.f32.gmra.mxu2 %vm134_vm3, %v7628_v2  ;;  %7648 = vmatmul.msk.f32.gmra.mxu3 %vm134_vm3, %v7628_v2  ;;  %14489 = vst [vmem:[#allocation19_spill] sm:$0xff] %v8689_v11 }
  0xa4   :  { %v630_v39 = vpop.permute.xlu1 %629  ;;  %1385 = vrot.lane.b32.xlu0 %v1376_v61, %s8339_s13  ;;  %14490 = vst [vmem:[#allocation20_spill] sm:$0xff] %v8693_v15 }
  0xa5   :  { %v634_v56 = vsel %vm633_vm5, %v630_v39, %v632_v55  ;;  %14491 = vst [vmem:[#allocation21_spill] sm:$0xff] %v8702_v24 }
  0xa6   :  { %v628_v32 = vpop.permute.xlu0 %627  ;;  %v650_v59 = vmul.f32 %v8604_v52, %v634_v56  ;;  %14492 = vst [vmem:[#allocation22_spill] sm:$0xff] %v8704_v25  ;;  %v7720_v56 = vld [vmem:[%s14285_s2 + $0x90] sm:$0xff]  ;;  %v8341_v52 = vmov 0  }
  0xa7   :  { %v635_v42 = vsel %vm633_vm5, %v628_v32, %v630_v39  ;;  %8258 = vset.pattern.permute.xlu1 %v8341_v52  ;;  %8257 = vset.pattern.permute.xlu0 %v8341_v52 }
  0xa8   :  { %v649_v48 = vmul.f32 %v8586_v41, %v635_v42  ;;  %v9050_v41 = vld [vmem:[%s14286_s6 + $0x8] sm:$0xff]  ;;  %8256 = vset.pattern.permute.xlu2 %v8341_v52  ;;  %v9071_v52 = vld [vmem:[%s14286_s6 + $0x18] sm:$0xff] }
  0xa9   :  { %7634 = vmatmul.msk.f32.gmra.mxu0 %vm134_vm3, %v7629_v18  ;;  %7639 = vmatmul.msk.f32.gmra.mxu1 %vm134_vm3, %v7629_v18  ;;  %14505 = vst [vmem:[#allocation35_spill] sm:$0xff] %v9050_v41 }
  0xaa   :  { %14508 = vst [vmem:[#allocation38_spill] sm:$0xff] %v9071_v52 }
  0xab   :  { %7644 = vmatmul.msk.f32.gmra.mxu2 %vm134_vm3, %v7629_v18  ;;  %7649 = vmatmul.msk.f32.gmra.mxu3 %vm134_vm3, %v7629_v18 }
  0xac   :  { %v992_v4 = vpop.permute.xlu1 %991 }
  0xad   :  { %v996_v14 = vsel %vm14369_vm6, %v992_v4, %v994_v9 }
  0xae   :  { %v626_v40 = vpop.permute.xlu0 %625  ;;  %v1011_v22 = vmul.f32 %v8689_v11, %v996_v14 }
  0xaf   :  { %v636_v44 = vsel %vm633_vm5, %v626_v40, %v628_v32  ;;  %v637_v57 = vsel %vm633_vm5, %v632_v55, %v626_v40  ;;  %v7718_v40 = vld [vmem:[%s14285_s2 + $0x80] sm:$0xff] }
  0xb0   :  { %v648_v49 = vmul.f32 %v8590_v43, %v636_v44  ;;  %v647_v58 = vmul.f32 %v8602_v51, %v637_v57 }
  0xb1   :  { %7651 = vmatmul.msk.f32.vlgmr.msrb.gmra.mxu0 %vm134_vm3, %v88_v26  ;;  %7656 = vmatmul.msk.f32.vlgmr.msrb.gmra.mxu1 %vm134_vm3, %v88_v26 }
  0xb2   :  { %7703 = vmatpush.msk.msrb.mxu1 %vm14365_vm2, %v648_v49  ;;  %7698 = vmatpush.msk.msrb.mxu0 %vm14365_vm2, %v647_v58 }
  0xb3   :  { %7661 = vmatmul.msk.f32.vlgmr.msrb.gmra.mxu2 %vm134_vm3, %v88_v26  ;;  %7666 = vmatmul.msk.f32.vlgmr.msrb.gmra.mxu3 %vm134_vm3, %v88_v26 }
  0xb4   :  { %7708 = vmatpush.msk.msrb.mxu2 %vm14365_vm2, %v649_v48  ;;  %7713 = vmatpush.msk.msrb.mxu3 %vm14365_vm2, %v650_v59  ;;  %v990_v10 = vpop.permute.xlu1 %989  ;;  %v1190_v48 = vpop.permute.xlu2 %1189  ;;  %v7623_v59 = vld [vmem:[%s14284_s1 + $0x6] ss:$8 sm:$0xf] }
  0xb5   :  { %v997_v18 = vsel %vm14369_vm6, %v990_v10, %v992_v4  ;;  %v8787_v7 = vperm.slane %v7623_v59, 3 }
  0xb6   :  { %v1010_v23 = vmul.f32 %v8693_v15, %v997_v18  ;;  %v988_v26 = vpop.permute.xlu0 %987 }
  0xb7   :  { %v999_v32 = vsel %vm14369_vm6, %v994_v9, %v988_v26  ;;  %14496 = vst [vmem:[#allocation26_spill] sm:$0xff] %v8787_v7 }
  0xb9   :  { %7652 = vmatmul.msk.f32.gmra.mxu0 %vm134_vm3, %v89_v29  ;;  %7657 = vmatmul.msk.f32.gmra.mxu1 %vm134_vm3, %v89_v29 }
  0xbb   :  { %7662 = vmatmul.msk.f32.gmra.mxu2 %vm134_vm3, %v89_v29  ;;  %7667 = vmatmul.msk.f32.gmra.mxu3 %vm134_vm3, %v89_v29  ;;  %v998_v29 = vsel %vm14369_vm6, %v988_v26, %v990_v10  ;;  %v7742_v26 = vld [vmem:[%s14285_s2 + $0xa0] sm:$0xff] }
  0xbc   :  { %v1009_v33 = vmul.f32 %v8702_v24, %v998_v29  ;;  %v1186_v9 = vpop.permute.xlu1 %1185 }
  0xc1   :  { %7653 = vmatmul.msk.f32.gmra.mxu0 %vm134_vm3, %v90_v34  ;;  %7658 = vmatmul.msk.f32.gmra.mxu1 %vm134_vm3, %v90_v34 }
  0xc3   :  { %7663 = vmatmul.msk.f32.gmra.mxu2 %vm134_vm3, %v90_v34  ;;  %7668 = vmatmul.msk.f32.gmra.mxu3 %vm134_vm3, %v90_v34  ;;  %v1012_v34 = vmul.f32 %v8704_v25, %v999_v32 }
  0xc9   :  { %7654 = vmatmul.msk.f32.gmra.mxu0 %vm134_vm3, %v91_v47  ;;  %7659 = vmatmul.msk.f32.gmra.mxu1 %vm134_vm3, %v91_v47 }
  0xcb   :  { %7664 = vmatmul.msk.f32.gmra.mxu2 %vm134_vm3, %v91_v47  ;;  %7669 = vmatmul.msk.f32.gmra.mxu3 %vm134_vm3, %v91_v47 }
  0xd1   :  { %7675 = vmatmul.msk.f32.vlgmr.msra.gmra.mxu0 %vm134_vm3, %v7670_v62  ;;  %7680 = vmatmul.msk.f32.vlgmr.msra.gmra.mxu1 %vm134_vm3, %v7670_v62 }
  0xd2   :  { %7722 = vmatpush.msk.msra.mxu0 %vm14365_vm2, %v8421_v16  ;;  %7727 = vmatpush.msk.msra.mxu1 %vm14365_vm2, %v8423_v17  ;;  %v7672_v16 = vld [vmem:[%s14285_s2 + $0x50] sm:$0xff] }
  0xd3   :  { %7685 = vmatmul.msk.f32.vlgmr.msra.gmra.mxu2 %vm134_vm3, %v7670_v62  ;;  %7690 = vmatmul.msk.f32.vlgmr.msra.gmra.mxu3 %vm134_vm3, %v7670_v62  ;;  %v1575_v17 = vld.sshfl [vmem:[#allocation1 + $0x10] sm:$0xff pattern:$0x75316420]  ;;  %v8762_v62 = vperm.slane %v7623_v59, 2 }
  0xd4   :  { %7732 = vmatpush.msk.msra.mxu2 %vm14365_vm2, %v8432_v20  ;;  %7737 = vmatpush.msk.msra.mxu3 %vm14365_vm2, %v8434_v21  ;;  %v7673_v20 = vld [vmem:[%s14285_s2 + $0x58] sm:$0xff]  ;;  %v1375_v21 = vld.sshfl [vmem:[#allocation1] sm:$0xff pattern:$0x75316420] }
  0xd5   :  { %1585 = vrot.lane.b32.xlu1 %v1575_v17, %s8340_s22  ;;  %1383 = vrot.lane.b32.xlu2 %v1375_v21, %s8339_s13  ;;  %1570 = vst [vmem:[#allocation1] ss:$2 sm:$0xff] %v8399_v1 }
  0xd6   :  { %14493 = vst [vmem:[#allocation23_spill] sm:$0xff] %v8762_v62 }
  0xd9   :  { %7676 = vmatmul.msk.f32.gmra.mxu0 %vm134_vm3, %v7671_v0  ;;  %7681 = vmatmul.msk.f32.gmra.mxu1 %vm134_vm3, %v7671_v0 }
  0xdb   :  { %7686 = vmatmul.msk.f32.gmra.mxu2 %vm134_vm3, %v7671_v0  ;;  %7691 = vmatmul.msk.f32.gmra.mxu3 %vm134_vm3, %v7671_v0 }
  0xdc   :  { %v1574_v2 = vld.sshfl [vmem:[#allocation1 + $0x8] sm:$0xff pattern:$0x75316420]  ;;  %v1573_v1 = vld.sshfl [vmem:[#allocation1] sm:$0xff pattern:$0x75316420] }
  0xdd   :  { %1583 = vrot.lane.b32.xlu1 %v1574_v2, %s8340_s22  ;;  %1581 = vrot.lane.b32.xlu0 %v1573_v1, %s8340_s22 }
  0xde   :  { %1587 = vrot.lane.b32.xlu2 %v1576_v28, %s8340_s22 }
  0xe1   :  { %7677 = vmatmul.msk.f32.gmra.mxu0 %vm134_vm3, %v7672_v16  ;;  %7682 = vmatmul.msk.f32.gmra.mxu1 %vm134_vm3, %v7672_v16 }
  0xe3   :  { %7687 = vmatmul.msk.f32.gmra.mxu2 %vm134_vm3, %v7672_v16  ;;  %7692 = vmatmul.msk.f32.gmra.mxu3 %vm134_vm3, %v7672_v16  ;;  %v8766_v16 = vperm.slane %v7623_v59, 1 }
  0xe5   :  { %14494 = vst [vmem:[#allocation24_spill] sm:$0xff] %v8766_v16  ;;  %1775 = vperm.xlu1 %8258, %v9050_v41  }
  0xe6   :  { %1785 = vperm.xlu2 %8256, %v9071_v52  }
  0xe9   :  { %7678 = vmatmul.msk.f32.gmra.mxu0 %vm134_vm3, %v7673_v20  ;;  %7683 = vmatmul.msk.f32.gmra.mxu1 %vm134_vm3, %v7673_v20 }
  0xeb   :  { %7688 = vmatmul.msk.f32.gmra.mxu2 %vm134_vm3, %v7673_v20  ;;  %7693 = vmatmul.msk.f32.gmra.mxu3 %vm134_vm3, %v7673_v20 }
  0xee   :  { %1770 = vperm.xlu2 %8256, %v9098_v36  }
  0xef   :  { %v1188_v61 = vpop.permute.xlu2 %1187 }
  0xf0   :  { %v1195_v17 = vsel %vm14368_vm7, %v1188_v61, %v1190_v48  ;;  %v1196_v10 = vsel %vm14368_vm7, %v1186_v9, %v1188_v61 }
  0xf1   :  { %7699 = vmatmul.msk.f32.vlgmr.msrb.gmra.mxu0 %vm134_vm3, %v7694_v63  ;;  %7704 = vmatmul.msk.f32.vlgmr.msrb.gmra.mxu1 %vm134_vm3, %v7694_v63 }
  0xf2   :  { %7751 = vmatpush.msk.msrb.mxu1 %vm14365_vm2, %v1010_v23  ;;  %7746 = vmatpush.msk.msrb.mxu0 %vm14365_vm2, %v1009_v33 }
  0xf3   :  { %7709 = vmatmul.msk.f32.vlgmr.msrb.gmra.mxu2 %vm134_vm3, %v7694_v63  ;;  %7714 = vmatmul.msk.f32.vlgmr.msrb.gmra.mxu3 %vm134_vm3, %v7694_v63  ;;  %v7721_v63 = vld [vmem:[%s14285_s2 + $0x98] sm:$0xff] }
  0xf4   :  { %7756 = vmatpush.msk.msrb.mxu2 %vm14365_vm2, %v1011_v22  ;;  %7761 = vmatpush.msk.msrb.mxu3 %vm14365_vm2, %v1012_v34  ;;  %v7743_v34 = vld [vmem:[%s14285_s2 + $0xa8] sm:$0xff] }
  0xf9   :  { %7700 = vmatmul.msk.f32.gmra.mxu0 %vm134_vm3, %v7695_v3  ;;  %7705 = vmatmul.msk.f32.gmra.mxu1 %vm134_vm3, %v7695_v3 }
  0xfb   :  { %7710 = vmatmul.msk.f32.gmra.mxu2 %vm134_vm3, %v7695_v3  ;;  %7715 = vmatmul.msk.f32.gmra.mxu3 %vm134_vm3, %v7695_v3  ;;  %v1208_v3 = vmul.f32 %v8766_v16, %v1195_v17 }
 0x101   :  { %7701 = vmatmul.msk.f32.gmra.mxu0 %vm134_vm3, %v7696_v5  ;;  %7706 = vmatmul.msk.f32.gmra.mxu1 %vm134_vm3, %v7696_v5 }
 0x103   :  { %7711 = vmatmul.msk.f32.gmra.mxu2 %vm134_vm3, %v7696_v5  ;;  %7716 = vmatmul.msk.f32.gmra.mxu3 %vm134_vm3, %v7696_v5  ;;  %v8785_v5 = vperm.slane %v7623_v59, 0 }
 0x105   :  { %14495 = vst [vmem:[#allocation25_spill] sm:$0xff] %v8785_v5  ;;  %v1207_v18 = vmul.f32 %v8785_v5, %v1196_v10 }
 0x106   :  { %v1192_v60 = vpop.permute.xlu0 %1191 }
 0x107   :  { %v1194_v0 = vsel %vm14368_vm7, %v1190_v48, %v1192_v60  ;;  %v1197_v14 = vsel %vm14368_vm7, %v1192_v60, %v1186_v9 }
 0x108   :  { %v1209_v2 = vmul.f32 %v8762_v62, %v1194_v0 }
 0x109   :  { %7702 = vmatmul.msk.f32.gmra.mxu0 %vm134_vm3, %v7697_v19  ;;  %7707 = vmatmul.msk.f32.gmra.mxu1 %vm134_vm3, %v7697_v19 }
 0x10b   :  { %7712 = vmatmul.msk.f32.gmra.mxu2 %vm134_vm3, %v7697_v19  ;;  %7717 = vmatmul.msk.f32.gmra.mxu3 %vm134_vm3, %v7697_v19  ;;  %v1210_v19 = vmul.f32 %v8787_v7, %v1197_v14 }
 0x10e   :  { %v8721_v38 = vpop.f32.mrf.mxu0  ;;  %v8723_v39 = vpop.f32.mrf.mxu1 }
 0x10f   :  { %v1388_v59 = vpop.permute.xlu0 %1387 }
 0x111   :  { %7723 = vmatmul.msk.f32.vlgmr.msra.gmra.mxu0 %vm134_vm3, %v7718_v40  ;;  %7728 = vmatmul.msk.f32.vlgmr.msra.gmra.mxu1 %vm134_vm3, %v7718_v40 }
 0x112   :  { %7775 = vmatpush.msk.msra.mxu1 %vm14365_vm2, %v1208_v3  ;;  %7770 = vmatpush.msk.msra.mxu0 %vm14365_vm2, %v1207_v18 }
 0x113   :  { %7733 = vmatmul.msk.f32.vlgmr.msra.gmra.mxu2 %vm134_vm3, %v7718_v40  ;;  %7738 = vmatmul.msk.f32.vlgmr.msra.gmra.mxu3 %vm134_vm3, %v7718_v40 }
 0x114   :  { %7780 = vmatpush.msk.msra.mxu2 %vm14365_vm2, %v1209_v2  ;;  %7785 = vmatpush.msk.msra.mxu3 %vm14365_vm2, %v1210_v19 }
 0x116   :  { %v235_v42 = vpop.f32.mrf.mxu2  ;;  %v264_v44 = vpop.f32.mrf.mxu3 }
 0x117   :  { %v8735_v46 = vpop.f32.mrf.mxu0  ;;  %v8737_v47 = vpop.f32.mrf.mxu1 }
 0x118   :  { %v1386_v2 = vpop.permute.xlu0 %1385 }
 0x119   :  { %7724 = vmatmul.msk.f32.gmra.mxu0 %vm134_vm3, %v7719_v45  ;;  %7729 = vmatmul.msk.f32.gmra.mxu1 %vm134_vm3, %v7719_v45  ;;  %v1393_v14 = vsel %vm14367_vm8, %v1386_v2, %v1388_v59 }
 0x11b   :  { %7734 = vmatmul.msk.f32.gmra.mxu2 %vm134_vm3, %v7719_v45  ;;  %7739 = vmatmul.msk.f32.gmra.mxu3 %vm134_vm3, %v7719_v45 }
 0x11e   :  { %v8743_v49 = vpop.f32.mrf.mxu2  ;;  %v8745_v55 = vpop.f32.mrf.mxu3 }
 0x11f   :  { %v8750_v57 = vpop.f32.mrf.mxu0  ;;  %v8752_v58 = vpop.f32.mrf.mxu1 }
 0x121   :  { %7725 = vmatmul.msk.f32.gmra.mxu0 %vm134_vm3, %v7720_v56  ;;  %7730 = vmatmul.msk.f32.gmra.mxu1 %vm134_vm3, %v7720_v56 }
 0x123   :  { %7735 = vmatmul.msk.f32.gmra.mxu2 %vm134_vm3, %v7720_v56  ;;  %7740 = vmatmul.msk.f32.gmra.mxu3 %vm134_vm3, %v7720_v56 }
 0x126   :  { %v8770_v20 = vpop.f32.mrf.mxu2  ;;  %v8772_v21 = vpop.f32.mrf.mxu3 }
 0x127   :  { %v8779_v1 = vpop.f32.mrf.mxu0  ;;  %v8781_v4 = vpop.f32.mrf.mxu1 }
 0x129   :  { %7726 = vmatmul.msk.f32.gmra.mxu0 %vm134_vm3, %v7721_v63  ;;  %7731 = vmatmul.msk.f32.gmra.mxu1 %vm134_vm3, %v7721_v63 }
 0x12b   :  { %7736 = vmatmul.msk.f32.gmra.mxu2 %vm134_vm3, %v7721_v63  ;;  %7741 = vmatmul.msk.f32.gmra.mxu3 %vm134_vm3, %v7721_v63 }
 0x12e   :  { %v8801_v22 = vpop.f32.mrf.mxu2  ;;  %v8803_v23 = vpop.f32.mrf.mxu3 }
 0x12f   :  { %v8808_v28 = vpop.f32.mrf.mxu0  ;;  %v8810_v29 = vpop.f32.mrf.mxu1 }
 0x131   :  { %7747 = vmatmul.msk.f32.vlgmr.msrb.gmra.mxu0 %vm134_vm3, %v7742_v26  ;;  %7752 = vmatmul.msk.f32.vlgmr.msrb.gmra.mxu1 %vm134_vm3, %v7742_v26 }
 0x133   :  { %7757 = vmatmul.msk.f32.vlgmr.msrb.gmra.mxu2 %vm134_vm3, %v7742_v26  ;;  %7762 = vmatmul.msk.f32.vlgmr.msrb.gmra.mxu3 %vm134_vm3, %v7742_v26  ;;  %v7745_v26 = vld [vmem:[%s14285_s2 + $0xb8] sm:$0xff] }
 0x136   :  { %v375_v32 = vpop.f32.mrf.mxu2  ;;  %v404_v33 = vpop.f32.mrf.mxu3 }
 0x137   :  { %v8819_v40 = vadd.f32 %v375_v32, %v235_v42  ;;  %v8821_v45 = vadd.f32 %v404_v33, %v264_v44  ;;  %v8823_v48 = vpop.f32.mrf.mxu0  ;;  %v8825_v56 = vpop.f32.mrf.mxu1  ;;  %v7744_v42 = vld [vmem:[%s14285_s2 + $0xb0] sm:$0xff] }
 0x139   :  { %7748 = vmatmul.msk.f32.gmra.mxu0 %vm134_vm3, %v7743_v34  ;;  %7753 = vmatmul.msk.f32.gmra.mxu1 %vm134_vm3, %v7743_v34 }
 0x13b   :  { %7758 = vmatmul.msk.f32.gmra.mxu2 %vm134_vm3, %v7743_v34  ;;  %7763 = vmatmul.msk.f32.gmra.mxu3 %vm134_vm3, %v7743_v34 }
 0x13e   :  { %v378_v60 = vpop.f32.mrf.mxu2  ;;  %v407_v61 = vpop.f32.mrf.mxu3 }
 0x13f   :  { %v8835_v44 = vadd.f32 %v378_v60, %v8743_v49  ;;  %v8838_v0 = vadd.f32 %v407_v61, %v8745_v55  ;;  %v8840_v17 = vpop.f32.mrf.mxu0  ;;  %v8842_v63 = vpop.f32.mrf.mxu1  ;;  %v7624_v49 = vld [vmem:[%s14284_s1 + $0x7] ss:$8 sm:$0xf] }
 0x140   :  { %v1390_v55 = vpop.permute.xlu1 %1389  ;;  %v8852_v3 = vperm.slane %v7624_v49, 2  ;;  %v8856_v10 = vperm.slane %v7624_v49, 1  ;;  %v8879_v7 = vperm.slane %v7624_v49, 3 }
 0x141   :  { %7749 = vmatmul.msk.f32.gmra.mxu0 %vm134_vm3, %v7744_v42  ;;  %7754 = vmatmul.msk.f32.gmra.mxu1 %vm134_vm3, %v7744_v42  ;;  %v1392_v9 = vsel %vm14367_vm8, %v1388_v59, %v1390_v55  ;;  %v8877_v59 = vperm.slane %v7624_v49, 0 }
 0x142   :  { %14497 = vst [vmem:[#allocation27_spill] sm:$0xff] %v8852_v3  ;;  %v1407_v32 = vmul.f32 %v8852_v3, %v1392_v9  ;;  %v1406_v33 = vmul.f32 %v8856_v10, %v1393_v14  ;;  %v1384_v9 = vpop.permute.xlu2 %1383 }
 0x143   :  { %7759 = vmatmul.msk.f32.gmra.mxu2 %vm134_vm3, %v7744_v42  ;;  %7764 = vmatmul.msk.f32.gmra.mxu3 %vm134_vm3, %v7744_v42  ;;  %14498 = vst [vmem:[#allocation28_spill] sm:$0xff] %v8856_v10 }
 0x144   :  { %7799 = vmatpush.msk.msrb.mxu1 %vm14365_vm2, %v1406_v33  ;;  %7804 = vmatpush.msk.msrb.mxu2 %vm14365_vm2, %v1407_v32  ;;  %14499 = vst [vmem:[#allocation29_spill] sm:$0xff] %v8877_v59 }
 0x145   :  { %14500 = vst [vmem:[#allocation30_spill] sm:$0xff] %v8879_v7 }
 0x146   :  { %v381_v18 = vpop.f32.mrf.mxu2  ;;  %v410_v19 = vpop.f32.mrf.mxu3 }
 0x147   :  { %v8866_v34 = vadd.f32 %v381_v18, %v8770_v20  ;;  %v8869_v60 = vadd.f32 %v410_v19, %v8772_v21  ;;  %v8871_v61 = vpop.f32.mrf.mxu0  ;;  %v8873_v42 = vpop.f32.mrf.mxu1  ;;  %v1394_v20 = vsel %vm14367_vm8, %v1384_v9, %v1386_v2  ;;  %v1395_v21 = vsel %vm14367_vm8, %v1390_v55, %v1384_v9  ;;  %v7766_v2 = vld [vmem:[%s14285_s2 + $0xc0] sm:$0xff] }
 0x148   :  { %v1405_v14 = vmul.f32 %v8877_v59, %v1394_v20  ;;  %v1408_v18 = vmul.f32 %v8879_v7, %v1395_v21  ;;  %v7769_v59 = vld [vmem:[%s14285_s2 + $0xd8] sm:$0xff] }
 0x149   :  { %7750 = vmatmul.msk.f32.gmra.mxu0 %vm134_vm3, %v7745_v26  ;;  %7755 = vmatmul.msk.f32.gmra.mxu1 %vm134_vm3, %v7745_v26 }
 0x14a   :  { %7809 = vmatpush.msk.msrb.mxu3 %vm14365_vm2, %v1408_v18  ;;  %7794 = vmatpush.msk.msrb.mxu0 %vm14365_vm2, %v1405_v14 }
 0x14b   :  { %7760 = vmatmul.msk.f32.gmra.mxu2 %vm134_vm3, %v7745_v26  ;;  %7765 = vmatmul.msk.f32.gmra.mxu3 %vm134_vm3, %v7745_v26 }
 0x14e   :  { %v384_v49 = vpop.f32.mrf.mxu2  ;;  %v413_v19 = vpop.f32.mrf.mxu3 }
 0x14f   :  { %v8897_v55 = vadd.f32 %v384_v49, %v8801_v22  ;;  %v8900_v32 = vadd.f32 %v413_v19, %v8803_v23  ;;  %v8902_v33 = vpop.f32.mrf.mxu0  ;;  %v8904_v9 = vpop.f32.mrf.mxu1  ;;  %v7767_v22 = vld [vmem:[%s14285_s2 + $0xc8] sm:$0xff] }
 0x150   :  { %v1586_v49 = vpop.permute.xlu1 %1585 }
 0x151   :  { %7771 = vmatmul.msk.f32.vlgmr.msra.gmra.mxu0 %vm134_vm3, %v7766_v2  ;;  %7776 = vmatmul.msk.f32.vlgmr.msra.gmra.mxu1 %vm134_vm3, %v7766_v2 }
 0x153   :  { %7781 = vmatmul.msk.f32.vlgmr.msra.gmra.mxu2 %vm134_vm3, %v7766_v2  ;;  %7786 = vmatmul.msk.f32.vlgmr.msra.gmra.mxu3 %vm134_vm3, %v7766_v2 }
 0x156   :  { %v557_v26 = vpop.f32.mrf.mxu2  ;;  %v586_v20 = vpop.f32.mrf.mxu3 }
 0x157   :  { %v8914_v23 = vadd.f32 %v557_v26, %v8819_v40  ;;  %v8917_v21 = vadd.f32 %v586_v20, %v8821_v45  ;;  %v8919_v14 = vpop.f32.mrf.mxu0  ;;  %v8921_v18 = vpop.f32.mrf.mxu1  ;;  %v7768_v40 = vld [vmem:[%s14285_s2 + $0xd0] sm:$0xff] }
 0x158   :  { %v1584_v24 = vpop.permute.xlu1 %1583 }
 0x159   :  { %7772 = vmatmul.msk.f32.gmra.mxu0 %vm134_vm3, %v7767_v22  ;;  %7777 = vmatmul.msk.f32.gmra.mxu1 %vm134_vm3, %v7767_v22 }
 0x15b   :  { %7782 = vmatmul.msk.f32.gmra.mxu2 %vm134_vm3, %v7767_v22  ;;  %7787 = vmatmul.msk.f32.gmra.mxu3 %vm134_vm3, %v7767_v22  ;;  %v1588_v22 = vpop.permute.xlu2 %1587 }
 0x15e   :  { %v560_v19 = vpop.f32.mrf.mxu2  ;;  %v589_v2 = vpop.f32.mrf.mxu3 }
 0x15f   :  { %v8931_v45 = vadd.f32 %v560_v19, %v8835_v44  ;;  %v8934_v26 = vadd.f32 %v589_v2, %v8838_v0  ;;  %v8936_v20 = vpop.f32.mrf.mxu0  ;;  %v8938_v7 = vpop.f32.mrf.mxu1  ;;  %v7625_v44 = vld [vmem:[%s14284_s1 + $0x20] ss:$8 sm:$0xf]  ;;  %v1590_v19 = vsel %vm14366_vm9, %v1586_v49, %v1588_v22 }
 0x160   :  { %v8948_v0 = vperm.slane %v7625_v44, 2  ;;  %v8956_v10 = vperm.slane %v7625_v44, 1  ;;  %v8969_v11 = vperm.slane %v7625_v44, 0  ;;  %v8971_v25 = vperm.slane %v7625_v44, 3 }
 0x161   :  { %7773 = vmatmul.msk.f32.gmra.mxu0 %vm134_vm3, %v7768_v40  ;;  %7778 = vmatmul.msk.f32.gmra.mxu1 %vm134_vm3, %v7768_v40 }
 0x162   :  { %14501 = vst [vmem:[#allocation31_spill] sm:$0xff] %v8948_v0 }
 0x163   :  { %7783 = vmatmul.msk.f32.gmra.mxu2 %vm134_vm3, %v7768_v40  ;;  %7788 = vmatmul.msk.f32.gmra.mxu3 %vm134_vm3, %v7768_v40  ;;  %v1605_v40 = vmul.f32 %v8948_v0, %v1590_v19  ;;  %14502 = vst [vmem:[#allocation32_spill] sm:$0xff] %v8956_v10  ;;  %v7793_v0 = vld [vmem:[%s14285_s2 + $0xf8] sm:$0xff] }
 0x164   :  { %14503 = vst [vmem:[#allocation33_spill] sm:$0xff] %v8969_v11 }
 0x165   :  { %7828 = vmatpush.msk.msra.mxu2 %vm14365_vm2, %v1605_v40  ;;  %14504 = vst [vmem:[#allocation34_spill] sm:$0xff] %v8971_v25 }
 0x166   :  { %v563_v2 = vpop.f32.mrf.mxu2  ;;  %v592_v3 = vpop.f32.mrf.mxu3 }
 0x167   :  { %v8959_v5 = vadd.f32 %v563_v2, %v8866_v34  ;;  %v8962_v16 = vadd.f32 %v592_v3, %v8869_v60  ;;  %v8964_v62 = vpop.f32.mrf.mxu0  ;;  %v8966_v15 = vpop.f32.mrf.mxu1  ;;  %v1591_v34 = vsel %vm14366_vm9, %v1584_v24, %v1586_v49 }
 0x168   :  { %v1582_v3 = vpop.permute.xlu0 %1581  ;;  %v1604_v60 = vmul.f32 %v8956_v10, %v1591_v34 }
 0x169   :  { %7774 = vmatmul.msk.f32.gmra.mxu0 %vm134_vm3, %v7769_v59  ;;  %7779 = vmatmul.msk.f32.gmra.mxu1 %vm134_vm3, %v7769_v59  ;;  %v1592_v19 = vsel %vm14366_vm9, %v1582_v3, %v1584_v24  ;;  %v1593_v2 = vsel %vm14366_vm9, %v1588_v22, %v1582_v3  ;;  %v7790_v24 = vld [vmem:[%s14285_s2 + $0xe0] sm:$0xff] }
 0x16a   :  { %v1603_v44 = vmul.f32 %v8969_v11, %v1592_v19  ;;  %v1606_v40 = vmul.f32 %v8971_v25, %v1593_v2  ;;  %7823 = vmatpush.msk.msra.mxu1 %vm14365_vm2, %v1604_v60 }
 0x16b   :  { %7784 = vmatmul.msk.f32.gmra.mxu2 %vm134_vm3, %v7769_v59  ;;  %7789 = vmatmul.msk.f32.gmra.mxu3 %vm134_vm3, %v7769_v59 }
 0x16c   :  { %7833 = vmatpush.msk.msra.mxu3 %vm14365_vm2, %v1606_v40  ;;  %7818 = vmatpush.msk.msra.mxu0 %vm14365_vm2, %v1603_v44 }
 0x16e   :  { %v566_v49 = vpop.f32.mrf.mxu2  ;;  %v595_v34 = vpop.f32.mrf.mxu3 }
 0x16f   :  { %v8993_v22 = vadd.f32 %v566_v49, %v8897_v55  ;;  %v8996_v59 = vadd.f32 %v595_v34, %v8900_v32  ;;  %v8998_v3 = vpop.f32.mrf.mxu0  ;;  %v9000_v19 = vpop.f32.mrf.mxu1  ;;  %v7791_v55 = vld [vmem:[%s14285_s2 + $0xe8] sm:$0xff]  ;;  %v7792_v34 = vld [vmem:[%s14285_s2 + $0xf0] sm:$0xff] }
 0x171   :  { %7795 = vmatmul.msk.f32.vlgmr.msrb.gmra.mxu0 %vm134_vm3, %v7790_v24  ;;  %7800 = vmatmul.msk.f32.vlgmr.msrb.gmra.mxu1 %vm134_vm3, %v7790_v24 }
 0x173   :  { %7805 = vmatmul.msk.f32.vlgmr.msrb.gmra.mxu2 %vm134_vm3, %v7790_v24  ;;  %7810 = vmatmul.msk.f32.vlgmr.msrb.gmra.mxu3 %vm134_vm3, %v7790_v24 }
 0x176   :  { %v9006_v60 = vpop.f32.mrf.mxu2  ;;  %v9008_v2 = vpop.f32.mrf.mxu3 }
 0x177   :  { %v9013_v32 = vpop.f32.mrf.mxu0  ;;  %v9015_v44 = vpop.f32.mrf.mxu1 }
 0x179   :  { %7796 = vmatmul.msk.f32.gmra.mxu0 %vm134_vm3, %v7791_v55  ;;  %7801 = vmatmul.msk.f32.gmra.mxu1 %vm134_vm3, %v7791_v55 }
 0x17b   :  { %7806 = vmatmul.msk.f32.gmra.mxu2 %vm134_vm3, %v7791_v55  ;;  %7811 = vmatmul.msk.f32.gmra.mxu3 %vm134_vm3, %v7791_v55 }
 0x17e   :  { %v9021_v40 = vpop.f32.mrf.mxu2  ;;  %v9023_v49 = vpop.f32.mrf.mxu3 }
 0x17f   :  { %v9028_v24 = vpop.f32.mrf.mxu0  ;;  %v9030_v10 = vpop.f32.mrf.mxu1 }
 0x181   :  { %7797 = vmatmul.msk.f32.gmra.mxu0 %vm134_vm3, %v7792_v34  ;;  %7802 = vmatmul.msk.f32.gmra.mxu1 %vm134_vm3, %v7792_v34 }
 0x183   :  { %7807 = vmatmul.msk.f32.gmra.mxu2 %vm134_vm3, %v7792_v34  ;;  %7812 = vmatmul.msk.f32.gmra.mxu3 %vm134_vm3, %v7792_v34 }
 0x186   :  { %v9036_v55 = vpop.f32.mrf.mxu2  ;;  %v9038_v11 = vpop.f32.mrf.mxu3 }
 0x187   :  { %v9043_v25 = vpop.f32.mrf.mxu0  ;;  %v9045_v51 = vpop.f32.mrf.mxu1 }
 0x189   :  { %7798 = vmatmul.msk.f32.gmra.mxu0 %vm134_vm3, %v7793_v0  ;;  %7803 = vmatmul.msk.f32.gmra.mxu1 %vm134_vm3, %v7793_v0 }
 0x18b   :  { %7808 = vmatmul.msk.f32.gmra.mxu2 %vm134_vm3, %v7793_v0  ;;  %7813 = vmatmul.msk.f32.gmra.mxu3 %vm134_vm3, %v7793_v0  ;;  %v9076_v0 = vld [vmem:[%s14286_s6 + $0x10] sm:$0xff] }
 0x18c   :  { %14509 = vst [vmem:[#allocation39_spill] sm:$0xff] %v9076_v0  ;;  %1780 = vperm.xlu0 %8257, %v9076_v0   ;;  %v7817_v0 = vld [vmem:[%s14285_s2 + $0x118] sm:$0xff] }
 0x18e   :  { %v9057_v34 = vpop.f32.mrf.mxu2  ;;  %v9059_v43 = vpop.f32.mrf.mxu3 }
 0x18f   :  { %v9064_v12 = vpop.f32.mrf.mxu0  ;;  %v9066_v6 = vpop.f32.mrf.mxu1 }
 0x190   :  { %14506 = vst [vmem:[#allocation36_spill] sm:$0xff] %v9064_v12 }
 0x191   :  { %14507 = vst [vmem:[#allocation37_spill] sm:$0xff] %v9066_v6  ;;  %7819 = vmatmul.msk.f32.vlgmr.msra.gmra.mxu0 %vm134_vm3, %v7814_v8  ;;  %7824 = vmatmul.msk.f32.vlgmr.msra.gmra.mxu1 %vm134_vm3, %v7814_v8 }
 0x193   :  { %7829 = vmatmul.msk.f32.vlgmr.msra.gmra.mxu2 %vm134_vm3, %v7814_v8  ;;  %7834 = vmatmul.msk.f32.vlgmr.msra.gmra.mxu3 %vm134_vm3, %v7814_v8 }
 0x196   :  { %v9084_v13 = vpop.f32.mrf.mxu2  ;;  %v9086_v37 = vpop.f32.mrf.mxu3 }
 0x197   :  { %14510 = vst [vmem:[#allocation40_spill] sm:$0xff] %v9084_v13  ;;  %v9091_v53 = vpop.f32.mrf.mxu0  ;;  %v9093_v54 = vpop.f32.mrf.mxu1 }
 0x198   :  { %14511 = vst [vmem:[#allocation41_spill] sm:$0xff] %v9086_v37 }
 0x199   :  { %7820 = vmatmul.msk.f32.gmra.mxu0 %vm134_vm3, %v7815_v50  ;;  %7825 = vmatmul.msk.f32.gmra.mxu1 %vm134_vm3, %v7815_v50 }
 0x19b   :  { %7830 = vmatmul.msk.f32.gmra.mxu2 %vm134_vm3, %v7815_v50  ;;  %7835 = vmatmul.msk.f32.gmra.mxu3 %vm134_vm3, %v7815_v50 }
 0x19e   :  { %v9105_v8 = vpop.f32.mrf.mxu2  ;;  %v9107_v30 = vpop.f32.mrf.mxu3 }
 0x19f   :  { %14513 = vst [vmem:[#allocation43_spill] sm:$0xff] %v9105_v8  ;;  %v9112_v31 = vpop.f32.mrf.mxu0  ;;  %v9114_v27 = vpop.f32.mrf.mxu1 }
 0x1a0   :  { %14514 = vst [vmem:[#allocation44_spill] sm:$0xff] %v9107_v30 }
 0x1a1   :  { %14515 = vst [vmem:[#allocation45_spill] sm:$0xff] %v9112_v31  ;;  %7821 = vmatmul.msk.f32.gmra.mxu0 %vm134_vm3, %v7816_v35  ;;  %7826 = vmatmul.msk.f32.gmra.mxu1 %vm134_vm3, %v7816_v35 }
 0x1a2   :  { %14516 = vst [vmem:[#allocation46_spill] sm:$0xff] %v9114_v27 }
 0x1a3   :  { %7831 = vmatmul.msk.f32.gmra.mxu2 %vm134_vm3, %v7816_v35  ;;  %7836 = vmatmul.msk.f32.gmra.mxu3 %vm134_vm3, %v7816_v35 }
 0x1a6   :  { %v9120_v50 = vpop.f32.mrf.mxu2  ;;  %v9122_v52 = vpop.f32.mrf.mxu3 }
 0x1a7   :  { %14517 = vst [vmem:[#allocation47_spill] sm:$0xff] %v9120_v50  ;;  %v9127_v36 = vpop.f32.mrf.mxu1  ;;  %v9129_v41 = vpop.f32.mrf.mxu0 }
 0x1a8   :  { %14518 = vst [vmem:[#allocation48_spill] sm:$0xff] %v9122_v52 }
 0x1a9   :  { %14519 = vst [vmem:[#allocation49_spill] sm:$0xff] %v9127_v36  ;;  %7822 = vmatmul.msk.f32.gmra.mxu0 %vm134_vm3, %v7817_v0  ;;  %7827 = vmatmul.msk.f32.gmra.mxu1 %vm134_vm3, %v7817_v0 }
 0x1aa   :  { %14520 = vst [vmem:[#allocation50_spill] sm:$0xff] %v9129_v41 }
 0x1ab   :  { %7832 = vmatmul.msk.f32.gmra.mxu2 %vm134_vm3, %v7817_v0  ;;  %7837 = vmatmul.msk.f32.gmra.mxu3 %vm134_vm3, %v7817_v0 }
 0x1ae   :  { %v9135_v35 = vpop.f32.mrf.mxu2  ;;  %v9137_v50 = vpop.f32.mrf.mxu3 }
 0x1af   :  { %14521 = vst [vmem:[#allocation51_spill] sm:$0xff] %v9135_v35  ;;  %v9139_v52 = vpop.f32.mrf.mxu1  ;;  %v9141_v27 = vpop.f32.mrf.mxu0 }
 0x1b0   :  { %14522 = vst [vmem:[#allocation52_spill] sm:$0xff] %v9137_v50 }
 0x1b1   :  { %14523 = vst [vmem:[#allocation53_spill] sm:$0xff] %v9139_v52 }
 0x1b2   :  { %14524 = vst [vmem:[#allocation54_spill] sm:$0xff] %v9141_v27 }
 0x1b6   :  { %v9143_v31 = vpop.f32.mrf.mxu2  ;;  %v9145_v36 = vpop.f32.mrf.mxu3 }
 0x1b7   :  { %14525 = vst [vmem:[#allocation55_spill] sm:$0xff] %v9143_v31  ;;  %v9147_v41 = vpop.f32.mrf.mxu1  ;;  %v9149_v30 = vpop.f32.mrf.mxu0 }
 0x1b8   :  { %14526 = vst [vmem:[#allocation56_spill] sm:$0xff] %v9145_v36 }
 0x1be   :  { %v9151_v8 = vpop.f32.mrf.mxu2  ;;  %v9153_v37 = vpop.f32.mrf.mxu3 }
 0x1bf   :  { %14527 = vst [vmem:[#allocation57_spill] sm:$0xff] %v9151_v8  ;;  %v9155_v0 = vpop.f32.mrf.mxu0  ;;  %v9157_v35 = vpop.f32.mrf.mxu1 }
 0x1c0   :  { %14528 = vst [vmem:[#allocation58_spill] sm:$0xff] %v9153_v37 }
 0x1c1   :  { %14529 = vst [vmem:[#allocation59_spill] sm:$0xff] %v9155_v0 }
 0x1c2   :  { %14530 = vst [vmem:[#allocation60_spill] sm:$0xff] %v9157_v35 }
 0x1c6   :  { %v9159_v50 = vpop.f32.mrf.mxu2  ;;  %v9161_v52 = vpop.f32.mrf.mxu3 }
 0x1c7   :  { %14531 = vst [vmem:[#allocation61_spill] sm:$0xff] %v9159_v50  ;;  %v9163_v27 = vpop.f32.mrf.mxu0  ;;  %v9165_v31 = vpop.f32.mrf.mxu1 }
 0x1c8   :  { %14532 = vst [vmem:[#allocation62_spill] sm:$0xff] %v9161_v52 }
 0x1c9   :  { %14533 = vst [vmem:[#allocation63_spill] sm:$0xff] %v9163_v27 }
 0x1ca   :  { %14534 = vst [vmem:[#allocation64_spill] sm:$0xff] %v9165_v31 }
 0x1ce   :  { %v9167_v36 = vpop.f32.mrf.mxu2  ;;  %v9169_v13 = vpop.f32.mrf.mxu3 }
 0x1cf   :  { %14535 = vst [vmem:[#allocation65_spill] sm:$0xff] %v9167_v36  ;;  %v9171_v6 = vpop.f32.mrf.mxu0  ;;  %v9173_v8 = vpop.f32.mrf.mxu1 }
 0x1d0   :  { %14536 = vst [vmem:[#allocation66_spill] sm:$0xff] %v9169_v13 }
 0x1d1   :  { %14537 = vst [vmem:[#allocation67_spill] sm:$0xff] %v9171_v6 }
 0x1d2   :  { %14538 = vst [vmem:[#allocation68_spill] sm:$0xff] %v9173_v8 }
 0x1d6   :  { %v9175_v37 = vpop.f32.mrf.mxu2  ;;  %v9177_v0 = vpop.f32.mrf.mxu3 }
 0x1d7   :  { %14539 = vst [vmem:[#allocation69_spill] sm:$0xff] %v9175_v37  ;;  %v9179_v35 = vpop.f32.mrf.mxu0  ;;  %v9181_v50 = vpop.f32.mrf.mxu1 }
 0x1d8   :  { %14540 = vst [vmem:[#allocation70_spill] sm:$0xff] %v9177_v0 }
 0x1d9   :  { %14541 = vst [vmem:[#allocation71_spill] sm:$0xff] %v9179_v35 }
 0x1da   :  { %14542 = vst [vmem:[#allocation72_spill] sm:$0xff] %v9181_v50 }
 0x1de   :  { %v9183_v52 = vpop.f32.mrf.mxu2  ;;  %v9185_v27 = vpop.f32.mrf.mxu3 }
 0x1df   :  { %14543 = vst [vmem:[#allocation73_spill] sm:$0xff] %v9183_v52  ;;  %v9187_v31 = vpop.f32.mrf.mxu0  ;;  %v9189_v36 = vpop.f32.mrf.mxu1 }
 0x1e0   :  { %14544 = vst [vmem:[#allocation74_spill] sm:$0xff] %v9185_v27 }
 0x1e1   :  { %14545 = vst [vmem:[#allocation75_spill] sm:$0xff] %v9187_v31 }
 0x1e2   :  { %14546 = vst [vmem:[#allocation76_spill] sm:$0xff] %v9189_v36 }
 0x1e6   :  { %v9191_v13 = vpop.f32.mrf.mxu2  ;;  %v9193_v6 = vpop.f32.mrf.mxu3 }
 0x1e7   :  { %14547 = vst [vmem:[#allocation77_spill] sm:$0xff] %v9191_v13  ;;  %v9195_v8 = vpop.f32.mrf.mxu0  ;;  %v9197_v37 = vpop.f32.mrf.mxu1 }
 0x1e8   :  { %14548 = vst [vmem:[#allocation78_spill] sm:$0xff] %v9193_v6 }
 0x1e9   :  { %14549 = vst [vmem:[#allocation79_spill] sm:$0xff] %v9195_v8 }
 0x1ea   :  { %14550 = vst [vmem:[#allocation80_spill] sm:$0xff] %v9197_v37 }
 0x1ee   :  { %v9199_v0 = vpop.f32.mrf.mxu2  ;;  %v9201_v35 = vpop.f32.mrf.mxu3 }
 0x1ef   :  { %14551 = vst [vmem:[#allocation81_spill] sm:$0xff] %v9199_v0  ;;  %v9203_v50 = vpop.f32.mrf.mxu0  ;;  %v9205_v52 = vpop.f32.mrf.mxu1 }
 0x1f0   :  { %14552 = vst [vmem:[#allocation82_spill] sm:$0xff] %v9201_v35 }
 0x1f1   :  { %14553 = vst [vmem:[#allocation83_spill] sm:$0xff] %v9203_v50 }
 0x1f2   :  { %14554 = vst [vmem:[#allocation84_spill] sm:$0xff] %v9205_v52 }
 0x1f6   :  { %v9207_v27 = vpop.f32.mrf.mxu2  ;;  %v9209_v31 = vpop.f32.mrf.mxu3 }
 0x1f7   :  { %14555 = vst [vmem:[#allocation85_spill] sm:$0xff] %v9207_v27  ;;  %v1458_v36 = vpop.f32.mrf.mxu0  ;;  %v1487_v13 = vpop.f32.mrf.mxu1  ;;  %v350_v27 = vadd.f32 %v8825_v56, %v8737_v47  ;;  %v356_v47 = vadd.f32 %v8873_v42, %v8781_v4  ;;  %v799_v42 = vadd.f32 %v9008_v2, %v8917_v21  ;;  %v14569_v2 = vld [vmem:[#allocation43_spill] sm:$0xff] }
 0x1f8   :  { %14556 = vst [vmem:[#allocation86_spill] sm:$0xff] %v9209_v31  ;;  %v321_v31 = vadd.f32 %v8823_v48, %v8735_v46  ;;  %v327_v46 = vadd.f32 %v8871_v61, %v8779_v1 }
 0x1f9   :  { %v611_v48 = vadd.f32 %v8966_v15, %v356_v47  ;;  %v803_v15 = vadd.f32 %v9023_v49, %v8934_v26 }
 0x1fe   :  { %v9211_v12 = vpop.f32.mrf.mxu2  ;;  %v9213_v6 = vpop.f32.mrf.mxu3 }
 0x1ff   :  { %14557 = vst [vmem:[#allocation87_spill] sm:$0xff] %v9213_v6  ;;  %v9215_v8 = vpop.f32.mrf.mxu0  ;;  %v9217_v37 = vpop.f32.mrf.mxu1  ;;  %v318_v6 = vadd.f32 %v8808_v28, %v8721_v38 }
 0x200   :  { %14558 = vst [vmem:[#allocation88_spill] sm:$0xff] %v9217_v37  ;;  %v347_v37 = vadd.f32 %v8810_v29, %v8723_v39 }
 0x201   :  { %v598_v38 = vadd.f32 %v8902_v33, %v318_v6  ;;  %v610_v6 = vadd.f32 %v8964_v62, %v327_v46  ;;  %v14574_v46 = vld [vmem:[#allocation48_spill] sm:$0xff] }
 0x203   :  { %v796_v56 = vadd.f32 %v8998_v3, %v598_v38  ;;  %v808_v21 = vadd.f32 %v9043_v25, %v610_v6  ;;  %v14575_v38 = vld [vmem:[#allocation49_spill] sm:$0xff] }
 0x206   :  { %v9219_v0 = vpop.f32.mrf.mxu2  ;;  %v9221_v35 = vpop.f32.mrf.mxu3 }
 0x207   :  { %14559 = vst [vmem:[#allocation89_spill] sm:$0xff] %v9219_v0  ;;  %v9223_v50 = vpop.f32.mrf.mxu0  ;;  %v9225_v52 = vpop.f32.mrf.mxu1  ;;  %v324_v0 = vadd.f32 %v8840_v17, %v8750_v57  ;;  %v599_v57 = vadd.f32 %v8904_v9, %v347_v37  ;;  %v798_v17 = vadd.f32 %v9006_v60, %v8914_v23  ;;  %v806_v9 = vadd.f32 %v9036_v55, %v8959_v5  ;;  %v14564_v5 = vld [vmem:[#allocation71_spill] sm:$0xff]  ;;  %v14567_v60 = vld [vmem:[#allocation40_spill] sm:$0xff] }
 0x208   :  { %14560 = vst [vmem:[#allocation90_spill] sm:$0xff] %v9221_v35  ;;  %v602_v35 = vadd.f32 %v8919_v14, %v321_v31  ;;  %v807_v23 = vadd.f32 %v9038_v11, %v8962_v16  ;;  %v809_v14 = vadd.f32 %v9045_v51, %v611_v48  ;;  %v14568_v16 = vld [vmem:[#allocation41_spill] sm:$0xff] }
 0x209   :  { %14561 = vst [vmem:[#allocation91_spill] sm:$0xff] %v9223_v50  ;;  %v603_v50 = vadd.f32 %v8921_v18, %v350_v27  ;;  %v606_v31 = vadd.f32 %v8936_v20, %v324_v0  ;;  %v797_v37 = vadd.f32 %v9000_v19, %v599_v57  ;;  %v810_v18 = vadd.f32 %v9057_v34, %v8993_v22 }
 0x20a   :  { %14562 = vst [vmem:[#allocation92_spill] sm:$0xff] %v9225_v52  ;;  %v353_v52 = vadd.f32 %v8842_v63, %v8752_v58  ;;  %v800_v27 = vadd.f32 %v9013_v32, %v602_v35  ;;  %v962_v11 = vadd.f32 %v14567_v60, %v798_v17  ;;  %v963_v25 = vadd.f32 %v14568_v16, %v799_v42  ;;  %v14573_v35 = vld [vmem:[#allocation47_spill] sm:$0xff] }
 0x20b   :  { %v801_v58 = vadd.f32 %v9015_v44, %v603_v50  ;;  %v804_v62 = vadd.f32 %v9028_v24, %v606_v31  ;;  %v14570_v44 = vld [vmem:[#allocation44_spill] sm:$0xff]  ;;  %v970_v0 = vadd.f32 %v14573_v35, %v806_v9  ;;  %v971_v47 = vadd.f32 %v14574_v46, %v807_v23  ;;  %v14576_v31 = vld [vmem:[#allocation57_spill] sm:$0xff]  ;;  %v14580_v17 = vld [vmem:[#allocation59_spill] sm:$0xff] }
 0x20c   :  { %v607_v4 = vadd.f32 %v8938_v7, %v353_v52  ;;  %v964_v63 = vadd.f32 %v9091_v53, %v800_v27  ;;  %v802_v7 = vadd.f32 %v9021_v40, %v8931_v45  ;;  %v14563_v45 = vld [vmem:[#allocation36_spill] sm:$0xff]  ;;  %v14572_v52 = vld [vmem:[#allocation46_spill] sm:$0xff]  ;;  %v973_v57 = vadd.f32 %v14575_v38, %v809_v14 }
 0x20d   :  { %v965_v61 = vadd.f32 %v9093_v54, %v801_v58  ;;  %v960_v26 = vadd.f32 %v14563_v45, %v796_v56  ;;  %v14577_v58 = vld [vmem:[#allocation58_spill] sm:$0xff]  ;;  %v9314_v45 = vpop.permute.xlu2 %1785 }
 0x20e   :  { %v9246_v28 = vpop.f32.mrf.mxu2  ;;  %v9248_v39 = vpop.f32.mrf.mxu3  ;;  %v805_v33 = vadd.f32 %v9030_v10, %v607_v4  ;;  %v1162_v54 = vadd.f32 %v9149_v30, %v964_v63  ;;  %v811_v10 = vadd.f32 %v9059_v43, %v8996_v59  ;;  %v14566_v30 = vld [vmem:[#allocation37_spill] sm:$0xff]  ;;  %v966_v51 = vadd.f32 %v14569_v2, %v802_v7  ;;  %v14578_v56 = vld [vmem:[#allocation50_spill] sm:$0xff]  ;;  %v14590_v2 = vld [vmem:[#allocation87_spill] sm:$0xff] }
 0x20f   :  { %v9254_v29 = vpop.f32.mrf.mxu0  ;;  %v9256_v1 = vpop.f32.mrf.mxu1  ;;  %v1163_v53 = vadd.f32 %v9147_v41, %v965_v61  ;;  %v14565_v41 = vld [vmem:[#allocation72_spill] sm:$0xff]  ;;  %v961_v19 = vadd.f32 %v14566_v30, %v797_v37  ;;  %v967_v43 = vadd.f32 %v14570_v44, %v803_v15  ;;  %v14571_v59 = vld [vmem:[#allocation45_spill] sm:$0xff]  ;;  %v972_v37 = vadd.f32 %v14578_v56, %v808_v21  ;;  %v14585_v23 = vld [vmem:[#allocation74_spill] sm:$0xff] }
 0x210   :  { %v1360_v20 = vadd.f32 %v14564_v5, %v1162_v54  ;;  %v968_v40 = vadd.f32 %v14571_v59, %v804_v62  ;;  %v969_v50 = vadd.f32 %v14572_v52, %v805_v33  ;;  %v1164_v27 = vadd.f32 %v14576_v31, %v966_v51  ;;  %v14581_v61 = vld [vmem:[#allocation60_spill] sm:$0xff]  ;;  %v1776_v7 = vpop.permute.xlu1 %1775  ;;  %v14583_v33 = vld [vmem:[#allocation53_spill] sm:$0xff]  ;;  %v14586_v5 = vld [vmem:[#allocation54_spill] sm:$0xff] }
 0x211   :  { %v1361_v3 = vadd.f32 %v14565_v41, %v1163_v53  ;;  %v1165_v4 = vadd.f32 %v14577_v58, %v967_v43  ;;  %v14582_v15 = vld [vmem:[#allocation52_spill] sm:$0xff]  ;;  %v1159_v9 = vadd.f32 %v14583_v33, %v961_v19  ;;  %v14584_v53 = vld [vmem:[#allocation73_spill] sm:$0xff]  ;;  %v14587_v21 = vld [vmem:[#allocation55_spill] sm:$0xff] }
 0x212   :  { %v1558_v49 = vadd.f32 %v1458_v36, %v1360_v20  ;;  %v14579_v36 = vld [vmem:[#allocation51_spill] sm:$0xff]  ;;  %v1166_v63 = vadd.f32 %v14580_v17, %v968_v40  ;;  %v1167_v42 = vadd.f32 %v14581_v61, %v969_v50  ;;  %v975_v62 = vadd.f32 %v14582_v15, %v811_v10  ;;  %v14589_v30 = vld [vmem:[#allocation76_spill] sm:$0xff]  ;;  %v14592_v59 = vld [vmem:[#allocation61_spill] sm:$0xff] }
 0x213   :  { %v1559_v24 = vadd.f32 %v1487_v13, %v1361_v3  ;;  %v974_v13 = vadd.f32 %v14579_v36, %v810_v18  ;;  %v1362_v54 = vadd.f32 %v14584_v53, %v1164_v27  ;;  %v1363_v14 = vadd.f32 %v14585_v23, %v1165_v4  ;;  %v14588_v18 = vld [vmem:[#allocation75_spill] sm:$0xff]  ;;  %v14591_v44 = vld [vmem:[#allocation56_spill] sm:$0xff]  ;;  %v14597_v4 = vld [vmem:[#allocation65_spill] sm:$0xff] }
 0x214   :  { %v1158_v20 = vadd.f32 %v14586_v5, %v960_v26  ;;  %v1160_v41 = vadd.f32 %v14587_v21, %v962_v11  ;;  %v1364_v3 = vadd.f32 %v14588_v18, %v1166_v63  ;;  %v1365_v60 = vadd.f32 %v14589_v30, %v1167_v42  ;;  %v14595_v50 = vld [vmem:[#allocation63_spill] sm:$0xff]  ;;  %v14596_v27 = vld [vmem:[#allocation64_spill] sm:$0xff]  ;;  %v14601_v42 = vld [vmem:[#allocation69_spill] sm:$0xff] }
 0x215   :  { %v1560_v16 = vadd.f32 %v9211_v12, %v1362_v54  ;;  %v1561_v10 = vadd.f32 %v14590_v2, %v1363_v14  ;;  %v1161_v43 = vadd.f32 %v14591_v44, %v963_v25  ;;  %v1168_v40 = vadd.f32 %v14592_v59, %v970_v0  ;;  %v14599_v36 = vld [vmem:[#allocation67_spill] sm:$0xff]  ;;  %v14602_v33 = vld [vmem:[#allocation77_spill] sm:$0xff]  ;;  %v14603_v53 = vld [vmem:[#allocation78_spill] sm:$0xff]  ;;  %v1771_v59 = vpop.permute.xlu2 %1770 }
 0x216   :  { %v9294_v32 = vpop.f32.mrf.mxu2  ;;  %v9296_v22 = vpop.f32.mrf.mxu3  ;;  %v1562_v26 = vadd.f32 %v9215_v8, %v1364_v3  ;;  %v1170_v12 = vadd.f32 %v14595_v50, %v972_v37  ;;  %v1171_v58 = vadd.f32 %v14596_v27, %v973_v57  ;;  %v1172_v25 = vadd.f32 %v14597_v4, %v974_v13  ;;  %v14598_v8 = vld [vmem:[#allocation66_spill] sm:$0xff]  ;;  %v14600_v37 = vld [vmem:[#allocation68_spill] sm:$0xff]  ;;  %v14604_v5 = vld [vmem:[#allocation79_spill] sm:$0xff] }
 0x217   :  { %v1656_v55 = vpop.f32.mrf.mxu0  ;;  %v1685_v34 = vpop.f32.mrf.mxu1  ;;  %v1173_v56 = vadd.f32 %v14598_v8, %v975_v62  ;;  %v1356_v17 = vadd.f32 %v14599_v36, %v1158_v20  ;;  %v1357_v61 = vadd.f32 %v14600_v37, %v1159_v9  ;;  %v1358_v15 = vadd.f32 %v14601_v42, %v1160_v41  ;;  %v14605_v21 = vld [vmem:[#allocation80_spill] sm:$0xff]  ;;  %v14606_v3 = vld [vmem:[#allocation83_spill] sm:$0xff]  ;;  %v14609_v2 = vld [vmem:[#allocation89_spill] sm:$0xff] }
 0x218   :  { %v1756_v6 = vadd.f32 %v1656_v55, %v1558_v49  ;;  %v1757_v48 = vadd.f32 %v1685_v34, %v1559_v24  ;;  %v14593_v49 = vld [vmem:[#allocation88_spill] sm:$0xff]  ;;  %v14594_v34 = vld [vmem:[#allocation62_spill] sm:$0xff]  ;;  %v1366_v57 = vadd.f32 %v14602_v33, %v1168_v40  ;;  %v1368_v20 = vadd.f32 %v14604_v5, %v1170_v12 }
 0x219   :  { %v1563_v11 = vadd.f32 %v14593_v49, %v1365_v60  ;;  %v1169_v52 = vadd.f32 %v14594_v34, %v971_v47  ;;  %v1369_v18 = vadd.f32 %v14605_v21, %v1171_v58  ;;  %v1554_v9 = vadd.f32 %v14606_v3, %v1356_v17  ;;  %v14607_v30 = vld [vmem:[#allocation84_spill] sm:$0xff]  ;;  %v14608_v60 = vld [vmem:[#allocation85_spill] sm:$0xff]  ;;  %v14613_v58 = vld [vmem:[#allocation70_spill] sm:$0xff] }
 0x21a   :  { %v9322_v51 = vadd.f32 %v1776_v7, %v1756_v6  ;;  %v9324_v19 = vadd.f32 %v1776_v7, %v1757_v48  ;;  %v1781_v48 = vpop.permute.xlu0 %1780  ;;  %v1555_v41 = vadd.f32 %v14607_v30, %v1357_v61  ;;  %v1359_v4 = vadd.f32 %v14613_v58, %v1161_v43  ;;  %v14615_v37 = vld [vmem:[#allocation82_spill] sm:$0xff] }
 0x21b   :  { %v1367_v13 = vadd.f32 %v14603_v53, %v1169_v52  ;;  %v1371_v61 = vadd.f32 %v14615_v37, %v1173_v56 }
 0x21c   :  { %v1813_v47 = vadd.f32 %v9324_v19, %v9322_v51  ;;  %v1753_v34 = vadd.f32 %v9256_v1, %v1555_v41 }
 0x21e   :  { %v1714_v24 = vpop.f32.mrf.mxu2  ;;  %v1743_v55 = vpop.f32.mrf.mxu3 }
 0x21f   :  { %v1758_v35 = vadd.f32 %v1714_v24, %v1560_v16  ;;  %v1759_v46 = vadd.f32 %v1743_v55, %v1561_v10  ;;  %v1659_v38 = vpop.f32.mrf.mxu0  ;;  %v1688_v31 = vpop.f32.mrf.mxu1  ;;  %v1556_v16 = vadd.f32 %v14608_v60, %v1358_v15  ;;  %v1564_v10 = vadd.f32 %v14609_v2, %v1366_v57  ;;  %v14616_v57 = vld [vmem:[#allocation86_spill] sm:$0xff] }
 0x220   :  { %v1760_v6 = vadd.f32 %v1659_v38, %v1562_v26  ;;  %v1761_v0 = vadd.f32 %v1688_v31, %v1563_v11  ;;  %v14611_v26 = vld [vmem:[#allocation91_spill] sm:$0xff]  ;;  %v14612_v11 = vld [vmem:[#allocation92_spill] sm:$0xff]  ;;  %v1752_v55 = vadd.f32 %v9254_v29, %v1554_v9  ;;  %v9379_v15 = vadd.f32 %v1771_v59, %v1753_v34 }
 0x221   :  { %v9336_v63 = vadd.f32 %v1776_v7, %v1758_v35  ;;  %v9344_v54 = vadd.f32 %v1776_v7, %v1759_v46  ;;  %v14610_v7 = vld [vmem:[#allocation90_spill] sm:$0xff]  ;;  %v1566_v49 = vadd.f32 %v14611_v26, %v1368_v20  ;;  %v1567_v24 = vadd.f32 %v14612_v11, %v1369_v18 }
 0x222   :  { %v9346_v23 = vadd.f32 %v1781_v48, %v1760_v6  ;;  %v9348_v62 = vadd.f32 %v1781_v48, %v1761_v0  ;;  %v1565_v44 = vadd.f32 %v14610_v7, %v1367_v13  ;;  %v14614_v6 = vld [vmem:[#allocation81_spill] sm:$0xff]  ;;  %v1754_v1 = vadd.f32 %v9294_v32, %v1556_v16 }
 0x223   :  { %v1814_v14 = vadd.f32 %v1813_v47, %v9336_v63  ;;  %v1370_v0 = vadd.f32 %v14614_v6, %v1172_v25  ;;  %v9377_v42 = vadd.f32 %v1771_v59, %v1752_v55  ;;  %v1557_v53 = vadd.f32 %v14616_v57, %v1359_v4 }
 0x224   :  { %v1840_v31 = vmul.f32 %v9346_v23, %v9346_v23  ;;  %v1841_v27 = vmul.f32 %v9348_v62, %v9348_v62  ;;  %v1818_v47 = vadd.f32 %v9348_v62, %v9346_v23  ;;  %v1569_v13 = vadd.f32 %v9248_v39, %v1371_v61 }
 0x225   :  { %v1815_v40 = vadd.f32 %v1814_v14, %v9344_v54  ;;  %v1568_v56 = vadd.f32 %v9246_v28, %v1370_v0  ;;  %v9393_v14 = vadd.f32 %v1771_v59, %v1754_v1  ;;  %v1755_v18 = vadd.f32 %v9296_v22, %v1557_v53 }
 0x226   :  { %v1717_v52 = vpop.f32.mrf.mxu2  ;;  %v1746_v50 = vpop.f32.mrf.mxu3  ;;  %v1858_v33 = vadd.f32 %v1841_v27, %v1840_v31  ;;  %v1808_v30 = vadd.f32 %v9379_v15, %v9377_v42  ;;  %v1836_v11 = vmul.f32 %v9322_v51, %v9322_v51  ;;  %v1839_v4 = vmul.f32 %v9344_v54, %v9344_v54 }
 0x227   :  { %v1762_v12 = vadd.f32 %v1717_v52, %v1564_v10  ;;  %v1763_v35 = vadd.f32 %v1746_v50, %v1565_v44  ;;  %1816 = vadd.xlane.f32.xlu2 %v1815_v40  ;;  %v1662_v46 = vpop.f32.mrf.mxu0  ;;  %v1691_v38 = vpop.f32.mrf.mxu1  ;;  %v9414_v44 = vadd.f32 %v1771_v59, %v1755_v18  ;;  %v1837_v52 = vmul.f32 %v9324_v19, %v9324_v19 }
 0x228   :  { %v1764_v29 = vadd.f32 %v1662_v46, %v1566_v49  ;;  %v1765_v8 = vadd.f32 %v1691_v38, %v1567_v24  ;;  %v1809_v10 = vadd.f32 %v1808_v30, %v9393_v14  ;;  %v1833_v24 = vmul.f32 %v9379_v15, %v9379_v15 }
 0x229   :  { %v9370_v36 = vadd.f32 %v1781_v48, %v1762_v12  ;;  %v9372_v17 = vadd.f32 %v1781_v48, %v1763_v35  ;;  %v1838_v35 = vmul.f32 %v9336_v63, %v9336_v63  ;;  %v1834_v46 = vmul.f32 %v9393_v14, %v9393_v14 }
 0x22a   :  { %v9382_v43 = vadd.f32 %v9314_v45, %v1764_v29  ;;  %v9385_v25 = vadd.f32 %v9314_v45, %v1765_v8  ;;  %v1810_v55 = vadd.f32 %v1809_v10, %v9414_v44  ;;  %v1853_v38 = vadd.f32 %v1837_v52, %v1836_v11 }
 0x22b   :  { %v1819_v32 = vadd.f32 %v1818_v47, %v9370_v36  ;;  %v1842_v48 = vmul.f32 %v9370_v36, %v9370_v36  ;;  %v1843_v20 = vmul.f32 %v9372_v17, %v9372_v17  ;;  %v1835_v6 = vmul.f32 %v9414_v44, %v9414_v44 }
 0x22c   :  { %v1844_v28 = vmul.f32 %v9382_v43, %v9382_v43  ;;  %v1845_v16 = vmul.f32 %v9385_v25, %v9385_v25  ;;  %v1823_v7 = vadd.f32 %v9385_v25, %v9382_v43  ;;  %v1854_v27 = vadd.f32 %v1853_v38, %v1838_v35 }
 0x22d   :  { %v1820_v5 = vadd.f32 %v1819_v32, %v9372_v17  ;;  %v1859_v21 = vadd.f32 %v1858_v33, %v1842_v48  ;;  %v8342_v48 = vmov 1  }
 0x22e   :  { %v1720_v3 = vpop.f32.mrf.mxu2  ;;  %v1749_v9 = vpop.f32.mrf.mxu3  ;;  %v1863_v26 = vadd.f32 %v1845_v16, %v1844_v28  ;;  %v1855_v0 = vadd.f32 %v1854_v27, %v1839_v4  ;;  %8259 = vset.pattern.permute.xlu2 %v8342_v48  ;;  %8260 = vset.pattern.permute.xlu1 %v8342_v48 }
 0x22f   :  { %v1766_v41 = vadd.f32 %v1720_v3, %v1568_v56  ;;  %v1767_v39 = vadd.f32 %v1749_v9, %v1569_v13  ;;  %1821 = vadd.xlane.f32.xlu2 %v1820_v5  ;;  %v1860_v60 = vadd.f32 %v1859_v21, %v1843_v20 }
 0x231   :  { %v9406_v2 = vadd.f32 %v9314_v45, %v1766_v41  ;;  %v9409_v22 = vadd.f32 %v9314_v45, %v1767_v39  ;;  %1861 = vadd.xlane.f32.xlu1 %v1860_v60  ;;  %v1832_v45 = vmul.f32 %v9377_v42, %v9377_v42 }
 0x233   :  { %v1846_v40 = vmul.f32 %v9406_v2, %v9406_v2  ;;  %v1824_v49 = vadd.f32 %v1823_v7, %v9406_v2  ;;  %v1847_v59 = vmul.f32 %v9409_v22, %v9409_v22  ;;  %v1848_v31 = vadd.f32 %v1833_v24, %v1832_v45 }
 0x235   :  { %v1864_v34 = vadd.f32 %v1863_v26, %v1846_v40  ;;  %v1825_v12 = vadd.f32 %v1824_v49, %v9409_v22  ;;  %v1849_v58 = vadd.f32 %v1848_v31, %v1834_v46 }
 0x237   :  { %1811 = vadd.xlane.f32.xlu2 %v1810_v55  ;;  %v1865_v50 = vadd.f32 %v1864_v34, %v1847_v59  ;;  %v1850_v29 = vadd.f32 %v1849_v58, %v1835_v6 }
 0x239   :  { %1866 = vadd.xlane.f32.xlu0 %v1865_v50  ;;  %1826 = vadd.xlane.f32.xlu1 %v1825_v12 }
 0x241   :  { %1856 = vadd.xlane.f32.xlu0 %v1855_v0  ;;  %1851 = vadd.xlane.f32.xlu1 %v1850_v29 }
 0x29a   :  { %v1817_v8 = vpop.xlane.xlu2 %1816 }
 0x29b   :  { %v1829_v21 = vmul.f32 0.001953125, %v1817_v8 }
 0x29d   :  { %v1873_v28 = vmul.f32 %v1829_v21, %v1829_v21 }
 0x2a2   :  { %v1822_v1 = vpop.xlane.xlu2 %1821 }
 0x2a3   :  { %v9439_v47 = vmul.f32 0.001953125, %v1822_v1 }
 0x2a4   :  { %v1862_v37 = vpop.xlane.xlu1 %1861 }
 0x2a5   :  { %v1874_v61 = vmul.f32 %v9439_v47, %v9439_v47  ;;  %v1870_v32 = vmul.f32 0.001953125, %v1862_v37 }
 0x2a7   :  { %v1878_v33 = vsub.f32 %v1870_v32, %v1874_v61  ;;  %v14617_v32 = vld [vmem:[#allocation35_spill] sm:$0xff] }
 0x2a9   :  { %v1882_v18 = vadd.f32 1e-05, %v1878_v33 }
 0x2aa   :  { %v1812_v13 = vpop.xlane.xlu2 %1811 }
 0x2ab   :  { %v1828_v3 = vmul.f32 0.001953125, %v1812_v13  ;;  %8281 = vrsqrt.f32 %v1882_v18  ;;  %v14618_v13 = vld [vmem:[#allocation42_spill] sm:$0xff]  ;;  %vm1910_vm9 = vweird.f32 %v1882_v18 }
 0x2ac   :  { %v1867_v57 = vpop.xlane.xlu0 %1866  ;;  %v1827_v53 = vpop.xlane.xlu1 %1826 }
 0x2ad   :  { %v9443_v56 = vmul.f32 0.001953125, %v1827_v53  ;;  %v1871_v5 = vmul.f32 0.001953125, %v1867_v57  ;;  %v1872_v60 = vmul.f32 %v1828_v3, %v1828_v3 }
 0x2af   :  { %v1875_v20 = vmul.f32 %v9443_v56, %v9443_v56 }
 0x2b1   :  { %v1879_v9 = vsub.f32 %v1871_v5, %v1875_v20  ;;  %v8282_v11 = vpop.eup %8281 }
 0x2b2   :  { %v1905_v24 = vmul.f32 %v8282_v11, %v1882_v18  ;;  %vm1911_vm3 = vweird.f32 %v8282_v11  ;;  %v8343_v18 = vmov 2  }
 0x2b3   :  { %v1883_v30 = vadd.f32 1e-05, %v1879_v9  ;;  %vm1912_vm7 = vmor %vm1910_vm9, %vm1911_vm3  ;;  %8261 = vset.pattern.permute.xlu0 %v8343_v18 }
 0x2b4   :  { %v1857_v41 = vpop.xlane.xlu0 %1856  ;;  %v1852_v39 = vpop.xlane.xlu1 %1851  ;;  %v1906_v34 = vmul.f32 %v8282_v11, %v1905_v24 }
 0x2b5   :  { %8283 = vrsqrt.f32 %v1883_v30  ;;  %v1869_v16 = vmul.f32 0.001953125, %v1857_v41  ;;  %v1868_v10 = vmul.f32 0.001953125, %v1852_v39  ;;  %vm1920_vm8 = vweird.f32 %v1883_v30  ;;  %v14619_v39 = vld [vmem:[#allocation39_spill] sm:$0xff] }
 0x2b6   :  { %v1907_v38 = vmul.f32 0.5, %v1906_v34 }
 0x2b7   :  { %v1877_v7 = vsub.f32 %v1869_v16, %v1873_v28  ;;  %v1876_v40 = vsub.f32 %v1868_v10, %v1872_v60  ;;  %v14620_v16 = vld [vmem:[#allocation38_spill] sm:$0xff] }
 0x2b8   :  { %v1908_v29 = vsub.f32 1.5, %v1907_v38 }
 0x2b9   :  { %v1881_v26 = vadd.f32 1e-05, %v1877_v7  ;;  %v1880_v49 = vadd.f32 1e-05, %v1876_v40 }
 0x2ba   :  { %v1909_v57 = vmul.f32 %v8282_v11, %v1908_v29 }
 0x2bb   :  { %v8284_v45 = vpop.eup %8283  ;;  %8285 = vrsqrt.f32 %v1881_v26  ;;  %vm1900_vm12 = vweird.f32 %v1881_v26  ;;  %vm1890_vm13 = vweird.f32 %v1880_v49 }
 0x2bc   :  { %8287 = vrsqrt.f32 %v1880_v49  ;;  %v1915_v55 = vmul.f32 %v8284_v45, %v1883_v30  ;;  %vm1921_vm2 = vweird.f32 %v8284_v45  ;;  %v1913_v28 = vsel %vm1912_vm7, %v8282_v11, %v1909_v57 }
 0x2bd   :  { %vm1922_vm6 = vmor %vm1920_vm8, %vm1921_vm2  ;;  %v1926_v60 = vmul.f32 %v1913_v28, %v14619_v39  ;;  %vm2177_vm2 = vcmask 261120  }
 0x2be   :  { %v1916_v50 = vmul.f32 %v8284_v45, %v1915_v55 }
 0x2bf   :  { %v1930_v7 = vmul.f32 %v1926_v60, %v9439_v47 }
 0x2c0   :  { %v1917_v27 = vmul.f32 0.5, %v1916_v50 }
 0x2c1   :  { %v8286_v59 = vpop.eup %8285 }
 0x2c2   :  { %v8288_v52 = vpop.eup %8287  ;;  %v1895_v12 = vmul.f32 %v8286_v59, %v1881_v26  ;;  %vm1901_vm10 = vweird.f32 %v8286_v59  ;;  %v1918_v8 = vsub.f32 1.5, %v1917_v27 }
 0x2c3   :  { %v1885_v35 = vmul.f32 %v8288_v52, %v1880_v49  ;;  %vm1891_vm11 = vweird.f32 %v8288_v52  ;;  %vm1902_vm14 = vmor %vm1900_vm12, %vm1901_vm10 }
 0x2c4   :  { %v1896_v46 = vmul.f32 %v8286_v59, %v1895_v12  ;;  %vm1892_vm15 = vmor %vm1890_vm13, %vm1891_vm11  ;;  %v1919_v53 = vmul.f32 %v8284_v45, %v1918_v8 }
 0x2c5   :  { %v1886_v31 = vmul.f32 %v8288_v52, %v1885_v35 }
 0x2c6   :  { %v1897_v58 = vmul.f32 0.5, %v1896_v46  ;;  %v1923_v41 = vsel %vm1922_vm6, %v8284_v45, %v1919_v53 }
 0x2c7   :  { %v1887_v4 = vmul.f32 0.5, %v1886_v31  ;;  %v1927_v10 = vmul.f32 %v1923_v41, %v14620_v16 }
 0x2c8   :  { %v1898_v6 = vsub.f32 1.5, %v1897_v58 }
 0x2c9   :  { %v1888_v0 = vsub.f32 1.5, %v1887_v4 }
 0x2ca   :  { %v1899_v1 = vmul.f32 %v8286_v59, %v1898_v6 }
 0x2cb   :  { %v1889_v37 = vmul.f32 %v8288_v52, %v1888_v0 }
 0x2cc   :  { %v1903_v61 = vsel %vm1902_vm14, %v8286_v59, %v1899_v1 }
 0x2cd   :  { %v1925_v48 = vmul.f32 %v1903_v61, %v14617_v32  ;;  %v1893_v33 = vsel %vm1892_vm15, %v8288_v52, %v1889_v37 }
 0x2ce   :  { %v1924_v5 = vmul.f32 %v1893_v33, %v14618_v13 }
 0x2cf   :  { %1959 = vperm.xlu2 %8259, %v1925_v48   ;;  %v1929_v20 = vmul.f32 %v1925_v48, %v1829_v21  ;;  %v1931_v21 = vmul.f32 %v1927_v10, %v9443_v56 }
 0x2d0   :  { %v1928_v9 = vmul.f32 %v1924_v5, %v1828_v3 }
 0x2d1   :  { %1938 = vrot.lane.b32.xlu1 %v1929_v20, %s8336_s30 }
 0x2d2   :  { %1936 = vrot.lane.b32.xlu0 %v1928_v9, %s8336_s30 }
 0x2d7   :  { %1969 = vperm.xlu2 %8259, %v1927_v10  }
 0x2d9   :  { %1964 = vperm.xlu1 %8260, %v1926_v60  }
 0x2da   :  { %1940 = vrot.lane.b32.xlu0 %v1930_v7, %s8336_s30 }
 0x2df   :  { %1942 = vrot.lane.b32.xlu2 %v1931_v21, %s8336_s30 }
 0x2e1   :  { %8262 = vset.pattern.permute.xlu1 %v8343_v18 }
 0x2e7   :  { %1954 = vperm.xlu2 %8259, %v1924_v5  }
 0x329   :  { %v1960_v3 = vpop.permute.xlu2 %1959 }
 0x32a   :  { %v1977_v29 = vmul.f32 %v1960_v3, %v9324_v19  ;;  %v1976_v8 = vmul.f32 %v1960_v3, %v9322_v51 }
 0x331   :  { %v9457_v30 = vpop.permute.xlu2 %1969 }
 0x339   :  { %v1943_v11 = vpop.permute.xlu2 %1942 }
 0x33a   :  { %v1951_v56 = vsub.f32 %v14620_v16, %v1943_v11 }
 0x341   :  { %v1955_v55 = vpop.permute.xlu2 %1954 }
 0x342   :  { %v1972_v59 = vmul.f32 %v1955_v55, %v9377_v42  ;;  %v1973_v34 = vmul.f32 %v1955_v55, %v9379_v15  ;;  %v1974_v52 = vmul.f32 %v1955_v55, %v9393_v14  ;;  %v1975_v58 = vmul.f32 %v1955_v55, %v9414_v44 }
 0x343   :  { %v1939_v40 = vpop.permute.xlu1 %1938  ;;  %v1978_v44 = vmul.f32 %v1960_v3, %v9336_v63 }
 0x344   :  { %v1937_v26 = vpop.permute.xlu0 %1936  ;;  %v1949_v49 = vsub.f32 %v14617_v32, %v1939_v40  ;;  %v1979_v32 = vmul.f32 %v1960_v3, %v9344_v54 }
 0x345   :  { %v1948_v47 = vsub.f32 %v14618_v13, %v1937_v26 }
 0x346   :  { %1995 = vperm.xlu1 %8262, %v1949_v49  }
 0x347   :  { %1990 = vperm.xlu0 %8261, %v1948_v47  }
 0x34b   :  { %v1965_v4 = vpop.permute.xlu1 %1964 }
 0x34c   :  { %v1941_v45 = vpop.permute.xlu0 %1940  ;;  %v1981_v33 = vmul.f32 %v1965_v4, %v9348_v62  ;;  %v1982_v57 = vmul.f32 %v1965_v4, %v9370_v36  ;;  %v1980_v20 = vmul.f32 %v1965_v4, %v9346_v23  ;;  %v1983_v62 = vmul.f32 %v1965_v4, %v9372_v17 }
 0x34d   :  { %v1950_v24 = vsub.f32 %v14619_v39, %v1941_v45  ;;  %v1984_v17 = vmul.f32 %v9457_v30, %v9382_v43  ;;  %v1986_v39 = vmul.f32 %v9457_v30, %v9406_v2  ;;  %v1985_v43 = vmul.f32 %v9457_v30, %v9385_v25 }
 0x34e   :  { %v1987_v2 = vmul.f32 %v9457_v30, %v9409_v22 }
 0x34f   :  { %2005 = vperm.xlu0 %8261, %v1951_v56   ;;  %2000 = vperm.xlu1 %8262, %v1950_v24  }
 0x3b8   :  { %v1996_v14 = vpop.permute.xlu1 %1995 }
 0x3b9   :  { %v1991_v50 = vpop.permute.xlu0 %1990  ;;  %v2014_v6 = vadd.f32 %v1996_v14, %v1978_v44  ;;  %v2013_v63 = vadd.f32 %v1996_v14, %v1977_v29  ;;  %v2012_v1 = vadd.f32 %v1996_v14, %v1976_v8  ;;  %v2015_v51 = vadd.f32 %v1996_v14, %v1979_v32 }
 0x3ba   :  { %v2008_v12 = vadd.f32 %v1991_v50, %v1972_v59  ;;  %v2009_v35 = vadd.f32 %v1991_v50, %v1973_v34  ;;  %v2010_v46 = vadd.f32 %v1991_v50, %v1974_v52  ;;  %v2011_v42 = vadd.f32 %v1991_v50, %v1975_v58 }
 0x3bb   :  { %v9488_v0 = vmax.f32 %v2014_v6, 0.0  ;;  %v9498_v37 = vmax.f32 %v2013_v63, 0.0  ;;  %v9500_v61 = vmax.f32 %v2012_v1, 0.0  ;;  %v9509_v19 = vmax.f32 %v2015_v51, 0.0  ;;  %v14621_v51 = vld [vmem:[#allocation2_spill] sm:$0xff] }
 0x3bc   :  { %v9466_v38 = vmax.f32 %v2008_v12, 0.0  ;;  %v9468_v31 = vmax.f32 %v2009_v35, 0.0  ;;  %v9470_v27 = vmax.f32 %v2010_v46, 0.0  ;;  %v9479_v15 = vmax.f32 %v2011_v42, 0.0 }
 0x3bd   :  { %vm14638_vm6 = vcmp.lt.s32.totalorder %v14621_v51, 127 }
 0x3be   :  { %2124 = vrot.lane.b32.xlu0 %v9470_v27, %s8334_s29  ;;  %2108 = vrot.lane.b32.xlu2 %v9466_v38, %s8334_s29  ;;  %vm14639_vm7 = vmmov %vm14638_vm6 }
 0x3bf   :  { %2116 = vrot.lane.b32.xlu1 %v9468_v31, %s8334_s29  ;;  %vm14640_vm8 = vmmov %vm14638_vm6 }
 0x3c0   :  { %vm14642_vm9 = vmmov %vm14638_vm6 }
 0x3c1   :  { %v2001_v48 = vpop.permute.xlu1 %2000  ;;  %v2006_v23 = vpop.permute.xlu0 %2005  ;;  %vm14644_vm10 = vmmov %vm14638_vm6 }
 0x3c2   :  { %v2017_v54 = vadd.f32 %v2001_v48, %v1981_v33  ;;  %v2018_v53 = vadd.f32 %v2001_v48, %v1982_v57  ;;  %v2016_v36 = vadd.f32 %v2001_v48, %v1980_v20  ;;  %v2019_v9 = vadd.f32 %v2001_v48, %v1983_v62  ;;  %vm14645_vm11 = vmmov %vm14638_vm6 }
 0x3c3   :  { %v2020_v60 = vadd.f32 %v2006_v23, %v1984_v17  ;;  %v2022_v16 = vadd.f32 %v2006_v23, %v1986_v39  ;;  %v2021_v21 = vadd.f32 %v2006_v23, %v1985_v43  ;;  %v2023_v18 = vadd.f32 %v2006_v23, %v1987_v2  ;;  %vm14646_vm12 = vmmov %vm14638_vm6 }
 0x3c4   :  { %v9519_v13 = vmax.f32 %v2017_v54, 0.0  ;;  %v9521_v5 = vmax.f32 %v2018_v53, 0.0  ;;  %v9531_v28 = vmax.f32 %v2016_v36, 0.0  ;;  %v9533_v41 = vmax.f32 %v2019_v9, 0.0  ;;  %v14622_v54 = vld [vmem:[#allocation4_spill] sm:$0xff]  ;;  %v14623_v36 = vld [vmem:[#allocation5_spill] sm:$0xff]  ;;  %vm14647_vm13 = vmmov %vm14638_vm6 }
 0x3c5   :  { %v9551_v10 = vmax.f32 %v2020_v60, 0.0  ;;  %v9553_v7 = vmax.f32 %v2022_v16, 0.0  ;;  %v9565_v3 = vmax.f32 %v2021_v21, 0.0  ;;  %v9567_v40 = vmax.f32 %v2023_v18, 0.0  ;;  %vm14648_vm14 = vmmov %vm14638_vm6 }
 0x3c6   :  { %2132 = vrot.lane.b32.xlu0 %v9479_v15, %s8334_s29  ;;  %2056 = vrot.lane.b32.xlu2 %v9470_v27, %s8333_s28  ;;  %vm14649_vm15 = vmmov %vm14638_vm6 }
 0x3c7   :  { %2040 = vrot.lane.b32.xlu1 %v9466_v38, %s8333_s28  ;;  %vm14650_vm3 = vmmov %vm14638_vm6 }
 0x3ce   :  { %2048 = vrot.lane.b32.xlu0 %v9468_v31, %s8333_s28  ;;  %2064 = vrot.lane.b32.xlu2 %v9479_v15, %s8333_s28 }
 0x3cf   :  { %2126 = vrot.lane.b32.xlu1 %v9488_v0, %s8334_s29 }
 0x3d6   :  { %2058 = vrot.lane.b32.xlu0 %v9488_v0, %s8333_s28  ;;  %2118 = vrot.lane.b32.xlu2 %v9498_v37, %s8334_s29 }
 0x3d7   :  { %2110 = vrot.lane.b32.xlu1 %v9500_v61, %s8334_s29 }
 0x3de   :  { %2134 = vrot.lane.b32.xlu2 %v9509_v19, %s8334_s29  ;;  %2042 = vrot.lane.b32.xlu0 %v9500_v61, %s8333_s28 }
 0x3df   :  { %2050 = vrot.lane.b32.xlu1 %v9498_v37, %s8333_s28 }
 0x3e6   :  { %2128 = vrot.lane.b32.xlu2 %v9521_v5, %s8334_s29  ;;  %2120 = vrot.lane.b32.xlu0 %v9519_v13, %s8334_s29 }
 0x3e7   :  { %2066 = vrot.lane.b32.xlu1 %v9509_v19, %s8333_s28 }
 0x3ee   :  { %2136 = vrot.lane.b32.xlu0 %v9533_v41, %s8334_s29  ;;  %2112 = vrot.lane.b32.xlu2 %v9531_v28, %s8334_s29 }
 0x3ef   :  { %2060 = vrot.lane.b32.xlu1 %v9521_v5, %s8333_s28 }
 0x3f6   :  { %2454 = vrot.lane.b32.xlu0 %v9521_v5, %s8335_s0  ;;  %2052 = vrot.lane.b32.xlu2 %v9519_v13, %s8333_s28 }
 0x3f7   :  { %2044 = vrot.lane.b32.xlu1 %v9531_v28, %s8333_s28 }
 0x3fe   :  { %2114 = vrot.lane.b32.xlu0 %v9551_v10, %s8334_s29  ;;  %2068 = vrot.lane.b32.xlu2 %v9533_v41, %s8333_s28 }
 0x3ff   :  { %2130 = vrot.lane.b32.xlu1 %v9553_v7, %s8334_s29 }
 0x406   :  { %2444 = vrot.lane.b32.xlu0 %v9498_v37, %s8335_s0  ;;  %2122 = vrot.lane.b32.xlu2 %v9565_v3, %s8334_s29 }
 0x407   :  { %2138 = vrot.lane.b32.xlu1 %v9567_v40, %s8334_s29 }
 0x40e   :  { %2438 = vrot.lane.b32.xlu0 %v9531_v28, %s8335_s0  ;;  %2452 = vrot.lane.b32.xlu2 %v9488_v0, %s8335_s0 }
 0x40f   :  { %2446 = vrot.lane.b32.xlu1 %v9519_v13, %s8335_s0 }
 0x416   :  { %2062 = vrot.lane.b32.xlu0 %v9553_v7, %s8333_s28  ;;  %2442 = vrot.lane.b32.xlu2 %v9468_v31, %s8335_s0 }
 0x417   :  { %2462 = vrot.lane.b32.xlu1 %v9533_v41, %s8335_s0 }
 0x418   :  { %v9587_v25 = vpop.permute.xlu2 %2108 }
 0x41e   :  { %2070 = vrot.lane.b32.xlu0 %v9567_v40, %s8333_s28  ;;  %2436 = vrot.lane.b32.xlu2 %v9500_v61, %s8335_s0 }
 0x41f   :  { %2054 = vrot.lane.b32.xlu1 %v9565_v3, %s8333_s28 }
 0x420   :  { %v9595_v22 = vpop.permute.xlu2 %2056 }
 0x426   :  { %2460 = vrot.lane.b32.xlu0 %v9509_v19, %s8335_s0  ;;  %2046 = vrot.lane.b32.xlu2 %v9551_v10, %s8333_s28 }
 0x427   :  { %2450 = vrot.lane.b32.xlu1 %v9470_v27, %s8335_s0 }
 0x428   :  { %v9603_v30 = vpop.permute.xlu2 %2064 }
 0x42e   :  { %2434 = vrot.lane.b32.xlu0 %v9466_v38, %s8335_s0  ;;  %2667 = vrot.lane.b32.xlu2 %v9521_v5, %s8336_s30 }
 0x42f   :  { %2458 = vrot.lane.b32.xlu1 %v9479_v15, %s8335_s0 }
 0x430   :  { %v9611_v26 = vpop.permute.xlu0 %2124  ;;  %v2119_v49 = vpop.permute.xlu2 %2118 }
 0x431   :  { %v9613_v47 = vpop.permute.xlu1 %2116 }
 0x432   :  { %v2148_v60 = vsel %vm111_vm0, %v9587_v25, %v9613_v47  ;;  %v2144_v43 = vsel %vm111_vm0, %v9613_v47, %v9611_v26  ;;  %v7838_v47 = vld [vmem:[%s14287_s3 + $0x20] sm:$0xff] }
 0x436   :  { %2659 = vrot.lane.b32.xlu0 %v9519_v13, %s8336_s30  ;;  %2657 = vrot.lane.b32.xlu2 %v9498_v37, %s8336_s30 }
 0x437   :  { %2665 = vrot.lane.b32.xlu1 %v9488_v0, %s8336_s30 }
 0x438   :  { %v9621_v11 = vpop.permute.xlu0 %2132  ;;  %v9623_v45 = vpop.permute.xlu2 %2134 }
 0x439   :  { %v9625_v56 = vpop.permute.xlu1 %2040 }
 0x43e   :  { %2448 = vrot.lane.b32.xlu0 %v9565_v3, %s8335_s0  ;;  %2456 = vrot.lane.b32.xlu2 %v9553_v7, %s8335_s0 }
 0x43f   :  { %2655 = vrot.lane.b32.xlu1 %v9468_v31, %s8336_s30 }
 0x440   :  { %v9633_v24 = vpop.permute.xlu0 %2048  ;;  %v9635_v55 = vpop.permute.xlu2 %2128 }
 0x441   :  { %v9637_v59 = vpop.permute.xlu1 %2126 }
 0x442   :  { %v2145_v17 = vsel %vm111_vm0, %v2119_v49, %v9637_v59 }
 0x446   :  { %2675 = vrot.lane.b32.xlu0 %v9533_v41, %s8336_s30  ;;  %2464 = vrot.lane.b32.xlu2 %v9567_v40, %s8335_s0 }
 0x447   :  { %2440 = vrot.lane.b32.xlu1 %v9551_v10, %s8335_s0 }
 0x448   :  { %v9645_v34 = vpop.permute.xlu0 %2058  ;;  %v9647_v52 = vpop.permute.xlu2 %2112 }
 0x449   :  { %v9649_v50 = vpop.permute.xlu1 %2110 }
 0x44a   :  { %v2149_v23 = vsel %vm111_vm0, %v9649_v50, %v2119_v49  ;;  %v2162_v49 = vmul.f32 %v2145_v17, %v14623_v36  ;;  %v14625_v17 = vld [vmem:[#allocation6_spill] sm:$0xff] }
 0x44b   :  { %v2161_v2 = vmul.f32 %v2149_v23, %v14622_v54 }
 0x44e   :  { %2663 = vrot.lane.b32.xlu0 %v9470_v27, %s8336_s30  ;;  %2651 = vrot.lane.b32.xlu2 %v9531_v28, %s8336_s30 }
 0x44f   :  { %2649 = vrot.lane.b32.xlu1 %v9500_v61, %s8336_s30 }
 0x450   :  { %v9657_v12 = vpop.permute.xlu0 %2042  ;;  %v9659_v35 = vpop.permute.xlu2 %2052 }
 0x451   :  { %v9661_v46 = vpop.permute.xlu1 %2050 }
 0x456   :  { %2671 = vrot.lane.b32.xlu0 %v9479_v15, %s8336_s30  ;;  %2673 = vrot.lane.b32.xlu2 %v9509_v19, %s8336_s30 }
 0x457   :  { %3029 = vrot.lane.b32.xlu1 %v9521_v5, %s8337_s8 }
 0x458   :  { %v2121_v58 = vpop.permute.xlu0 %2120  ;;  %v9669_v4 = vpop.permute.xlu2 %2068 }
 0x459   :  { %v9671_v42 = vpop.permute.xlu1 %2066  ;;  %v2150_v57 = vsel %vm111_vm0, %v9647_v52, %v2121_v58  ;;  %v2146_v62 = vsel %vm111_vm0, %v2121_v58, %v9635_v55 }
 0x45a   :  { %v2165_v39 = vmul.f32 %v2150_v57, %v14622_v54  ;;  %v2166_v16 = vmul.f32 %v2146_v62, %v14623_v36 }
 0x45e   :  { %2653 = vrot.lane.b32.xlu0 %v9551_v10, %s8336_s30  ;;  %2647 = vrot.lane.b32.xlu2 %v9466_v38, %s8336_s30 }
 0x45f   :  { %2669 = vrot.lane.b32.xlu1 %v9553_v7, %s8336_s30 }
 0x460   :  { %v2137_v14 = vpop.permute.xlu0 %2136  ;;  %v2123_v44 = vpop.permute.xlu2 %2122 }
 0x461   :  { %v9679_v6 = vpop.permute.xlu1 %2060  ;;  %v2154_v62 = vsel %vm111_vm0, %v2137_v14, %v9647_v52 }
 0x466   :  { %3037 = vrot.lane.b32.xlu0 %v9533_v41, %s8337_s8  ;;  %2661 = vrot.lane.b32.xlu2 %v9565_v3, %s8336_s30 }
 0x467   :  { %2677 = vrot.lane.b32.xlu1 %v9567_v40, %s8336_s30 }
 0x468   :  { %v9687_v29 = vpop.permute.xlu0 %2454  ;;  %v9689_v8 = vpop.permute.xlu2 %2452 }
 0x469   :  { %v9691_v63 = vpop.permute.xlu1 %2044 }
 0x46e   :  { %3027 = vrot.lane.b32.xlu0 %v9488_v0, %s8337_s8  ;;  %3013 = vrot.lane.b32.xlu2 %v9531_v28, %s8337_s8 }
 0x46f   :  { %3011 = vrot.lane.b32.xlu1 %v9500_v61, %s8337_s8 }
 0x470   :  { %v2115_v1 = vpop.permute.xlu0 %2114  ;;  %v9699_v32 = vpop.permute.xlu2 %2442 }
 0x471   :  { %v2151_v48 = vsel %vm111_vm0, %v2115_v1, %v2123_v44  ;;  %v2131_v33 = vpop.permute.xlu1 %2130 }
 0x472   :  { %v2169_v53 = vmul.f32 %v2151_v48, %v14622_v54  ;;  %v2147_v20 = vsel %vm111_vm0, %v2123_v44, %v2131_v33  ;;  %v2157_v44 = vmul.f32 %v2148_v60, %v14622_v54 }
 0x473   :  { %v2170_v9 = vmul.f32 %v2147_v20, %v14623_v36  ;;  %v2142_v20 = vsel %vm111_vm0, %v9635_v55, %v2137_v14  ;;  %v2153_v55 = vsel %vm111_vm0, %v9623_v45, %v9649_v50 }
 0x474   :  { %2231 = vmatpush.msrb.mxu1 %v2169_v53  ;;  %v2158_v53 = vmul.f32 %v2144_v43, %v14623_v36  ;;  %v2167_v14 = vmul.f32 %v2142_v20, %v14625_v17  ;;  %v7839_v43 = vld [vmem:[%s14287_s3 + $0x28] sm:$0xff]  ;;  %v7977_v36 = vld [vmem:[%s14287_s3 + $0xf8] sm:$0xff] }
 0x475   :  { %2260 = vmatpush.msrb.mxu2 %v2170_v9  ;;  %v14624_v9 = vld [vmem:[#allocation3_spill] sm:$0xff] }
 0x476   :  { %3021 = vrot.lane.b32.xlu0 %v9519_v13, %s8337_s8  ;;  %3035 = vrot.lane.b32.xlu2 %v9509_v19, %s8337_s8  ;;  %v2164_v52 = vmul.f32 %v2154_v62, %v14624_v9  ;;  %v2160_v60 = vmul.f32 %v2153_v55, %v14624_v9  ;;  %v14626_v62 = vld [vmem:[#allocation10_spill] sm:$0xff] }
 0x477   :  { %3033 = vrot.lane.b32.xlu1 %v9479_v15, %s8337_s8  ;;  %2232 = vmatpush.msrb.mxu1 %v2165_v39 }
 0x478   :  { %2261 = vmatpush.msrb.mxu2 %v2166_v16  ;;  %v9736_v21 = vpop.permute.xlu0 %2444  ;;  %v9738_v18 = vpop.permute.xlu2 %2436 }
 0x479   :  { %2233 = vmatpush.msrb.mxu1 %v2161_v2  ;;  %v2139_v58 = vpop.permute.xlu1 %2138 }
 0x47a   :  { %2262 = vmatpush.msrb.mxu2 %v2162_v49  ;;  %v2143_v48 = vsel %vm111_vm0, %v2131_v33, %v2139_v58  ;;  %v2155_v57 = vsel %vm111_vm0, %v2139_v58, %v2115_v1  ;;  %v2141_v1 = vsel %vm111_vm0, %v9637_v59, %v9623_v45  ;;  %v2140_v59 = vsel %vm111_vm0, %v9611_v26, %v9621_v11 }
 0x47b   :  { %v2168_v23 = vmul.f32 %v2155_v57, %v14624_v9  ;;  %v2171_v39 = vmul.f32 %v2143_v48, %v14625_v17  ;;  %2234 = vmatpush.msrb.mxu1 %v2157_v44  ;;  %v2152_v45 = vsel %vm111_vm0, %v9621_v11, %v9587_v25  ;;  %v2163_v26 = vmul.f32 %v2141_v1, %v14625_v17  ;;  %v7840_v44 = vld [vmem:[%s14287_s3 + $0x30] sm:$0xff] }
 0x47c   :  { %2263 = vmatpush.msrb.mxu2 %v2158_v53  ;;  %7846 = vmatmul.msk.f32.vlgmr.msrb.gmra.mxu1 %vm2177_vm2, %v7838_v47  ;;  %v2156_v25 = vmul.f32 %v2152_v45, %v14624_v9  ;;  %v2159_v11 = vmul.f32 %v2140_v59, %v14625_v17  ;;  %v14628_v59 = vld [vmem:[#allocation8_spill] sm:$0xff] }
 0x47d   :  { %7850 = vmatmul.msk.f32.vlgmr.msrb.gmra.mxu2 %vm2177_vm2, %v7838_v47  ;;  %2202 = vmatpush.msrb.mxu0 %v2168_v23 }
 0x47e   :  { %2289 = vmatpush.msrb.mxu3 %v2171_v39  ;;  %3009 = vrot.lane.b32.xlu0 %v9466_v38, %s8337_s8  ;;  %v14627_v39 = vld [vmem:[#allocation9_spill] sm:$0xff] }
 0x47f   :  { %3017 = vrot.lane.b32.xlu1 %v9468_v31, %s8337_s8  ;;  %3025 = vrot.lane.b32.xlu2 %v9470_v27, %s8337_s8 }
 0x480   :  { %2203 = vmatpush.msrb.mxu0 %v2164_v52  ;;  %2290 = vmatpush.msrb.mxu3 %v2167_v14  ;;  %v9784_v50 = vpop.permute.xlu0 %2438  ;;  %v2047_v33 = vpop.permute.xlu2 %2046  ;;  %v7841_v14 = vld [vmem:[%s14287_s3 + $0x38] sm:$0xff] }
 0x481   :  { %v9788_v16 = vpop.permute.xlu1 %2446 }
 0x482   :  { %2204 = vmatpush.msrb.mxu0 %v2160_v60  ;;  %2291 = vmatpush.msrb.mxu3 %v2163_v26  ;;  %v14629_v60 = vld [vmem:[#allocation7_spill] sm:$0xff] }
 0x484   :  { %2205 = vmatpush.msrb.mxu0 %v2156_v25  ;;  %2292 = vmatpush.msrb.mxu3 %v2159_v11  ;;  %v2086_v25 = vsel %vm70_vm1, %v9669_v4, %v9691_v63  ;;  %v2078_v11 = vsel %vm70_vm1, %v9659_v35, %v9679_v6 }
 0x485   :  { %7842 = vmatmul.msk.f32.vlgmr.msrb.gmra.mxu0 %vm2177_vm2, %v7838_v47  ;;  %7847 = vmatmul.msk.f32.gmra.mxu1 %vm2177_vm2, %v7839_v43 }
 0x486   :  { %7851 = vmatmul.msk.f32.gmra.mxu2 %vm2177_vm2, %v7839_v43  ;;  %7854 = vmatmul.msk.f32.vlgmr.msrb.gmra.mxu3 %vm2177_vm2, %v7838_v47 }
 0x487   :  { %3242 = vrot.lane.b32.xlu0 %v9521_v5, %s8338_s23  ;;  %3226 = vrot.lane.b32.xlu1 %v9531_v28, %s8338_s23 }
 0x488   :  { %3019 = vrot.lane.b32.xlu2 %v9498_v37, %s8337_s8  ;;  %v2063_v2 = vpop.permute.xlu0 %2062  ;;  %v9805_v49 = vpop.permute.xlu2 %2667 }
 0x489   :  { %v9807_v58 = vpop.permute.xlu1 %2462 }
 0x48d   :  { %7843 = vmatmul.msk.f32.gmra.mxu0 %vm2177_vm2, %v7839_v43  ;;  %7848 = vmatmul.msk.f32.gmra.mxu1 %vm2177_vm2, %v7840_v44 }
 0x48e   :  { %7852 = vmatmul.msk.f32.gmra.mxu2 %vm2177_vm2, %v7840_v44  ;;  %7855 = vmatmul.msk.f32.gmra.mxu3 %vm2177_vm2, %v7839_v43  ;;  %v2082_v43 = vsel %vm70_vm1, %v9691_v63, %v9659_v35  ;;  %v2077_v35 = vsel %vm70_vm1, %v9661_v46, %v9645_v34  ;;  %v2081_v63 = vsel %vm70_vm1, %v9657_v12, %v9661_v46 }
 0x48f   :  { %3224 = vrot.lane.b32.xlu0 %v9500_v61, %s8338_s23  ;;  %3248 = vrot.lane.b32.xlu1 %v9509_v19, %s8338_s23 }
 0x490   :  { %3250 = vrot.lane.b32.xlu2 %v9533_v41, %s8338_s23  ;;  %v2071_v47 = vpop.permute.xlu0 %2070  ;;  %v9822_v48 = vpop.permute.xlu2 %2657 }
 0x491   :  { %v2075_v57 = vsel %vm70_vm1, %v2063_v2, %v2071_v47  ;;  %v2087_v53 = vsel %vm70_vm1, %v2071_v47, %v2047_v33  ;;  %v2055_v20 = vpop.permute.xlu1 %2054  ;;  %v2085_v47 = vsel %vm70_vm1, %v9671_v42, %v9657_v12 }
 0x492   :  { %v2100_v23 = vmul.f32 %v2087_v53, %v14626_v62  ;;  %v2103_v1 = vmul.f32 %v2075_v57, %v14627_v39  ;;  %v2079_v55 = vsel %vm70_vm1, %v2055_v20, %v2063_v2  ;;  %v2083_v52 = vsel %vm70_vm1, %v2047_v33, %v2055_v20 }
 0x493   :  { %v2101_v45 = vmul.f32 %v2083_v52, %v14628_v59  ;;  %v2102_v26 = vmul.f32 %v2079_v55, %v14629_v60  ;;  %v2084_v33 = vsel %vm70_vm1, %v9603_v30, %v9625_v56  ;;  %v2076_v2 = vsel %vm70_vm1, %v9633_v24, %v9595_v22 }
 0x494   :  { %2330 = vmatpush.msra.mxu0 %v2100_v23  ;;  %2417 = vmatpush.msra.mxu3 %v2103_v1  ;;  %v2074_v57 = vsel %vm70_vm1, %v9679_v6, %v9669_v4  ;;  %v2096_v53 = vmul.f32 %v2086_v25, %v14626_v62  ;;  %v2073_v4 = vsel %vm70_vm1, %v9645_v34, %v9671_v42 }
 0x495   :  { %7844 = vmatmul.msk.f32.gmra.mxu0 %vm2177_vm2, %v7840_v44  ;;  %7849 = vmatmul.msk.f32.gmra.mxu1 %vm2177_vm2, %v7841_v14  ;;  %v2097_v6 = vmul.f32 %v2082_v43, %v14628_v59  ;;  %v2080_v20 = vsel %vm70_vm1, %v9625_v56, %v9633_v24  ;;  %v2099_v34 = vmul.f32 %v2074_v57, %v14627_v39 }
 0x496   :  { %7853 = vmatmul.msk.f32.gmra.mxu2 %vm2177_vm2, %v7841_v14  ;;  %7856 = vmatmul.msk.f32.gmra.mxu3 %vm2177_vm2, %v7840_v44  ;;  %v2098_v44 = vmul.f32 %v2078_v11, %v14629_v60  ;;  %v2092_v42 = vmul.f32 %v2085_v47, %v14626_v62  ;;  %v2072_v1 = vsel %vm70_vm1, %v9595_v22, %v9603_v30  ;;  %v2104_v30 = vld [vmem:[%s14287_s3] sm:$0xff] }
 0x497   :  { %2359 = vmatpush.msra.mxu1 %v2101_v45  ;;  %2388 = vmatpush.msra.mxu2 %v2102_v26  ;;  %v2093_v55 = vmul.f32 %v2081_v63, %v14628_v59  ;;  %v2094_v56 = vmul.f32 %v2077_v35, %v14629_v60  ;;  %v2095_v24 = vmul.f32 %v2073_v4, %v14627_v39  ;;  %v2105_v35 = vld [vmem:[%s14287_s3 + $0x8] sm:$0xff] }
 0x498   :  { %3246 = vrot.lane.b32.xlu0 %v9479_v15, %s8338_s23  ;;  %3238 = vrot.lane.b32.xlu1 %v9470_v27, %s8338_s23  ;;  %v9890_v12 = vpop.permute.xlu0 %2460  ;;  %v9892_v46 = vpop.permute.xlu2 %2456  ;;  %v2088_v52 = vmul.f32 %v2084_v33, %v14626_v62  ;;  %v2089_v45 = vmul.f32 %v2080_v20, %v14628_v59  ;;  %v2090_v26 = vmul.f32 %v2076_v2, %v14629_v60  ;;  %v14630_v2 = vld [vmem:[#allocation14_spill] sm:$0xff] }
 0x499   :  { %3240 = vrot.lane.b32.xlu2 %v9488_v0, %s8338_s23  ;;  %2331 = vmatpush.msra.mxu0 %v2096_v53  ;;  %v9902_v23 = vpop.permute.xlu1 %2450  ;;  %v2091_v22 = vmul.f32 %v2072_v1, %v14627_v39  ;;  %v2468_v11 = vsel %vm435_vm4, %v9687_v29, %v9807_v58  ;;  %v2467_v63 = vsel %vm435_vm4, %v9689_v8, %v9890_v12  ;;  %v14692_v62 = vld [vmem:[#allocation30_spill] sm:$0xff] }
 0x49a   :  { %2360 = vmatpush.msra.mxu1 %v2097_v6  ;;  %2389 = vmatpush.msra.mxu2 %v2098_v44  ;;  %v2493_v57 = vmul.f32 %v2468_v11, %v14630_v2  ;;  %v2489_v44 = vmul.f32 %v2467_v63, %v14630_v2  ;;  %v14632_v63 = vld [vmem:[#allocation13_spill] sm:$0xff]  ;;  %v14704_v60 = vld [vmem:[#allocation34_spill] sm:$0xff] }
 0x49b   :  { %2418 = vmatpush.msra.mxu3 %v2099_v34  ;;  %2332 = vmatpush.msra.mxu0 %v2092_v42  ;;  %v2106_v42 = vld [vmem:[%s14287_s3 + $0x10] sm:$0xff] }
 0x49c   :  { %2361 = vmatpush.msra.mxu1 %v2093_v55  ;;  %2390 = vmatpush.msra.mxu2 %v2094_v56  ;;  %v2472_v56 = vsel %vm435_vm4, %v9788_v16, %v9687_v29 }
 0x49d   :  { %2419 = vmatpush.msra.mxu3 %v2095_v24  ;;  %2333 = vmatpush.msra.mxu0 %v2088_v52 }
 0x49e   :  { %2362 = vmatpush.msra.mxu1 %v2089_v45  ;;  %2391 = vmatpush.msra.mxu2 %v2090_v26  ;;  %v14631_v45 = vld [vmem:[#allocation11_spill] sm:$0xff] }
 0x49f   :  { %2420 = vmatpush.msra.mxu3 %v2091_v22  ;;  %7845 = vmatmul.msk.f32.gmra.mxu0 %vm2177_vm2, %v7841_v14  ;;  %v2492_v29 = vmul.f32 %v2472_v56, %v14631_v45  ;;  %v2107_v22 = vld [vmem:[%s14287_s3 + $0x18] sm:$0xff] }
 0x4a0   :  { %7857 = vmatmul.msk.f32.gmra.mxu3 %vm2177_vm2, %v7841_v14  ;;  %7862 = vmatmul.msk.f32.vlgmr.msra.gmra.mxu1 %vm2177_vm2, %v2104_v30  ;;  %v9921_v25 = vpop.permute.xlu0 %2434  ;;  %v2465_v33 = vpop.permute.xlu2 %2464 }
 0x4a1   :  { %7866 = vmatmul.msk.f32.vlgmr.msra.gmra.mxu2 %vm2177_vm2, %v2104_v30  ;;  %3039 = vrot.lane.b32.xlu0 %v9567_v40, %s8337_s8  ;;  %v2469_v43 = vsel %vm435_vm4, %v9892_v46, %v2465_v33  ;;  %v9933_v14 = vpop.permute.xlu1 %2458 }
 0x4a2   :  { %3031 = vrot.lane.b32.xlu1 %v9553_v7, %s8337_s8  ;;  %3234 = vrot.lane.b32.xlu2 %v9519_v13, %s8338_s23  ;;  %v2497_v47 = vmul.f32 %v2469_v43, %v14630_v2  ;;  %v2466_v53 = vsel %vm435_vm4, %v9902_v23, %v9933_v14 }
 0x4a3   :  { %v2485_v34 = vmul.f32 %v2466_v53, %v14630_v2  ;;  %v14665_v2 = vld [vmem:[#allocation24_spill] sm:$0xff] }
 0x4a4   :  { %2614 = vmatpush.msrb.mxu3 %v2497_v47 }
 0x4a6   :  { %2615 = vmatpush.msrb.mxu3 %v2493_v57 }
 0x4a7   :  { %7858 = vmatmul.msk.f32.vlgmr.msra.gmra.mxu0 %vm2177_vm2, %v2104_v30 }
 0x4a8   :  { %7863 = vmatmul.msk.f32.gmra.mxu1 %vm2177_vm2, %v2105_v35  ;;  %7870 = vmatmul.msk.f32.vlgmr.msra.gmra.mxu3 %vm2177_vm2, %v2104_v30  ;;  %v9955_v4 = vpop.permute.xlu0 %2659  ;;  %v9957_v6 = vpop.permute.xlu2 %2651  ;;  %v2470_v30 = vsel %vm435_vm4, %v9699_v32, %v9902_v23 }
 0x4a9   :  { %7867 = vmatmul.msk.f32.gmra.mxu2 %vm2177_vm2, %v2105_v35  ;;  %3230 = vrot.lane.b32.xlu0 %v9468_v31, %s8338_s23  ;;  %v9963_v20 = vpop.permute.xlu1 %2665 }
 0x4aa   :  { %3023 = vrot.lane.b32.xlu1 %v9565_v3, %s8337_s8  ;;  %3015 = vrot.lane.b32.xlu2 %v9551_v10, %s8337_s8 }
 0x4ab   :  { %2616 = vmatpush.msrb.mxu3 %v2489_v44  ;;  %v14633_v44 = vld [vmem:[#allocation12_spill] sm:$0xff] }
 0x4ad   :  { %2617 = vmatpush.msrb.mxu3 %v2485_v34 }
 0x4af   :  { %7859 = vmatmul.msk.f32.gmra.mxu0 %vm2177_vm2, %v2105_v35 }
 0x4b0   :  { %7864 = vmatmul.msk.f32.gmra.mxu1 %vm2177_vm2, %v2106_v42  ;;  %7871 = vmatmul.msk.f32.gmra.mxu3 %vm2177_vm2, %v2105_v35  ;;  %v2449_v1 = vpop.permute.xlu0 %2448  ;;  %v9976_v55 = vpop.permute.xlu2 %2673  ;;  %v2480_v35 = vsel %vm435_vm4, %v9807_v58, %v9784_v50  ;;  %v7874_v58 = vld [vmem:[%s14287_s3 + $0x40] sm:$0xff] }
 0x4b1   :  { %7868 = vmatmul.msk.f32.gmra.mxu2 %vm2177_vm2, %v2106_v42  ;;  %3439 = vrot.lane.b32.xlu0 %v9531_v28, %s8339_s13  ;;  %v2473_v24 = vsel %vm435_vm4, %v2449_v1, %v9892_v46  ;;  %v9988_v52 = vpop.permute.xlu1 %2655  ;;  %v2471_v46 = vsel %vm435_vm4, %v9736_v21, %v9689_v8  ;;  %v2490_v56 = vmul.f32 %v2480_v35, %v14632_v63 }
 0x4b2   :  { %3232 = vrot.lane.b32.xlu1 %v9498_v37, %s8338_s23  ;;  %3222 = vrot.lane.b32.xlu2 %v9466_v38, %s8338_s23  ;;  %v2496_v26 = vmul.f32 %v2473_v24, %v14631_v45  ;;  %v2488_v8 = vmul.f32 %v2471_v46, %v14631_v45  ;;  %v2475_v24 = vsel %vm435_vm4, %v9738_v18, %v9736_v21 }
 0x4b3   :  { %v2689_v35 = vsel %vm633_vm5, %v9957_v6, %v9955_v4 }
 0x4b4   :  { %2585 = vmatpush.msrb.mxu2 %v2496_v26 }
 0x4b6   :  { %2586 = vmatpush.msrb.mxu2 %v2492_v29  ;;  %v2487_v29 = vmul.f32 %v2475_v24, %v14633_v44 }
 0x4b7   :  { %7860 = vmatmul.msk.f32.gmra.mxu0 %vm2177_vm2, %v2106_v42 }
 0x4b8   :  { %7865 = vmatmul.msk.f32.gmra.mxu1 %vm2177_vm2, %v2107_v22  ;;  %7872 = vmatmul.msk.f32.gmra.mxu3 %vm2177_vm2, %v2106_v42  ;;  %v10010_v11 = vpop.permute.xlu0 %2675  ;;  %v10012_v43 = vpop.permute.xlu2 %2647  ;;  %v2484_v42 = vmul.f32 %v2470_v30, %v14631_v45 }
 0x4b9   :  { %7869 = vmatmul.msk.f32.gmra.mxu2 %vm2177_vm2, %v2107_v22  ;;  %3244 = vrot.lane.b32.xlu0 %v9553_v7, %s8338_s23  ;;  %v2441_v47 = vpop.permute.xlu1 %2440 }
 0x4ba   :  { %3463 = vrot.lane.b32.xlu1 %v9533_v41, %s8339_s13  ;;  %3455 = vrot.lane.b32.xlu2 %v9521_v5, %s8339_s13  ;;  %v2477_v23 = vsel %vm435_vm4, %v2441_v47, %v2449_v1  ;;  %v2481_v57 = vsel %vm435_vm4, %v2465_v33, %v2441_v47  ;;  %v2476_v1 = vsel %vm435_vm4, %v9784_v50, %v9788_v16  ;;  %v7876_v47 = vld [vmem:[%s14287_s3 + $0x50] sm:$0xff] }
 0x4bb   :  { %2587 = vmatpush.msrb.mxu2 %v2488_v8  ;;  %v2494_v53 = vmul.f32 %v2481_v57, %v14632_v63  ;;  %v2495_v34 = vmul.f32 %v2477_v23, %v14633_v44  ;;  %v2479_v33 = vsel %vm435_vm4, %v9890_v12, %v9738_v18  ;;  %v2478_v50 = vsel %vm435_vm4, %v9933_v14, %v9921_v25 }
 0x4bc   :  { %v2491_v26 = vmul.f32 %v2476_v1, %v14633_v44  ;;  %v2486_v21 = vmul.f32 %v2479_v33, %v14632_v63  ;;  %v2474_v14 = vsel %vm435_vm4, %v9921_v25, %v9699_v32  ;;  %v7875_v32 = vld [vmem:[%s14287_s3 + $0x48] sm:$0xff]  ;;  %v14634_v1 = vld [vmem:[#allocation16_spill] sm:$0xff] }
 0x4bd   :  { %2588 = vmatpush.msrb.mxu2 %v2484_v42  ;;  %2527 = vmatpush.msrb.mxu0 %v2494_v53  ;;  %v2483_v46 = vmul.f32 %v2474_v14, %v14633_v44  ;;  %v2685_v42 = vsel %vm633_vm5, %v9955_v4, %v9805_v49  ;;  %v2684_v4 = vsel %vm633_vm5, %v9822_v48, %v9963_v20 }
 0x4be   :  { %2556 = vmatpush.msrb.mxu1 %v2495_v34  ;;  %v2687_v14 = vsel %vm633_vm5, %v10012_v43, %v9988_v52 }
 0x4bf   :  { %7861 = vmatmul.msk.f32.gmra.mxu0 %vm2177_vm2, %v2107_v22 }
 0x4c0   :  { %7873 = vmatmul.msk.f32.gmra.mxu3 %vm2177_vm2, %v2107_v22  ;;  %2528 = vmatpush.msrb.mxu0 %v2490_v56  ;;  %v10055_v16 = vpop.permute.xlu0 %2663  ;;  %v2662_v12 = vpop.permute.xlu2 %2661  ;;  %v2482_v22 = vmul.f32 %v2478_v50, %v14632_v63  ;;  %v14635_v56 = vld [vmem:[#allocation15_spill] sm:$0xff]  ;;  %v2704_v50 = vmul.f32 %v2689_v35, %v14634_v1 }
 0x4c1   :  { %7886 = vmatmul.msk.f32.vlgmr.msrb.gmra.mxu2 %vm2177_vm2, %v7874_v58  ;;  %3236 = vrot.lane.b32.xlu0 %v9565_v3, %s8338_s23  ;;  %v10062_v18 = vpop.permute.xlu1 %2649 }
 0x4c2   :  { %3453 = vrot.lane.b32.xlu1 %v9488_v0, %s8339_s13  ;;  %3252 = vrot.lane.b32.xlu2 %v9567_v40, %s8338_s23 }
 0x4c3   :  { %2557 = vmatpush.msrb.mxu1 %v2491_v26  ;;  %2529 = vmatpush.msrb.mxu0 %v2486_v21  ;;  %v2705_v26 = vmul.f32 %v2685_v42, %v14635_v56  ;;  %v2688_v21 = vsel %vm633_vm5, %v10062_v18, %v9822_v48 }
 0x4c5   :  { %2558 = vmatpush.msrb.mxu1 %v2487_v29  ;;  %2530 = vmatpush.msrb.mxu0 %v2482_v22  ;;  %v2683_v29 = vsel %vm633_vm5, %v9988_v52, %v10055_v16 }
 0x4c7   :  { %2559 = vmatpush.msrb.mxu1 %v2483_v46  ;;  %7878 = vmatmul.msk.f32.vlgmr.msrb.gmra.mxu0 %vm2177_vm2, %v7874_v58  ;;  %v2700_v46 = vmul.f32 %v2688_v21, %v14634_v1  ;;  %v2692_v21 = vsel %vm633_vm5, %v9976_v55, %v10062_v18 }
 0x4c8   :  { %7882 = vmatmul.msk.f32.vlgmr.msrb.gmra.mxu1 %vm2177_vm2, %v7874_v58  ;;  %7890 = vmatmul.msk.f32.vlgmr.msrb.gmra.mxu3 %vm2177_vm2, %v7874_v58  ;;  %v10081_v25 = vpop.permute.xlu0 %2671  ;;  %v10083_v30 = vpop.permute.xlu2 %3013 }
 0x4c9   :  { %7887 = vmatmul.msk.f32.gmra.mxu2 %vm2177_vm2, %v7875_v32  ;;  %3461 = vrot.lane.b32.xlu0 %v9509_v19, %s8339_s13  ;;  %v10088_v8 = vpop.permute.xlu1 %3029  ;;  %v2691_v18 = vsel %vm633_vm5, %v10081_v25, %v10012_v43 }
 0x4ca   :  { %3228 = vrot.lane.b32.xlu1 %v9551_v10, %s8338_s23  ;;  %3437 = vrot.lane.b32.xlu2 %v9500_v61, %s8339_s13 }
 0x4cf   :  { %7879 = vmatmul.msk.f32.gmra.mxu0 %vm2177_vm2, %v7875_v32 }
 0x4d0   :  { %7883 = vmatmul.msk.f32.gmra.mxu1 %vm2177_vm2, %v7875_v32  ;;  %7891 = vmatmul.msk.f32.gmra.mxu3 %vm2177_vm2, %v7875_v32  ;;  %v2654_v23 = vpop.permute.xlu0 %2653  ;;  %v10100_v57 = vpop.permute.xlu2 %3035  ;;  %v2701_v32 = vmul.f32 %v2684_v4, %v14635_v56 }
 0x4d1   :  { %7888 = vmatmul.msk.f32.gmra.mxu2 %vm2177_vm2, %v7876_v47  ;;  %3451 = vrot.lane.b32.xlu0 %v9470_v27, %s8339_s13  ;;  %v2690_v53 = vsel %vm633_vm5, %v2654_v23, %v2662_v12  ;;  %v2670_v34 = vpop.permute.xlu1 %2669 }
 0x4d2   :  { %3447 = vrot.lane.b32.xlu1 %v9519_v13, %s8339_s13  ;;  %3459 = vrot.lane.b32.xlu2 %v9479_v15, %s8339_s13  ;;  %v2708_v33 = vmul.f32 %v2690_v53, %v14634_v1  ;;  %v2686_v58 = vsel %vm633_vm5, %v2662_v12, %v2670_v34  ;;  %v7877_v12 = vld [vmem:[%s14287_s3 + $0x58] sm:$0xff]  ;;  %v14636_v53 = vld [vmem:[#allocation18_spill] sm:$0xff] }
 0x4d3   :  { %v2709_v24 = vmul.f32 %v2686_v58, %v14635_v56  ;;  %v2697_v58 = vmul.f32 %v2683_v29, %v14635_v56 }
 0x4d4   :  { %2769 = vmatpush.msra.mxu1 %v2708_v33  ;;  %v2696_v33 = vmul.f32 %v2687_v14, %v14634_v1 }
 0x4d5   :  { %2798 = vmatpush.msra.mxu2 %v2709_v24  ;;  %v14637_v24 = vld [vmem:[#allocation17_spill] sm:$0xff] }
 0x4d6   :  { %2770 = vmatpush.msra.mxu1 %v2704_v50  ;;  %v2699_v14 = vmul.f32 %v2692_v21, %v14637_v24  ;;  %v2695_v29 = vmul.f32 %v2691_v18, %v14637_v24 }
 0x4d7   :  { %7880 = vmatmul.msk.f32.gmra.mxu0 %vm2177_vm2, %v7876_v47  ;;  %2799 = vmatpush.msra.mxu2 %v2705_v26  ;;  %v7894_v26 = vld [vmem:[%s14287_s3 + $0x60] sm:$0xff] }
 0x4d8   :  { %7884 = vmatmul.msk.f32.gmra.mxu1 %vm2177_vm2, %v7876_v47  ;;  %7892 = vmatmul.msk.f32.gmra.mxu3 %vm2177_vm2, %v7876_v47  ;;  %v10147_v48 = vpop.permute.xlu0 %3037 }
 0x4d9   :  { %7889 = vmatmul.msk.f32.gmra.mxu2 %vm2177_vm2, %v7877_v12  ;;  %3445 = vrot.lane.b32.xlu0 %v9498_v37, %s8339_s13  ;;  %v10152_v22 = vpop.permute.xlu2 %3025  ;;  %v2678_v35 = vpop.permute.xlu1 %2677 }
 0x4da   :  { %3435 = vrot.lane.b32.xlu1 %v9466_v38, %s8339_s13  ;;  %3443 = vrot.lane.b32.xlu2 %v9468_v31, %s8339_s13  ;;  %v2682_v52 = vsel %vm633_vm5, %v2670_v34, %v2678_v35  ;;  %v2694_v47 = vsel %vm633_vm5, %v2678_v35, %v2654_v23  ;;  %v2693_v23 = vsel %vm633_vm5, %v10010_v11, %v9957_v6 }
 0x4db   :  { %2771 = vmatpush.msra.mxu1 %v2700_v46  ;;  %2800 = vmatpush.msra.mxu2 %v2701_v32  ;;  %v2710_v42 = vmul.f32 %v2682_v52, %v14636_v53  ;;  %v2707_v50 = vmul.f32 %v2694_v47, %v14637_v24  ;;  %v2681_v34 = vsel %vm633_vm5, %v9805_v49, %v10010_v11  ;;  %v7896_v52 = vld [vmem:[%s14287_s3 + $0x70] sm:$0xff] }
 0x4dc   :  { %v2680_v49 = vsel %vm633_vm5, %v9963_v20, %v9976_v55  ;;  %v2703_v11 = vmul.f32 %v2693_v23, %v14637_v24  ;;  %v2706_v20 = vmul.f32 %v2681_v34, %v14636_v53  ;;  %v2679_v55 = vsel %vm633_vm5, %v10055_v16, %v10081_v25  ;;  %v7895_v25 = vld [vmem:[%s14287_s3 + $0x68] sm:$0xff] }
 0x4dd   :  { %2772 = vmatpush.msra.mxu1 %v2696_v33  ;;  %2801 = vmatpush.msra.mxu2 %v2697_v58  ;;  %v2702_v43 = vmul.f32 %v2680_v49, %v14636_v53  ;;  %v2698_v16 = vmul.f32 %v2679_v55, %v14636_v53  ;;  %v7915_v34 = vld [vmem:[%s14287_s3 + $0x88] sm:$0xff]  ;;  %v14643_v53 = vld [vmem:[#allocation19_spill] sm:$0xff] }
 0x4de   :  { %2827 = vmatpush.msra.mxu3 %v2710_v42  ;;  %2740 = vmatpush.msra.mxu0 %v2707_v50 }
 0x4df   :  { %2918 = vmatpush.msrb.mxu1 %v9565_v3  ;;  %2947 = vmatpush.msrb.mxu2 %v9553_v7 }
 0x4e0   :  { %7881 = vmatmul.msk.f32.gmra.mxu0 %vm2177_vm2, %v7877_v12  ;;  %7885 = vmatmul.msk.f32.gmra.mxu1 %vm2177_vm2, %v7877_v12  ;;  %v10184_v4 = vpop.permute.xlu0 %3027 }
 0x4e1   :  { %7893 = vmatmul.msk.f32.gmra.mxu3 %vm2177_vm2, %v7877_v12  ;;  %7906 = vmatmul.msk.f32.vlgmr.msra.gmra.mxu2 %vm2177_vm2, %v7894_v26  ;;  %v10191_v6 = vpop.permute.xlu1 %3011  ;;  %v3042_v56 = vsel %vm14644_vm10, %v10184_v4, %v10100_v57  ;;  %vm14657_vm10 = vmmov %vm14650_vm3 }
 0x4e2   :  { %2919 = vmatpush.msrb.mxu1 %v9519_v13  ;;  %2948 = vmatpush.msrb.mxu2 %v9521_v5  ;;  %v10200_v12 = vpop.permute.xlu2 %3019 }
 0x4e3   :  { %3441 = vrot.lane.b32.xlu0 %v9551_v10, %s8339_s13  ;;  %3465 = vrot.lane.b32.xlu1 %v9567_v40, %s8339_s13 }
 0x4e4   :  { %3457 = vrot.lane.b32.xlu2 %v9553_v7, %s8339_s13  ;;  %2741 = vmatpush.msra.mxu0 %v2703_v11 }
 0x4e5   :  { %2828 = vmatpush.msra.mxu3 %v2706_v20  ;;  %2920 = vmatpush.msrb.mxu1 %v9498_v37  ;;  %v7916_v20 = vld [vmem:[%s14287_s3 + $0x90] sm:$0xff] }
 0x4e6   :  { %2949 = vmatpush.msrb.mxu2 %v9488_v0  ;;  %2742 = vmatpush.msra.mxu0 %v2699_v14 }
 0x4e7   :  { %2829 = vmatpush.msra.mxu3 %v2702_v43  ;;  %2921 = vmatpush.msrb.mxu1 %v9468_v31 }
 0x4e8   :  { %2950 = vmatpush.msrb.mxu2 %v9470_v27  ;;  %2743 = vmatpush.msra.mxu0 %v2695_v29  ;;  %v10228_v46 = vpop.permute.xlu0 %3021 }
 0x4e9   :  { %2830 = vmatpush.msra.mxu3 %v2698_v16  ;;  %7898 = vmatmul.msk.f32.vlgmr.msra.gmra.mxu0 %vm2177_vm2, %v7894_v26  ;;  %v10231_v32 = vpop.permute.xlu1 %3033 }
 0x4ea   :  { %7902 = vmatmul.msk.f32.vlgmr.msra.gmra.mxu1 %vm2177_vm2, %v7894_v26  ;;  %7907 = vmatmul.msk.f32.gmra.mxu2 %vm2177_vm2, %v7895_v25  ;;  %v10235_v35 = vpop.permute.xlu2 %3250 }
 0x4eb   :  { %7910 = vmatmul.msk.f32.vlgmr.msra.gmra.mxu3 %vm2177_vm2, %v7894_v26  ;;  %2889 = vmatpush.msrb.mxu0 %v9551_v10 }
 0x4ec   :  { %2976 = vmatpush.msrb.mxu3 %v9567_v40  ;;  %3676 = vrot.lane.b32.xlu0 %v9533_v41, %s8340_s22 }
 0x4ed   :  { %2890 = vmatpush.msrb.mxu0 %v9531_v28  ;;  %3668 = vrot.lane.b32.xlu1 %v9521_v5, %s8340_s22 }
 0x4ee   :  { %2977 = vmatpush.msrb.mxu3 %v9533_v41  ;;  %3449 = vrot.lane.b32.xlu2 %v9565_v3, %s8339_s13  ;;  %v7897_v41 = vld [vmem:[%s14287_s3 + $0x78] sm:$0xff] }
 0x4ef   :  { %2891 = vmatpush.msrb.mxu0 %v9500_v61 }
 0x4f0   :  { %2978 = vmatpush.msrb.mxu3 %v9509_v19  ;;  %v10253_v47 = vpop.permute.xlu0 %3009 }
 0x4f1   :  { %2892 = vmatpush.msrb.mxu0 %v9466_v38  ;;  %v10256_v42 = vpop.permute.xlu1 %3017 }
 0x4f2   :  { %2979 = vmatpush.msrb.mxu3 %v9479_v15  ;;  %7899 = vmatmul.msk.f32.gmra.mxu0 %vm2177_vm2, %v7895_v25 }
 0x4f3   :  { %7903 = vmatmul.msk.f32.gmra.mxu1 %vm2177_vm2, %v7895_v25  ;;  %7908 = vmatmul.msk.f32.gmra.mxu2 %vm2177_vm2, %v7896_v52  ;;  %v10262_v5 = vpop.permute.xlu2 %3240 }
 0x4f4   :  { %7911 = vmatmul.msk.f32.gmra.mxu3 %vm2177_vm2, %v7895_v25  ;;  %3666 = vrot.lane.b32.xlu0 %v9488_v0, %s8340_s22 }
 0x4f5   :  { %3650 = vrot.lane.b32.xlu1 %v9500_v61, %s8340_s22  ;;  %v7914_v61 = vld [vmem:[%s14287_s3 + $0x80] sm:$0xff] }
 0x4f6   :  { %3652 = vrot.lane.b32.xlu2 %v9531_v28, %s8340_s22 }
 0x4f9   :  { %v10274_v33 = vpop.permute.xlu0 %3242  ;;  %v10276_v58 = vpop.f32.mrf.mxu1 }
 0x4fa   :  { %7900 = vmatmul.msk.f32.gmra.mxu0 %vm2177_vm2, %v7896_v52  ;;  %v10279_v50 = vpop.permute.xlu1 %3226 }
 0x4fb   :  { %7904 = vmatmul.msk.f32.gmra.mxu1 %vm2177_vm2, %v7896_v52  ;;  %7909 = vmatmul.msk.f32.gmra.mxu2 %vm2177_vm2, %v7897_v41 }
 0x4fc   :  { %7912 = vmatmul.msk.f32.gmra.mxu3 %vm2177_vm2, %v7896_v52  ;;  %3660 = vrot.lane.b32.xlu0 %v9519_v13, %s8340_s22  ;;  %v10286_v0 = vpop.permute.xlu2 %3234  ;;  %v3043_v52 = vsel %vm14640_vm8, %v10088_v8, %v10147_v48  ;;  %vm14655_vm8 = vmmov %vm14650_vm3 }
 0x4fd   :  { %3672 = vrot.lane.b32.xlu1 %v9479_v15, %s8340_s22 }
 0x4fe   :  { %3674 = vrot.lane.b32.xlu2 %v9509_v19, %s8340_s22 }
 0x500   :  { %v10295_v28 = vpop.f32.mrf.mxu2 }
 0x501   :  { %v10297_v26 = vpop.permute.xlu0 %3224 }
 0x502   :  { %7901 = vmatmul.msk.f32.gmra.mxu0 %vm2177_vm2, %v7897_v41  ;;  %v10300_v23 = vpop.f32.mrf.mxu0  ;;  %v10302_v13 = vpop.f32.mrf.mxu1 }
 0x503   :  { %7905 = vmatmul.msk.f32.gmra.mxu1 %vm2177_vm2, %v7897_v41  ;;  %7926 = vmatmul.msk.f32.vlgmr.msrb.gmra.mxu2 %vm2177_vm2, %v7914_v61  ;;  %v10306_v15 = vpop.permute.xlu1 %3248 }
 0x504   :  { %7913 = vmatmul.msk.f32.gmra.mxu3 %vm2177_vm2, %v7897_v41  ;;  %3678 = vrot.lane.b32.xlu0 %v9567_v40, %s8340_s22  ;;  %v10311_v19 = vpop.permute.xlu2 %3015  ;;  %v14641_v41 = vld [vmem:[#allocation22_spill] sm:$0xff] }
 0x505   :  { %3670 = vrot.lane.b32.xlu1 %v9553_v7, %s8340_s22 }
 0x506   :  { %3664 = vrot.lane.b32.xlu2 %v9470_v27, %s8340_s22 }
 0x509   :  { %v10320_v21 = vpop.f32.mrf.mxu2  ;;  %v10322_v49 = vpop.f32.mrf.mxu3 }
 0x50a   :  { %7918 = vmatmul.msk.f32.vlgmr.msrb.gmra.mxu0 %vm2177_vm2, %v7914_v61  ;;  %v10325_v11 = vpop.permute.xlu0 %3246  ;;  %v10327_v40 = vpop.f32.mrf.mxu0 }
 0x50b   :  { %7922 = vmatmul.msk.f32.vlgmr.msrb.gmra.mxu1 %vm2177_vm2, %v7914_v61  ;;  %7927 = vmatmul.msk.f32.gmra.mxu2 %vm2177_vm2, %v7915_v34  ;;  %v10331_v7 = vpop.f32.mrf.mxu1  ;;  %v10333_v27 = vpop.permute.xlu1 %3238 }
 0x50c   :  { %7930 = vmatmul.msk.f32.vlgmr.msrb.gmra.mxu3 %vm2177_vm2, %v7914_v61  ;;  %3648 = vrot.lane.b32.xlu0 %v9466_v38, %s8340_s22  ;;  %v10338_v18 = vpop.permute.xlu2 %3222 }
 0x50d   :  { %3662 = vrot.lane.b32.xlu1 %v9565_v3, %s8340_s22 }
 0x50e   :  { %3654 = vrot.lane.b32.xlu2 %v9551_v10, %s8340_s22  ;;  %v3055_v10 = vsel %vm14638_vm6, %v10147_v48, %v10083_v30  ;;  %vm14653_vm6 = vmmov %vm14650_vm3 }
 0x50f   :  { %v3068_v48 = vmul.f32 %v3055_v10, %v14641_v41 }
 0x511   :  { %v10347_v55 = vpop.f32.mrf.mxu2  ;;  %v10349_v14 = vpop.f32.mrf.mxu3 }
 0x512   :  { %7919 = vmatmul.msk.f32.gmra.mxu0 %vm2177_vm2, %v7915_v34  ;;  %v10352_v43 = vpop.f32.mrf.mxu0 }
 0x513   :  { %7923 = vmatmul.msk.f32.gmra.mxu1 %vm2177_vm2, %v7915_v34  ;;  %7928 = vmatmul.msk.f32.gmra.mxu2 %vm2177_vm2, %v7916_v20  ;;  %v3040_v38 = vpop.permute.xlu0 %3039  ;;  %v10356_v3 = vpop.f32.mrf.mxu1 }
 0x514   :  { %7931 = vmatmul.msk.f32.gmra.mxu3 %vm2177_vm2, %v7915_v34  ;;  %v3056_v29 = vsel %vm14639_vm7, %v3040_v38, %v10311_v19  ;;  %v10366_v16 = vpop.permute.xlu2 %3455  ;;  %v3032_v25 = vpop.permute.xlu1 %3031  ;;  %vm14654_vm7 = vmmov %vm14650_vm3 }
 0x515   :  { %3656 = vrot.lane.b32.xlu1 %v9468_v31, %s8340_s22  ;;  %v3072_v61 = vmul.f32 %v3056_v29, %v14641_v41  ;;  %v3044_v34 = vsel %vm14642_vm9, %v3032_v25, %v3040_v38  ;;  %v3054_v31 = vsel %vm14645_vm11, %v10100_v57, %v10191_v6  ;;  %v7917_v38 = vld [vmem:[%s14287_s3 + $0x98] sm:$0xff]  ;;  %v3041_v29 = vsel %vm14646_vm12, %v10152_v22, %v10231_v32  ;;  %vm14656_vm9 = vmmov %vm14650_vm3 }
 0x516   :  { %3658 = vrot.lane.b32.xlu2 %v9498_v37, %s8340_s22  ;;  %v3071_v24 = vmul.f32 %v3044_v34, %v14643_v53  ;;  %v3067_v37 = vmul.f32 %v3043_v52, %v14643_v53  ;;  %v3053_v57 = vsel %vm14647_vm13, %v10231_v32, %v10253_v47  ;;  %v3064_v34 = vmul.f32 %v3054_v31, %v14641_v41 }
 0x517   :  { %3189 = vmatpush.msra.mxu3 %v3072_v61  ;;  %v3059_v1 = vmul.f32 %v3041_v29, %v14643_v53  ;;  %v3051_v31 = vsel %vm14650_vm3, %v10083_v30, %v10228_v46  ;;  %v14651_v29 = vld [vmem:[#allocation21_spill] sm:$0xff]  ;;  %vm14658_vm11 = vcmp.lt.s32.totalorder %v14621_v51, 113 }
 0x518   :  { %3160 = vmatpush.msra.mxu2 %v3071_v24  ;;  %v3063_v24 = vmul.f32 %v3042_v56, %v14643_v53  ;;  %v3060_v56 = vmul.f32 %v3053_v57, %v14641_v41  ;;  %v3065_v30 = vmul.f32 %v3051_v31, %v14651_v29  ;;  %vm14659_vm12 = vmmov %vm14658_vm11 }
 0x519   :  { %v10397_v61 = vpop.f32.mrf.mxu3  ;;  %3190 = vmatpush.msra.mxu3 %v3068_v48  ;;  %v10404_v10 = vpop.f32.mrf.mxu2  ;;  %vm14661_vm13 = vmmov %vm14658_vm11 }
 0x51a   :  { %7920 = vmatmul.msk.f32.gmra.mxu0 %vm2177_vm2, %v7916_v20  ;;  %3161 = vmatpush.msra.mxu2 %v3067_v37  ;;  %vm14664_vm3 = vmmov %vm14658_vm11 }
 0x51b   :  { %7924 = vmatmul.msk.f32.gmra.mxu1 %vm2177_vm2, %v7916_v20  ;;  %7929 = vmatmul.msk.f32.gmra.mxu2 %vm2177_vm2, %v7917_v38  ;;  %v10409_v52 = vpop.permute.xlu0 %3230 }
 0x51c   :  { %7932 = vmatmul.msk.f32.gmra.mxu3 %vm2177_vm2, %v7916_v20  ;;  %v10413_v48 = vpop.permute.xlu2 %3252  ;;  %v10415_v32 = vpop.f32.mrf.mxu0  ;;  %3162 = vmatpush.msra.mxu2 %v3063_v24 }
 0x51d   :  { %3191 = vmatpush.msra.mxu3 %v3064_v34  ;;  %v3024_v37 = vpop.permute.xlu1 %3023  ;;  %v10419_v44 = vpop.f32.mrf.mxu1  ;;  %v14652_v34 = vld [vmem:[#allocation20_spill] sm:$0xff] }
 0x51e   :  { %v3048_v63 = vsel %vm14648_vm14, %v3024_v37, %v3032_v25  ;;  %v3052_v20 = vsel %vm14649_vm15, %v10311_v19, %v3024_v37  ;;  %3163 = vmatpush.msra.mxu2 %v3059_v1  ;;  %v3047_v25 = vsel %vm14653_vm6, %v10228_v46, %v10088_v8  ;;  %v7934_v19 = vld [vmem:[%s14287_s3 + $0xa0] sm:$0xff]  ;;  %v3050_v1 = vsel %vm14654_vm7, %v10191_v6, %v10200_v12  ;;  %vm14662_vm14 = vmmov %vm14658_vm11 }
 0x51f   :  { %v3069_v24 = vmul.f32 %v3052_v20, %v14651_v29  ;;  %v3070_v53 = vmul.f32 %v3048_v63, %v14652_v34  ;;  %3192 = vmatpush.msra.mxu3 %v3060_v56  ;;  %v3046_v63 = vsel %vm14655_vm8, %v10200_v12, %v10184_v4  ;;  %v3049_v8 = vsel %vm14656_vm9, %v10253_v47, %v10256_v42  ;;  %vm14663_vm15 = vmmov %vm14658_vm11 }
 0x520   :  { %v3045_v4 = vsel %vm14657_vm10, %v10256_v42, %v10152_v22  ;;  %v3061_v57 = vmul.f32 %v3050_v1, %v14651_v29  ;;  %v3062_v20 = vmul.f32 %v3046_v63, %v14652_v34  ;;  %v3057_v22 = vmul.f32 %v3049_v8, %v14651_v29  ;;  %vm14666_vm6 = vmmov %vm14664_vm3 }
 0x521   :  { %3102 = vmatpush.msra.mxu0 %v3069_v24  ;;  %3131 = vmatpush.msra.mxu1 %v3070_v53  ;;  %v3066_v53 = vmul.f32 %v3047_v25, %v14652_v34  ;;  %v3058_v42 = vmul.f32 %v3045_v4, %v14652_v34  ;;  %v3256_v1 = vsel %vm14658_vm11, %v10274_v33, %v10235_v35  ;;  %vm14667_vm7 = vmmov %vm14664_vm3 }
 0x522   :  { %7921 = vmatmul.msk.f32.gmra.mxu0 %vm2177_vm2, %v7917_v38  ;;  %vm14668_vm8 = vmmov %vm14664_vm3 }
 0x523   :  { %7925 = vmatmul.msk.f32.gmra.mxu1 %vm2177_vm2, %v7917_v38  ;;  %7946 = vmatmul.msk.f32.vlgmr.msra.gmra.mxu2 %vm2177_vm2, %v7934_v19  ;;  %v10455_v6 = vpop.f32.mrf.mxu3  ;;  %v10458_v46 = vpop.permute.xlu0 %3439  ;;  %vm14669_vm9 = vmmov %vm14664_vm3 }
 0x524   :  { %7933 = vmatmul.msk.f32.gmra.mxu3 %vm2177_vm2, %v7917_v38  ;;  %v2393_v12 = vpop.f32.mrf.mxu2  ;;  %3103 = vmatpush.msra.mxu0 %v3065_v30  ;;  %v10465_v47 = vpop.permute.xlu2 %3437  ;;  %vm14670_vm10 = vmmov %vm14664_vm3 }
 0x525   :  { %v10469_v37 = vadd.f32 %v2393_v12, %v10295_v28  ;;  %3132 = vmatpush.msra.mxu1 %v3066_v53  ;;  %v10471_v56 = vpop.f32.mrf.mxu0  ;;  %v10474_v31 = vpop.permute.xlu1 %3232  ;;  %v7935_v28 = vld [vmem:[%s14287_s3 + $0xa8] sm:$0xff]  ;;  %v14660_v12 = vld [vmem:[#allocation23_spill] sm:$0xff]  ;;  %vm14673_vm11 = vmmov %vm14664_vm3 }
 0x526   :  { %3104 = vmatpush.msra.mxu0 %v3061_v57  ;;  %v10478_v38 = vpop.f32.mrf.mxu1 }
 0x527   :  { %3133 = vmatpush.msra.mxu1 %v3062_v20 }
 0x528   :  { %3105 = vmatpush.msra.mxu0 %v3057_v22 }
 0x529   :  { %3134 = vmatpush.msra.mxu1 %v3058_v42  ;;  %v7936_v42 = vld [vmem:[%s14287_s3 + $0xb0] sm:$0xff] }
 0x52a   :  { %7938 = vmatmul.msk.f32.vlgmr.msra.gmra.mxu0 %vm2177_vm2, %v7934_v19 }
 0x52b   :  { %7942 = vmatmul.msk.f32.vlgmr.msra.gmra.mxu1 %vm2177_vm2, %v7934_v19  ;;  %7947 = vmatmul.msk.f32.gmra.mxu2 %vm2177_vm2, %v7935_v28  ;;  %v2422_v24 = vpop.f32.mrf.mxu3  ;;  %v3245_v25 = vpop.permute.xlu0 %3244 }
 0x52c   :  { %7950 = vmatmul.msk.f32.vlgmr.msra.gmra.mxu3 %vm2177_vm2, %v7934_v19  ;;  %v2396_v63 = vpop.f32.mrf.mxu2  ;;  %v10492_v30 = vadd.f32 %v2422_v24, %v10322_v49  ;;  %v3257_v8 = vsel %vm14659_vm12, %v3245_v25, %v10413_v48  ;;  %v10497_v53 = vpop.permute.xlu2 %3459  ;;  %v3255_v49 = vsel %vm14661_vm13, %v10262_v5, %v10306_v15  ;;  %v3280_v19 = vmul.f32 %v3256_v1, %v14660_v12  ;;  %vm14674_vm12 = vmmov %vm14664_vm3 }
 0x52d   :  { %v10500_v4 = vadd.f32 %v2396_v63, %v10320_v21  ;;  %v3284_v57 = vmul.f32 %v3257_v8, %v14660_v12  ;;  %v10503_v20 = vpop.f32.mrf.mxu0  ;;  %v10505_v22 = vpop.permute.xlu1 %3463  ;;  %v3254_v21 = vsel %vm14662_vm14, %v10333_v27, %v10325_v11  ;;  %v3276_v63 = vmul.f32 %v3255_v49, %v14660_v12  ;;  %vm14675_vm13 = vmmov %vm14664_vm3 }
 0x52e   :  { %v10519_v24 = vpop.f32.mrf.mxu1  ;;  %v3260_v1 = vsel %vm14663_vm15, %v10286_v0, %v10274_v33  ;;  %v3272_v33 = vmul.f32 %v3254_v21, %v14660_v12  ;;  %v3258_v21 = vsel %vm14667_vm7, %v10409_v52, %v10333_v27  ;;  %vm14676_vm14 = vmmov %vm14664_vm3  ;;  %v14691_v12 = vld [vmem:[#allocation27_spill] sm:$0xff] }
 0x52f   :  { %3373 = vmatpush.msrb.mxu2 %v3284_v57  ;;  %v3271_v27 = vmul.f32 %v3258_v21, %v14665_v2  ;;  %v3268_v21 = vsel %vm14670_vm10, %v10235_v35, %v10279_v50  ;;  %v3263_v35 = vsel %vm14675_vm13, %v10297_v26, %v10474_v31  ;;  %vm14677_vm15 = vmmov %vm14664_vm3 }
 0x531   :  { %3374 = vmatpush.msrb.mxu2 %v3280_v19 }
 0x532   :  { %7939 = vmatmul.msk.f32.gmra.mxu0 %vm2177_vm2, %v7935_v28 }
 0x533   :  { %7943 = vmatmul.msk.f32.gmra.mxu1 %vm2177_vm2, %v7935_v28  ;;  %7948 = vmatmul.msk.f32.gmra.mxu2 %vm2177_vm2, %v7936_v42  ;;  %v2425_v8 = vpop.f32.mrf.mxu3  ;;  %v3237_v57 = vpop.permute.xlu0 %3236 }
 0x534   :  { %7951 = vmatmul.msk.f32.gmra.mxu3 %vm2177_vm2, %v7935_v28  ;;  %v2399_v19 = vpop.f32.mrf.mxu2  ;;  %v10531_v34 = vadd.f32 %v2425_v8, %v10349_v14  ;;  %v3261_v49 = vsel %vm14664_vm3, %v3237_v57, %v3245_v25  ;;  %v10535_v29 = vpop.permute.xlu2 %3443  ;;  %3375 = vmatpush.msrb.mxu2 %v3276_v63  ;;  %v3259_v14 = vsel %vm14666_vm6, %v10474_v31, %v10262_v5  ;;  %vm14678_vm3 = vcmp.lt.s32.totalorder %v14621_v51, 112 }
 0x535   :  { %v10539_v41 = vadd.f32 %v2399_v19, %v10347_v55  ;;  %v3283_v45 = vmul.f32 %v3261_v49, %v14665_v2  ;;  %v10542_v59 = vpop.f32.mrf.mxu0  ;;  %v10544_v28 = vpop.permute.xlu1 %3453  ;;  %v3279_v25 = vmul.f32 %v3260_v1, %v14665_v2  ;;  %v7937_v55 = vld [vmem:[%s14287_s3 + $0xb8] sm:$0xff]  ;;  %v3275_v63 = vmul.f32 %v3259_v14, %v14665_v2  ;;  %vm14680_vm6 = vmmov %vm14678_vm3 }
 0x536   :  { %3376 = vmatpush.msrb.mxu2 %v3272_v33  ;;  %v10569_v19 = vpop.f32.mrf.mxu1  ;;  %vm14681_vm7 = vmmov %vm14678_vm3 }
 0x537   :  { %3344 = vmatpush.msrb.mxu1 %v3283_v45  ;;  %vm14684_vm10 = vmmov %vm14678_vm3 }
 0x538   :  { %vm14688_vm13 = vmmov %vm14678_vm3 }
 0x539   :  { %3345 = vmatpush.msrb.mxu1 %v3279_v25 }
 0x53a   :  { %7940 = vmatmul.msk.f32.gmra.mxu0 %vm2177_vm2, %v7936_v42 }
 0x53b   :  { %7944 = vmatmul.msk.f32.gmra.mxu1 %vm2177_vm2, %v7936_v42  ;;  %7949 = vmatmul.msk.f32.gmra.mxu2 %vm2177_vm2, %v7937_v55  ;;  %v2428_v45 = vpop.f32.mrf.mxu3  ;;  %v10562_v5 = vpop.permute.xlu0 %3461 }
 0x53c   :  { %7952 = vmatmul.msk.f32.gmra.mxu3 %vm2177_vm2, %v7936_v42  ;;  %v2402_v1 = vpop.f32.mrf.mxu2  ;;  %v10566_v8 = vadd.f32 %v2428_v45, %v10397_v61  ;;  %3346 = vmatpush.msrb.mxu1 %v3275_v63  ;;  %v14672_v45 = vld [vmem:[#allocation26_spill] sm:$0xff] }
 0x53d   :  { %v10572_v49 = vadd.f32 %v2402_v1, %v10404_v10  ;;  %v10574_v33 = vpop.f32.mrf.mxu0  ;;  %v3229_v25 = vpop.permute.xlu1 %3228  ;;  %v14671_v10 = vld [vmem:[#allocation25_spill] sm:$0xff] }
 0x53e   :  { %v10576_v14 = vpop.permute.xlu2 %3457  ;;  %3347 = vmatpush.msrb.mxu1 %v3271_v27  ;;  %v3265_v42 = vsel %vm14668_vm8, %v3229_v25, %v3237_v57  ;;  %v3269_v61 = vsel %vm14669_vm9, %v10413_v48, %v3229_v25  ;;  %v7954_v27 = vld [vmem:[%s14287_s3 + $0xc0] sm:$0xff]  ;;  %v3264_v57 = vsel %vm14673_vm11, %v10279_v50, %v10286_v0  ;;  %v3267_v48 = vsel %vm14674_vm12, %v10306_v15, %v10297_v26  ;;  %vm14682_vm8 = vmmov %vm14678_vm3 }
 0x53f   :  { %v3282_v63 = vmul.f32 %v3265_v42, %v14671_v10  ;;  %v3285_v1 = vmul.f32 %v3269_v61, %v14672_v45  ;;  %v3281_v50 = vmul.f32 %v3268_v21, %v14672_v45  ;;  %v3266_v15 = vsel %vm14676_vm14, %v10325_v11, %v10338_v18  ;;  %vm14683_vm9 = vmmov %vm14678_vm3 }
 0x540   :  { %v3278_v31 = vmul.f32 %v3264_v57, %v14671_v10  ;;  %v3262_v61 = vsel %vm14677_vm15, %v10338_v18, %v10409_v52  ;;  %v3273_v57 = vmul.f32 %v3266_v15, %v14672_v45  ;;  %vm14685_vm11 = vmmov %vm14678_vm3 }
 0x541   :  { %3402 = vmatpush.msrb.mxu3 %v3285_v1  ;;  %3315 = vmatpush.msrb.mxu0 %v3282_v63  ;;  %v3270_v18 = vmul.f32 %v3262_v61, %v14671_v10  ;;  %vm14687_vm12 = vmmov %vm14678_vm3 }
 0x542   :  { %7941 = vmatmul.msk.f32.gmra.mxu0 %vm2177_vm2, %v7937_v55  ;;  %vm14689_vm14 = vmmov %vm14678_vm3 }
 0x543   :  { %7945 = vmatmul.msk.f32.gmra.mxu1 %vm2177_vm2, %v7937_v55  ;;  %7966 = vmatmul.msk.f32.vlgmr.msrb.gmra.mxu2 %vm2177_vm2, %v7954_v27  ;;  %v2431_v25 = vpop.f32.mrf.mxu3  ;;  %v10608_v0 = vpop.permute.xlu0 %3451  ;;  %vm14690_vm15 = vmmov %vm14678_vm3 }
 0x544   :  { %7953 = vmatmul.msk.f32.gmra.mxu3 %vm2177_vm2, %v7937_v55  ;;  %v10616_v42 = vadd.f32 %v2431_v25, %v10455_v6  ;;  %v2590_v26 = vpop.f32.mrf.mxu2  ;;  %v3277_v55 = vmul.f32 %v3267_v48, %v14672_v45  ;;  %3316 = vmatpush.msrb.mxu0 %v3278_v31  ;;  %v3274_v6 = vmul.f32 %v3263_v35, %v14671_v10  ;;  %v14679_v48 = vld [vmem:[#allocation28_spill] sm:$0xff] }
 0x545   :  { %v10624_v21 = vadd.f32 %v2590_v26, %v10469_v37  ;;  %3403 = vmatpush.msrb.mxu3 %v3281_v50  ;;  %v10626_v1 = vpop.f32.mrf.mxu0  ;;  %v10628_v11 = vpop.f32.mrf.mxu1  ;;  %v7955_v37 = vld [vmem:[%s14287_s3 + $0xc8] sm:$0xff] }
 0x546   :  { %v3448_v63 = vpop.permute.xlu1 %3447  ;;  %3317 = vmatpush.msrb.mxu0 %v3274_v6 }
 0x547   :  { %3404 = vmatpush.msrb.mxu3 %v3277_v55  ;;  %v3473_v35 = vsel %vm14680_vm6, %v3448_v63, %v10366_v16  ;;  %vm14693_vm6 = vmmov %vm14678_vm3 }
 0x548   :  { %v3450_v25 = vpop.permute.xlu2 %3449  ;;  %3318 = vmatpush.msrb.mxu0 %v3270_v18 }
 0x549   :  { %v3474_v52 = vsel %vm14678_vm3, %v3450_v25, %v10576_v14  ;;  %3405 = vmatpush.msrb.mxu3 %v3273_v57  ;;  %v3492_v57 = vmul.f32 %v3473_v35, %v14679_v48 }
 0x54a   :  { %v3496_v50 = vmul.f32 %v3474_v52, %v14679_v48  ;;  %7958 = vmatmul.msk.f32.vlgmr.msrb.gmra.mxu0 %vm2177_vm2, %v7954_v27 }
 0x54b   :  { %7962 = vmatmul.msk.f32.vlgmr.msrb.gmra.mxu1 %vm2177_vm2, %v7954_v27  ;;  %v2619_v15 = vpop.f32.mrf.mxu3  ;;  %v3446_v26 = vpop.permute.xlu0 %3445  ;;  %7967 = vmatmul.msk.f32.gmra.mxu2 %vm2177_vm2, %v7955_v37 }
 0x54c   :  { %7970 = vmatmul.msk.f32.vlgmr.msrb.gmra.mxu3 %vm2177_vm2, %v7954_v27  ;;  %v2593_v31 = vpop.f32.mrf.mxu2  ;;  %v10649_v61 = vadd.f32 %v2619_v15, %v10492_v30  ;;  %v3472_v55 = vsel %vm14681_vm7, %v3446_v26, %v10544_v28  ;;  %3557 = vmatpush.msra.mxu1 %v3496_v50  ;;  %v3471_v30 = vsel %vm14682_vm8, %v10535_v29, %v10608_v0  ;;  %vm14694_vm7 = vmmov %vm14678_vm3 }
 0x54d   :  { %v10655_v6 = vadd.f32 %v2593_v31, %v10500_v4  ;;  %v10658_v18 = vpop.f32.mrf.mxu0  ;;  %v10660_v52 = vpop.f32.mrf.mxu1  ;;  %v3488_v27 = vmul.f32 %v3472_v55, %v14679_v48  ;;  %v7956_v4 = vld [vmem:[%s14287_s3 + $0xd0] sm:$0xff]  ;;  %v3484_v35 = vmul.f32 %v3471_v30, %v14679_v48  ;;  %v3469_v30 = vsel %vm14683_vm9, %v10366_v16, %v10505_v22  ;;  %vm14695_vm8 = vmmov %vm14678_vm3 }
 0x54e   :  { %v3436_v45 = vpop.permute.xlu1 %3435  ;;  %3558 = vmatpush.msra.mxu1 %v3492_v57  ;;  %vm14697_vm9 = vmmov %vm14678_vm3 }
 0x550   :  { %3559 = vmatpush.msra.mxu1 %v3488_v27 }
 0x552   :  { %7959 = vmatmul.msk.f32.gmra.mxu0 %vm2177_vm2, %v7955_v37  ;;  %3560 = vmatpush.msra.mxu1 %v3484_v35 }
 0x553   :  { %7963 = vmatmul.msk.f32.gmra.mxu1 %vm2177_vm2, %v7955_v37  ;;  %v2622_v50 = vpop.f32.mrf.mxu3  ;;  %7968 = vmatmul.msk.f32.gmra.mxu2 %vm2177_vm2, %v7956_v4 }
 0x554   :  { %7971 = vmatmul.msk.f32.gmra.mxu3 %vm2177_vm2, %v7955_v37  ;;  %v2596_v15 = vpop.f32.mrf.mxu2  ;;  %v10676_v31 = vadd.f32 %v2622_v50, %v10531_v34  ;;  %v10695_v34 = vpop.permute.xlu2 %3652  ;;  %v14686_v50 = vld [vmem:[#allocation29_spill] sm:$0xff] }
 0x555   :  { %v10679_v55 = vadd.f32 %v2596_v15, %v10539_v41  ;;  %v3442_v57 = vpop.permute.xlu0 %3441  ;;  %v10681_v27 = vpop.f32.mrf.mxu0  ;;  %v3481_v41 = vsel %vm14685_vm11, %v10505_v22, %v10458_v46  ;;  %v3477_v22 = vsel %vm14690_vm15, %v10458_v46, %v3448_v63  ;;  %v3480_v46 = vsel %vm14693_vm6, %v10562_v5, %v10465_v47 }
 0x556   :  { %v3478_v48 = vsel %vm14684_vm10, %v3442_v57, %v3450_v25  ;;  %v10689_v37 = vpop.f32.mrf.mxu1  ;;  %v3466_v10 = vpop.permute.xlu1 %3465  ;;  %v3468_v25 = vsel %vm14689_vm14, %v10544_v28, %v10562_v5  ;;  %v3493_v28 = vmul.f32 %v3469_v30, %v14691_v12  ;;  %v3475_v30 = vsel %vm14695_vm8, %v3436_v45, %v10535_v29 }
 0x557   :  { %v3495_v35 = vmul.f32 %v3478_v48, %v14686_v50  ;;  %v3470_v15 = vsel %vm14687_vm12, %v10576_v14, %v3466_v10  ;;  %v3482_v16 = vsel %vm14688_vm13, %v3466_v10, %v3442_v57  ;;  %v7957_v14 = vld [vmem:[%s14287_s3 + $0xd8] sm:$0xff]  ;;  %v3476_v10 = vsel %vm14678_vm3, %v10465_v47, %v3446_v26 }
 0x558   :  { %v3497_v2 = vmul.f32 %v3470_v15, %v14691_v12  ;;  %v3498_v48 = vmul.f32 %v3482_v16, %v14692_v62  ;;  %v3494_v57 = vmul.f32 %v3481_v41, %v14692_v62  ;;  %v3489_v26 = vmul.f32 %v3468_v25, %v14691_v12 }
 0x559   :  { %3528 = vmatpush.msra.mxu0 %v3495_v35  ;;  %v3491_v35 = vmul.f32 %v3477_v22, %v14686_v50  ;;  %v3479_v41 = vsel %vm14697_vm9, %v10497_v53, %v3436_v45  ;;  %v3487_v29 = vmul.f32 %v3476_v10, %v14686_v50  ;;  %vm14701_vm10 = vcmp.lt.s32.totalorder %v14621_v51, 111 }
 0x55a   :  { %3586 = vmatpush.msra.mxu2 %v3497_v2  ;;  %3615 = vmatpush.msra.mxu3 %v3498_v48  ;;  %v3467_v2 = vsel %vm14694_vm7, %v10608_v0, %v10497_v53  ;;  %v3483_v53 = vmul.f32 %v3475_v30, %v14686_v50  ;;  %v3486_v45 = vmul.f32 %v3479_v41, %v14692_v62  ;;  %v7974_v48 = vld [vmem:[%s14287_s3 + $0xe0] sm:$0xff]  ;;  %vm14703_vm11 = vmmov %vm14701_vm10 }
 0x55b   :  { %7960 = vmatmul.msk.f32.gmra.mxu0 %vm2177_vm2, %v7956_v4  ;;  %7964 = vmatmul.msk.f32.gmra.mxu1 %vm2177_vm2, %v7956_v4  ;;  %v2625_v63 = vpop.f32.mrf.mxu3  ;;  %vm14706_vm12 = vmmov %vm14701_vm10 }
 0x55c   :  { %7969 = vmatmul.msk.f32.gmra.mxu2 %vm2177_vm2, %v7957_v14  ;;  %7972 = vmatmul.msk.f32.gmra.mxu3 %vm2177_vm2, %v7956_v4  ;;  %v2599_v47 = vpop.f32.mrf.mxu2  ;;  %v10738_v5 = vadd.f32 %v2625_v63, %v10566_v8  ;;  %v3490_v8 = vmul.f32 %v3480_v46, %v14692_v62  ;;  %v3675_v22 = vpop.permute.xlu2 %3674  ;;  %vm14707_vm13 = vmmov %vm14701_vm10 }
 0x55d   :  { %v10744_v15 = vadd.f32 %v2599_v47, %v10572_v49  ;;  %3529 = vmatpush.msra.mxu0 %v3491_v35  ;;  %3587 = vmatpush.msra.mxu2 %v3493_v28  ;;  %v10746_v0 = vpop.f32.mrf.mxu0  ;;  %v3485_v49 = vmul.f32 %v3467_v2, %v14691_v12  ;;  %v7975_v2 = vld [vmem:[%s14287_s3 + $0xe8] sm:$0xff]  ;;  %vm14708_vm14 = vmmov %vm14701_vm10 }
 0x55e   :  { %14696 = vst [vmem:[#allocation36_spill] sm:$0xff] %v10738_v5  ;;  %3616 = vmatpush.msra.mxu3 %v3494_v57  ;;  %v3677_v16 = vpop.permute.xlu0 %3676  ;;  %v10749_v4 = vpop.f32.mrf.mxu1  ;;  %v14709_v5 = vld [vmem:[#allocation31_spill] sm:$0xff]  ;;  %vm14710_vm15 = vmmov %vm14701_vm10 }
 0x55f   :  { %14698 = vst [vmem:[#allocation71_spill] sm:$0xff] %v10744_v15  ;;  %3530 = vmatpush.msra.mxu0 %v3487_v29  ;;  %3588 = vmatpush.msra.mxu2 %v3489_v26  ;;  %v10752_v25 = vpop.permute.xlu1 %3668  ;;  %v3694_v50 = vsel %vm14703_vm11, %v3677_v16, %v10695_v34  ;;  %vm14711_vm3 = vmmov %vm14701_vm10 }
 0x560   :  { %3617 = vmatpush.msra.mxu3 %v3490_v8  ;;  %v3682_v54 = vsel %vm14707_vm13, %v10752_v25, %v3677_v16  ;;  %vm14713_vm6 = vmmov %vm14711_vm3 }
 0x561   :  { %3531 = vmatpush.msra.mxu0 %v3483_v53  ;;  %3589 = vmatpush.msra.mxu2 %v3485_v49  ;;  %v7976_v53 = vld [vmem:[%s14287_s3 + $0xf0] sm:$0xff]  ;;  %v3706_v16 = vmul.f32 %v3682_v54, %v14709_v5  ;;  %vm14718_vm7 = vmmov %vm14711_vm3 }
 0x562   :  { %3618 = vmatpush.msra.mxu3 %v3486_v45  ;;  %vm14719_vm8 = vmmov %vm14711_vm3 }
 0x563   :  { %7961 = vmatmul.msk.f32.gmra.mxu0 %vm2177_vm2, %v7957_v14  ;;  %7965 = vmatmul.msk.f32.gmra.mxu1 %vm2177_vm2, %v7957_v14  ;;  %vm14720_vm9 = vmmov %vm14711_vm3 }
 0x564   :  { %v2628_v10 = vpop.f32.mrf.mxu3  ;;  %7973 = vmatmul.msk.f32.gmra.mxu3 %vm2177_vm2, %v7957_v14  ;;  %7986 = vmatmul.msk.f32.vlgmr.msra.gmra.mxu2 %vm2177_vm2, %v7974_v48  ;;  %v10767_v57 = vpop.f32.mrf.mxu2  ;;  %vm14725_vm11 = vmmov %vm14711_vm3 }
 0x565   :  { %v10765_v28 = vadd.f32 %v2628_v10, %v10616_v42  ;;  %v10780_v14 = vpop.permute.xlu2 %3664  ;;  %vm14728_vm13 = vmmov %vm14711_vm3 }
 0x566   :  { %v10769_v46 = vpop.permute.xlu0 %3666  ;;  %v10771_v63 = vpop.f32.mrf.mxu0 }
 0x567   :  { %14699 = vst [vmem:[#allocation72_spill] sm:$0xff] %v10765_v28  ;;  %v10773_v35 = vpop.f32.mrf.mxu1  ;;  %v10775_v26 = vpop.permute.xlu1 %3650  ;;  %v3681_v15 = vsel %vm14710_vm15, %v10769_v46, %v3675_v22 }
 0x568   :  { %v3693_v28 = vsel %vm14708_vm14, %v3675_v22, %v10775_v26  ;;  %vm14729_vm14 = vmmov %vm14711_vm3 }
 0x56b   :  { %7978 = vmatmul.msk.f32.vlgmr.msra.gmra.mxu0 %vm2177_vm2, %v7974_v48  ;;  %7982 = vmatmul.msk.f32.vlgmr.msra.gmra.mxu1 %vm2177_vm2, %v7974_v48 }
 0x56c   :  { %7987 = vmatmul.msk.f32.gmra.mxu2 %vm2177_vm2, %v7975_v2  ;;  %7990 = vmatmul.msk.f32.vlgmr.msra.gmra.mxu3 %vm2177_vm2, %v7974_v48 }
 0x56d   :  { %v10786_v42 = vpop.f32.mrf.mxu2  ;;  %v3655_v49 = vpop.permute.xlu2 %3654 }
 0x56e   :  { %v10788_v30 = vpop.f32.mrf.mxu3  ;;  %v10790_v47 = vpop.permute.xlu0 %3660 }
 0x56f   :  { %v10792_v41 = vpop.f32.mrf.mxu0  ;;  %v3673_v29 = vpop.permute.xlu1 %3672 }
 0x570   :  { %v10794_v8 = vpop.f32.mrf.mxu1 }
 0x573   :  { %7979 = vmatmul.msk.f32.gmra.mxu0 %vm2177_vm2, %v7975_v2  ;;  %7983 = vmatmul.msk.f32.gmra.mxu1 %vm2177_vm2, %v7975_v2 }
 0x574   :  { %7988 = vmatmul.msk.f32.gmra.mxu2 %vm2177_vm2, %v7976_v53  ;;  %7991 = vmatmul.msk.f32.gmra.mxu3 %vm2177_vm2, %v7975_v2 }
 0x576   :  { %v10803_v45 = vpop.f32.mrf.mxu2  ;;  %v3679_v48 = vpop.permute.xlu0 %3678 }
 0x577   :  { %v10805_v10 = vpop.f32.mrf.mxu3  ;;  %v3695_v62 = vsel %vm14701_vm10, %v3679_v48, %v3655_v49  ;;  %v10809_v12 = vpop.f32.mrf.mxu0  ;;  %vm14724_vm10 = vmmov %vm14711_vm3 }
 0x578   :  { %14700 = vst [vmem:[#allocation37_spill] sm:$0xff] %v10805_v10  ;;  %v3711_v39 = vmul.f32 %v3695_v62, %v14704_v60  ;;  %v10815_v17 = vpop.f32.mrf.mxu1  ;;  %v3671_v2 = vpop.permute.xlu1 %3670  ;;  %v10857_v10 = vld [vmem:[%s14286_s6 + $0x8] sm:$0xff] }
 0x579   :  { %14702 = vst [vmem:[#allocation40_spill] sm:$0xff] %v10809_v12  ;;  %v3683_v9 = vsel %vm14706_vm12, %v3671_v2, %v3679_v48  ;;  %v3707_v48 = vmul.f32 %v3694_v50, %v14704_v60  ;;  %v8344_v12 = vmov 3   ;;  %vm14726_vm12 = vmmov %vm14711_vm3 }
 0x57a   :  { %14705 = vst [vmem:[#allocation41_spill] sm:$0xff] %v10815_v17  ;;  %v3710_v62 = vmul.f32 %v3683_v9, %v14709_v5  ;;  %3828 = vmatpush.msrb.mxu3 %v3711_v39  ;;  %v3703_v9 = vmul.f32 %v3693_v28, %v14704_v60  ;;  %v3680_v39 = vsel %vm14711_vm3, %v10780_v14, %v3673_v29 }
 0x57b   :  { %7980 = vmatmul.msk.f32.gmra.mxu0 %vm2177_vm2, %v7976_v53  ;;  %7984 = vmatmul.msk.f32.gmra.mxu1 %vm2177_vm2, %v7976_v53  ;;  %v3702_v28 = vmul.f32 %v3681_v15, %v14709_v5  ;;  %14716 = vst [vmem:[#allocation46_spill] sm:$0xff] %v10857_v10  ;;  %v3659_v15 = vpop.permute.xlu2 %3658 }
 0x57c   :  { %7989 = vmatmul.msk.f32.gmra.mxu2 %vm2177_vm2, %v7977_v36  ;;  %7992 = vmatmul.msk.f32.gmra.mxu3 %vm2177_vm2, %v7976_v53 }
 0x57d   :  { %3799 = vmatpush.msrb.mxu2 %v3710_v62  ;;  %3829 = vmatpush.msrb.mxu3 %v3707_v48 }
 0x57e   :  { %v10842_v17 = vpop.f32.mrf.mxu2  ;;  %v3649_v50 = vpop.permute.xlu0 %3648  ;;  %8265 = vset.pattern.permute.xlu1 %v8344_v12  ;;  %8264 = vset.pattern.permute.xlu2 %v8344_v12 }
 0x57f   :  { %14712 = vst [vmem:[#allocation43_spill] sm:$0xff] %v10842_v17  ;;  %v10844_v22 = vpop.f32.mrf.mxu3  ;;  %3800 = vmatpush.msrb.mxu2 %v3706_v16  ;;  %v3692_v53 = vsel %vm14713_vm6, %v3673_v29, %v3649_v50  ;;  %v10848_v54 = vpop.f32.mrf.mxu0  ;;  %3830 = vmatpush.msrb.mxu3 %v3703_v9  ;;  %v10863_v29 = vld [vmem:[%s14286_s6 + $0x10] sm:$0xff] }
 0x580   :  { %14714 = vst [vmem:[#allocation44_spill] sm:$0xff] %v10848_v54  ;;  %v10851_v62 = vpop.f32.mrf.mxu1  ;;  %v3663_v48 = vpop.permute.xlu1 %3662  ;;  %v3699_v17 = vmul.f32 %v3692_v53, %v14704_v60  ;;  %3868 = vperm.xlu1 %8265, %v10857_v10   ;;  %3873 = vperm.xlu2 %8264, %v10863_v29   ;;  %v3698_v53 = vmul.f32 %v3680_v39, %v14709_v5  ;;  %v14721_v10 = vld [vmem:[#allocation33_spill] sm:$0xff]  ;;  %v14722_v54 = vld [vmem:[#allocation32_spill] sm:$0xff] }
 0x581   :  { %14715 = vst [vmem:[#allocation45_spill] sm:$0xff] %v10851_v62  ;;  %3801 = vmatpush.msrb.mxu2 %v3702_v28  ;;  %v3687_v16 = vsel %vm14718_vm7, %v3663_v48, %v3671_v2  ;;  %v3691_v9 = vsel %vm14719_vm8, %v3655_v49, %v3663_v48  ;;  %8263 = vset.pattern.permute.xlu0 %v8344_v12  ;;  %v7994_v28 = vld [vmem:[%s14287_s3 + $0x100] sm:$0xff]  ;;  %v10883_v49 = vld [vmem:[%s14286_s6 + $0x18] sm:$0xff] }
 0x582   :  { %14717 = vst [vmem:[#allocation47_spill] sm:$0xff] %v10863_v29  ;;  %v3690_v60 = vsel %vm14720_vm9, %v10695_v34, %v10790_v47  ;;  %v3708_v62 = vmul.f32 %v3691_v9, %v14721_v10  ;;  %v3709_v29 = vmul.f32 %v3687_v16, %v14722_v54  ;;  %3831 = vmatpush.msrb.mxu3 %v3699_v17  ;;  %v7995_v16 = vld [vmem:[%s14287_s3 + $0x108] sm:$0xff] }
 0x583   :  { %14723 = vst [vmem:[#allocation48_spill] sm:$0xff] %v10883_v49  ;;  %3878 = vperm.xlu0 %8263, %v10883_v49   ;;  %v3686_v12 = vsel %vm14724_vm10, %v10790_v47, %v10752_v25  ;;  %3802 = vmatpush.msrb.mxu2 %v3698_v53  ;;  %v3689_v34 = vsel %vm14725_vm11, %v10775_v26, %v3659_v15 }
 0x584   :  { %7981 = vmatmul.msk.f32.gmra.mxu0 %vm2177_vm2, %v7977_v36  ;;  %7985 = vmatmul.msk.f32.gmra.mxu1 %vm2177_vm2, %v7977_v36  ;;  %v3685_v17 = vsel %vm14726_vm12, %v3659_v15, %v10769_v46  ;;  %v3704_v25 = vmul.f32 %v3690_v60, %v14721_v10  ;;  %v3705_v2 = vmul.f32 %v3686_v12, %v14722_v54  ;;  %v10915_v60 = vld [vmem:[%s14286_s6] sm:$0xff] }
 0x585   :  { %7993 = vmatmul.msk.f32.gmra.mxu3 %vm2177_vm2, %v7977_v36  ;;  %8006 = vmatmul.msk.f32.vlgmr.msrb.gmra.mxu2 %vm2177_vm2, %v7994_v28  ;;  %v3700_v36 = vmul.f32 %v3689_v34, %v14721_v10  ;;  %v3701_v46 = vmul.f32 %v3685_v17, %v14722_v54  ;;  %14727 = vst [vmem:[#allocation49_spill] sm:$0xff] %v10915_v60  ;;  %v7996_v17 = vld [vmem:[%s14287_s3 + $0x110] sm:$0xff] }
 0x586   :  { %3741 = vmatpush.msrb.mxu0 %v3708_v62  ;;  %3770 = vmatpush.msrb.mxu1 %v3709_v29  ;;  %v10901_v47 = vpop.f32.mrf.mxu2 }
 0x587   :  { %v10904_v39 = vpop.f32.mrf.mxu3  ;;  %v10906_v26 = vpop.f32.mrf.mxu0 }
 0x588   :  { %3742 = vmatpush.msrb.mxu0 %v3704_v25  ;;  %3771 = vmatpush.msrb.mxu1 %v3705_v2  ;;  %v10909_v48 = vpop.f32.mrf.mxu1  ;;  %v3657_v62 = vpop.permute.xlu1 %3656 }
 0x589   :  { %3863 = vperm.xlu2 %8264, %v10915_v60   ;;  %v3684_v29 = vsel %vm14728_vm13, %v3657_v62, %v10780_v14  ;;  %v3688_v15 = vsel %vm14729_vm14, %v3649_v50, %v3657_v62 }
 0x58a   :  { %3743 = vmatpush.msrb.mxu0 %v3700_v36  ;;  %3772 = vmatpush.msrb.mxu1 %v3701_v46  ;;  %v3696_v9 = vmul.f32 %v3688_v15, %v14721_v10  ;;  %v3697_v53 = vmul.f32 %v3684_v29, %v14722_v54  ;;  %v7997_v46 = vld [vmem:[%s14287_s3 + $0x118] sm:$0xff] }
 0x58c   :  { %3744 = vmatpush.msrb.mxu0 %v3696_v9  ;;  %3773 = vmatpush.msrb.mxu1 %v3697_v53 }
 0x58d   :  { %8010 = vmatmul.msk.f32.vlgmr.msrb.gmra.mxu3 %vm2177_vm2, %v7994_v28  ;;  %8007 = vmatmul.msk.f32.gmra.mxu2 %vm2177_vm2, %v7995_v16 }
 0x58e   :  { %7998 = vmatmul.msk.f32.vlgmr.msrb.gmra.mxu0 %vm2177_vm2, %v7994_v28  ;;  %8002 = vmatmul.msk.f32.vlgmr.msrb.gmra.mxu1 %vm2177_vm2, %v7994_v28  ;;  %v10932_v14 = vpop.f32.mrf.mxu2 }
 0x58f   :  { %v10934_v50 = vpop.f32.mrf.mxu3  ;;  %v10936_v12 = vpop.f32.mrf.mxu0 }
 0x590   :  { %v10938_v34 = vpop.f32.mrf.mxu1 }
 0x591   :  { %14730 = vst [vmem:[#allocation57_spill] sm:$0xff] %v10938_v34  ;;  %v2365_v34 = vadd.f32 %v10419_v44, %v10276_v58 }
 0x593   :  { %v2632_v58 = vadd.f32 %v10628_v11, %v2365_v34 }
 0x595   :  { %8011 = vmatmul.msk.f32.gmra.mxu3 %vm2177_vm2, %v7995_v16  ;;  %8008 = vmatmul.msk.f32.gmra.mxu2 %vm2177_vm2, %v7996_v17 }
 0x596   :  { %7999 = vmatmul.msk.f32.gmra.mxu0 %vm2177_vm2, %v7995_v16  ;;  %8003 = vmatmul.msk.f32.gmra.mxu1 %vm2177_vm2, %v7995_v16  ;;  %v10947_v28 = vpop.f32.mrf.mxu2 }
 0x597   :  { %14731 = vst [vmem:[#allocation58_spill] sm:$0xff] %v10947_v28  ;;  %v10949_v25 = vpop.f32.mrf.mxu3  ;;  %v10951_v2 = vpop.f32.mrf.mxu0 }
 0x598   :  { %14732 = vst [vmem:[#allocation50_spill] sm:$0xff] %v10949_v25  ;;  %v10953_v36 = vpop.f32.mrf.mxu1 }
 0x599   :  { %14733 = vst [vmem:[#allocation51_spill] sm:$0xff] %v10951_v2 }
 0x59a   :  { %14734 = vst [vmem:[#allocation59_spill] sm:$0xff] %v10953_v36 }
 0x59d   :  { %8012 = vmatmul.msk.f32.gmra.mxu3 %vm2177_vm2, %v7996_v17  ;;  %8009 = vmatmul.msk.f32.gmra.mxu2 %vm2177_vm2, %v7997_v46 }
 0x59e   :  { %8000 = vmatmul.msk.f32.gmra.mxu0 %vm2177_vm2, %v7996_v17  ;;  %8004 = vmatmul.msk.f32.gmra.mxu1 %vm2177_vm2, %v7996_v17  ;;  %v10962_v62 = vpop.f32.mrf.mxu2 }
 0x59f   :  { %14735 = vst [vmem:[#allocation60_spill] sm:$0xff] %v10962_v62  ;;  %v10964_v29 = vpop.f32.mrf.mxu3  ;;  %v10966_v15 = vpop.f32.mrf.mxu0 }
 0x5a0   :  { %14736 = vst [vmem:[#allocation52_spill] sm:$0xff] %v10964_v29  ;;  %v10968_v16 = vpop.f32.mrf.mxu1 }
 0x5a1   :  { %14737 = vst [vmem:[#allocation53_spill] sm:$0xff] %v10966_v15 }
 0x5a2   :  { %14738 = vst [vmem:[#allocation73_spill] sm:$0xff] %v10968_v16 }
 0x5a5   :  { %8013 = vmatmul.msk.f32.gmra.mxu3 %vm2177_vm2, %v7997_v46 }
 0x5a6   :  { %8001 = vmatmul.msk.f32.gmra.mxu0 %vm2177_vm2, %v7997_v46  ;;  %8005 = vmatmul.msk.f32.gmra.mxu1 %vm2177_vm2, %v7997_v46  ;;  %v10973_v9 = vpop.f32.mrf.mxu2 }
 0x5a7   :  { %v10975_v53 = vpop.f32.mrf.mxu3  ;;  %v10977_v54 = vpop.f32.mrf.mxu0 }
 0x5a8   :  { %14739 = vst [vmem:[#allocation74_spill] sm:$0xff] %v10975_v53  ;;  %v10979_v17 = vpop.f32.mrf.mxu1 }
 0x5ae   :  { %v10981_v10 = vpop.f32.mrf.mxu2 }
 0x5af   :  { %14740 = vst [vmem:[#allocation54_spill] sm:$0xff] %v10981_v10  ;;  %v10983_v5 = vpop.f32.mrf.mxu3  ;;  %v10985_v51 = vpop.f32.mrf.mxu0 }
 0x5b0   :  { %14741 = vst [vmem:[#allocation55_spill] sm:$0xff] %v10985_v51  ;;  %v10987_v49 = vpop.f32.mrf.mxu1 }
 0x5b1   :  { %14742 = vst [vmem:[#allocation75_spill] sm:$0xff] %v10987_v49 }
 0x5b6   :  { %v10989_v60 = vpop.f32.mrf.mxu2 }
 0x5b7   :  { %14743 = vst [vmem:[#allocation76_spill] sm:$0xff] %v10989_v60  ;;  %v10991_v16 = vpop.f32.mrf.mxu3  ;;  %v10993_v46 = vpop.f32.mrf.mxu0 }
 0x5b8   :  { %14744 = vst [vmem:[#allocation87_spill] sm:$0xff] %v10991_v16  ;;  %v10995_v15 = vpop.f32.mrf.mxu1 }
 0x5b9   :  { %14745 = vst [vmem:[#allocation56_spill] sm:$0xff] %v10993_v46 }
 0x5ba   :  { %14746 = vst [vmem:[#allocation61_spill] sm:$0xff] %v10995_v15 }
 0x5be   :  { %v10997_v53 = vpop.f32.mrf.mxu2 }
 0x5bf   :  { %14747 = vst [vmem:[#allocation88_spill] sm:$0xff] %v10997_v53  ;;  %v10999_v29 = vpop.f32.mrf.mxu3  ;;  %v11001_v62 = vpop.f32.mrf.mxu0 }
 0x5c0   :  { %14748 = vst [vmem:[#allocation62_spill] sm:$0xff] %v10999_v29  ;;  %v11003_v10 = vpop.f32.mrf.mxu1 }
 0x5c1   :  { %14749 = vst [vmem:[#allocation63_spill] sm:$0xff] %v11001_v62 }
 0x5c2   :  { %14750 = vst [vmem:[#allocation64_spill] sm:$0xff] %v11003_v10 }
 0x5c6   :  { %v11005_v36 = vpop.f32.mrf.mxu2 }
 0x5c7   :  { %v11007_v51 = vpop.f32.mrf.mxu3  ;;  %v11009_v49 = vpop.f32.mrf.mxu0 }
 0x5c8   :  { %14751 = vst [vmem:[#allocation65_spill] sm:$0xff] %v11007_v51  ;;  %v11011_v60 = vpop.f32.mrf.mxu1 }
 0x5ce   :  { %v11013_v16 = vpop.f32.mrf.mxu2 }
 0x5cf   :  { %14752 = vst [vmem:[#allocation66_spill] sm:$0xff] %v11013_v16  ;;  %v11015_v46 = vpop.f32.mrf.mxu3  ;;  %v11017_v15 = vpop.f32.mrf.mxu0 }
 0x5d0   :  { %14753 = vst [vmem:[#allocation67_spill] sm:$0xff] %v11015_v46  ;;  %v11019_v53 = vpop.f32.mrf.mxu1 }
 0x5d1   :  { %14754 = vst [vmem:[#allocation68_spill] sm:$0xff] %v11017_v15 }
 0x5d2   :  { %14755 = vst [vmem:[#allocation69_spill] sm:$0xff] %v11019_v53 }
 0x5d6   :  { %v11021_v29 = vpop.f32.mrf.mxu2 }
 0x5d7   :  { %14756 = vst [vmem:[#allocation77_spill] sm:$0xff] %v11021_v29  ;;  %v11023_v62 = vpop.f32.mrf.mxu3 }
 0x5d8   :  { %14757 = vst [vmem:[#allocation78_spill] sm:$0xff] %v11023_v62  ;;  %v11025_v10 = vpop.f32.mrf.mxu0  ;;  %v11027_v2 = vpop.f32.mrf.mxu1 }
 0x5d9   :  { %14758 = vst [vmem:[#allocation79_spill] sm:$0xff] %v11025_v10 }
 0x5da   :  { %14759 = vst [vmem:[#allocation80_spill] sm:$0xff] %v11027_v2 }
 0x5df   :  { %v11029_v51 = vpop.f32.mrf.mxu2  ;;  %v11031_v25 = vpop.f32.mrf.mxu3 }
 0x5e0   :  { %14760 = vst [vmem:[#allocation83_spill] sm:$0xff] %v11029_v51  ;;  %v11033_v28 = vpop.f32.mrf.mxu0  ;;  %v11035_v16 = vpop.f32.mrf.mxu1 }
 0x5e1   :  { %14761 = vst [vmem:[#allocation84_spill] sm:$0xff] %v11031_v25 }
 0x5e2   :  { %14762 = vst [vmem:[#allocation85_spill] sm:$0xff] %v11033_v28 }
 0x5e3   :  { %14763 = vst [vmem:[#allocation89_spill] sm:$0xff] %v11035_v16 }
 0x5e7   :  { %v11037_v46 = vpop.f32.mrf.mxu3  ;;  %v3591_v15 = vpop.f32.mrf.mxu2 }
 0x5e8   :  { %14764 = vst [vmem:[#allocation90_spill] sm:$0xff] %v11037_v46  ;;  %v11039_v53 = vpop.f32.mrf.mxu0  ;;  %v11041_v29 = vpop.f32.mrf.mxu1 }
 0x5ef   :  { %v11043_v62 = vpop.f32.mrf.mxu2  ;;  %v11045_v10 = vpop.f32.mrf.mxu3 }
 0x5f0   :  { %14765 = vst [vmem:[#allocation91_spill] sm:$0xff] %v11043_v62  ;;  %v11047_v2 = vpop.f32.mrf.mxu0  ;;  %v11049_v51 = vpop.f32.mrf.mxu1  ;;  %v2336_v62 = vadd.f32 %v10471_v56, %v10300_v23  ;;  %v2374_v23 = vadd.f32 %v10569_v19, %v10356_v3  ;;  %v2846_v56 = vadd.f32 %v10767_v57, %v10624_v21  ;;  %v2850_v21 = vadd.f32 %v10786_v42, %v10655_v6  ;;  %v14773_v6 = vld [vmem:[#allocation40_spill] sm:$0xff]  ;;  %v14774_v42 = vld [vmem:[#allocation41_spill] sm:$0xff] }
 0x5f1   :  { %14766 = vst [vmem:[#allocation92_spill] sm:$0xff] %v11045_v10  ;;  %v2368_v10 = vadd.f32 %v10478_v38, %v10302_v13  ;;  %v2345_v13 = vadd.f32 %v10574_v33, %v10415_v32 }
 0x5f2   :  { %14767 = vst [vmem:[#allocation70_spill] sm:$0xff] %v11047_v2  ;;  %v2631_v44 = vadd.f32 %v10626_v1, %v2336_v62  ;;  %v2644_v32 = vadd.f32 %v10749_v4, %v2374_v23  ;;  %v2847_v1 = vadd.f32 %v10788_v30, %v10649_v61  ;;  %v14772_v4 = vld [vmem:[#allocation37_spill] sm:$0xff] }
 0x5f3   :  { %14768 = vst [vmem:[#allocation81_spill] sm:$0xff] %v11049_v51  ;;  %v2339_v51 = vadd.f32 %v10503_v20, %v10327_v40  ;;  %v11088_v20 = vpop.permute.xlu2 %3873  ;;  %v2851_v57 = vadd.f32 %v14772_v4, %v10676_v31 }
 0x5f4   :  { %v2996_v34 = vadd.f32 %v10934_v50, %v2847_v1  ;;  %v14788_v1 = vld [vmem:[#allocation55_spill] sm:$0xff] }
 0x5f5   :  { %v2635_v40 = vadd.f32 %v10658_v18, %v2339_v51  ;;  %v2995_v51 = vadd.f32 %v10901_v47, %v2846_v56 }
 0x5f6   :  { %v3209_v23 = vadd.f32 %v10983_v5, %v2996_v34 }
 0x5f7   :  { %v11051_v25 = vpop.f32.mrf.mxu2  ;;  %v11053_v28 = vpop.f32.mrf.mxu3 }
 0x5f8   :  { %14769 = vst [vmem:[#allocation82_spill] sm:$0xff] %v11051_v25  ;;  %v11055_v16 = vpop.f32.mrf.mxu0  ;;  %v11057_v46 = vpop.f32.mrf.mxu1 }
 0x5f9   :  { %14770 = vst [vmem:[#allocation86_spill] sm:$0xff] %v11055_v16  ;;  %v2371_v16 = vadd.f32 %v10519_v24, %v10331_v7  ;;  %v2636_v7 = vadd.f32 %v10660_v52, %v2368_v10  ;;  %v2643_v24 = vadd.f32 %v10746_v0, %v2345_v13  ;;  %v2848_v52 = vadd.f32 %v10792_v41, %v2635_v40  ;;  %v14775_v10 = vld [vmem:[#allocation71_spill] sm:$0xff]  ;;  %v14782_v40 = vld [vmem:[#allocation58_spill] sm:$0xff] }
 0x5fa   :  { %14771 = vst [vmem:[#allocation35_spill] sm:$0xff] %v11057_v46  ;;  %v2342_v46 = vadd.f32 %v10542_v59, %v10352_v43  ;;  %v2844_v59 = vadd.f32 %v10771_v63, %v2631_v44  ;;  %v2845_v43 = vadd.f32 %v10773_v35, %v2632_v58  ;;  %v3208_v0 = vadd.f32 %v10973_v9, %v2995_v51  ;;  %v14776_v41 = vld [vmem:[#allocation43_spill] sm:$0xff]  ;;  %v14779_v9 = vld [vmem:[#allocation45_spill] sm:$0xff] }
 0x5fb   :  { %v2640_v3 = vadd.f32 %v10689_v37, %v2371_v16  ;;  %v2854_v37 = vadd.f32 %v10803_v45, %v10679_v55  ;;  %v2858_v47 = vadd.f32 %v14776_v41, %v14775_v10  ;;  %v2997_v58 = vadd.f32 %v10936_v12, %v2848_v52  ;;  %v3864_v12 = vpop.permute.xlu2 %3863  ;;  %v14786_v51 = vld [vmem:[#allocation59_spill] sm:$0xff]  ;;  %v14794_v10 = vld [vmem:[#allocation69_spill] sm:$0xff] }
 0x5fc   :  { %v2639_v38 = vadd.f32 %v10681_v27, %v2342_v46  ;;  %v2993_v11 = vadd.f32 %v10906_v26, %v2844_v59  ;;  %v2994_v18 = vadd.f32 %v10909_v48, %v2845_v43  ;;  %v2849_v27 = vadd.f32 %v10794_v8, %v2636_v7  ;;  %v14777_v8 = vld [vmem:[#allocation36_spill] sm:$0xff]  ;;  %v14783_v7 = vld [vmem:[#allocation50_spill] sm:$0xff] }
 0x5fd   :  { %v2853_v30 = vadd.f32 %v14774_v42, %v2640_v3  ;;  %v2855_v26 = vadd.f32 %v10844_v22, %v14777_v8  ;;  %v3421_v55 = vadd.f32 %v11005_v36, %v3208_v0  ;;  %v14778_v48 = vld [vmem:[#allocation44_spill] sm:$0xff]  ;;  %v2999_v22 = vadd.f32 %v10932_v14, %v2850_v21  ;;  %v14784_v3 = vld [vmem:[#allocation51_spill] sm:$0xff]  ;;  %v14787_v21 = vld [vmem:[#allocation54_spill] sm:$0xff] }
 0x5fe   :  { %v2852_v63 = vadd.f32 %v14773_v6, %v2639_v38  ;;  %v3206_v61 = vadd.f32 %v10977_v54, %v2993_v11  ;;  %v3207_v35 = vadd.f32 %v10979_v17, %v2994_v18  ;;  %v2856_v31 = vadd.f32 %v14778_v48, %v2643_v24  ;;  %v14780_v46 = vld [vmem:[#allocation72_spill] sm:$0xff]  ;;  %v14789_v18 = vld [vmem:[#allocation75_spill] sm:$0xff] }
 0x5ff   :  { %v11067_v2 = vpop.f32.mrf.mxu2  ;;  %v11069_v25 = vpop.f32.mrf.mxu3  ;;  %v11127_v17 = vadd.f32 %v14779_v9, %v2644_v32  ;;  %v11131_v44 = vadd.f32 %v10904_v39, %v14780_v46  ;;  %v3634_v36 = vadd.f32 %v3591_v15, %v3421_v55  ;;  %v3003_v56 = vadd.f32 %v14782_v40, %v2854_v37  ;;  %v14785_v15 = vld [vmem:[#allocation67_spill] sm:$0xff]  ;;  %v14791_v0 = vld [vmem:[#allocation92_spill] sm:$0xff] }
 0x600   :  { %v3419_v54 = vadd.f32 %v11009_v49, %v3206_v61  ;;  %v3420_v62 = vadd.f32 %v11011_v60, %v3207_v35  ;;  %v14781_v60 = vld [vmem:[#allocation57_spill] sm:$0xff]  ;;  %v3000_v38 = vadd.f32 %v14783_v7, %v2851_v57  ;;  %v3001_v14 = vadd.f32 %v14784_v3, %v2852_v63  ;;  %v14792_v63 = vld [vmem:[#allocation66_spill] sm:$0xff]  ;;  %v14793_v35 = vld [vmem:[#allocation68_spill] sm:$0xff] }
 0x601   :  { %v11094_v19 = vpop.f32.mrf.mxu0  ;;  %v11096_v33 = vpop.f32.mrf.mxu1  ;;  %v2998_v13 = vadd.f32 %v14781_v60, %v2849_v27  ;;  %v3422_v24 = vadd.f32 %v14785_v15, %v3209_v23  ;;  %v3210_v11 = vadd.f32 %v14788_v1, %v2997_v58  ;;  %v14790_v27 = vld [vmem:[#allocation60_spill] sm:$0xff]  ;;  %v14796_v9 = vld [vmem:[#allocation87_spill] sm:$0xff]  ;;  %v14798_v58 = vld [vmem:[#allocation70_spill] sm:$0xff] }
 0x602   :  { %v3632_v50 = vadd.f32 %v11039_v53, %v3419_v54  ;;  %v3633_v49 = vadd.f32 %v11041_v29, %v3420_v62  ;;  %v3002_v53 = vadd.f32 %v14786_v51, %v2853_v30  ;;  %v3212_v29 = vadd.f32 %v14787_v21, %v2999_v22  ;;  %v14795_v62 = vld [vmem:[#allocation52_spill] sm:$0xff]  ;;  %v14797_v22 = vld [vmem:[#allocation91_spill] sm:$0xff]  ;;  %v14802_v21 = vld [vmem:[#allocation53_spill] sm:$0xff] }
 0x603   :  { %v3211_v52 = vadd.f32 %v14789_v18, %v2998_v13  ;;  %v3007_v37 = vadd.f32 %v14790_v27, %v2858_v47  ;;  %v3635_v4 = vadd.f32 %v14791_v0, %v3422_v24  ;;  %v3423_v42 = vadd.f32 %v14793_v35, %v3210_v11  ;;  %v14800_v7 = vld [vmem:[#allocation76_spill] sm:$0xff]  ;;  %v3869_v24 = vpop.permute.xlu1 %3868  ;;  %v14804_v11 = vld [vmem:[#allocation61_spill] sm:$0xff]  ;;  %v14806_v35 = vld [vmem:[#allocation79_spill] sm:$0xff] }
 0x604   :  { %v3425_v61 = vadd.f32 %v14792_v63, %v3212_v29  ;;  %v3213_v46 = vadd.f32 %v14796_v9, %v3000_v38  ;;  %v3005_v29 = vadd.f32 %v14802_v21, %v2856_v31  ;;  %v14803_v1 = vld [vmem:[#allocation56_spill] sm:$0xff]  ;;  %v3215_v18 = vadd.f32 %v14804_v11, %v3002_v53  ;;  %v14805_v27 = vld [vmem:[#allocation77_spill] sm:$0xff]  ;;  %v14818_v21 = vld [vmem:[#allocation83_spill] sm:$0xff] }
 0x605   :  { %v3424_v30 = vadd.f32 %v14794_v10, %v3211_v52  ;;  %v3636_v23 = vadd.f32 %v14798_v58, %v3423_v42  ;;  %v14807_v10 = vld [vmem:[#allocation80_spill] sm:$0xff] }
 0x608   :  { %v11120_v45 = vpop.f32.mrf.mxu3  ;;  %v3804_v16 = vpop.f32.mrf.mxu2 }
 0x609   :  { %v3847_v59 = vadd.f32 %v3804_v16, %v3634_v36  ;;  %v3004_v16 = vadd.f32 %v14795_v62, %v2855_v26  ;;  %v3638_v36 = vadd.f32 %v14797_v22, %v3425_v61  ;;  %v14809_v62 = vld [vmem:[#allocation88_spill] sm:$0xff] }
 0x60a   :  { %v3220_v9 = vadd.f32 %v14809_v62, %v3007_v37  ;;  %v3879_v62 = vpop.permute.xlu0 %3878 }
 0x60b   :  { %v3746_v39 = vpop.f32.mrf.mxu0  ;;  %v3775_v43 = vpop.f32.mrf.mxu1  ;;  %v11156_v41 = vadd.f32 %v3864_v12, %v3847_v59  ;;  %v3216_v59 = vadd.f32 %v14800_v7, %v3003_v56  ;;  %v3214_v56 = vadd.f32 %v14803_v1, %v3001_v14 }
 0x60c   :  { %v3845_v32 = vadd.f32 %v3746_v39, %v3632_v50  ;;  %v3846_v5 = vadd.f32 %v3775_v43, %v3633_v49  ;;  %v14799_v50 = vld [vmem:[#allocation81_spill] sm:$0xff]  ;;  %v14801_v39 = vld [vmem:[#allocation78_spill] sm:$0xff]  ;;  %v3433_v1 = vadd.f32 %v14818_v21, %v3220_v9 }
 0x60d   :  { %v3637_v49 = vadd.f32 %v14799_v50, %v3424_v30  ;;  %v3426_v43 = vadd.f32 %v14801_v39, %v3213_v46  ;;  %v3923_v38 = vmul.f32 %v11156_v41, %v11156_v41  ;;  %v3429_v0 = vadd.f32 %v14805_v27, %v3216_v59  ;;  %v14810_v46 = vld [vmem:[#allocation62_spill] sm:$0xff]  ;;  %v14814_v59 = vld [vmem:[#allocation63_spill] sm:$0xff] }
 0x60e   :  { %v11149_v57 = vadd.f32 %v3864_v12, %v3845_v32  ;;  %v11151_v6 = vadd.f32 %v3864_v12, %v3846_v5  ;;  %v3427_v42 = vadd.f32 %v14806_v35, %v3214_v56  ;;  %v3428_v30 = vadd.f32 %v14807_v10, %v3215_v18  ;;  %v14819_v56 = vld [vmem:[#allocation85_spill] sm:$0xff] }
 0x60f   :  { %v3217_v22 = vadd.f32 %v14810_v46, %v3004_v16  ;;  %v3218_v39 = vadd.f32 %v14814_v59, %v3005_v29  ;;  %v14816_v16 = vld [vmem:[#allocation84_spill] sm:$0xff]  ;;  %v14820_v18 = vld [vmem:[#allocation89_spill] sm:$0xff]  ;;  %v14822_v46 = vld [vmem:[#allocation90_spill] sm:$0xff] }
 0x610   :  { %v3833_v8 = vpop.f32.mrf.mxu3  ;;  %v3921_v55 = vmul.f32 %v11149_v57, %v11149_v57  ;;  %v3922_v47 = vmul.f32 %v11151_v6, %v11151_v6  ;;  %v3807_v48 = vpop.f32.mrf.mxu2  ;;  %v3897_v54 = vadd.f32 %v11151_v6, %v11149_v57 }
 0x611   :  { %v3848_v34 = vadd.f32 %v3833_v8, %v3635_v4  ;;  %v3851_v3 = vadd.f32 %v3807_v48, %v3638_v36  ;;  %v3639_v4 = vadd.f32 %v11053_v28, %v3426_v43  ;;  %v14811_v36 = vld [vmem:[#allocation82_spill] sm:$0xff]  ;;  %v14815_v43 = vld [vmem:[#allocation64_spill] sm:$0xff]  ;;  %v3431_v11 = vadd.f32 %v14819_v56, %v3218_v39 }
 0x612   :  { %v3898_v13 = vadd.f32 %v3897_v54, %v11156_v41  ;;  %v3937_v40 = vadd.f32 %v3922_v47, %v3921_v55  ;;  %v3642_v58 = vadd.f32 %v14811_v36, %v3429_v0  ;;  %v8345_v56 = vmov 4  }
 0x613   :  { %v11169_v60 = vadd.f32 %v3864_v12, %v3848_v34  ;;  %v3749_v15 = vpop.f32.mrf.mxu0  ;;  %v3778_v26 = vpop.f32.mrf.mxu1  ;;  %v11190_v8 = vadd.f32 %v3869_v24, %v3851_v3  ;;  %v14808_v34 = vld [vmem:[#allocation73_spill] sm:$0xff]  ;;  %8266 = vset.pattern.permute.xlu0 %v8345_v56  ;;  %8267 = vset.pattern.permute.xlu1 %v8345_v56 }
 0x614   :  { %v3849_v32 = vadd.f32 %v3749_v15, %v3636_v23  ;;  %v3850_v5 = vadd.f32 %v3778_v26, %v3637_v49  ;;  %v3938_v52 = vadd.f32 %v3937_v40, %v3923_v38  ;;  %v3006_v54 = vadd.f32 %v14808_v34, %v11127_v17  ;;  %v14812_v23 = vld [vmem:[#allocation86_spill] sm:$0xff]  ;;  %v14813_v49 = vld [vmem:[#allocation35_spill] sm:$0xff] }
 0x615   :  { %v3899_v51 = vadd.f32 %v3898_v13, %v11169_v60  ;;  %v3924_v12 = vmul.f32 %v11169_v60, %v11169_v60  ;;  %v3640_v50 = vadd.f32 %v14812_v23, %v3427_v42  ;;  %v3641_v13 = vadd.f32 %v14813_v49, %v3428_v30 }
 0x616   :  { %v11184_v63 = vadd.f32 %v3869_v24, %v3849_v32  ;;  %v11186_v61 = vadd.f32 %v3869_v24, %v3850_v5  ;;  %v3219_v3 = vadd.f32 %v14815_v43, %v3006_v54  ;;  %v3430_v38 = vadd.f32 %v14816_v16, %v3217_v22 }
 0x617   :  { %3900 = vadd.xlane.f32.xlu2 %v3899_v51  ;;  %v3939_v14 = vadd.f32 %v3938_v52, %v3924_v12  ;;  %v14817_v12 = vld [vmem:[#allocation74_spill] sm:$0xff]  ;;  %v3927_v29 = vmul.f32 %v11190_v8, %v11190_v8 }
 0x618   :  { %v3836_v31 = vpop.f32.mrf.mxu3  ;;  %v3925_v53 = vmul.f32 %v11184_v63, %v11184_v63  ;;  %v3926_v55 = vmul.f32 %v11186_v61, %v11186_v61  ;;  %v3810_v28 = vpop.f32.mrf.mxu2  ;;  %v3902_v48 = vadd.f32 %v11186_v61, %v11184_v63  ;;  %v3432_v52 = vadd.f32 %v14820_v18, %v3219_v3 }
 0x619   :  { %v3852_v47 = vadd.f32 %v3836_v31, %v3639_v4  ;;  %3940 = vadd.xlane.f32.xlu0 %v3939_v14  ;;  %v3855_v17 = vadd.f32 %v3810_v28, %v3642_v58  ;;  %v3643_v27 = vadd.f32 %v11069_v25, %v3430_v38 }
 0x61a   :  { %v3903_v7 = vadd.f32 %v3902_v48, %v11190_v8  ;;  %v3942_v26 = vadd.f32 %v3926_v55, %v3925_v53  ;;  %v3645_v48 = vadd.f32 %v11096_v33, %v3432_v52 }
 0x61b   :  { %v11205_v40 = vadd.f32 %v3869_v24, %v3852_v47  ;;  %v3752_v15 = vpop.f32.mrf.mxu0  ;;  %v3781_v37 = vpop.f32.mrf.mxu1  ;;  %v3008_v24 = vadd.f32 %v14817_v12, %v11131_v44  ;;  %v3646_v44 = vadd.f32 %v11067_v2, %v3433_v1  ;;  %v11228_v35 = vadd.f32 %v11088_v20, %v3855_v17  ;;  %v14821_v2 = vld [vmem:[#allocation65_spill] sm:$0xff] }
 0x61c   :  { %v3853_v32 = vadd.f32 %v3752_v15, %v3640_v50  ;;  %v3854_v5 = vadd.f32 %v3781_v37, %v3641_v13  ;;  %v3943_v30 = vadd.f32 %v3942_v26, %v3927_v29  ;;  %v3644_v47 = vadd.f32 %v11094_v19, %v3431_v11 }
 0x61d   :  { %v3904_v51 = vadd.f32 %v3903_v7, %v11205_v40  ;;  %v3928_v10 = vmul.f32 %v11205_v40, %v11205_v40  ;;  %v3221_v28 = vadd.f32 %v14821_v2, %v3008_v24  ;;  %v3931_v33 = vmul.f32 %v11228_v35, %v11228_v35 }
 0x61e   :  { %v11221_v0 = vadd.f32 %v11088_v20, %v3853_v32  ;;  %v11224_v4 = vadd.f32 %v11088_v20, %v3854_v5 }
 0x61f   :  { %3905 = vadd.xlane.f32.xlu1 %v3904_v51  ;;  %v3434_v22 = vadd.f32 %v14822_v46, %v3221_v28  ;;  %v3944_v7 = vadd.f32 %v3943_v30, %v3928_v10 }
 0x620   :  { %v3839_v42 = vpop.f32.mrf.mxu3  ;;  %v3929_v25 = vmul.f32 %v11221_v0, %v11221_v0  ;;  %v3930_v31 = vmul.f32 %v11224_v4, %v11224_v4  ;;  %v3813_v14 = vpop.f32.mrf.mxu2  ;;  %v3907_v55 = vadd.f32 %v11224_v4, %v11221_v0 }
 0x621   :  { %v3856_v53 = vadd.f32 %v3839_v42, %v3643_v27  ;;  %v3859_v34 = vadd.f32 %v3813_v14, %v3646_v44  ;;  %v3647_v19 = vadd.f32 %v11120_v45, %v3434_v22 }
 0x622   :  { %v3908_v9 = vadd.f32 %v3907_v55, %v11228_v35  ;;  %v3947_v23 = vadd.f32 %v3930_v31, %v3929_v25 }
 0x623   :  { %v11242_v54 = vadd.f32 %v11088_v20, %v3856_v53  ;;  %v3755_v36 = vpop.f32.mrf.mxu0  ;;  %v3784_v58 = vpop.f32.mrf.mxu1  ;;  %v11250_v20 = vadd.f32 %v3879_v62, %v3859_v34 }
 0x624   :  { %v3857_v50 = vadd.f32 %v3755_v36, %v3644_v47  ;;  %v3858_v49 = vadd.f32 %v3784_v58, %v3645_v48  ;;  %v3948_v17 = vadd.f32 %v3947_v23, %v3931_v33 }
 0x625   :  { %v3909_v13 = vadd.f32 %v3908_v9, %v11242_v54  ;;  %v3932_v3 = vmul.f32 %v11242_v54, %v11242_v54  ;;  %v3935_v32 = vmul.f32 %v11250_v20, %v11250_v20 }
 0x626   :  { %v11252_v59 = vadd.f32 %v3879_v62, %v3857_v50  ;;  %v11254_v39 = vadd.f32 %v3879_v62, %v3858_v49 }
 0x627   :  { %3910 = vadd.xlane.f32.xlu0 %v3909_v13  ;;  %3945 = vadd.xlane.f32.xlu1 %v3944_v7  ;;  %v3949_v51 = vadd.f32 %v3948_v17, %v3932_v3 }
 0x628   :  { %v3842_v43 = vpop.f32.mrf.mxu3  ;;  %v3933_v15 = vmul.f32 %v11252_v59, %v11252_v59  ;;  %v3934_v45 = vmul.f32 %v11254_v39, %v11254_v39  ;;  %v3912_v26 = vadd.f32 %v11254_v39, %v11252_v59 }
 0x629   :  { %v3860_v37 = vadd.f32 %v3842_v43, %v3647_v19  ;;  %v14823_v43 = vld [vmem:[#allocation49_spill] sm:$0xff] }
 0x62a   :  { %v3913_v38 = vadd.f32 %v3912_v26, %v11250_v20  ;;  %v3952_v5 = vadd.f32 %v3934_v45, %v3933_v15 }
 0x62b   :  { %v11264_v16 = vadd.f32 %v3879_v62, %v3860_v37 }
 0x62c   :  { %v3953_v21 = vadd.f32 %v3952_v5, %v3935_v32 }
 0x62d   :  { %v3914_v12 = vadd.f32 %v3913_v38, %v11264_v16  ;;  %v3936_v24 = vmul.f32 %v11264_v16, %v11264_v16 }
 0x62f   :  { %3950 = vadd.xlane.f32.xlu0 %v3949_v51  ;;  %3915 = vadd.xlane.f32.xlu1 %v3914_v12  ;;  %v3954_v1 = vadd.f32 %v3953_v21, %v3936_v24 }
 0x631   :  { %3955 = vadd.xlane.f32.xlu2 %v3954_v1 }
 0x68a   :  { %v3901_v11 = vpop.xlane.xlu2 %3900 }
 0x68b   :  { %v3917_v29 = vmul.f32 0.001953125, %v3901_v11 }
 0x68c   :  { %v3941_v52 = vpop.xlane.xlu0 %3940 }
 0x68d   :  { %v3961_v18 = vmul.f32 %v3917_v29, %v3917_v29  ;;  %v3957_v27 = vmul.f32 0.001953125, %v3941_v52  ;;  %v14824_v52 = vld [vmem:[#allocation46_spill] sm:$0xff] }
 0x68f   :  { %v3965_v44 = vsub.f32 %v3957_v27, %v3961_v18 }
 0x691   :  { %v3969_v42 = vadd.f32 1e-05, %v3965_v44 }
 0x692   :  { %v3906_v10 = vpop.xlane.xlu1 %3905 }
 0x693   :  { %8289 = vrsqrt.f32 %v3969_v42  ;;  %v3918_v30 = vmul.f32 0.001953125, %v3906_v10  ;;  %vm3979_vm3 = vweird.f32 %v3969_v42 }
 0x695   :  { %v3962_v55 = vmul.f32 %v3918_v30, %v3918_v30 }
 0x699   :  { %v8290_v25 = vpop.eup %8289 }
 0x69a   :  { %v3911_v31 = vpop.xlane.xlu0 %3910  ;;  %v3946_v14 = vpop.xlane.xlu1 %3945  ;;  %v3974_v53 = vmul.f32 %v8290_v25, %v3969_v42  ;;  %vm3980_vm15 = vweird.f32 %v8290_v25 }
 0x69b   :  { %v3958_v2 = vmul.f32 0.001953125, %v3946_v14  ;;  %v11272_v34 = vmul.f32 0.001953125, %v3911_v31  ;;  %vm3981_vm6 = vmor %vm3979_vm3, %vm3980_vm15 }
 0x69c   :  { %v3975_v28 = vmul.f32 %v8290_v25, %v3974_v53 }
 0x69d   :  { %v3966_v47 = vsub.f32 %v3958_v2, %v3962_v55  ;;  %v3963_v36 = vmul.f32 %v11272_v34, %v11272_v34  ;;  %v14825_v2 = vld [vmem:[#allocation47_spill] sm:$0xff] }
 0x69e   :  { %v3976_v48 = vmul.f32 0.5, %v3975_v28 }
 0x69f   :  { %v3970_v62 = vadd.f32 1e-05, %v3966_v47 }
 0x6a0   :  { %v3977_v9 = vsub.f32 1.5, %v3976_v48  ;;  %v14826_v48 = vld [vmem:[#allocation48_spill] sm:$0xff] }
 0x6a1   :  { %8291 = vrsqrt.f32 %v3970_v62  ;;  %vm3989_vm8 = vweird.f32 %v3970_v62 }
 0x6a2   :  { %v3951_v46 = vpop.xlane.xlu0 %3950  ;;  %v3916_v22 = vpop.xlane.xlu1 %3915  ;;  %v3978_v50 = vmul.f32 %v8290_v25, %v3977_v9 }
 0x6a3   :  { %v3959_v58 = vmul.f32 0.001953125, %v3951_v46  ;;  %v3920_v23 = vmul.f32 0.001953125, %v3916_v22  ;;  %v8346_v46 = vmov 5  }
 0x6a4   :  { %v3956_v49 = vpop.xlane.xlu2 %3955  ;;  %v3982_v33 = vsel %vm3981_vm6, %v8290_v25, %v3978_v50  ;;  %8268 = vset.pattern.permute.xlu2 %v8346_v46 }
 0x6a5   :  { %v3967_v13 = vsub.f32 %v3959_v58, %v3963_v36  ;;  %v3964_v7 = vmul.f32 %v3920_v23, %v3920_v23  ;;  %v3960_v19 = vmul.f32 0.001953125, %v3956_v49  ;;  %v4013_v3 = vmul.f32 %v14823_v43, %v3982_v33 }
 0x6a7   :  { %v8292_v17 = vpop.eup %8291  ;;  %v3971_v15 = vadd.f32 1e-05, %v3967_v13  ;;  %v3968_v45 = vsub.f32 %v3960_v19, %v3964_v7  ;;  %4043 = vperm.xlu0 %8266, %v4013_v3   ;;  %v4017_v26 = vmul.f32 %v4013_v3, %v3917_v29 }
 0x6a8   :  { %v3984_v37 = vmul.f32 %v8292_v17, %v3970_v62  ;;  %vm3990_vm7 = vweird.f32 %v8292_v17 }
 0x6a9   :  { %8293 = vrsqrt.f32 %v3971_v15  ;;  %v3972_v38 = vadd.f32 1e-05, %v3968_v45  ;;  %4025 = vrot.lane.b32.xlu2 %v4017_v26, %s8336_s30  ;;  %vm3991_vm9 = vmor %vm3989_vm8, %vm3990_vm7  ;;  %vm3999_vm11 = vweird.f32 %v3971_v15 }
 0x6aa   :  { %v3985_v32 = vmul.f32 %v8292_v17, %v3984_v37 }
 0x6ab   :  { %8295 = vrsqrt.f32 %v3972_v38  ;;  %vm4009_vm14 = vweird.f32 %v3972_v38 }
 0x6ac   :  { %v3986_v5 = vmul.f32 0.5, %v3985_v32 }
 0x6ae   :  { %v3987_v51 = vsub.f32 1.5, %v3986_v5 }
 0x6af   :  { %v8294_v12 = vpop.eup %8293 }
 0x6b0   :  { %v3994_v24 = vmul.f32 %v8294_v12, %v3971_v15  ;;  %v3988_v21 = vmul.f32 %v8292_v17, %v3987_v51  ;;  %vm4000_vm10 = vweird.f32 %v8294_v12 }
 0x6b1   :  { %v8296_v1 = vpop.eup %8295  ;;  %vm4001_vm13 = vmor %vm3999_vm11, %vm4000_vm10 }
 0x6b2   :  { %v3995_v56 = vmul.f32 %v8294_v12, %v3994_v24  ;;  %v4004_v11 = vmul.f32 %v8296_v1, %v3972_v38  ;;  %v3992_v18 = vsel %vm3991_vm9, %v8292_v17, %v3988_v21  ;;  %vm4010_vm12 = vweird.f32 %v8296_v1 }
 0x6b3   :  { %v4014_v29 = vmul.f32 %v14824_v52, %v3992_v18  ;;  %vm4011_vm15 = vmor %vm4009_vm14, %vm4010_vm12 }
 0x6b4   :  { %v3996_v27 = vmul.f32 0.5, %v3995_v56  ;;  %v4005_v44 = vmul.f32 %v8296_v1, %v4004_v11 }
 0x6b5   :  { %4048 = vperm.xlu1 %8267, %v4014_v29   ;;  %v4018_v42 = vmul.f32 %v4014_v29, %v3918_v30 }
 0x6b6   :  { %v3997_v10 = vsub.f32 1.5, %v3996_v27  ;;  %v4006_v25 = vmul.f32 0.5, %v4005_v44 }
 0x6b7   :  { %4027 = vrot.lane.b32.xlu0 %v4018_v42, %s8336_s30 }
 0x6b8   :  { %v4007_v31 = vsub.f32 1.5, %v4006_v25  ;;  %v3998_v14 = vmul.f32 %v8294_v12, %v3997_v10 }
 0x6ba   :  { %v4002_v53 = vsel %vm4001_vm13, %v8294_v12, %v3998_v14  ;;  %v4008_v55 = vmul.f32 %v8296_v1, %v4007_v31 }
 0x6bb   :  { %v4015_v28 = vmul.f32 %v14825_v2, %v4002_v53 }
 0x6bc   :  { %v4012_v47 = vsel %vm4011_vm15, %v8296_v1, %v4008_v55 }
 0x6bd   :  { %4053 = vperm.xlu1 %8267, %v4015_v28   ;;  %v4016_v30 = vmul.f32 %v14826_v48, %v4012_v47  ;;  %v4019_v9 = vmul.f32 %v4015_v28, %v11272_v34 }
 0x6bf   :  { %4058 = vperm.xlu0 %8266, %v4016_v30   ;;  %v4020_v62 = vmul.f32 %v4016_v30, %v3920_v23 }
 0x6c1   :  { %4031 = vrot.lane.b32.xlu2 %v4020_v62, %s8336_s30 }
 0x6c5   :  { %4029 = vrot.lane.b32.xlu1 %v4019_v9, %s8336_s30 }
 0x6c6   :  { %8269 = vset.pattern.permute.xlu1 %v8346_v46 }
 0x703   :  { %v4026_v22 = vpop.permute.xlu2 %4025 }
 0x704   :  { %v4037_v36 = vsub.f32 %v14823_v43, %v4026_v22 }
 0x706   :  { %4079 = vperm.xlu2 %8268, %v4037_v36  }
 0x719   :  { %v4044_v58 = vpop.permute.xlu0 %4043 }
 0x71a   :  { %v4061_v3 = vmul.f32 %v4044_v58, %v11149_v57  ;;  %v4062_v43 = vmul.f32 %v4044_v58, %v11151_v6  ;;  %v4063_v17 = vmul.f32 %v4044_v58, %v11156_v41  ;;  %v4064_v57 = vmul.f32 %v4044_v58, %v11169_v60 }
 0x71b   :  { %v4032_v19 = vpop.permute.xlu2 %4031 }
 0x71c   :  { %v4040_v33 = vsub.f32 %v14826_v48, %v4032_v19 }
 0x727   :  { %v4049_v50 = vpop.permute.xlu1 %4048 }
 0x728   :  { %v4066_v60 = vmul.f32 %v4049_v50, %v11186_v61  ;;  %v4067_v51 = vmul.f32 %v4049_v50, %v11190_v8  ;;  %v4065_v11 = vmul.f32 %v4049_v50, %v11184_v63  ;;  %v4068_v18 = vmul.f32 %v4049_v50, %v11205_v40 }
 0x729   :  { %v4028_v49 = vpop.permute.xlu0 %4027 }
 0x72a   :  { %v4038_v13 = vsub.f32 %v14824_v52, %v4028_v49 }
 0x72c   :  { %4084 = vperm.xlu1 %8269, %v4038_v13  }
 0x72f   :  { %v11287_v23 = vpop.permute.xlu1 %4053 }
 0x730   :  { %v4070_v40 = vmul.f32 %v11287_v23, %v11224_v4  ;;  %v4071_v27 = vmul.f32 %v11287_v23, %v11228_v35  ;;  %v4069_v4 = vmul.f32 %v11287_v23, %v11221_v0  ;;  %v4072_v35 = vmul.f32 %v11287_v23, %v11242_v54 }
 0x731   :  { %v4059_v0 = vpop.permute.xlu0 %4058 }
 0x732   :  { %v4074_v28 = vmul.f32 %v4059_v0, %v11254_v39  ;;  %v4076_v46 = vmul.f32 %v4059_v0, %v11264_v16 }
 0x737   :  { %v4030_v7 = vpop.permute.xlu1 %4029 }
 0x738   :  { %v4039_v34 = vsub.f32 %v14825_v2, %v4030_v7  ;;  %v4075_v2 = vmul.f32 %v4059_v0, %v11250_v20  ;;  %v4073_v20 = vmul.f32 %v4059_v0, %v11252_v59 }
 0x73a   :  { %4089 = vperm.xlu2 %8268, %v4039_v34  }
 0x742   :  { %4094 = vperm.xlu2 %8268, %v4040_v33  }
 0x760   :  { %v4080_v15 = vpop.permute.xlu2 %4079 }
 0x761   :  { %v4097_v45 = vadd.f32 %v4080_v15, %v4061_v3  ;;  %v4098_v37 = vadd.f32 %v4080_v15, %v4062_v43  ;;  %v4099_v26 = vadd.f32 %v4080_v15, %v4063_v17  ;;  %v4100_v6 = vadd.f32 %v4080_v15, %v4064_v57 }
 0x763   :  { %v11294_v38 = vmax.f32 %v4097_v45, 0.0  ;;  %v11296_v32 = vmax.f32 %v4098_v37, 0.0  ;;  %v11298_v5 = vmax.f32 %v4099_v26, 0.0  ;;  %v11307_v41 = vmax.f32 %v4100_v6, 0.0 }
 0x765   :  { %4205 = vrot.lane.b32.xlu1 %v11296_v32, %s8334_s29  ;;  %4197 = vrot.lane.b32.xlu0 %v11294_v38, %s8334_s29 }
 0x766   :  { %4213 = vrot.lane.b32.xlu2 %v11298_v5, %s8334_s29 }
 0x76d   :  { %4129 = vrot.lane.b32.xlu1 %v11294_v38, %s8333_s28  ;;  %4145 = vrot.lane.b32.xlu0 %v11298_v5, %s8333_s28 }
 0x76e   :  { %4221 = vrot.lane.b32.xlu2 %v11307_v41, %s8334_s29 }
 0x775   :  { %4538 = vrot.lane.b32.xlu1 %v11298_v5, %s8335_s0  ;;  %4153 = vrot.lane.b32.xlu0 %v11307_v41, %s8333_s28 }
 0x776   :  { %4137 = vrot.lane.b32.xlu2 %v11296_v32, %s8333_s28 }
 0x77d   :  { %4530 = vrot.lane.b32.xlu0 %v11296_v32, %s8335_s0 }
 0x794   :  { %v4090_v63 = vpop.permute.xlu2 %4089 }
 0x795   :  { %v4106_v44 = vadd.f32 %v4090_v63, %v4070_v40  ;;  %v4107_v42 = vadd.f32 %v4090_v63, %v4071_v27  ;;  %v4105_v31 = vadd.f32 %v4090_v63, %v4069_v4  ;;  %v4108_v14 = vadd.f32 %v4090_v63, %v4072_v35 }
 0x797   :  { %v11363_v10 = vmax.f32 %v4106_v44, 0.0  ;;  %v11365_v25 = vmax.f32 %v4107_v42, 0.0  ;;  %v11377_v53 = vmax.f32 %v4105_v31, 0.0  ;;  %v11379_v55 = vmax.f32 %v4108_v14, 0.0 }
 0x79c   :  { %v4095_v54 = vpop.permute.xlu2 %4094 }
 0x79d   :  { %v4111_v47 = vadd.f32 %v4095_v54, %v4075_v2  ;;  %v4110_v48 = vadd.f32 %v4095_v54, %v4074_v28  ;;  %v4109_v39 = vadd.f32 %v4095_v54, %v4073_v20  ;;  %v4112_v22 = vadd.f32 %v4095_v54, %v4076_v46  ;;  %v14833_v2 = vld [vmem:[#allocation2_spill] sm:$0xff]  ;;  %v14834_v46 = vld [vmem:[#allocation4_spill] sm:$0xff] }
 0x79e   :  { %v4085_v12 = vpop.permute.xlu1 %4084  ;;  %vm14863_vm3 = vcmp.lt.s32.totalorder %v14833_v2, 127 }
 0x79f   :  { %v4102_v24 = vadd.f32 %v4085_v12, %v4066_v60  ;;  %v4103_v21 = vadd.f32 %v4085_v12, %v4067_v51  ;;  %v4101_v61 = vadd.f32 %v4085_v12, %v4065_v11  ;;  %v4104_v8 = vadd.f32 %v4085_v12, %v4068_v18  ;;  %vm14864_vm6 = vmmov %vm14863_vm3 }
 0x7a0   :  { %v11401_v30 = vmax.f32 %v4111_v47, 0.0  ;;  %v11405_v9 = vmax.f32 %v4110_v48, 0.0  ;;  %v11415_v36 = vmax.f32 %v4109_v39, 0.0  ;;  %v11417_v58 = vmax.f32 %v4112_v22, 0.0  ;;  %v14835_v22 = vld [vmem:[#allocation5_spill] sm:$0xff]  ;;  %vm14866_vm7 = vmmov %vm14863_vm3 }
 0x7a1   :  { %v11325_v1 = vmax.f32 %v4102_v24, 0.0  ;;  %v11327_v56 = vmax.f32 %v4103_v21, 0.0  ;;  %v11337_v52 = vmax.f32 %v4101_v61, 0.0  ;;  %v11339_v29 = vmax.f32 %v4104_v8, 0.0  ;;  %vm14867_vm8 = vmmov %vm14863_vm3 }
 0x7a2   :  { %vm14869_vm9 = vmmov %vm14863_vm3 }
 0x7a3   :  { %4147 = vrot.lane.b32.xlu2 %v11327_v56, %s8333_s28  ;;  %4215 = vrot.lane.b32.xlu1 %v11327_v56, %s8334_s29  ;;  %vm14871_vm10 = vmmov %vm14863_vm3 }
 0x7a4   :  { %4207 = vrot.lane.b32.xlu0 %v11325_v1, %s8334_s29  ;;  %vm14873_vm11 = vmmov %vm14863_vm3 }
 0x7a5   :  { %vm14874_vm12 = vmmov %vm14863_vm3 }
 0x7a6   :  { %vm14875_vm13 = vmmov %vm14863_vm3 }
 0x7a7   :  { %vm14876_vm14 = vmmov %vm14863_vm3 }
 0x7a8   :  { %vm14877_vm15 = vmmov %vm14863_vm3 }
 0x7ab   :  { %4131 = vrot.lane.b32.xlu2 %v11337_v52, %s8333_s28  ;;  %4199 = vrot.lane.b32.xlu1 %v11337_v52, %s8334_s29 }
 0x7ac   :  { %4223 = vrot.lane.b32.xlu0 %v11339_v29, %s8334_s29 }
 0x7b3   :  { %4532 = vrot.lane.b32.xlu2 %v11325_v1, %s8335_s0  ;;  %4139 = vrot.lane.b32.xlu1 %v11325_v1, %s8333_s28 }
 0x7b4   :  { %4540 = vrot.lane.b32.xlu0 %v11327_v56, %s8335_s0 }
 0x7bb   :  { %4548 = vrot.lane.b32.xlu2 %v11339_v29, %s8335_s0  ;;  %4155 = vrot.lane.b32.xlu1 %v11339_v29, %s8333_s28 }
 0x7bc   :  { %4524 = vrot.lane.b32.xlu0 %v11337_v52, %s8335_s0 }
 0x7c0   :  { %v11403_v62 = vpop.permute.xlu2 %4213 }
 0x7c3   :  { %4209 = vrot.lane.b32.xlu2 %v11363_v10, %s8334_s29  ;;  %4149 = vrot.lane.b32.xlu1 %v11365_v25, %s8333_s28 }
 0x7c4   :  { %4217 = vrot.lane.b32.xlu0 %v11365_v25, %s8334_s29 }
 0x7c8   :  { %v11419_v50 = vpop.permute.xlu2 %4221 }
 0x7cb   :  { %4225 = vrot.lane.b32.xlu2 %v11379_v55, %s8334_s29  ;;  %4133 = vrot.lane.b32.xlu1 %v11377_v53, %s8333_s28 }
 0x7cc   :  { %4201 = vrot.lane.b32.xlu0 %v11377_v53, %s8334_s29 }
 0x7d0   :  { %v11435_v16 = vpop.permute.xlu2 %4137 }
 0x7d3   :  { %4542 = vrot.lane.b32.xlu2 %v11365_v25, %s8335_s0  ;;  %4534 = vrot.lane.b32.xlu1 %v11363_v10, %s8335_s0 }
 0x7d4   :  { %4141 = vrot.lane.b32.xlu0 %v11363_v10, %s8333_s28 }
 0x7d7   :  { %v11427_v59 = vpop.permute.xlu0 %4197  ;;  %v11437_v49 = vpop.permute.xlu1 %4205 }
 0x7db   :  { %4526 = vrot.lane.b32.xlu2 %v11377_v53, %s8335_s0  ;;  %4550 = vrot.lane.b32.xlu1 %v11379_v55, %s8335_s0 }
 0x7dc   :  { %4157 = vrot.lane.b32.xlu0 %v11379_v55, %s8333_s28 }
 0x7df   :  { %v11439_v13 = vpop.permute.xlu0 %4145  ;;  %v11449_v7 = vpop.permute.xlu1 %4129 }
 0x7e3   :  { %4522 = vrot.lane.b32.xlu2 %v11294_v38, %s8335_s0  ;;  %4219 = vrot.lane.b32.xlu1 %v11401_v30, %s8334_s29 }
 0x7e4   :  { %4211 = vrot.lane.b32.xlu0 %v11405_v9, %s8334_s29 }
 0x7e7   :  { %v11455_v34 = vpop.permute.xlu0 %4153  ;;  %v11467_v33 = vpop.permute.xlu1 %4538 }
 0x7eb   :  { %4203 = vrot.lane.b32.xlu2 %v11415_v36, %s8334_s29  ;;  %4227 = vrot.lane.b32.xlu1 %v11417_v58, %s8334_s29 }
 0x7ec   :  { %4755 = vrot.lane.b32.xlu0 %v11365_v25, %s8336_s30 }
 0x7ef   :  { %v11471_v43 = vpop.permute.xlu0 %4530 }
 0x7f3   :  { %4747 = vrot.lane.b32.xlu2 %v11363_v10, %s8336_s30  ;;  %4546 = vrot.lane.b32.xlu1 %v11307_v41, %s8335_s0 }
 0x7f4   :  { %4745 = vrot.lane.b32.xlu0 %v11325_v1, %s8336_s30 }
 0x7fb   :  { %4763 = vrot.lane.b32.xlu2 %v11379_v55, %s8336_s30  ;;  %4753 = vrot.lane.b32.xlu1 %v11327_v56, %s8336_s30 }
 0x7fc   :  { %4739 = vrot.lane.b32.xlu0 %v11377_v53, %s8336_s30 }
 0x7fd   :  { %v11447_v23 = vpop.permute.xlu2 %4147 }
 0x803   :  { %4151 = vrot.lane.b32.xlu2 %v11401_v30, %s8333_s28  ;;  %4743 = vrot.lane.b32.xlu1 %v11296_v32, %s8336_s30 }
 0x804   :  { %4761 = vrot.lane.b32.xlu0 %v11339_v29, %s8336_s30 }
 0x805   :  { %v11459_v19 = vpop.permute.xlu2 %4131 }
 0x80b   :  { %4159 = vrot.lane.b32.xlu2 %v11417_v58, %s8333_s28  ;;  %4143 = vrot.lane.b32.xlu1 %v11405_v9, %s8333_s28 }
 0x80c   :  { %4135 = vrot.lane.b32.xlu0 %v11415_v36, %s8333_s28 }
 0x80d   :  { %v11469_v3 = vpop.permute.xlu2 %4532 }
 0x813   :  { %4751 = vrot.lane.b32.xlu2 %v11298_v5, %s8336_s30  ;;  %4737 = vrot.lane.b32.xlu1 %v11337_v52, %s8336_s30 }
 0x814   :  { %4735 = vrot.lane.b32.xlu0 %v11294_v38, %s8336_s30 }
 0x815   :  { %v11479_v17 = vpop.permute.xlu2 %4548  ;;  %v11481_v15 = vpop.permute.xlu1 %4215 }
 0x816   :  { %14827 = vst [vmem:[#allocation42_spill] sm:$0xff] %v11479_v17  ;;  %v4208_v45 = vpop.permute.xlu0 %4207 }
 0x81b   :  { %4759 = vrot.lane.b32.xlu2 %v11307_v41, %s8336_s30  ;;  %5117 = vrot.lane.b32.xlu1 %v11365_v25, %s8337_s8 }
 0x81c   :  { %4544 = vrot.lane.b32.xlu0 %v11401_v30, %s8335_s0 }
 0x81d   :  { %v4210_v37 = vpop.permute.xlu2 %4209  ;;  %v11489_v26 = vpop.permute.xlu1 %4199 }
 0x81e   :  { %v11491_v57 = vpop.permute.xlu0 %4223 }
 0x823   :  { %4536 = vrot.lane.b32.xlu2 %v11405_v9, %s8335_s0  ;;  %5099 = vrot.lane.b32.xlu1 %v11337_v52, %s8337_s8 }
 0x824   :  { %4552 = vrot.lane.b32.xlu0 %v11417_v58, %s8335_s0 }
 0x825   :  { %v11499_v6 = vpop.permute.xlu2 %4225  ;;  %v11501_v60 = vpop.permute.xlu1 %4139 }
 0x826   :  { %v11503_v51 = vpop.permute.xlu0 %4540 }
 0x82b   :  { %5125 = vrot.lane.b32.xlu2 %v11379_v55, %s8337_s8  ;;  %5121 = vrot.lane.b32.xlu1 %v11307_v41, %s8337_s8 }
 0x82c   :  { %5101 = vrot.lane.b32.xlu0 %v11377_v53, %s8337_s8 }
 0x82d   :  { %v11511_v12 = vpop.permute.xlu2 %4542  ;;  %v11513_v24 = vpop.permute.xlu1 %4155 }
 0x82e   :  { %v11515_v21 = vpop.permute.xlu0 %4524 }
 0x82f   :  { %14828 = vst [vmem:[#allocation39_spill] sm:$0xff] %v11515_v21 }
 0x833   :  { %5115 = vrot.lane.b32.xlu2 %v11327_v56, %s8337_s8  ;;  %4528 = vrot.lane.b32.xlu1 %v11415_v36, %s8335_s0 }
 0x834   :  { %5123 = vrot.lane.b32.xlu0 %v11339_v29, %s8337_s8 }
 0x835   :  { %v11523_v11 = vpop.permute.xlu2 %4526  ;;  %v11525_v18 = vpop.permute.xlu1 %4149 }
 0x836   :  { %14829 = vst [vmem:[#allocation38_spill] sm:$0xff] %v11523_v11  ;;  %v4218_v61 = vpop.permute.xlu0 %4217 }
 0x837   :  { %v4235_v20 = vsel %vm111_vm0, %v4210_v37, %v4218_v61 }
 0x83b   :  { %5109 = vrot.lane.b32.xlu2 %v11363_v10, %s8337_s8  ;;  %5105 = vrot.lane.b32.xlu1 %v11296_v32, %s8337_s8 }
 0x83c   :  { %5113 = vrot.lane.b32.xlu0 %v11298_v5, %s8337_s8 }
 0x83d   :  { %v11533_v8 = vpop.permute.xlu2 %4522  ;;  %v11535_v63 = vpop.permute.xlu1 %4133 }
 0x83e   :  { %14830 = vst [vmem:[#allocation37_spill] sm:$0xff] %v11533_v8  ;;  %v4202_v40 = vpop.permute.xlu0 %4201  ;;  %v4234_v8 = vsel %vm111_vm0, %v4208_v45, %v11481_v15 }
 0x83f   :  { %v4239_v28 = vsel %vm111_vm0, %v4202_v40, %v4210_v37  ;;  %v4237_v37 = vsel %vm111_vm0, %v11427_v59, %v11437_v49 }
 0x840   :  { %v4254_v21 = vmul.f32 %v4239_v28, %v14834_v46  ;;  %v4246_v11 = vmul.f32 %v4237_v37, %v14834_v46  ;;  %v4230_v37 = vsel %vm111_vm0, %v11481_v15, %v11491_v57 }
 0x843   :  { %5097 = vrot.lane.b32.xlu2 %v11294_v38, %s8337_s8  ;;  %4757 = vrot.lane.b32.xlu1 %v11401_v30, %s8336_s30 }
 0x844   :  { %4749 = vrot.lane.b32.xlu0 %v11405_v9, %s8336_s30 }
 0x845   :  { %v4204_v27 = vpop.permute.xlu2 %4203  ;;  %v11543_v44 = vpop.permute.xlu1 %4534 }
 0x846   :  { %v11545_v42 = vpop.permute.xlu0 %4141 }
 0x84b   :  { %4741 = vrot.lane.b32.xlu2 %v11415_v36, %s8336_s30  ;;  %4765 = vrot.lane.b32.xlu1 %v11417_v58, %s8336_s30 }
 0x84c   :  { %5107 = vrot.lane.b32.xlu0 %v11325_v1, %s8337_s8 }
 0x84d   :  { %v11553_v4 = vpop.permute.xlu2 %4747  ;;  %v11555_v35 = vpop.permute.xlu1 %4550 }
 0x84e   :  { %14831 = vst [vmem:[#allocation40_spill] sm:$0xff] %v11553_v4  ;;  %v11557_v31 = vpop.permute.xlu0 %4157 }
 0x853   :  { %5330 = vrot.lane.b32.xlu2 %v11365_v25, %s8338_s23  ;;  %5314 = vrot.lane.b32.xlu1 %v11377_v53, %s8338_s23 }
 0x854   :  { %5338 = vrot.lane.b32.xlu0 %v11379_v55, %s8338_s23 }
 0x855   :  { %v11565_v14 = vpop.permute.xlu2 %4763  ;;  %v4220_v0 = vpop.permute.xlu1 %4219 }
 0x856   :  { %14832 = vst [vmem:[#allocation41_spill] sm:$0xff] %v11565_v14  ;;  %v4212_v54 = vpop.permute.xlu0 %4211  ;;  %v4238_v14 = vsel %vm111_vm0, %v11489_v26, %v4208_v45  ;;  %v4233_v45 = vsel %vm111_vm0, %v11437_v49, %v11403_v62 }
 0x857   :  { %v4240_v47 = vsel %vm111_vm0, %v4204_v27, %v4212_v54  ;;  %v4236_v48 = vsel %vm111_vm0, %v4212_v54, %v4220_v0  ;;  %v4255_v54 = vmul.f32 %v4235_v20, %v14835_v22 }
 0x858   :  { %v4258_v39 = vmul.f32 %v4240_v47, %v14834_v46  ;;  %v4259_v4 = vmul.f32 %v4236_v48, %v14835_v22  ;;  %v4251_v47 = vmul.f32 %v4234_v8, %v14835_v22  ;;  %v14838_v8 = vld [vmem:[#allocation6_spill] sm:$0xff] }
 0x85a   :  { %4319 = vmatpush.msra.mxu1 %v4258_v39  ;;  %4348 = vmatpush.msra.mxu2 %v4259_v4  ;;  %v4250_v4 = vmul.f32 %v4238_v14, %v14834_v46  ;;  %v14837_v14 = vld [vmem:[#allocation3_spill] sm:$0xff] }
 0x85b   :  { %5312 = vrot.lane.b32.xlu2 %v11337_v52, %s8338_s23  ;;  %5336 = vrot.lane.b32.xlu1 %v11339_v29, %s8338_s23 }
 0x85c   :  { %5328 = vrot.lane.b32.xlu0 %v11327_v56, %s8338_s23  ;;  %4320 = vmatpush.msra.mxu1 %v4254_v21  ;;  %v4243_v21 = vsel %vm111_vm0, %v11499_v6, %v4202_v40  ;;  %v4242_v40 = vsel %vm111_vm0, %v11491_v57, %v11489_v26  ;;  %v4252_v57 = vmul.f32 %v4230_v37, %v14838_v8 }
 0x85d   :  { %4349 = vmatpush.msra.mxu2 %v4255_v54  ;;  %v11600_v28 = vpop.permute.xlu2 %4151  ;;  %v4228_v48 = vpop.permute.xlu1 %4227  ;;  %v4249_v15 = vmul.f32 %v4242_v40, %v14837_v14 }
 0x85e   :  { %v11603_v39 = vpop.permute.xlu0 %4755  ;;  %4321 = vmatpush.msra.mxu1 %v4250_v4  ;;  %v4232_v20 = vsel %vm111_vm0, %v4220_v0, %v4228_v48  ;;  %v4244_v49 = vsel %vm111_vm0, %v4228_v48, %v4204_v27  ;;  %v8014_v0 = vld [vmem:[%s14288_s4 + $0x20] sm:$0xff]  ;;  %v4231_v27 = vsel %vm111_vm0, %v4218_v61, %v11499_v6  ;;  %v4241_v6 = vsel %vm111_vm0, %v11419_v50, %v11427_v59 }
 0x85f   :  { %14836 = vst [vmem:[#allocation71_spill] sm:$0xff] %v11603_v39  ;;  %4350 = vmatpush.msra.mxu2 %v4251_v47  ;;  %v4257_v54 = vmul.f32 %v4244_v49, %v14837_v14  ;;  %v4260_v17 = vmul.f32 %v4232_v20, %v14838_v8  ;;  %v4247_v39 = vmul.f32 %v4233_v45, %v14835_v22  ;;  %v14839_v4 = vld [vmem:[#allocation9_spill] sm:$0xff] }
 0x860   :  { %4322 = vmatpush.msra.mxu1 %v4246_v11  ;;  %v4253_v45 = vmul.f32 %v4243_v21, %v14837_v14  ;;  %v4256_v26 = vmul.f32 %v4231_v27, %v14838_v8  ;;  %v4163_v20 = vsel %vm70_vm1, %v11525_v18, %v11557_v31  ;;  %v4162_v49 = vsel %vm70_vm1, %v11447_v23, %v11513_v24 }
 0x861   :  { %4351 = vmatpush.msra.mxu2 %v4247_v39  ;;  %4290 = vmatpush.msra.mxu0 %v4257_v54  ;;  %v8015_v39 = vld [vmem:[%s14288_s4 + $0x28] sm:$0xff]  ;;  %v4188_v21 = vmul.f32 %v4163_v20, %v14839_v4  ;;  %v4161_v54 = vsel %vm70_vm1, %v11439_v13, %v11455_v34  ;;  %v4184_v27 = vmul.f32 %v4162_v49, %v14839_v4  ;;  %v14840_v49 = vld [vmem:[#allocation7_spill] sm:$0xff] }
 0x862   :  { %4377 = vmatpush.msra.mxu3 %v4260_v17  ;;  %8022 = vmatmul.msk.f32.vlgmr.msra.gmra.mxu1 %vm2177_vm2, %v8014_v0  ;;  %v4229_v17 = vsel %vm111_vm0, %v11403_v62, %v11419_v50  ;;  %v4245_v50 = vmul.f32 %v4241_v6, %v14837_v14  ;;  %v8016_v6 = vld [vmem:[%s14288_s4 + $0x30] sm:$0xff] }
 0x863   :  { %5334 = vrot.lane.b32.xlu2 %v11307_v41, %s8338_s23  ;;  %5326 = vrot.lane.b32.xlu1 %v11298_v5, %s8338_s23  ;;  %v4248_v48 = vmul.f32 %v4229_v17, %v14838_v8 }
 0x864   :  { %5322 = vrot.lane.b32.xlu0 %v11363_v10, %s8338_s23  ;;  %4291 = vmatpush.msra.mxu0 %v4253_v45  ;;  %v4180_v45 = vmul.f32 %v4161_v54, %v14839_v4  ;;  %v4171_v54 = vsel %vm70_vm1, %v11535_v63, %v11545_v42 }
 0x865   :  { %4378 = vmatpush.msra.mxu3 %v4256_v26  ;;  %v4160_v59 = vpop.permute.xlu2 %4159  ;;  %v11649_v11 = vpop.permute.xlu1 %4546  ;;  %8026 = vmatmul.msk.f32.vlgmr.msra.gmra.mxu2 %vm2177_vm2, %v8014_v0 }
 0x866   :  { %v11652_v61 = vpop.permute.xlu0 %4745  ;;  %v4164_v62 = vsel %vm70_vm1, %v11600_v28, %v4160_v59  ;;  %4292 = vmatpush.msra.mxu0 %v4249_v15 }
 0x867   :  { %v4192_v47 = vmul.f32 %v4164_v62, %v14839_v4  ;;  %4379 = vmatpush.msra.mxu3 %v4252_v57  ;;  %v8017_v57 = vld [vmem:[%s14288_s4 + $0x38] sm:$0xff]  ;;  %v14872_v4 = vld [vmem:[#allocation19_spill] sm:$0xff] }
 0x868   :  { %4293 = vmatpush.msra.mxu0 %v4245_v50 }
 0x869   :  { %4380 = vmatpush.msra.mxu3 %v4248_v48  ;;  %8018 = vmatmul.msk.f32.vlgmr.msra.gmra.mxu0 %vm2177_vm2, %v8014_v0 }
 0x86a   :  { %8030 = vmatmul.msk.f32.vlgmr.msra.gmra.mxu3 %vm2177_vm2, %v8014_v0  ;;  %8023 = vmatmul.msk.f32.gmra.mxu1 %vm2177_vm2, %v8015_v39 }
 0x86b   :  { %4505 = vmatpush.msrb.mxu3 %v4192_v47  ;;  %5318 = vrot.lane.b32.xlu2 %v11296_v32, %s8338_s23 }
 0x86c   :  { %5310 = vrot.lane.b32.xlu0 %v11294_v38, %s8338_s23  ;;  %5320 = vrot.lane.b32.xlu1 %v11325_v1, %s8338_s23 }
 0x86d   :  { %4506 = vmatpush.msrb.mxu3 %v4188_v21  ;;  %v11685_v0 = vpop.permute.xlu2 %4751  ;;  %v11688_v40 = vpop.permute.xlu1 %4753  ;;  %8027 = vmatmul.msk.f32.gmra.mxu2 %vm2177_vm2, %v8015_v39 }
 0x86e   :  { %v11691_v37 = vpop.permute.xlu0 %4739 }
 0x86f   :  { %4507 = vmatpush.msrb.mxu3 %v4184_v27  ;;  %v4175_v27 = vsel %vm70_vm1, %v11557_v31, %v11535_v63  ;;  %v4174_v63 = vsel %vm70_vm1, %v11513_v24, %v11459_v19  ;;  %v4173_v24 = vsel %vm70_vm1, %v11455_v34, %v11449_v7 }
 0x871   :  { %4508 = vmatpush.msrb.mxu3 %v4180_v45  ;;  %8019 = vmatmul.msk.f32.gmra.mxu0 %vm2177_vm2, %v8015_v39  ;;  %v14841_v45 = vld [vmem:[#allocation10_spill] sm:$0xff] }
 0x872   :  { %8031 = vmatmul.msk.f32.gmra.mxu3 %vm2177_vm2, %v8015_v39  ;;  %8024 = vmatmul.msk.f32.gmra.mxu1 %vm2177_vm2, %v8016_v6 }
 0x873   :  { %5527 = vrot.lane.b32.xlu2 %v11377_v53, %s8339_s13 }
 0x874   :  { %5543 = vrot.lane.b32.xlu0 %v11365_v25, %s8339_s13  ;;  %5551 = vrot.lane.b32.xlu1 %v11379_v55, %s8339_s13 }
 0x875   :  { %v11706_v26 = vpop.permute.xlu2 %4759  ;;  %v11708_v17 = vpop.permute.xlu1 %4743  ;;  %8028 = vmatmul.msk.f32.gmra.mxu2 %vm2177_vm2, %v8016_v6 }
 0x876   :  { %v11711_v15 = vpop.permute.xlu0 %4761 }
 0x879   :  { %8020 = vmatmul.msk.f32.gmra.mxu0 %vm2177_vm2, %v8016_v6 }
 0x87a   :  { %8032 = vmatmul.msk.f32.gmra.mxu3 %vm2177_vm2, %v8016_v6  ;;  %8025 = vmatmul.msk.f32.gmra.mxu1 %vm2177_vm2, %v8017_v57  ;;  %v14842_v6 = vld [vmem:[#allocation8_spill] sm:$0xff] }
 0x87b   :  { %5549 = vrot.lane.b32.xlu2 %v11339_v29, %s8339_s13  ;;  %v4186_v31 = vmul.f32 %v4171_v54, %v14842_v6 }
 0x87c   :  { %5525 = vrot.lane.b32.xlu0 %v11337_v52, %s8339_s13  ;;  %5541 = vrot.lane.b32.xlu1 %v11327_v56, %s8339_s13 }
 0x87d   :  { %v11725_v62 = vpop.permute.xlu2 %4536  ;;  %v4144_v50 = vpop.permute.xlu1 %4143  ;;  %8029 = vmatmul.msk.f32.gmra.mxu2 %vm2177_vm2, %v8017_v57 }
 0x87e   :  { %v4136_v47 = vpop.permute.xlu0 %4135  ;;  %v4168_v48 = vsel %vm70_vm1, %v4144_v50, %v11600_v28 }
 0x87f   :  { %v4176_v39 = vsel %vm70_vm1, %v4160_v59, %v4136_v47  ;;  %v4172_v20 = vsel %vm70_vm1, %v4136_v47, %v4144_v50  ;;  %v4191_v21 = vmul.f32 %v4168_v48, %v14840_v49  ;;  %v4167_v59 = vsel %vm70_vm1, %v11545_v42, %v11525_v18 }
 0x880   :  { %v4189_v28 = vmul.f32 %v4176_v39, %v14841_v45  ;;  %v4190_v22 = vmul.f32 %v4172_v20, %v14842_v6  ;;  %v4170_v50 = vsel %vm70_vm1, %v11459_v19, %v11501_v60  ;;  %v4166_v18 = vsel %vm70_vm1, %v11501_v60, %v11447_v23 }
 0x881   :  { %8021 = vmatmul.msk.f32.gmra.mxu0 %vm2177_vm2, %v8017_v57  ;;  %4476 = vmatpush.msrb.mxu2 %v4191_v21  ;;  %v4185_v42 = vmul.f32 %v4175_v27, %v14841_v45  ;;  %v4169_v19 = vsel %vm70_vm1, %v11449_v7, %v11435_v16  ;;  %v4187_v23 = vmul.f32 %v4167_v59, %v14840_v49  ;;  %v4194_v59 = vld [vmem:[%s14288_s4 + $0x8] sm:$0xff] }
 0x882   :  { %8033 = vmatmul.msk.f32.gmra.mxu3 %vm2177_vm2, %v8017_v57  ;;  %4418 = vmatpush.msrb.mxu0 %v4189_v28  ;;  %v4165_v60 = vsel %vm70_vm1, %v11435_v16, %v11439_v13  ;;  %v4181_v57 = vmul.f32 %v4174_v63, %v14841_v45  ;;  %v4182_v7 = vmul.f32 %v4170_v50, %v14842_v6  ;;  %v4193_v13 = vld [vmem:[%s14288_s4] sm:$0xff]  ;;  %v14843_v50 = vld [vmem:[#allocation11_spill] sm:$0xff] }
 0x883   :  { %4447 = vmatpush.msrb.mxu1 %v4190_v22  ;;  %5127 = vrot.lane.b32.xlu2 %v11417_v58, %s8337_s8  ;;  %v4183_v48 = vmul.f32 %v4166_v18, %v14840_v49  ;;  %v4177_v39 = vmul.f32 %v4173_v24, %v14841_v45  ;;  %v4178_v16 = vmul.f32 %v4169_v19, %v14842_v6  ;;  %v14855_v6 = vld [vmem:[#allocation17_spill] sm:$0xff]  ;;  %v8093_v45 = vld [vmem:[%s14288_s4 + $0x98] sm:$0xff] }
 0x884   :  { %5103 = vrot.lane.b32.xlu0 %v11415_v36, %s8337_s8  ;;  %5535 = vrot.lane.b32.xlu1 %v11363_v10, %s8339_s13  ;;  %v4179_v20 = vmul.f32 %v4165_v60, %v14840_v49  ;;  %v4560_v18 = vsel %vm435_vm4, %v11543_v44, %v11511_v12  ;;  %v4558_v19 = vsel %vm435_vm4, %v11471_v43, %v11467_v33 }
 0x885   :  { %4419 = vmatpush.msrb.mxu0 %v4185_v42  ;;  %4448 = vmatpush.msrb.mxu1 %v4186_v31  ;;  %v11785_v22 = vpop.permute.xlu2 %5125  ;;  %v11789_v34 = vpop.permute.xlu1 %4737  ;;  %v4559_v42 = vsel %vm435_vm4, %v11469_v3, %v11503_v51  ;;  %v4580_v31 = vmul.f32 %v4560_v18, %v14843_v50 }
 0x886   :  { %4477 = vmatpush.msrb.mxu2 %v4187_v23  ;;  %v11791_v47 = vpop.permute.xlu0 %4735 }
 0x887   :  { %4420 = vmatpush.msrb.mxu0 %v4181_v57  ;;  %4449 = vmatpush.msrb.mxu1 %v4182_v7  ;;  %v4576_v57 = vmul.f32 %v4559_v42, %v14843_v50 }
 0x888   :  { %4478 = vmatpush.msrb.mxu2 %v4183_v48  ;;  %v4195_v48 = vld [vmem:[%s14288_s4 + $0x10] sm:$0xff] }
 0x889   :  { %4421 = vmatpush.msrb.mxu0 %v4177_v39  ;;  %4450 = vmatpush.msrb.mxu1 %v4178_v16  ;;  %v4572_v39 = vmul.f32 %v4558_v19, %v14843_v50  ;;  %v14844_v16 = vld [vmem:[#allocation14_spill] sm:$0xff] }
 0x88a   :  { %4479 = vmatpush.msrb.mxu2 %v4179_v20  ;;  %8034 = vmatmul.msk.f32.vlgmr.msrb.gmra.mxu0 %vm2177_vm2, %v4193_v13  ;;  %v4556_v20 = vsel %vm435_vm4, %v11511_v12, %v11555_v35 }
 0x88b   :  { %8038 = vmatmul.msk.f32.vlgmr.msrb.gmra.mxu1 %vm2177_vm2, %v4193_v13  ;;  %8042 = vmatmul.msk.f32.vlgmr.msrb.gmra.mxu2 %vm2177_vm2, %v4193_v13  ;;  %v4581_v12 = vmul.f32 %v4556_v20, %v14844_v16 }
 0x88c   :  { %8046 = vmatmul.msk.f32.vlgmr.msrb.gmra.mxu3 %vm2177_vm2, %v4193_v13  ;;  %5547 = vrot.lane.b32.xlu0 %v11307_v41, %s8339_s13 }
 0x88d   :  { %5539 = vrot.lane.b32.xlu2 %v11298_v5, %s8339_s13  ;;  %5119 = vrot.lane.b32.xlu1 %v11401_v30, %s8337_s8  ;;  %v11810_v21 = vpop.permute.xlu2 %5115  ;;  %v11812_v54 = vpop.permute.xlu1 %5117 }
 0x88e   :  { %v4545_v27 = vpop.permute.xlu0 %4544 }
 0x88f   :  { %v4561_v28 = vsel %vm435_vm4, %v11725_v62, %v4545_v27 }
 0x890   :  { %v4584_v63 = vmul.f32 %v4561_v28, %v14843_v50  ;;  %v14854_v50 = vld [vmem:[#allocation71_spill] sm:$0xff] }
 0x892   :  { %8035 = vmatmul.msk.f32.gmra.mxu0 %vm2177_vm2, %v4194_v59  ;;  %4673 = vmatpush.msra.mxu2 %v4584_v63 }
 0x893   :  { %8039 = vmatmul.msk.f32.gmra.mxu1 %vm2177_vm2, %v4194_v59  ;;  %8043 = vmatmul.msk.f32.gmra.mxu2 %vm2177_vm2, %v4194_v59 }
 0x894   :  { %8047 = vmatmul.msk.f32.gmra.mxu3 %vm2177_vm2, %v4194_v59  ;;  %5531 = vrot.lane.b32.xlu0 %v11296_v32, %s8339_s13 }
 0x895   :  { %5533 = vrot.lane.b32.xlu2 %v11325_v1, %s8339_s13  ;;  %5111 = vrot.lane.b32.xlu1 %v11405_v9, %s8337_s8  ;;  %v11844_v24 = vpop.permute.xlu2 %5109  ;;  %v11846_v23 = vpop.permute.xlu1 %5099 }
 0x896   :  { %4674 = vmatpush.msra.mxu2 %v4580_v31  ;;  %v4553_v60 = vpop.permute.xlu0 %4552  ;;  %v4196_v31 = vld [vmem:[%s14288_s4 + $0x18] sm:$0xff] }
 0x897   :  { %v4557_v7 = vsel %vm435_vm4, %v4545_v27, %v4553_v60  ;;  %v14845_v27 = vld [vmem:[#allocation42_spill] sm:$0xff] }
 0x898   :  { %4675 = vmatpush.msra.mxu2 %v4576_v57  ;;  %v4585_v13 = vmul.f32 %v4557_v7, %v14844_v16  ;;  %v4555_v28 = vsel %vm435_vm4, %v11503_v51, %v14845_v27  ;;  %v4554_v51 = vsel %vm435_vm4, %v11467_v33, %v11649_v11  ;;  %v14846_v7 = vld [vmem:[#allocation38_spill] sm:$0xff] }
 0x899   :  { %v4577_v42 = vmul.f32 %v4555_v28, %v14844_v16  ;;  %v4573_v19 = vmul.f32 %v4554_v51, %v14844_v16 }
 0x89a   :  { %4676 = vmatpush.msra.mxu2 %v4572_v39  ;;  %8036 = vmatmul.msk.f32.gmra.mxu0 %vm2177_vm2, %v4195_v48  ;;  %v4568_v39 = vsel %vm435_vm4, %v11555_v35, %v14846_v7 }
 0x89b   :  { %8040 = vmatmul.msk.f32.gmra.mxu1 %vm2177_vm2, %v4195_v48  ;;  %8044 = vmatmul.msk.f32.gmra.mxu2 %vm2177_vm2, %v4195_v48 }
 0x89c   :  { %8048 = vmatmul.msk.f32.gmra.mxu3 %vm2177_vm2, %v4195_v48  ;;  %5740 = vrot.lane.b32.xlu0 %v11377_v53, %s8340_s22  ;;  %v4564_v48 = vsel %vm435_vm4, %v14846_v7, %v11543_v44  ;;  %v14848_v44 = vld [vmem:[#allocation12_spill] sm:$0xff] }
 0x89d   :  { %4702 = vmatpush.msra.mxu3 %v4585_v13  ;;  %5764 = vrot.lane.b32.xlu2 %v11379_v55, %s8340_s22  ;;  %v11873_v59 = vpop.permute.xlu2 %5097  ;;  %v11875_v63 = vpop.permute.xlu1 %5121  ;;  %v4579_v7 = vmul.f32 %v4564_v48, %v14848_v44 }
 0x89e   :  { %5523 = vrot.lane.b32.xlu1 %v11294_v38, %s8339_s13  ;;  %v11883_v18 = vpop.permute.xlu0 %5101 }
 0x89f   :  { %4703 = vmatpush.msra.mxu3 %v4581_v12  ;;  %v14847_v12 = vld [vmem:[#allocation13_spill] sm:$0xff] }
 0x8a1   :  { %4704 = vmatpush.msra.mxu3 %v4577_v42 }
 0x8a2   :  { %8037 = vmatmul.msk.f32.gmra.mxu0 %vm2177_vm2, %v4196_v31 }
 0x8a3   :  { %4705 = vmatpush.msra.mxu3 %v4573_v19  ;;  %8041 = vmatmul.msk.f32.gmra.mxu1 %vm2177_vm2, %v4196_v31  ;;  %v8050_v19 = vld [vmem:[%s14288_s4 + $0x40] sm:$0xff] }
 0x8a4   :  { %8045 = vmatmul.msk.f32.gmra.mxu2 %vm2177_vm2, %v4196_v31  ;;  %8049 = vmatmul.msk.f32.gmra.mxu3 %vm2177_vm2, %v4196_v31  ;;  %v14849_v31 = vld [vmem:[#allocation39_spill] sm:$0xff] }
 0x8a5   :  { %5340 = vrot.lane.b32.xlu0 %v11417_v58, %s8338_s23  ;;  %5332 = vrot.lane.b32.xlu2 %v11401_v30, %s8338_s23  ;;  %v11898_v33 = vpop.permute.xlu2 %4741  ;;  %v4529_v57 = vpop.permute.xlu1 %4528  ;;  %v4567_v35 = vsel %vm435_vm4, %v14845_v27, %v14849_v31 }
 0x8a6   :  { %5756 = vrot.lane.b32.xlu1 %v11365_v25, %s8340_s22  ;;  %v11910_v13 = vpop.permute.xlu0 %5123  ;;  %v4565_v20 = vsel %vm435_vm4, %v4529_v57, %v11725_v62  ;;  %v4569_v28 = vsel %vm435_vm4, %v4553_v60, %v4529_v57  ;;  %v4578_v62 = vmul.f32 %v4568_v39, %v14847_v12  ;;  %v4563_v60 = vsel %vm435_vm4, %v14849_v31, %v11469_v3  ;;  %v14850_v57 = vld [vmem:[#allocation37_spill] sm:$0xff] }
 0x8a7   :  { %v4582_v51 = vmul.f32 %v4569_v28, %v14847_v12  ;;  %v4583_v42 = vmul.f32 %v4565_v20, %v14848_v44  ;;  %v4566_v27 = vsel %vm435_vm4, %v11649_v11, %v14850_v57  ;;  %v4562_v20 = vsel %vm435_vm4, %v14850_v57, %v11471_v43 }
 0x8a8   :  { %v4574_v48 = vmul.f32 %v4567_v35, %v14847_v12  ;;  %v4575_v11 = vmul.f32 %v4563_v60, %v14848_v44  ;;  %v4570_v28 = vmul.f32 %v4566_v27, %v14847_v12  ;;  %v14851_v60 = vld [vmem:[#allocation16_spill] sm:$0xff]  ;;  %v14852_v27 = vld [vmem:[#allocation15_spill] sm:$0xff] }
 0x8a9   :  { %4615 = vmatpush.msra.mxu0 %v4582_v51  ;;  %4644 = vmatpush.msra.mxu1 %v4583_v42  ;;  %v4571_v51 = vmul.f32 %v4562_v20, %v14848_v44  ;;  %v8051_v42 = vld [vmem:[%s14288_s4 + $0x48] sm:$0xff] }
 0x8ab   :  { %4616 = vmatpush.msra.mxu0 %v4578_v62  ;;  %4645 = vmatpush.msra.mxu1 %v4579_v7 }
 0x8ac   :  { %8062 = vmatmul.msk.f32.vlgmr.msra.gmra.mxu2 %vm2177_vm2, %v8050_v19  ;;  %8066 = vmatmul.msk.f32.vlgmr.msra.gmra.mxu3 %vm2177_vm2, %v8050_v19 }
 0x8ad   :  { %5762 = vrot.lane.b32.xlu0 %v11339_v29, %s8340_s22  ;;  %5324 = vrot.lane.b32.xlu2 %v11405_v9, %s8338_s23  ;;  %v11947_v3 = vpop.permute.xlu2 %5330  ;;  %v11950_v39 = vpop.permute.xlu1 %5105 }
 0x8ae   :  { %5316 = vrot.lane.b32.xlu1 %v11415_v36, %s8338_s23  ;;  %v11954_v43 = vpop.permute.xlu0 %5113  ;;  %4617 = vmatpush.msra.mxu0 %v4574_v48  ;;  %v14853_v48 = vld [vmem:[#allocation40_spill] sm:$0xff] }
 0x8af   :  { %4646 = vmatpush.msra.mxu1 %v4575_v11  ;;  %v4777_v11 = vsel %vm633_vm5, %v11691_v37, %v14853_v48 }
 0x8b0   :  { %4618 = vmatpush.msra.mxu0 %v4570_v28  ;;  %v8052_v28 = vld [vmem:[%s14288_s4 + $0x50] sm:$0xff] }
 0x8b1   :  { %4647 = vmatpush.msra.mxu1 %v4571_v51  ;;  %8054 = vmatmul.msk.f32.vlgmr.msra.gmra.mxu0 %vm2177_vm2, %v8050_v19  ;;  %v8347_v51 = vmov 6  }
 0x8b2   :  { %8058 = vmatmul.msk.f32.vlgmr.msra.gmra.mxu1 %vm2177_vm2, %v8050_v19  ;;  %8272 = vset.pattern.permute.xlu1 %v8347_v51 }
 0x8b3   :  { %8271 = vset.pattern.permute.xlu0 %v8347_v51  ;;  %8270 = vset.pattern.permute.xlu2 %v8347_v51 }
 0x8b4   :  { %8063 = vmatmul.msk.f32.gmra.mxu2 %vm2177_vm2, %v8051_v42  ;;  %8067 = vmatmul.msk.f32.gmra.mxu3 %vm2177_vm2, %v8051_v42 }
 0x8b5   :  { %5752 = vrot.lane.b32.xlu0 %v11298_v5, %s8340_s22  ;;  %5754 = vrot.lane.b32.xlu2 %v11327_v56, %s8340_s22  ;;  %v11969_v31 = vpop.permute.xlu2 %5312  ;;  %v4758_v35 = vpop.permute.xlu1 %4757 }
 0x8b6   :  { %5738 = vrot.lane.b32.xlu1 %v11337_v52, %s8340_s22  ;;  %v4750_v62 = vpop.permute.xlu0 %4749 }
 0x8b7   :  { %v4778_v19 = vsel %vm633_vm5, %v11898_v33, %v4750_v62  ;;  %v4774_v7 = vsel %vm633_vm5, %v4750_v62, %v4758_v35  ;;  %v4773_v62 = vsel %vm633_vm5, %v14853_v48, %v14854_v50  ;;  %v4792_v48 = vmul.f32 %v4777_v11, %v14851_v60 }
 0x8b8   :  { %v4796_v57 = vmul.f32 %v4778_v19, %v14851_v60  ;;  %v4797_v20 = vmul.f32 %v4774_v7, %v14852_v27  ;;  %v4776_v19 = vsel %vm633_vm5, %v11789_v34, %v11652_v61  ;;  %v4772_v7 = vsel %vm633_vm5, %v11652_v61, %v11688_v40 }
 0x8b9   :  { %8055 = vmatmul.msk.f32.gmra.mxu0 %vm2177_vm2, %v8051_v42  ;;  %v4771_v11 = vsel %vm633_vm5, %v11708_v17, %v11685_v0  ;;  %v4788_v12 = vmul.f32 %v4776_v19, %v14851_v60  ;;  %v4789_v49 = vmul.f32 %v4772_v7, %v14852_v27  ;;  %v14856_v19 = vld [vmem:[#allocation18_spill] sm:$0xff] }
 0x8ba   :  { %8059 = vmatmul.msk.f32.gmra.mxu1 %vm2177_vm2, %v8051_v42  ;;  %4886 = vmatpush.msrb.mxu2 %v4797_v20  ;;  %v4775_v42 = vsel %vm633_vm5, %v11791_v47, %v11708_v17 }
 0x8bb   :  { %4857 = vmatpush.msrb.mxu1 %v4796_v57  ;;  %v4793_v57 = vmul.f32 %v4773_v62, %v14852_v27  ;;  %v4784_v46 = vmul.f32 %v4775_v42, %v14851_v60  ;;  %v8092_v60 = vld [vmem:[%s14288_s4 + $0x90] sm:$0xff] }
 0x8bc   :  { %8064 = vmatmul.msk.f32.gmra.mxu2 %vm2177_vm2, %v8052_v28  ;;  %8068 = vmatmul.msk.f32.gmra.mxu3 %vm2177_vm2, %v8052_v28 }
 0x8bd   :  { %5746 = vrot.lane.b32.xlu0 %v11325_v1, %s8340_s22  ;;  %5748 = vrot.lane.b32.xlu2 %v11363_v10, %s8340_s22  ;;  %v12013_v61 = vpop.permute.xlu2 %5334  ;;  %v4766_v20 = vpop.permute.xlu1 %4765 }
 0x8be   :  { %5760 = vrot.lane.b32.xlu1 %v11307_v41, %s8340_s22  ;;  %4858 = vmatpush.msrb.mxu1 %v4792_v48  ;;  %v12021_v44 = vpop.permute.xlu0 %5107  ;;  %v4782_v62 = vsel %vm633_vm5, %v4766_v20, %v11898_v33  ;;  %v4770_v16 = vsel %vm633_vm5, %v4758_v35, %v4766_v20  ;;  %v4785_v48 = vmul.f32 %v4771_v11, %v14852_v27  ;;  %v8053_v33 = vld [vmem:[%s14288_s4 + $0x58] sm:$0xff] }
 0x8bf   :  { %4887 = vmatpush.msrb.mxu2 %v4793_v57  ;;  %v4795_v17 = vmul.f32 %v4782_v62, %v14855_v6  ;;  %v4798_v7 = vmul.f32 %v4770_v16, %v14856_v19  ;;  %v8328_v62 = vld [vmem:[%s14286_s6 + $0x18] sm:$0xff] }
 0x8c0   :  { %4859 = vmatpush.msrb.mxu1 %v4788_v12  ;;  %v14857_v12 = vld [vmem:[#allocation41_spill] sm:$0xff] }
 0x8c1   :  { %4888 = vmatpush.msrb.mxu2 %v4789_v49  ;;  %8056 = vmatmul.msk.f32.gmra.mxu0 %vm2177_vm2, %v8052_v28  ;;  %v4769_v49 = vsel %vm633_vm5, %v14854_v50, %v14857_v12  ;;  %v4781_v35 = vsel %vm633_vm5, %v14857_v12, %v11691_v37  ;;  %v4768_v50 = vsel %vm633_vm5, %v11688_v40, %v11711_v15 }
 0x8c2   :  { %4860 = vmatpush.msrb.mxu1 %v4784_v46  ;;  %4828 = vmatpush.msrb.mxu0 %v4795_v17  ;;  %v4780_v37 = vsel %vm633_vm5, %v11711_v15, %v11789_v34  ;;  %v4791_v51 = vmul.f32 %v4781_v35, %v14855_v6  ;;  %v4794_v42 = vmul.f32 %v4769_v49, %v14856_v19  ;;  %v8070_v34 = vld [vmem:[%s14288_s4 + $0x60] sm:$0xff] }
 0x8c3   :  { %4889 = vmatpush.msrb.mxu2 %v4785_v48  ;;  %8060 = vmatmul.msk.f32.gmra.mxu1 %vm2177_vm2, %v8052_v28  ;;  %v4767_v40 = vsel %vm633_vm5, %v11685_v0, %v11706_v26  ;;  %v4779_v15 = vsel %vm633_vm5, %v11706_v26, %v11791_v47  ;;  %v8073_v48 = vld [vmem:[%s14288_s4 + $0x78] sm:$0xff]  ;;  %v8090_v35 = vld [vmem:[%s14288_s4 + $0x80] sm:$0xff] }
 0x8c4   :  { %8065 = vmatmul.msk.f32.gmra.mxu2 %vm2177_vm2, %v8053_v33  ;;  %8069 = vmatmul.msk.f32.gmra.mxu3 %vm2177_vm2, %v8053_v33  ;;  %v4783_v0 = vmul.f32 %v4779_v15, %v14855_v6  ;;  %v4786_v26 = vmul.f32 %v4767_v40, %v14856_v19  ;;  %v8091_v40 = vld [vmem:[%s14288_s4 + $0x88] sm:$0xff] }
 0x8c5   :  { %5006 = vmatpush.msra.mxu1 %v11405_v9  ;;  %5035 = vmatpush.msra.mxu2 %v11401_v30  ;;  %v12051_v46 = vpop.permute.xlu2 %5318  ;;  %v12053_v16 = vpop.permute.xlu1 %5314 }
 0x8c6   :  { %4915 = vmatpush.msrb.mxu3 %v4798_v7  ;;  %5545 = vrot.lane.b32.xlu0 %v11401_v30, %s8339_s13  ;;  %v12065_v28 = vpop.permute.xlu0 %5338 }
 0x8c7   :  { %5007 = vmatpush.msra.mxu1 %v11363_v10  ;;  %5036 = vmatpush.msra.mxu2 %v11365_v25  ;;  %v4787_v10 = vmul.f32 %v4780_v37, %v14855_v6  ;;  %v4790_v25 = vmul.f32 %v4768_v50, %v14856_v19 }
 0x8c8   :  { %5736 = vrot.lane.b32.xlu2 %v11294_v38, %s8340_s22  ;;  %5744 = vrot.lane.b32.xlu1 %v11296_v32, %s8340_s22 }
 0x8c9   :  { %4829 = vmatpush.msrb.mxu0 %v4791_v51  ;;  %4916 = vmatpush.msrb.mxu3 %v4794_v42 }
 0x8ca   :  { %5008 = vmatpush.msra.mxu1 %v11325_v1  ;;  %5037 = vmatpush.msra.mxu2 %v11327_v56 }
 0x8cb   :  { %4830 = vmatpush.msrb.mxu0 %v4787_v10  ;;  %4917 = vmatpush.msrb.mxu3 %v4790_v25 }
 0x8cc   :  { %5009 = vmatpush.msra.mxu1 %v11296_v32  ;;  %5038 = vmatpush.msra.mxu2 %v11298_v5  ;;  %v8071_v32 = vld [vmem:[%s14288_s4 + $0x68] sm:$0xff] }
 0x8cd   :  { %4831 = vmatpush.msrb.mxu0 %v4783_v0  ;;  %4918 = vmatpush.msrb.mxu3 %v4786_v26  ;;  %v12094_v47 = vpop.permute.xlu2 %5527  ;;  %v12096_v1 = vpop.permute.xlu1 %5336  ;;  %v5143_v26 = vsel %vm14863_vm3, %v11785_v22, %v11883_v18 }
 0x8ce   :  { %8057 = vmatmul.msk.f32.gmra.mxu0 %vm2177_vm2, %v8053_v33  ;;  %8061 = vmatmul.msk.f32.gmra.mxu1 %vm2177_vm2, %v8053_v33  ;;  %v12100_v56 = vpop.permute.xlu0 %5328 }
 0x8cf   :  { %8082 = vmatmul.msk.f32.vlgmr.msrb.gmra.mxu2 %vm2177_vm2, %v8070_v34  ;;  %8086 = vmatmul.msk.f32.vlgmr.msrb.gmra.mxu3 %vm2177_vm2, %v8070_v34 }
 0x8d0   :  { %4977 = vmatpush.msra.mxu0 %v11415_v36  ;;  %5064 = vmatpush.msra.mxu3 %v11417_v58 }
 0x8d1   :  { %5537 = vrot.lane.b32.xlu0 %v11405_v9, %s8339_s13  ;;  %5529 = vrot.lane.b32.xlu2 %v11415_v36, %s8339_s13 }
 0x8d2   :  { %4978 = vmatpush.msra.mxu0 %v11377_v53  ;;  %5065 = vmatpush.msra.mxu3 %v11379_v55 }
 0x8d3   :  { %5553 = vrot.lane.b32.xlu1 %v11417_v58, %s8339_s13 }
 0x8d4   :  { %4979 = vmatpush.msra.mxu0 %v11337_v52  ;;  %5066 = vmatpush.msra.mxu3 %v11339_v29  ;;  %v8325_v52 = vld [vmem:[%s14286_s6 + $0x8] sm:$0xff]  ;;  %v8072_v29 = vld [vmem:[%s14288_s4 + $0x70] sm:$0xff] }
 0x8d5   :  { %v12119_v5 = vpop.permute.xlu2 %5549  ;;  %v12121_v57 = vpop.permute.xlu1 %5326 }
 0x8d6   :  { %4980 = vmatpush.msra.mxu0 %v11294_v38  ;;  %5067 = vmatpush.msra.mxu3 %v11307_v41  ;;  %v12125_v53 = vpop.permute.xlu0 %5322  ;;  %v8326_v38 = vld [vmem:[%s14286_s6] sm:$0xff]  ;;  %v8327_v41 = vld [vmem:[%s14286_s6 + $0x10] sm:$0xff] }
 0x8d7   :  { %8074 = vmatmul.msk.f32.vlgmr.msrb.gmra.mxu0 %vm2177_vm2, %v8070_v34  ;;  %8078 = vmatmul.msk.f32.vlgmr.msrb.gmra.mxu1 %vm2177_vm2, %v8070_v34 }
 0x8d8   :  { %8083 = vmatmul.msk.f32.gmra.mxu2 %vm2177_vm2, %v8071_v32  ;;  %8087 = vmatmul.msk.f32.gmra.mxu3 %vm2177_vm2, %v8071_v32 }
 0x8d9   :  { %5954 = vperm.xlu0 %8271, %v8325_v52   ;;  %5950 = vperm.xlu2 %8270, %v8326_v38   ;;  %v14865_v52 = vld [vmem:[#allocation22_spill] sm:$0xff] }
 0x8db   :  { %5958 = vperm.xlu1 %8272, %v8327_v41  }
 0x8dd   :  { %v12143_v55 = vpop.permute.xlu2 %5127 }
 0x8de   :  { %v12145_v20 = vpop.permute.xlu0 %5310  ;;  %v12147_v11 = vpop.permute.xlu1 %5320 }
 0x8df   :  { %8075 = vmatmul.msk.f32.gmra.mxu0 %vm2177_vm2, %v8071_v32  ;;  %8079 = vmatmul.msk.f32.gmra.mxu1 %vm2177_vm2, %v8071_v32  ;;  %v12158_v17 = vpop.f32.mrf.mxu1 }
 0x8e0   :  { %8084 = vmatmul.msk.f32.gmra.mxu2 %vm2177_vm2, %v8072_v29  ;;  %8088 = vmatmul.msk.f32.gmra.mxu3 %vm2177_vm2, %v8072_v29  ;;  %14858 = vst [vmem:[#allocation43_spill] sm:$0xff] %v12158_v17 }
 0x8e1   :  { %5742 = vrot.lane.b32.xlu0 %v11415_v36, %s8340_s22  ;;  %5962 = vperm.xlu2 %8270, %v8328_v62  }
 0x8e3   :  { %5758 = vrot.lane.b32.xlu1 %v11401_v30, %s8340_s22 }
 0x8e6   :  { %v12165_v33 = vpop.permute.xlu0 %5543  ;;  %v12167_v7 = vpop.f32.mrf.mxu0 }
 0x8e7   :  { %8076 = vmatmul.msk.f32.gmra.mxu0 %vm2177_vm2, %v8072_v29  ;;  %8080 = vmatmul.msk.f32.gmra.mxu1 %vm2177_vm2, %v8072_v29  ;;  %v12171_v36 = vpop.permute.xlu2 %5539  ;;  %v12173_v12 = vpop.permute.xlu1 %5551  ;;  %v5142_v29 = vsel %vm14866_vm7, %v11910_v13, %v11846_v23  ;;  %vm14882_vm7 = vmmov %vm14863_vm3 }
 0x8e8   :  { %8085 = vmatmul.msk.f32.gmra.mxu2 %vm2177_vm2, %v8073_v48  ;;  %8089 = vmatmul.msk.f32.gmra.mxu3 %vm2177_vm2, %v8073_v48  ;;  %v12177_v30 = vpop.f32.mrf.mxu2  ;;  %v12183_v49 = vpop.f32.mrf.mxu1 }
 0x8e9   :  { %5766 = vrot.lane.b32.xlu2 %v11417_v58, %s8340_s22  ;;  %14859 = vst [vmem:[#allocation36_spill] sm:$0xff] %v12183_v49 }
 0x8eb   :  { %5750 = vrot.lane.b32.xlu1 %v11405_v9, %s8340_s22 }
 0x8ed   :  { %v12188_v50 = vpop.f32.mrf.mxu3 }
 0x8ee   :  { %v12190_v37 = vpop.permute.xlu0 %5525  ;;  %v12192_v51 = vpop.f32.mrf.mxu0 }
 0x8ef   :  { %14860 = vst [vmem:[#allocation44_spill] sm:$0xff] %v12192_v51  ;;  %8077 = vmatmul.msk.f32.gmra.mxu0 %vm2177_vm2, %v8073_v48  ;;  %8081 = vmatmul.msk.f32.gmra.mxu1 %vm2177_vm2, %v8073_v48  ;;  %v12196_v58 = vpop.permute.xlu2 %5533  ;;  %v12198_v42 = vpop.permute.xlu1 %5541  ;;  %v5156_v48 = vmul.f32 %v5143_v26, %v14865_v52 }
 0x8f0   :  { %8102 = vmatmul.msk.f32.vlgmr.msra.gmra.mxu2 %vm2177_vm2, %v8090_v35  ;;  %8106 = vmatmul.msk.f32.vlgmr.msra.gmra.mxu3 %vm2177_vm2, %v8090_v35  ;;  %v12202_v9 = vpop.f32.mrf.mxu2  ;;  %v12209_v10 = vpop.f32.mrf.mxu1 }
 0x8f1   :  { %14861 = vst [vmem:[#allocation45_spill] sm:$0xff] %v12209_v10  ;;  %v14880_v10 = vld [vmem:[#allocation20_spill] sm:$0xff] }
 0x8f5   :  { %v12207_v15 = vpop.f32.mrf.mxu3 }
 0x8f6   :  { %v5104_v25 = vpop.permute.xlu0 %5103  ;;  %v12211_v0 = vpop.f32.mrf.mxu0 }
 0x8f7   :  { %14862 = vst [vmem:[#allocation72_spill] sm:$0xff] %v12211_v0  ;;  %8094 = vmatmul.msk.f32.vlgmr.msra.gmra.mxu0 %vm2177_vm2, %v8090_v35  ;;  %8098 = vmatmul.msk.f32.vlgmr.msra.gmra.mxu1 %vm2177_vm2, %v8090_v35  ;;  %v5144_v34 = vsel %vm14864_vm6, %v12143_v55, %v5104_v25  ;;  %v12222_v32 = vpop.permute.xlu1 %5535  ;;  %v12227_v41 = vpop.permute.xlu2 %5764  ;;  %v5141_v35 = vsel %vm14867_vm8, %v11875_v63, %v11873_v59  ;;  %vm14881_vm6 = vmmov %vm14863_vm3 }
 0x8f8   :  { %8103 = vmatmul.msk.f32.gmra.mxu2 %vm2177_vm2, %v8091_v40  ;;  %8107 = vmatmul.msk.f32.gmra.mxu3 %vm2177_vm2, %v8091_v40  ;;  %v5160_v38 = vmul.f32 %v5144_v34, %v14865_v52  ;;  %v12233_v62 = vpop.f32.mrf.mxu2  ;;  %v5152_v34 = vmul.f32 %v5142_v29, %v14865_v52  ;;  %v5131_v29 = vsel %vm14869_vm9, %v11812_v54, %v11785_v22  ;;  %v12259_v19 = vpop.f32.mrf.mxu1  ;;  %vm14883_vm8 = vmmov %vm14863_vm3 }
 0x8f9   :  { %14870 = vst [vmem:[#allocation58_spill] sm:$0xff] %v12259_v19  ;;  %v5130_v22 = vsel %vm14873_vm11, %v11810_v21, %v11910_v13  ;;  %v14879_v19 = vld [vmem:[#allocation21_spill] sm:$0xff]  ;;  %vm14884_vm9 = vmmov %vm14863_vm3 }
 0x8fa   :  { %5277 = vmatpush.msrb.mxu3 %v5160_v38  ;;  %v5151_v13 = vmul.f32 %v5130_v22, %v14872_v4 }
 0x8fc   :  { %5278 = vmatpush.msrb.mxu3 %v5156_v48  ;;  %v5148_v48 = vmul.f32 %v5141_v35, %v14865_v52  ;;  %v5155_v35 = vmul.f32 %v5131_v29, %v14872_v4 }
 0x8fd   :  { %v12244_v6 = vpop.f32.mrf.mxu3 }
 0x8fe   :  { %v12246_v27 = vpop.permute.xlu0 %5547  ;;  %v12248_v38 = vpop.f32.mrf.mxu0  ;;  %5279 = vmatpush.msrb.mxu3 %v5152_v34 }
 0x8ff   :  { %14868 = vst [vmem:[#allocation57_spill] sm:$0xff] %v12248_v38  ;;  %8095 = vmatmul.msk.f32.gmra.mxu0 %vm2177_vm2, %v8091_v40  ;;  %8099 = vmatmul.msk.f32.gmra.mxu1 %vm2177_vm2, %v8091_v40  ;;  %v5120_v26 = vpop.permute.xlu1 %5119  ;;  %v12265_v8 = vpop.permute.xlu2 %5332 }
 0x900   :  { %8104 = vmatmul.msk.f32.gmra.mxu2 %vm2177_vm2, %v8092_v60  ;;  %8108 = vmatmul.msk.f32.gmra.mxu3 %vm2177_vm2, %v8092_v60  ;;  %v5132_v34 = vsel %vm14871_vm10, %v5120_v26, %v12143_v55  ;;  %v12272_v52 = vpop.f32.mrf.mxu2  ;;  %vm14885_vm10 = vcmp.lt.s32.totalorder %v14833_v2, 113 }
 0x901   :  { %v5159_v40 = vmul.f32 %v5132_v34, %v14872_v4  ;;  %5280 = vmatpush.msrb.mxu3 %v5148_v48  ;;  %v5129_v48 = vsel %vm14874_vm12, %v11954_v43, %v11875_v63  ;;  %v5135_v34 = vsel %vm14875_vm13, %v11844_v24, %v11812_v54  ;;  %vm14887_vm11 = vmmov %vm14885_vm10 }
 0x902   :  { %v5147_v54 = vmul.f32 %v5129_v48, %v14872_v4  ;;  %v5154_v49 = vmul.f32 %v5135_v34, %v14880_v10  ;;  %v8110_v48 = vld [vmem:[%s14288_s4 + $0xa0] sm:$0xff]  ;;  %vm14890_vm12 = vmmov %vm14885_vm10 }
 0x903   :  { %5248 = vmatpush.msrb.mxu2 %v5159_v40  ;;  %vm14892_vm13 = vmmov %vm14885_vm10 }
 0x905   :  { %v12277_v55 = vpop.f32.mrf.mxu3  ;;  %5249 = vmatpush.msrb.mxu2 %v5155_v35  ;;  %v5139_v35 = vsel %vm14876_vm14, %v11883_v18, %v11844_v24  ;;  %v5134_v24 = vsel %vm14881_vm6, %v12021_v44, %v11810_v21  ;;  %v5138_v18 = vsel %vm14882_vm7, %v11846_v23, %v12021_v44  ;;  %v5133_v21 = vsel %vm14883_vm8, %v11950_v39, %v11954_v43  ;;  %vm14893_vm14 = vmmov %vm14885_vm10 }
 0x906   :  { %v12283_v29 = vpop.permute.xlu0 %5531  ;;  %v5137_v23 = vsel %vm14884_vm9, %v11873_v59, %v11950_v39  ;;  %v5150_v59 = vmul.f32 %v5134_v24, %v14880_v10  ;;  %v5348_v39 = vsel %vm14887_vm11, %v12125_v53, %v11947_v3  ;;  %v5146_v34 = vmul.f32 %v5133_v21, %v14880_v10 }
 0x907   :  { %8096 = vmatmul.msk.f32.gmra.mxu0 %vm2177_vm2, %v8092_v60  ;;  %8100 = vmatmul.msk.f32.gmra.mxu1 %vm2177_vm2, %v8092_v60  ;;  %v12294_v40 = vpop.f32.mrf.mxu0  ;;  %v5112_v63 = vpop.permute.xlu1 %5111 }
 0x908   :  { %8105 = vmatmul.msk.f32.gmra.mxu2 %vm2177_vm2, %v8093_v45  ;;  %8109 = vmatmul.msk.f32.gmra.mxu3 %vm2177_vm2, %v8093_v45  ;;  %v5136_v60 = vsel %vm14877_vm15, %v5112_v63, %v5120_v26  ;;  %v5140_v22 = vsel %vm14863_vm3, %v5104_v25, %v5112_v63  ;;  %v12305_v14 = vpop.f32.mrf.mxu1  ;;  %v12318_v25 = vpop.permute.xlu2 %5324  ;;  %v5153_v26 = vmul.f32 %v5139_v35, %v14879_v19  ;;  %v14888_v63 = vld [vmem:[#allocation24_spill] sm:$0xff]  ;;  %vm14894_vm15 = vmmov %vm14885_vm10 }
 0x909   :  { %5250 = vmatpush.msrb.mxu2 %v5151_v13  ;;  %14878 = vst [vmem:[#allocation50_spill] sm:$0xff] %v12305_v14  ;;  %v5157_v38 = vmul.f32 %v5140_v22, %v14879_v19  ;;  %v5158_v0 = vmul.f32 %v5136_v60, %v14880_v10  ;;  %v5149_v13 = vmul.f32 %v5138_v18, %v14879_v19  ;;  %v8111_v18 = vld [vmem:[%s14288_s4 + $0xa8] sm:$0xff]  ;;  %vm14896_vm3 = vmmov %vm14885_vm10 }
 0x90a   :  { %v5347_v22 = vsel %vm14890_vm12, %v12147_v11, %v12100_v56  ;;  %v5367_v24 = vmul.f32 %v5348_v39, %v14888_v63  ;;  %v5344_v39 = vsel %vm14893_vm14, %v11947_v3, %v12065_v28  ;;  %v5343_v3 = vsel %vm14896_vm3, %v12100_v56, %v12096_v1  ;;  %vm14898_vm6 = vmmov %vm14896_vm3 }
 0x90b   :  { %5251 = vmatpush.msrb.mxu2 %v5147_v54  ;;  %5190 = vmatpush.msrb.mxu0 %v5157_v38  ;;  %v5349_v38 = vsel %vm14885_vm10, %v12318_v25, %v12265_v8  ;;  %vm14900_vm7 = vmmov %vm14896_vm3 }
 0x90c   :  { %5219 = vmatpush.msrb.mxu1 %v5158_v0  ;;  %v5371_v35 = vmul.f32 %v5349_v38, %v14888_v63  ;;  %vm14901_vm8 = vmmov %vm14896_vm3 }
 0x90d   :  { %5191 = vmatpush.msrb.mxu0 %v5153_v26  ;;  %v5346_v26 = vsel %vm14892_vm13, %v12051_v46, %v12121_v57  ;;  %vm14904_vm9 = vmmov %vm14896_vm3 }
 0x90e   :  { %v12332_v44 = vpop.f32.mrf.mxu2  ;;  %5220 = vmatpush.msrb.mxu1 %v5154_v49  ;;  %v12334_v0 = vpop.permute.xlu0 %5740  ;;  %vm14905_vm10 = vmmov %vm14896_vm3 }
 0x90f   :  { %8097 = vmatmul.msk.f32.gmra.mxu0 %vm2177_vm2, %v8093_v45  ;;  %8101 = vmatmul.msk.f32.gmra.mxu1 %vm2177_vm2, %v8093_v45  ;;  %v12342_v43 = vpop.f32.mrf.mxu3  ;;  %v5145_v45 = vmul.f32 %v5137_v23, %v14879_v19  ;;  %v12357_v60 = vpop.f32.mrf.mxu0  ;;  %v14902_v19 = vld [vmem:[#allocation25_spill] sm:$0xff]  ;;  %vm14906_vm11 = vmmov %vm14896_vm3 }
 0x910   :  { %14886 = vst [vmem:[#allocation51_spill] sm:$0xff] %v12342_v43  ;;  %8122 = vmatmul.msk.f32.vlgmr.msrb.gmra.mxu2 %vm2177_vm2, %v8110_v48  ;;  %8126 = vmatmul.msk.f32.vlgmr.msrb.gmra.mxu3 %vm2177_vm2, %v8110_v48  ;;  %v12352_v49 = vpop.permute.xlu1 %5523  ;;  %v12363_v54 = vpop.f32.mrf.mxu1  ;;  %vm14907_vm12 = vmmov %vm14896_vm3  ;;  %v14933_v43 = vld [vmem:[#allocation30_spill] sm:$0xff] }
 0x911   :  { %5192 = vmatpush.msrb.mxu0 %v5149_v13  ;;  %5221 = vmatpush.msrb.mxu1 %v5150_v59  ;;  %14889 = vst [vmem:[#allocation67_spill] sm:$0xff] %v12357_v60  ;;  %v12373_v21 = vpop.permute.xlu2 %5754  ;;  %v5363_v13 = vmul.f32 %v5347_v22, %v14888_v63  ;;  %v5359_v22 = vmul.f32 %v5346_v26, %v14888_v63  ;;  %vm14909_vm13 = vmmov %vm14896_vm3 }
 0x912   :  { %14891 = vst [vmem:[#allocation59_spill] sm:$0xff] %v12363_v54  ;;  %v5342_v26 = vsel %vm14898_vm6, %v12121_v57, %v12013_v61  ;;  %vm14910_vm14 = vmmov %vm14896_vm3 }
 0x913   :  { %5193 = vmatpush.msrb.mxu0 %v5145_v45  ;;  %5222 = vmatpush.msrb.mxu1 %v5146_v34 }
 0x915   :  { %5432 = vmatpush.msra.mxu1 %v5371_v35 }
 0x916   :  { %v12375_v23 = vpop.f32.mrf.mxu2 }
 0x917   :  { %5433 = vmatpush.msra.mxu1 %v5367_v24  ;;  %8114 = vmatmul.msk.f32.vlgmr.msrb.gmra.mxu0 %vm2177_vm2, %v8110_v48  ;;  %v12379_v38 = vpop.f32.mrf.mxu3  ;;  %v5341_v59 = vpop.permute.xlu0 %5340 }
 0x918   :  { %8118 = vmatmul.msk.f32.vlgmr.msrb.gmra.mxu1 %vm2177_vm2, %v8110_v48  ;;  %8123 = vmatmul.msk.f32.gmra.mxu2 %vm2177_vm2, %v8111_v18  ;;  %v5345_v45 = vsel %vm14894_vm15, %v12265_v8, %v5341_v59  ;;  %v14895_v48 = vld [vmem:[#allocation23_spill] sm:$0xff]  ;;  %v12392_v35 = vpop.permute.xlu1 %5756  ;;  %v12400_v10 = vpop.f32.mrf.mxu0  ;;  %vm14920_vm15 = vcmp.lt.s32.totalorder %v14833_v2, 112 }
 0x919   :  { %8127 = vmatmul.msk.f32.gmra.mxu3 %vm2177_vm2, %v8111_v18  ;;  %5434 = vmatpush.msra.mxu1 %v5363_v13  ;;  %v5372_v34 = vmul.f32 %v5345_v45, %v14895_v48  ;;  %v5368_v24 = vmul.f32 %v5344_v39, %v14895_v48  ;;  %14897 = vst [vmem:[#allocation54_spill] sm:$0xff] %v12400_v10  ;;  %v8112_v8 = vld [vmem:[%s14288_s4 + $0xb0] sm:$0xff]  ;;  %v12409_v13 = vpop.f32.mrf.mxu1  ;;  %vm14922_vm3 = vmmov %vm14920_vm15 }
 0x91a   :  { %14899 = vst [vmem:[#allocation55_spill] sm:$0xff] %v12409_v13  ;;  %vm14923_vm6 = vmmov %vm14922_vm3 }
 0x91b   :  { %5435 = vmatpush.msra.mxu1 %v5359_v22  ;;  %5461 = vmatpush.msra.mxu2 %v5372_v34  ;;  %v5364_v34 = vmul.f32 %v5343_v3, %v14895_v48  ;;  %v12420_v22 = vpop.permute.xlu2 %5748  ;;  %v14903_v3 = vld [vmem:[#allocation26_spill] sm:$0xff] }
 0x91d   :  { %5462 = vmatpush.msra.mxu2 %v5368_v24  ;;  %v5360_v24 = vmul.f32 %v5342_v26, %v14895_v48  ;;  %v5352_v26 = vsel %vm14905_vm10, %v12053_v16, %v12125_v53  ;;  %v8132_v48 = vld [vmem:[%s14288_s4 + $0xd0] sm:$0xff]  ;;  %vm14930_vm10 = vmmov %vm14922_vm3 }
 0x91e   :  { %v12411_v39 = vpop.f32.mrf.mxu2  ;;  %v5366_v53 = vmul.f32 %v5352_v26, %v14902_v19 }
 0x91f   :  { %8115 = vmatmul.msk.f32.gmra.mxu0 %vm2177_vm2, %v8111_v18  ;;  %v12415_v56 = vpop.f32.mrf.mxu3  ;;  %v12417_v45 = vpop.permute.xlu0 %5762  ;;  %5463 = vmatpush.msra.mxu2 %v5364_v34  ;;  %v5356_v34 = vsel %vm14904_vm9, %v12065_v28, %v12053_v16  ;;  %v5351_v28 = vsel %vm14907_vm12, %v11969_v31, %v12147_v11  ;;  %vm14929_vm9 = vmmov %vm14922_vm3 }
 0x920   :  { %8119 = vmatmul.msk.f32.gmra.mxu1 %vm2177_vm2, %v8111_v18  ;;  %8124 = vmatmul.msk.f32.gmra.mxu2 %vm2177_vm2, %v8112_v8  ;;  %v5317_v57 = vpop.permute.xlu1 %5316  ;;  %vm14932_vm12 = vmmov %vm14922_vm3 }
 0x921   :  { %8128 = vmatmul.msk.f32.gmra.mxu3 %vm2177_vm2, %v8112_v8  ;;  %v5353_v18 = vsel %vm14900_vm7, %v5317_v57, %v12318_v25  ;;  %v5357_v63 = vsel %vm14901_vm8, %v5341_v59, %v5317_v57  ;;  %5464 = vmatpush.msra.mxu2 %v5360_v24  ;;  %v8113_v25 = vld [vmem:[%s14288_s4 + $0xb8] sm:$0xff]  ;;  %v12451_v59 = vpop.f32.mrf.mxu0  ;;  %v12469_v11 = vpop.f32.mrf.mxu1  ;;  %v5362_v57 = vmul.f32 %v5351_v28, %v14902_v19  ;;  %vm14924_vm7 = vmmov %vm14922_vm3 }
 0x922   :  { %v5370_v4 = vmul.f32 %v5353_v18, %v14902_v19  ;;  %v5373_v13 = vmul.f32 %v5357_v63, %v14903_v3  ;;  %v5355_v63 = vsel %vm14906_vm11, %v12096_v1, %v11969_v31  ;;  %14908 = vst [vmem:[#allocation75_spill] sm:$0xff] %v12451_v59  ;;  %v5350_v1 = vsel %vm14909_vm13, %v12145_v20, %v12051_v46  ;;  %vm14928_vm8 = vmmov %vm14922_vm3 }
 0x923   :  { %v5354_v31 = vsel %vm14910_vm14, %v12013_v61, %v12145_v20  ;;  %14911 = vst [vmem:[#allocation60_spill] sm:$0xff] %v12469_v11  ;;  %v5365_v24 = vmul.f32 %v5355_v63, %v14903_v3  ;;  %v12479_v18 = vpop.permute.xlu2 %5736  ;;  %v5358_v61 = vmul.f32 %v5350_v1, %v14902_v19  ;;  %v5569_v60 = vsel %vm14924_vm7, %v12173_v12, %v12094_v47  ;;  %vm14931_vm11 = vmmov %vm14922_vm3 }
 0x924   :  { %5403 = vmatpush.msra.mxu0 %v5370_v4  ;;  %5490 = vmatpush.msra.mxu3 %v5373_v13  ;;  %v5369_v13 = vmul.f32 %v5356_v34, %v14903_v3  ;;  %v5361_v20 = vmul.f32 %v5354_v31, %v14903_v3  ;;  %v8130_v34 = vld [vmem:[%s14288_s4 + $0xc0] sm:$0xff]  ;;  %vm14934_vm13 = vmmov %vm14922_vm3 }
 0x925   :  { %vm14935_vm14 = vmmov %vm14922_vm3 }
 0x926   :  { %5404 = vmatpush.msra.mxu0 %v5366_v53  ;;  %5491 = vmatpush.msra.mxu3 %v5369_v13  ;;  %vm14939_vm7 = vmmov %vm14922_vm3 }
 0x927   :  { %8116 = vmatmul.msk.f32.gmra.mxu0 %vm2177_vm2, %v8112_v8  ;;  %v12455_v16 = vpop.f32.mrf.mxu2  ;;  %v12457_v4 = vpop.f32.mrf.mxu3 }
 0x928   :  { %8120 = vmatmul.msk.f32.gmra.mxu1 %vm2177_vm2, %v8112_v8  ;;  %8125 = vmatmul.msk.f32.gmra.mxu2 %vm2177_vm2, %v8113_v25  ;;  %v12473_v8 = vpop.permute.xlu0 %5752  ;;  %v12477_v46 = vpop.permute.xlu1 %5738 }
 0x929   :  { %8129 = vmatmul.msk.f32.gmra.mxu3 %vm2177_vm2, %v8113_v25  ;;  %5405 = vmatpush.msra.mxu0 %v5362_v57  ;;  %v8131_v57 = vld [vmem:[%s14288_s4 + $0xc8] sm:$0xff] }
 0x92a   :  { %5492 = vmatpush.msra.mxu3 %v5365_v24 }
 0x92b   :  { %5406 = vmatpush.msra.mxu0 %v5358_v61  ;;  %v5530_v31 = vpop.permute.xlu2 %5529 }
 0x92c   :  { %5493 = vmatpush.msra.mxu3 %v5361_v20 }
 0x92e   :  { %v12486_v26 = vpop.f32.mrf.mxu0 }
 0x92f   :  { %14912 = vst [vmem:[#allocation92_spill] sm:$0xff] %v12486_v26  ;;  %8117 = vmatmul.msk.f32.gmra.mxu0 %vm2177_vm2, %v8113_v25  ;;  %v12490_v63 = vpop.f32.mrf.mxu2  ;;  %v12492_v28 = vpop.f32.mrf.mxu3 }
 0x930   :  { %8121 = vmatmul.msk.f32.gmra.mxu1 %vm2177_vm2, %v8113_v25  ;;  %14913 = vst [vmem:[#allocation66_spill] sm:$0xff] %v12490_v63  ;;  %8142 = vmatmul.msk.f32.vlgmr.msra.gmra.mxu2 %vm2177_vm2, %v8130_v34  ;;  %v12496_v53 = vpop.permute.xlu0 %5746  ;;  %v12498_v13 = vpop.f32.mrf.mxu1  ;;  %v14927_v63 = vld [vmem:[#allocation27_spill] sm:$0xff] }
 0x931   :  { %14914 = vst [vmem:[#allocation68_spill] sm:$0xff] %v12492_v28  ;;  %8146 = vmatmul.msk.f32.vlgmr.msra.gmra.mxu3 %vm2177_vm2, %v8130_v34  ;;  %v12500_v1 = vpop.permute.xlu1 %5760 }
 0x932   :  { %14915 = vst [vmem:[#allocation69_spill] sm:$0xff] %v12498_v13  ;;  %v14926_v13 = vld [vmem:[#allocation28_spill] sm:$0xff] }
 0x933   :  { %v12522_v11 = vpop.permute.xlu2 %5950 }
 0x934   :  { %14918 = vst [vmem:[#allocation91_spill] sm:$0xff] %v12522_v11 }
 0x936   :  { %v12505_v25 = vpop.f32.mrf.mxu0 }
 0x937   :  { %14916 = vst [vmem:[#allocation52_spill] sm:$0xff] %v12505_v25  ;;  %8134 = vmatmul.msk.f32.vlgmr.msra.gmra.mxu0 %vm2177_vm2, %v8130_v34  ;;  %v12509_v24 = vpop.f32.mrf.mxu2  ;;  %v12511_v61 = vpop.f32.mrf.mxu3  ;;  %v5557_v25 = vsel %vm14920_vm15, %v12165_v33, %v12173_v12  ;;  %v5565_v12 = vsel %vm14929_vm9, %v12094_v47, %v12222_v32  ;;  %v5560_v47 = vsel %vm14935_vm14, %v12196_v58, %v12198_v42  ;;  %vm14936_vm15 = vmmov %vm14922_vm3  ;;  %vm14943_vm9 = vcmp.lt.s32.totalorder %v14833_v2, 111 }
 0x938   :  { %8138 = vmatmul.msk.f32.vlgmr.msra.gmra.mxu1 %vm2177_vm2, %v8130_v34  ;;  %8143 = vmatmul.msk.f32.gmra.mxu2 %vm2177_vm2, %v8131_v57  ;;  %v12515_v20 = vpop.f32.mrf.mxu1  ;;  %v5546_v19 = vpop.permute.xlu0 %5545  ;;  %v5581_v14 = vmul.f32 %v5557_v25, %v14927_v63  ;;  %v5564_v25 = vsel %vm14932_vm12, %v12190_v37, %v12196_v58  ;;  %vm14948_vm12 = vmmov %vm14943_vm9 }
 0x939   :  { %8147 = vmatmul.msk.f32.gmra.mxu3 %vm2177_vm2, %v8131_v57  ;;  %14917 = vst [vmem:[#allocation87_spill] sm:$0xff] %v12515_v20  ;;  %vm14950_vm14 = vmmov %vm14943_vm9 }
 0x93a   :  { %v12517_v3 = vpop.permute.xlu1 %5744 }
 0x93e   :  { %v12532_v20 = vpop.f32.mrf.mxu0 }
 0x93f   :  { %8135 = vmatmul.msk.f32.gmra.mxu0 %vm2177_vm2, %v8131_v57  ;;  %v12526_v34 = vpop.f32.mrf.mxu2  ;;  %v12528_v59 = vpop.f32.mrf.mxu3  ;;  %14919 = vst [vmem:[#allocation70_spill] sm:$0xff] %v12532_v20  ;;  %v14925_v20 = vld [vmem:[#allocation29_spill] sm:$0xff] }
 0x940   :  { %8139 = vmatmul.msk.f32.gmra.mxu1 %vm2177_vm2, %v8131_v57  ;;  %8144 = vmatmul.msk.f32.gmra.mxu2 %vm2177_vm2, %v8132_v48  ;;  %v12538_v11 = vpop.f32.mrf.mxu1  ;;  %v5579_v58 = vmul.f32 %v5565_v12, %v14925_v20 }
 0x941   :  { %8148 = vmatmul.msk.f32.gmra.mxu3 %vm2177_vm2, %v8132_v48  ;;  %14921 = vst [vmem:[#allocation81_spill] sm:$0xff] %v12538_v11  ;;  %v8133_v11 = vld [vmem:[%s14288_s4 + $0xd8] sm:$0xff] }
 0x943   :  { %v5538_v10 = vpop.permute.xlu0 %5537 }
 0x944   :  { %v5562_v57 = vsel %vm14922_vm3, %v5538_v10, %v5546_v19  ;;  %v5566_v54 = vsel %vm14923_vm6, %v5530_v31, %v5538_v10  ;;  %v5561_v10 = vsel %vm14928_vm8, %v12222_v32, %v12165_v33  ;;  %vm14938_vm6 = vmmov %vm14922_vm3 }
 0x945   :  { %v5583_v51 = vmul.f32 %v5566_v54, %v14925_v20  ;;  %v5584_v26 = vmul.f32 %v5562_v57, %v14926_v13  ;;  %v5554_v28 = vpop.permute.xlu1 %5553  ;;  %vm14940_vm8 = vmmov %vm14922_vm3 }
 0x946   :  { %v5558_v54 = vsel %vm14930_vm10, %v5546_v19, %v5554_v28  ;;  %v5570_v57 = vsel %vm14931_vm11, %v5554_v28, %v5530_v31  ;;  %v5568_v19 = vsel %vm14934_vm13, %v12119_v5, %v12190_v37  ;;  %v5556_v37 = vsel %vm14936_vm15, %v12198_v42, %v12119_v5  ;;  %v12593_v31 = vpop.permute.xlu2 %5962  ;;  %vm14945_vm10 = vmmov %vm14943_vm9 }
 0x947   :  { %v5585_v17 = vmul.f32 %v5558_v54, %v14927_v63  ;;  %v5586_v33 = vmul.f32 %v5570_v57, %v14933_v43  ;;  %8136 = vmatmul.msk.f32.gmra.mxu0 %vm2177_vm2, %v8132_v48  ;;  %v12584_v32 = vpop.f32.mrf.mxu2  ;;  %v12586_v28 = vpop.f32.mrf.mxu3  ;;  %14937 = vst [vmem:[#allocation76_spill] sm:$0xff] %v12593_v31  ;;  %5645 = vmatpush.msrb.mxu1 %v5584_v26  ;;  %vm14946_vm11 = vmmov %vm14943_vm9 }
 0x948   :  { %8140 = vmatmul.msk.f32.gmra.mxu1 %vm2177_vm2, %v8132_v48  ;;  %8145 = vmatmul.msk.f32.gmra.mxu2 %vm2177_vm2, %v8133_v11  ;;  %v5582_v48 = vmul.f32 %v5569_v60, %v14933_v43  ;;  %v5580_v54 = vmul.f32 %v5561_v10, %v14926_v13  ;;  %v5559_v57 = vsel %vm14922_vm3, %v12283_v29, %v12171_v36  ;;  %vm14949_vm13 = vmmov %vm14943_vm9 }
 0x949   :  { %8149 = vmatmul.msk.f32.gmra.mxu3 %vm2177_vm2, %v8133_v11  ;;  %5616 = vmatpush.msrb.mxu0 %v5583_v51  ;;  %v5563_v60 = vsel %vm14938_vm6, %v12352_v49, %v12283_v29  ;;  %v5575_v5 = vmul.f32 %v5564_v25, %v14925_v20  ;;  %v5555_v51 = vsel %vm14939_vm7, %v12171_v36, %v12246_v27  ;;  %vm14951_vm15 = vmmov %vm14943_vm9 }
 0x94a   :  { %5674 = vmatpush.msrb.mxu2 %v5585_v17  ;;  %5703 = vmatpush.msrb.mxu3 %v5586_v33  ;;  %v5567_v42 = vsel %vm14940_vm8, %v12246_v27, %v12352_v49  ;;  %v5576_v17 = vmul.f32 %v5560_v47, %v14926_v13  ;;  %v5577_v12 = vmul.f32 %v5556_v37, %v14927_v63  ;;  %vm14952_vm3 = vmmov %vm14943_vm9 }
 0x94b   :  { %5617 = vmatpush.msrb.mxu0 %v5579_v58  ;;  %5646 = vmatpush.msrb.mxu1 %v5580_v54  ;;  %v12614_v26 = vpop.permute.xlu0 %5954  ;;  %v12616_v10 = vpop.f32.mrf.mxu0  ;;  %v5578_v36 = vmul.f32 %v5568_v19, %v14933_v43  ;;  %v5571_v27 = vmul.f32 %v5563_v60, %v14925_v20  ;;  %v5572_v49 = vmul.f32 %v5559_v57, %v14926_v13  ;;  %v8150_v19 = vld [vmem:[%s14288_s4 + $0xe0] sm:$0xff]  ;;  %vm14953_vm6 = vmmov %vm14952_vm3 }
 0x94c   :  { %14941 = vst [vmem:[#allocation78_spill] sm:$0xff] %v12614_v26  ;;  %5675 = vmatpush.msrb.mxu2 %v5581_v14  ;;  %5704 = vmatpush.msrb.mxu3 %v5582_v48  ;;  %v12619_v29 = vpop.f32.mrf.mxu1  ;;  %v5573_v33 = vmul.f32 %v5555_v51, %v14927_v63  ;;  %v5574_v14 = vmul.f32 %v5567_v42, %v14933_v43  ;;  %vm14954_vm7 = vmmov %vm14952_vm3 }
 0x94d   :  { %5618 = vmatpush.msrb.mxu0 %v5575_v5  ;;  %5647 = vmatpush.msrb.mxu1 %v5576_v17  ;;  %v12623_v25 = vpop.permute.xlu1 %5958  ;;  %v14944_v5 = vld [vmem:[#allocation34_spill] sm:$0xff]  ;;  %v5782_v42 = vsel %vm14945_vm10, %v12227_v41, %v12334_v0  ;;  %vm14956_vm8 = vmmov %vm14952_vm3  ;;  %v4514_v31 = vadd.f32 %v12379_v38, %v12207_v15  ;;  %v4517_v15 = vadd.f32 %v12415_v56, %v12244_v6 }
 0x94e   :  { %14942 = vst [vmem:[#allocation53_spill] sm:$0xff] %v12623_v25  ;;  %5676 = vmatpush.msrb.mxu2 %v5577_v12  ;;  %5705 = vmatpush.msrb.mxu3 %v5578_v36  ;;  %v5767_v37 = vpop.permute.xlu2 %5766  ;;  %v14947_v12 = vld [vmem:[#allocation31_spill] sm:$0xff]  ;;  %vm14959_vm10 = vmmov %vm14952_vm3  ;;  %v4491_v56 = vadd.f32 %v12455_v16, %v12272_v52 }
 0x94f   :  { %5619 = vmatpush.msrb.mxu0 %v5571_v27  ;;  %5648 = vmatpush.msrb.mxu1 %v5572_v49  ;;  %v8151_v27 = vld [vmem:[%s14288_s4 + $0xe8] sm:$0xff]  ;;  %v5770_v49 = vsel %vm14948_vm12, %v12392_v35, %v12227_v41  ;;  %v5780_v41 = vsel %vm14951_vm15, %v12500_v1, %v12479_v18  ;;  %vm14961_vm12 = vmmov %vm14952_vm3 }
 0x950   :  { %5677 = vmatpush.msrb.mxu2 %v5573_v33  ;;  %5706 = vmatpush.msrb.mxu3 %v5574_v14  ;;  %v5781_v33 = vsel %vm14949_vm13, %v12417_v45, %v12477_v46  ;;  %v5795_v14 = vmul.f32 %v5782_v42, %v14944_v5  ;;  %v5787_v63 = vmul.f32 %v5780_v41, %v14944_v5  ;;  %vm14963_vm13 = vmmov %vm14952_vm3 }
 0x951   :  { %8137 = vmatmul.msk.f32.gmra.mxu0 %vm2177_vm2, %v8133_v11  ;;  %8141 = vmatmul.msk.f32.gmra.mxu1 %vm2177_vm2, %v8133_v11  ;;  %v5791_v42 = vmul.f32 %v5781_v33, %v14944_v5  ;;  %v5778_v41 = vsel %vm14956_vm8, %v12334_v0, %v12420_v22 }
 0x952   :  { %8162 = vmatmul.msk.f32.vlgmr.msrb.gmra.mxu2 %vm2177_vm2, %v8150_v19  ;;  %8166 = vmatmul.msk.f32.vlgmr.msrb.gmra.mxu3 %vm2177_vm2, %v8150_v19  ;;  %v12636_v47 = vpop.f32.mrf.mxu2  ;;  %v12638_v48 = vpop.f32.mrf.mxu3 }
 0x953   :  { %v5743_v58 = vpop.permute.xlu0 %5742 }
 0x954   :  { %v5783_v54 = vsel %vm14943_vm9, %v5767_v37, %v5743_v58  ;;  %v12642_v57 = vpop.f32.mrf.mxu0  ;;  %v12644_v60 = vpop.f32.mrf.mxu1  ;;  %vm14958_vm9 = vmmov %vm14952_vm3 }
 0x955   :  { %v5799_v51 = vmul.f32 %v5783_v54, %v14944_v5  ;;  %v5759_v11 = vpop.permute.xlu1 %5758 }
 0x956   :  { %v5771_v17 = vsel %vm14946_vm11, %v5759_v11, %v5767_v37  ;;  %v5769_v37 = vsel %vm14950_vm14, %v12373_v21, %v12417_v45  ;;  %v5768_v45 = vsel %vm14952_vm3, %v12473_v8, %v12500_v1  ;;  %vm14960_vm11 = vmmov %vm14952_vm3 }
 0x957   :  { %v5798_v36 = vmul.f32 %v5771_v17, %v14947_v12  ;;  %5916 = vmatpush.msra.mxu3 %v5799_v51  ;;  %v5794_v51 = vmul.f32 %v5770_v49, %v14947_v12  ;;  %v5786_v43 = vmul.f32 %v5768_v45, %v14947_v12  ;;  %v5773_v0 = vsel %vm14960_vm11, %v12496_v53, %v12373_v21 }
 0x959   :  { %8154 = vmatmul.msk.f32.vlgmr.msrb.gmra.mxu0 %vm2177_vm2, %v8150_v19  ;;  %8158 = vmatmul.msk.f32.vlgmr.msrb.gmra.mxu1 %vm2177_vm2, %v8150_v19 }
 0x95a   :  { %8163 = vmatmul.msk.f32.gmra.mxu2 %vm2177_vm2, %v8151_v27  ;;  %8167 = vmatmul.msk.f32.gmra.mxu3 %vm2177_vm2, %v8151_v27 }
 0x95b   :  { %5887 = vmatpush.msra.mxu2 %v5798_v36  ;;  %v12678_v54 = vpop.f32.mrf.mxu2  ;;  %v12680_v19 = vpop.f32.mrf.mxu3  ;;  %5917 = vmatpush.msra.mxu3 %v5795_v14  ;;  %v5790_v36 = vmul.f32 %v5769_v37, %v14947_v12  ;;  %v14955_v14 = vld [vmem:[#allocation33_spill] sm:$0xff]  ;;  %v8152_v37 = vld [vmem:[%s14288_s4 + $0xf0] sm:$0xff] }
 0x95c   :  { %v12688_v17 = vpop.f32.mrf.mxu0  ;;  %v12690_v20 = vpop.f32.mrf.mxu1 }
 0x95d   :  { %5888 = vmatpush.msra.mxu2 %v5794_v51  ;;  %5918 = vmatpush.msra.mxu3 %v5791_v42  ;;  %v5751_v13 = vpop.permute.xlu1 %5750  ;;  %v14957_v51 = vld [vmem:[#allocation32_spill] sm:$0xff] }
 0x95e   :  { %v5775_v49 = vsel %vm14953_vm6, %v5751_v13, %v5759_v11  ;;  %v5779_v33 = vsel %vm14954_vm7, %v5743_v58, %v5751_v13  ;;  %v5774_v13 = vsel %vm14958_vm9, %v12420_v22, %v12392_v35  ;;  %v5792_v22 = vmul.f32 %v5778_v41, %v14955_v14  ;;  %v8170_v41 = vld [vmem:[%s14288_s4 + $0x100] sm:$0xff] }
 0x95f   :  { %5889 = vmatpush.msra.mxu2 %v5790_v36  ;;  %v5796_v1 = vmul.f32 %v5779_v33, %v14955_v14  ;;  %5919 = vmatpush.msra.mxu3 %v5787_v63  ;;  %v5797_v11 = vmul.f32 %v5775_v49, %v14957_v51  ;;  %v5777_v63 = vsel %vm14959_vm10, %v12477_v46, %v12496_v53  ;;  %v8153_v49 = vld [vmem:[%s14288_s4 + $0xf8] sm:$0xff] }
 0x960   :  { %v5776_v46 = vsel %vm14961_vm12, %v12479_v18, %v12517_v3  ;;  %v5793_v58 = vmul.f32 %v5774_v13, %v14957_v51  ;;  %v5772_v53 = vsel %vm14963_vm13, %v12517_v3, %v12473_v8  ;;  %v5788_v42 = vmul.f32 %v5777_v63, %v14955_v14 }
 0x961   :  { %5890 = vmatpush.msra.mxu2 %v5786_v43  ;;  %8155 = vmatmul.msk.f32.gmra.mxu0 %vm2177_vm2, %v8151_v27  ;;  %v5789_v45 = vmul.f32 %v5773_v0, %v14957_v51  ;;  %v5784_v18 = vmul.f32 %v5776_v46, %v14955_v14  ;;  %v5785_v36 = vmul.f32 %v5772_v53, %v14957_v51  ;;  %v8171_v0 = vld [vmem:[%s14288_s4 + $0x108] sm:$0xff] }
 0x962   :  { %8159 = vmatmul.msk.f32.gmra.mxu1 %vm2177_vm2, %v8151_v27  ;;  %8164 = vmatmul.msk.f32.gmra.mxu2 %vm2177_vm2, %v8152_v37 }
 0x963   :  { %8168 = vmatmul.msk.f32.gmra.mxu3 %vm2177_vm2, %v8152_v37  ;;  %5829 = vmatpush.msra.mxu0 %v5796_v1  ;;  %v12724_v43 = vpop.f32.mrf.mxu2  ;;  %v12726_v35 = vpop.f32.mrf.mxu3 }
 0x964   :  { %5858 = vmatpush.msra.mxu1 %v5797_v11  ;;  %v12734_v27 = vpop.f32.mrf.mxu0  ;;  %v12736_v21 = vpop.f32.mrf.mxu1 }
 0x965   :  { %14962 = vst [vmem:[#allocation56_spill] sm:$0xff] %v12736_v21  ;;  %5830 = vmatpush.msra.mxu0 %v5792_v22 }
 0x966   :  { %5859 = vmatpush.msra.mxu1 %v5793_v58 }
 0x967   :  { %5831 = vmatpush.msra.mxu0 %v5788_v42  ;;  %v8172_v42 = vld [vmem:[%s14288_s4 + $0x110] sm:$0xff] }
 0x968   :  { %5860 = vmatpush.msra.mxu1 %v5789_v45 }
 0x969   :  { %5832 = vmatpush.msra.mxu0 %v5784_v18 }
 0x96a   :  { %5861 = vmatpush.msra.mxu1 %v5785_v36  ;;  %8156 = vmatmul.msk.f32.gmra.mxu0 %vm2177_vm2, %v8152_v37 }
 0x96b   :  { %8160 = vmatmul.msk.f32.gmra.mxu1 %vm2177_vm2, %v8152_v37  ;;  %8165 = vmatmul.msk.f32.gmra.mxu2 %vm2177_vm2, %v8153_v49  ;;  %v12752_v3 = vpop.f32.mrf.mxu2  ;;  %v12754_v8 = vpop.f32.mrf.mxu3 }
 0x96c   :  { %8169 = vmatmul.msk.f32.gmra.mxu3 %vm2177_vm2, %v8153_v49  ;;  %v12757_v33 = vpop.f32.mrf.mxu0  ;;  %v12759_v1 = vpop.f32.mrf.mxu1 }
 0x96d   :  { %14964 = vst [vmem:[#allocation61_spill] sm:$0xff] %v12757_v33 }
 0x96e   :  { %14965 = vst [vmem:[#allocation77_spill] sm:$0xff] %v12759_v1 }
 0x972   :  { %8157 = vmatmul.msk.f32.gmra.mxu0 %vm2177_vm2, %v8153_v49 }
 0x973   :  { %8161 = vmatmul.msk.f32.gmra.mxu1 %vm2177_vm2, %v8153_v49  ;;  %8182 = vmatmul.msk.f32.vlgmr.msra.gmra.mxu2 %vm2177_vm2, %v8170_v41  ;;  %v12767_v37 = vpop.f32.mrf.mxu2  ;;  %v12769_v11 = vpop.f32.mrf.mxu3 }
 0x974   :  { %8186 = vmatmul.msk.f32.vlgmr.msra.gmra.mxu3 %vm2177_vm2, %v8170_v41  ;;  %v12772_v13 = vpop.f32.mrf.mxu0  ;;  %v12774_v63 = vpop.f32.mrf.mxu1 }
 0x97a   :  { %8174 = vmatmul.msk.f32.vlgmr.msra.gmra.mxu0 %vm2177_vm2, %v8170_v41 }
 0x97b   :  { %8178 = vmatmul.msk.f32.vlgmr.msra.gmra.mxu1 %vm2177_vm2, %v8170_v41  ;;  %8183 = vmatmul.msk.f32.gmra.mxu2 %vm2177_vm2, %v8171_v0  ;;  %v5043_v22 = vpop.f32.mrf.mxu2  ;;  %v5072_v46 = vpop.f32.mrf.mxu3  ;;  %v8173_v41 = vld [vmem:[%s14288_s4 + $0x118] sm:$0xff] }
 0x97c   :  { %8187 = vmatmul.msk.f32.gmra.mxu3 %vm2177_vm2, %v8171_v0  ;;  %v12783_v58 = vpop.f32.mrf.mxu0  ;;  %v12785_v53 = vpop.f32.mrf.mxu1 }
 0x982   :  { %8175 = vmatmul.msk.f32.gmra.mxu0 %vm2177_vm2, %v8171_v0 }
 0x983   :  { %8179 = vmatmul.msk.f32.gmra.mxu1 %vm2177_vm2, %v8171_v0  ;;  %8184 = vmatmul.msk.f32.gmra.mxu2 %vm2177_vm2, %v8172_v42  ;;  %v5046_v45 = vpop.f32.mrf.mxu2  ;;  %v5075_v18 = vpop.f32.mrf.mxu3 }
 0x984   :  { %8188 = vmatmul.msk.f32.gmra.mxu3 %vm2177_vm2, %v8172_v42  ;;  %v12794_v36 = vpop.f32.mrf.mxu0  ;;  %v12796_v49 = vpop.f32.mrf.mxu1 }
 0x985   :  { %14966 = vst [vmem:[#allocation79_spill] sm:$0xff] %v12794_v36 }
 0x986   :  { %14967 = vst [vmem:[#allocation80_spill] sm:$0xff] %v12796_v49 }
 0x98a   :  { %8176 = vmatmul.msk.f32.gmra.mxu0 %vm2177_vm2, %v8172_v42 }
 0x98b   :  { %8180 = vmatmul.msk.f32.gmra.mxu1 %vm2177_vm2, %v8172_v42  ;;  %8185 = vmatmul.msk.f32.gmra.mxu2 %vm2177_vm2, %v8173_v41  ;;  %v5049_v0 = vpop.f32.mrf.mxu2  ;;  %v5078_v12 = vpop.f32.mrf.mxu3  ;;  %v4485_v42 = vadd.f32 %v12375_v23, %v12202_v9  ;;  %v4488_v9 = vadd.f32 %v12411_v39, %v12233_v62 }
 0x98c   :  { %8189 = vmatmul.msk.f32.gmra.mxu3 %vm2177_vm2, %v8173_v41  ;;  %v12805_v51 = vpop.f32.mrf.mxu0  ;;  %v12807_v14 = vpop.f32.mrf.mxu1 }
 0x98d   :  { %14968 = vst [vmem:[#allocation73_spill] sm:$0xff] %v12805_v51  ;;  %v4726_v51 = vadd.f32 %v12511_v61, %v4514_v31  ;;  %v4729_v31 = vadd.f32 %v12526_v34, %v4488_v9 }
 0x98e   :  { %14969 = vst [vmem:[#allocation88_spill] sm:$0xff] %v12807_v14  ;;  %v4725_v14 = vadd.f32 %v12509_v24, %v4485_v42 }
 0x98f   :  { %v4939_v1 = vadd.f32 %v12680_v19, %v4726_v51  ;;  %v4942_v19 = vadd.f32 %v12724_v43, %v4729_v31  ;;  %v4733_v43 = vadd.f32 %v12584_v32, %v4491_v56 }
 0x991   :  { %v5088_v36 = vadd.f32 %v5072_v46, %v4939_v1  ;;  %v5091_v62 = vadd.f32 %v5046_v45, %v4942_v19 }
 0x992   :  { %8177 = vmatmul.msk.f32.gmra.mxu0 %vm2177_vm2, %v8173_v41 }
 0x993   :  { %8181 = vmatmul.msk.f32.gmra.mxu1 %vm2177_vm2, %v8173_v41  ;;  %v12811_v5 = vpop.f32.mrf.mxu2  ;;  %v12813_v2 = vpop.f32.mrf.mxu3  ;;  %v4938_v41 = vadd.f32 %v12678_v54, %v4725_v14  ;;  %v4730_v54 = vadd.f32 %v12528_v59, %v4517_v15 }
 0x994   :  { %v12819_v25 = vpop.f32.mrf.mxu0 }
 0x995   :  { %v12821_v26 = vpop.f32.mrf.mxu1  ;;  %v5087_v49 = vadd.f32 %v5043_v22, %v4938_v41  ;;  %v4943_v14 = vadd.f32 %v12726_v35, %v4730_v54  ;;  %v4946_v22 = vadd.f32 %v12752_v3, %v4733_v43 }
 0x997   :  { %v5092_v39 = vadd.f32 %v5075_v18, %v4943_v14  ;;  %v5095_v52 = vadd.f32 %v5049_v0, %v4946_v22 }
 0x99b   :  { %v5256_v33 = vpop.f32.mrf.mxu2 }
 0x99c   :  { %v5285_v21 = vpop.f32.mrf.mxu3  ;;  %v12831_v23 = vadd.f32 %v5256_v33, %v5087_v49  ;;  %v12835_v24 = vpop.f32.mrf.mxu0 }
 0x99d   :  { %v12833_v38 = vadd.f32 %v5285_v21, %v5088_v36  ;;  %v12837_v61 = vpop.f32.mrf.mxu1  ;;  %v4520_v21 = vadd.f32 %v12457_v4, %v12277_v55 }
 0x99f   :  { %v4734_v35 = vadd.f32 %v12586_v28, %v4520_v21 }
 0x9a1   :  { %v4947_v46 = vadd.f32 %v12754_v8, %v4734_v35 }
 0x9a3   :  { %v5259_v51 = vpop.f32.mrf.mxu2  ;;  %v5096_v16 = vadd.f32 %v5078_v12, %v4947_v46 }
 0x9a4   :  { %v5288_v6 = vpop.f32.mrf.mxu3  ;;  %v12847_v33 = vadd.f32 %v5259_v51, %v5091_v62  ;;  %v12851_v34 = vpop.f32.mrf.mxu0 }
 0x9a5   :  { %v12849_v1 = vadd.f32 %v5288_v6, %v5092_v39  ;;  %v12853_v59 = vpop.f32.mrf.mxu1 }
 0x9a7   :  { %14970 = vst [vmem:[#allocation62_spill] sm:$0xff] %v12849_v1 }
 0x9ab   :  { %v5262_v45 = vpop.f32.mrf.mxu2 }
 0x9ac   :  { %v5291_v55 = vpop.f32.mrf.mxu3  ;;  %v12859_v4 = vadd.f32 %v5262_v45, %v5095_v52  ;;  %v12863_v36 = vpop.f32.mrf.mxu0 }
 0x9ad   :  { %v12861_v18 = vadd.f32 %v5291_v55, %v5096_v16  ;;  %14973 = vst [vmem:[#allocation35_spill] sm:$0xff] %v12863_v36  ;;  %v12865_v49 = vpop.f32.mrf.mxu1  ;;  %v14989_v36 = vld [vmem:[#allocation66_spill] sm:$0xff] }
 0x9ae   :  { %14971 = vst [vmem:[#allocation82_spill] sm:$0xff] %v12859_v4  ;;  %v14988_v4 = vld [vmem:[#allocation50_spill] sm:$0xff] }
 0x9af   :  { %14972 = vst [vmem:[#allocation86_spill] sm:$0xff] %v12861_v18 }
 0x9b0   :  { %14974 = vst [vmem:[#allocation63_spill] sm:$0xff] %v12865_v49 }
 0x9b3   :  { %v5466_v42 = vpop.f32.mrf.mxu2 }
 0x9b4   :  { %v5495_v32 = vpop.f32.mrf.mxu3  ;;  %v5408_v41 = vpop.f32.mrf.mxu0 }
 0x9b5   :  { %v5437_v28 = vpop.f32.mrf.mxu1 }
 0x9bb   :  { %v12867_v9 = vpop.f32.mrf.mxu2 }
 0x9bc   :  { %v12869_v3 = vpop.f32.mrf.mxu3  ;;  %v12871_v8 = vpop.f32.mrf.mxu0 }
 0x9bd   :  { %v12873_v12 = vpop.f32.mrf.mxu1 }
 0x9c3   :  { %v12875_v0 = vpop.f32.mrf.mxu2 }
 0x9c4   :  { %v12877_v15 = vpop.f32.mrf.mxu3  ;;  %v12879_v31 = vpop.f32.mrf.mxu0 }
 0x9c5   :  { %14975 = vst [vmem:[#allocation64_spill] sm:$0xff] %v12877_v15  ;;  %v12881_v54 = vpop.f32.mrf.mxu1  ;;  %v14992_v15 = vld [vmem:[#allocation69_spill] sm:$0xff] }
 0x9c6   :  { %14976 = vst [vmem:[#allocation84_spill] sm:$0xff] %v12879_v31  ;;  %v14991_v31 = vld [vmem:[#allocation92_spill] sm:$0xff] }
 0x9c7   :  { %14977 = vst [vmem:[#allocation74_spill] sm:$0xff] %v12881_v54  ;;  %v14990_v54 = vld [vmem:[#allocation68_spill] sm:$0xff] }
 0x9cb   :  { %v12883_v19 = vpop.f32.mrf.mxu2 }
 0x9cc   :  { %14978 = vst [vmem:[#allocation83_spill] sm:$0xff] %v12883_v19  ;;  %v12885_v14 = vpop.f32.mrf.mxu3  ;;  %v14987_v19 = vld [vmem:[#allocation43_spill] sm:$0xff] }
 0x9cd   :  { %14979 = vst [vmem:[#allocation85_spill] sm:$0xff] %v12885_v14  ;;  %v14986_v14 = vld [vmem:[#allocation51_spill] sm:$0xff]  ;;  %v4453_v49 = vadd.f32 %v14988_v4, %v14987_v19 }
 0x9ce   :  { %v12887_v62 = vpop.f32.mrf.mxu0  ;;  %v12889_v39 = vpop.f32.mrf.mxu1  ;;  %v4511_v18 = vadd.f32 %v14986_v14, %v12188_v50  ;;  %v14996_v19 = vld [vmem:[#allocation59_spill] sm:$0xff] }
 0x9cf   :  { %14980 = vst [vmem:[#allocation89_spill] sm:$0xff] %v12887_v62  ;;  %v4424_v62 = vadd.f32 %v12294_v40, %v12167_v7 }
 0x9d0   :  { %14981 = vst [vmem:[#allocation65_spill] sm:$0xff] %v12889_v39  ;;  %v4482_v39 = vadd.f32 %v12332_v44, %v12177_v30 }
 0x9d5   :  { %v5679_v51 = vpop.f32.mrf.mxu2  ;;  %v5708_v6 = vpop.f32.mrf.mxu3 }
 0x9d6   :  { %v5621_v56 = vpop.f32.mrf.mxu0  ;;  %v5650_v21 = vpop.f32.mrf.mxu1 }
 0x9dd   :  { %v12891_v43 = vpop.f32.mrf.mxu2  ;;  %v12893_v35 = vpop.f32.mrf.mxu3 }
 0x9de   :  { %v12895_v22 = vpop.f32.mrf.mxu0 }
 0x9df   :  { %v12897_v46 = vpop.f32.mrf.mxu1 }
 0x9e5   :  { %v12899_v52 = vpop.f32.mrf.mxu2 }
 0x9e6   :  { %14982 = vst [vmem:[#allocation90_spill] sm:$0xff] %v12899_v52  ;;  %v12901_v16 = vpop.f32.mrf.mxu3  ;;  %v4721_v52 = vadd.f32 %v14989_v36, %v4482_v39 }
 0x9e7   :  { %14983 = vst [vmem:[#allocation49_spill] sm:$0xff] %v12901_v16  ;;  %v12903_v45 = vpop.f32.mrf.mxu0  ;;  %v4722_v16 = vadd.f32 %v14990_v54, %v4511_v18 }
 0x9e8   :  { %14984 = vst [vmem:[#allocation46_spill] sm:$0xff] %v12903_v45  ;;  %v12905_v55 = vpop.f32.mrf.mxu1  ;;  %v4719_v45 = vadd.f32 %v14991_v31, %v4424_v62  ;;  %v4934_v1 = vadd.f32 %v12636_v47, %v4721_v52  ;;  %v14994_v31 = vld [vmem:[#allocation67_spill] sm:$0xff]  ;;  %v14997_v62 = vld [vmem:[#allocation72_spill] sm:$0xff] }
 0x9e9   :  { %14985 = vst [vmem:[#allocation47_spill] sm:$0xff] %v12905_v55  ;;  %v4720_v55 = vadd.f32 %v14992_v15, %v4453_v49  ;;  %v4935_v30 = vadd.f32 %v12638_v48, %v4722_v16  ;;  %v14999_v16 = vld [vmem:[#allocation52_spill] sm:$0xff] }
 0x9ea   :  { %v4932_v7 = vadd.f32 %v12642_v57, %v4719_v45  ;;  %v5083_v44 = vadd.f32 %v12767_v37, %v4934_v1  ;;  %v14993_v57 = vld [vmem:[#allocation44_spill] sm:$0xff]  ;;  %v15000_v45 = vld [vmem:[#allocation87_spill] sm:$0xff] }
 0x9eb   :  { %v4933_v50 = vadd.f32 %v12644_v60, %v4720_v55  ;;  %v5084_v18 = vadd.f32 %v12769_v11, %v4935_v30  ;;  %v4427_v54 = vadd.f32 %v14994_v31, %v14993_v57  ;;  %v14995_v60 = vld [vmem:[#allocation36_spill] sm:$0xff]  ;;  %v14998_v11 = vld [vmem:[#allocation54_spill] sm:$0xff]  ;;  %v15003_v57 = vld [vmem:[#allocation57_spill] sm:$0xff] }
 0x9ec   :  { %v5081_v49 = vadd.f32 %v12772_v13, %v4932_v7  ;;  %v5296_v48 = vadd.f32 %v12811_v5, %v5083_v44  ;;  %v4456_v37 = vadd.f32 %v14996_v19, %v14995_v60  ;;  %v4430_v39 = vadd.f32 %v14998_v11, %v14997_v62  ;;  %v15001_v7 = vld [vmem:[#allocation45_spill] sm:$0xff]  ;;  %v15004_v31 = vld [vmem:[#allocation75_spill] sm:$0xff] }
 0x9ed   :  { %v5082_v47 = vadd.f32 %v12774_v63, %v4933_v50  ;;  %v5297_v1 = vadd.f32 %v12813_v2, %v5084_v18  ;;  %v4723_v63 = vadd.f32 %v14999_v16, %v4427_v54  ;;  %v15002_v50 = vld [vmem:[#allocation55_spill] sm:$0xff]  ;;  %v4433_v2 = vadd.f32 %v15004_v31, %v15003_v57  ;;  %v15006_v54 = vld [vmem:[#allocation60_spill] sm:$0xff] }
 0x9ee   :  { %v12922_v40 = vpop.f32.mrf.mxu2  ;;  %v5294_v14 = vadd.f32 %v12819_v25, %v5081_v49  ;;  %v5509_v52 = vadd.f32 %v5466_v42, %v5296_v48  ;;  %v4724_v5 = vadd.f32 %v15000_v45, %v4456_v37  ;;  %v4459_v44 = vadd.f32 %v15002_v50, %v15001_v7  ;;  %v15005_v48 = vld [vmem:[#allocation58_spill] sm:$0xff]  ;;  %v15009_v45 = vld [vmem:[#allocation91_spill] sm:$0xff]  ;;  %v15011_v7 = vld [vmem:[#allocation61_spill] sm:$0xff] }
 0x9ef   :  { %v12926_v4 = vpop.f32.mrf.mxu3  ;;  %v12928_v36 = vpop.f32.mrf.mxu0  ;;  %v5295_v13 = vadd.f32 %v12821_v26, %v5082_v47  ;;  %v5510_v55 = vadd.f32 %v5495_v32, %v5297_v1  ;;  %v4936_v49 = vadd.f32 %v12688_v17, %v4723_v63  ;;  %v4462_v19 = vadd.f32 %v15006_v54, %v15005_v48  ;;  %v15007_v32 = vld [vmem:[#allocation70_spill] sm:$0xff] }
 0x9f0   :  { %v12932_v15 = vpop.f32.mrf.mxu1  ;;  %v5507_v30 = vadd.f32 %v5408_v41, %v5294_v14  ;;  %v5722_v25 = vadd.f32 %v5679_v51, %v5509_v52  ;;  %v4937_v60 = vadd.f32 %v12690_v20, %v4724_v5  ;;  %v4727_v41 = vadd.f32 %v15007_v32, %v4430_v39  ;;  %v15008_v20 = vld [vmem:[#allocation81_spill] sm:$0xff] }
 0x9f1   :  { %v5508_v18 = vadd.f32 %v5437_v28, %v5295_v13  ;;  %v5723_v26 = vadd.f32 %v5708_v6, %v5510_v55  ;;  %v5085_v11 = vadd.f32 %v12783_v58, %v4936_v49  ;;  %v4728_v6 = vadd.f32 %v15008_v20, %v4459_v44  ;;  %v15016_v20 = vld [vmem:[#allocation62_spill] sm:$0xff] }
 0x9f2   :  { %v5720_v42 = vadd.f32 %v5621_v56, %v5507_v30  ;;  %v5086_v28 = vadd.f32 %v12785_v53, %v4937_v60  ;;  %v4731_v56 = vadd.f32 %v12616_v10, %v4433_v2  ;;  %v4732_v52 = vadd.f32 %v12619_v29, %v4462_v19  ;;  %v15012_v60 = vld [vmem:[#allocation79_spill] sm:$0xff] }
 0x9f3   :  { %v5721_v37 = vadd.f32 %v5650_v21, %v5508_v18  ;;  %v4940_v39 = vadd.f32 %v12734_v27, %v4727_v41  ;;  %v5298_v21 = vadd.f32 %v12835_v24, %v5085_v11  ;;  %v5513_v53 = vadd.f32 %v12867_v9, %v12831_v23  ;;  %v15010_v23 = vld [vmem:[#allocation56_spill] sm:$0xff]  ;;  %v15014_v41 = vld [vmem:[#allocation77_spill] sm:$0xff] }
 0x9f4   :  { %v5299_v63 = vadd.f32 %v12837_v61, %v5086_v28  ;;  %v5514_v5 = vadd.f32 %v12869_v3, %v12833_v38  ;;  %v4941_v9 = vadd.f32 %v15010_v23, %v4728_v6  ;;  %v5517_v28 = vadd.f32 %v12875_v0, %v12847_v33  ;;  %v15017_v6 = vld [vmem:[#allocation64_spill] sm:$0xff] }
 0x9f5   :  { %v5511_v27 = vadd.f32 %v12871_v8, %v5298_v21  ;;  %v5726_v38 = vadd.f32 %v12891_v43, %v5513_v53  ;;  %v4944_v8 = vadd.f32 %v15011_v7, %v4731_v56  ;;  %v5518_v56 = vadd.f32 %v15017_v6, %v15016_v20  ;;  %v15020_v21 = vld [vmem:[#allocation90_spill] sm:$0xff]  ;;  %v15021_v53 = vld [vmem:[#allocation73_spill] sm:$0xff] }
 0x9f6   :  { %v5892_v47 = vpop.f32.mrf.mxu2  ;;  %v5512_v24 = vadd.f32 %v12873_v12, %v5299_v63  ;;  %v5727_v12 = vadd.f32 %v12893_v35, %v5514_v5  ;;  %v5730_v33 = vadd.f32 %v15020_v21, %v5517_v28  ;;  %v15034_v6 = vld [vmem:[#allocation65_spill] sm:$0xff] }
 0x9f7   :  { %v5935_v1 = vadd.f32 %v5892_v47, %v5722_v25  ;;  %v5921_v14 = vpop.f32.mrf.mxu3  ;;  %v5834_v62 = vpop.f32.mrf.mxu0  ;;  %v5724_v50 = vadd.f32 %v12895_v22, %v5511_v27  ;;  %v5093_v5 = vadd.f32 %v15021_v53, %v4944_v8  ;;  %v15022_v27 = vld [vmem:[#allocation49_spill] sm:$0xff] }
 0x9f8   :  { %v5936_v51 = vadd.f32 %v5921_v14, %v5723_v26  ;;  %v5933_v17 = vadd.f32 %v5834_v62, %v5720_v42  ;;  %v5863_v13 = vpop.f32.mrf.mxu1  ;;  %v5725_v44 = vadd.f32 %v12897_v46, %v5512_v24  ;;  %v5089_v26 = vadd.f32 %v15012_v60, %v4940_v39  ;;  %v15013_v42 = vld [vmem:[#allocation80_spill] sm:$0xff]  ;;  %v15015_v62 = vld [vmem:[#allocation78_spill] sm:$0xff] }
 0x9f9   :  { %v5934_v16 = vadd.f32 %v5863_v13, %v5721_v37  ;;  %v12972_v10 = vadd.f32 %v15009_v45, %v5935_v1  ;;  %v5090_v47 = vadd.f32 %v15013_v42, %v4941_v9  ;;  %v4945_v37 = vadd.f32 %v15014_v41, %v4732_v52  ;;  %v15024_v9 = vld [vmem:[#allocation47_spill] sm:$0xff]  ;;  %v15032_v41 = vld [vmem:[#allocation53_spill] sm:$0xff] }
 0x9fa   :  { %v12965_v58 = vadd.f32 %v15009_v45, %v5933_v17  ;;  %v12980_v61 = vadd.f32 %v15009_v45, %v5936_v51  ;;  %v5302_v1 = vadd.f32 %v12851_v34, %v5089_v26  ;;  %v15018_v34 = vld [vmem:[#allocation84_spill] sm:$0xff]  ;;  %v5731_v24 = vadd.f32 %v15022_v27, %v5518_v56 }
 0x9fb   :  { %v12975_v29 = vadd.f32 %v15009_v45, %v5934_v16  ;;  %v6007_v31 = vmul.f32 %v12972_v10, %v12972_v10  ;;  %v5303_v14 = vadd.f32 %v12853_v59, %v5090_v47  ;;  %v15019_v59 = vld [vmem:[#allocation74_spill] sm:$0xff]  ;;  %v15027_v47 = vld [vmem:[#allocation63_spill] sm:$0xff] }
 0x9fc   :  { %v6005_v55 = vmul.f32 %v12965_v58, %v12965_v58  ;;  %v6008_v22 = vmul.f32 %v12980_v61, %v12980_v61  ;;  %v5515_v52 = vadd.f32 %v15018_v34, %v5302_v1 }
 0x9fd   :  { %v5981_v3 = vadd.f32 %v12975_v29, %v12965_v58  ;;  %v6006_v30 = vmul.f32 %v12975_v29, %v12975_v29  ;;  %v5516_v16 = vadd.f32 %v15019_v59, %v5303_v14 }
 0x9fe   :  { %v5895_v57 = vpop.f32.mrf.mxu2 }
 0x9ff   :  { %v5939_v2 = vadd.f32 %v5895_v57, %v5726_v38  ;;  %v5924_v43 = vpop.f32.mrf.mxu3  ;;  %v5837_v18 = vpop.f32.mrf.mxu0  ;;  %v5982_v25 = vadd.f32 %v5981_v3, %v12972_v10  ;;  %v6021_v49 = vadd.f32 %v6006_v30, %v6005_v55  ;;  %v15023_v55 = vld [vmem:[#allocation46_spill] sm:$0xff]  ;;  %v5729_v38 = vadd.f32 %v15024_v9, %v5516_v16 }
 0xa00   :  { %v5937_v48 = vadd.f32 %v5837_v18, %v5724_v50  ;;  %v5866_v35 = vpop.f32.mrf.mxu1  ;;  %v5940_v46 = vadd.f32 %v5924_v43, %v5727_v12  ;;  %v5728_v23 = vadd.f32 %v15023_v55, %v5515_v52  ;;  %v15026_v43 = vld [vmem:[#allocation35_spill] sm:$0xff] }
 0xa01   :  { %v5938_v54 = vadd.f32 %v5866_v35, %v5725_v44  ;;  %v5983_v19 = vadd.f32 %v5982_v25, %v12980_v61  ;;  %v6022_v32 = vadd.f32 %v6021_v49, %v6007_v31  ;;  %v13011_v51 = vadd.f32 %v15015_v62, %v5939_v2  ;;  %v15025_v31 = vld [vmem:[#allocation88_spill] sm:$0xff]  ;;  %v15028_v35 = vld [vmem:[#allocation82_spill] sm:$0xff] }
 0xa02   :  { %v13006_v11 = vadd.f32 %v15015_v62, %v5937_v48  ;;  %v13024_v0 = vadd.f32 %v15015_v62, %v5940_v46  ;;  %v5094_v2 = vadd.f32 %v15025_v31, %v4945_v37  ;;  %v5306_v8 = vadd.f32 %v15026_v43, %v5093_v5 }
 0xa03   :  { %v13014_v17 = vadd.f32 %v15015_v62, %v5938_v54  ;;  %5984 = vadd.xlane.f32.xlu1 %v5983_v19  ;;  %v6023_v13 = vadd.f32 %v6022_v32, %v6008_v22  ;;  %v6011_v30 = vmul.f32 %v13011_v51, %v13011_v51  ;;  %v15029_v22 = vld [vmem:[#allocation83_spill] sm:$0xff]  ;;  %v15030_v54 = vld [vmem:[#allocation86_spill] sm:$0xff]  ;;  %v15031_v19 = vld [vmem:[#allocation85_spill] sm:$0xff] }
 0xa04   :  { %v6009_v39 = vmul.f32 %v13006_v11, %v13006_v11  ;;  %v6012_v26 = vmul.f32 %v13024_v0, %v13024_v0  ;;  %v5307_v48 = vadd.f32 %v15027_v47, %v5094_v2  ;;  %v5521_v46 = vadd.f32 %v15029_v22, %v15028_v35 }
 0xa05   :  { %v5986_v63 = vadd.f32 %v13014_v17, %v13006_v11  ;;  %v6010_v45 = vmul.f32 %v13014_v17, %v13014_v17  ;;  %6024 = vadd.xlane.f32.xlu2 %v6023_v13  ;;  %v5522_v32 = vadd.f32 %v15031_v19, %v15030_v54  ;;  %v15033_v13 = vld [vmem:[#allocation89_spill] sm:$0xff]  ;;  %v8348_v47 = vmov 7  }
 0xa06   :  { %v5898_v3 = vpop.f32.mrf.mxu2  ;;  %v5519_v20 = vadd.f32 %v15033_v13, %v5306_v8  ;;  %v5520_v56 = vadd.f32 %v15034_v6, %v5307_v48  ;;  %v5734_v34 = vadd.f32 %v12922_v40, %v5521_v46  ;;  %8273 = vset.pattern.permute.xlu1 %v8348_v47  ;;  %8274 = vset.pattern.permute.xlu0 %v8348_v47 }
 0xa07   :  { %v5943_v7 = vadd.f32 %v5898_v3, %v5730_v33  ;;  %v5927_v12 = vpop.f32.mrf.mxu3  ;;  %v5840_v50 = vpop.f32.mrf.mxu0  ;;  %v6026_v44 = vadd.f32 %v6010_v45, %v6009_v39  ;;  %v5987_v57 = vadd.f32 %v5986_v63, %v13011_v51  ;;  %v5735_v21 = vadd.f32 %v12926_v4, %v5522_v32  ;;  %8275 = vset.pattern.permute.xlu2 %v8348_v47 }
 0xa08   :  { %v5941_v18 = vadd.f32 %v5840_v50, %v5728_v23  ;;  %v5869_v25 = vpop.f32.mrf.mxu1  ;;  %v5944_v49 = vadd.f32 %v5927_v12, %v5731_v24  ;;  %v5732_v33 = vadd.f32 %v12928_v36, %v5519_v20  ;;  %v5733_v40 = vadd.f32 %v12932_v15, %v5520_v56 }
 0xa09   :  { %v5942_v60 = vadd.f32 %v5869_v25, %v5729_v38  ;;  %v6027_v42 = vadd.f32 %v6026_v44, %v6011_v30  ;;  %v13050_v1 = vadd.f32 %v15032_v41, %v5943_v7  ;;  %v5988_v28 = vadd.f32 %v5987_v57, %v13024_v0  ;;  %v15035_v30 = vld [vmem:[#allocation76_spill] sm:$0xff] }
 0xa0a   :  { %v13047_v37 = vadd.f32 %v15032_v41, %v5941_v18  ;;  %v13062_v59 = vadd.f32 %v15032_v41, %v5944_v49 }
 0xa0b   :  { %v13053_v14 = vadd.f32 %v15032_v41, %v5942_v60  ;;  %v6028_v62 = vadd.f32 %v6027_v42, %v6012_v26  ;;  %v6015_v45 = vmul.f32 %v13050_v1, %v13050_v1 }
 0xa0c   :  { %v6013_v52 = vmul.f32 %v13047_v37, %v13047_v37  ;;  %v6016_v4 = vmul.f32 %v13062_v59, %v13062_v59 }
 0xa0d   :  { %v5991_v16 = vadd.f32 %v13053_v14, %v13047_v37  ;;  %v6014_v39 = vmul.f32 %v13053_v14, %v13053_v14  ;;  %6029 = vadd.xlane.f32.xlu0 %v6028_v62  ;;  %5989 = vadd.xlane.f32.xlu2 %v5988_v28 }
 0xa0e   :  { %v5901_v63 = vpop.f32.mrf.mxu2 }
 0xa0f   :  { %v5947_v53 = vadd.f32 %v5901_v63, %v5734_v34  ;;  %v5930_v5 = vpop.f32.mrf.mxu3  ;;  %v5843_v27 = vpop.f32.mrf.mxu0  ;;  %v6031_v24 = vadd.f32 %v6014_v39, %v6013_v52  ;;  %v5992_v55 = vadd.f32 %v5991_v16, %v13050_v1 }
 0xa10   :  { %v5945_v23 = vadd.f32 %v5843_v27, %v5732_v33  ;;  %v5872_v9 = vpop.f32.mrf.mxu1  ;;  %v5948_v38 = vadd.f32 %v5930_v5, %v5735_v21 }
 0xa11   :  { %v5946_v3 = vadd.f32 %v5872_v9, %v5733_v40  ;;  %v6032_v36 = vadd.f32 %v6031_v24, %v6015_v45  ;;  %v13080_v7 = vadd.f32 %v15035_v30, %v5947_v53  ;;  %v5993_v44 = vadd.f32 %v5992_v55, %v13062_v59 }
 0xa12   :  { %v13077_v15 = vadd.f32 %v15035_v30, %v5945_v23  ;;  %v13089_v31 = vadd.f32 %v15035_v30, %v5948_v38 }
 0xa13   :  { %v13083_v12 = vadd.f32 %v15035_v30, %v5946_v3  ;;  %v6033_v50 = vadd.f32 %v6032_v36, %v6016_v4  ;;  %v6019_v8 = vmul.f32 %v13080_v7, %v13080_v7  ;;  %v13108_v30 = vld [vmem:[%s14286_s6] sm:$0xff] }
 0xa14   :  { %v6017_v57 = vmul.f32 %v13077_v15, %v13077_v15  ;;  %v6020_v49 = vmul.f32 %v13089_v31, %v13089_v31 }
 0xa15   :  { %v5996_v2 = vadd.f32 %v13083_v12, %v13077_v15  ;;  %v6018_v43 = vmul.f32 %v13083_v12, %v13083_v12  ;;  %6034 = vadd.xlane.f32.xlu1 %v6033_v50  ;;  %5994 = vadd.xlane.f32.xlu0 %v5993_v44 }
 0xa17   :  { %v6036_v18 = vadd.f32 %v6018_v43, %v6017_v57  ;;  %v5997_v25 = vadd.f32 %v5996_v2, %v13080_v7 }
 0xa19   :  { %v6037_v60 = vadd.f32 %v6036_v18, %v6019_v8  ;;  %v5998_v42 = vadd.f32 %v5997_v25, %v13089_v31 }
 0xa1b   :  { %v6038_v26 = vadd.f32 %v6037_v60, %v6020_v49 }
 0xa1d   :  { %6039 = vadd.xlane.f32.xlu2 %v6038_v26  ;;  %5999 = vadd.xlane.f32.xlu1 %v5998_v42 }
 0xa76   :  { %v5985_v48 = vpop.xlane.xlu1 %5984 }
 0xa77   :  { %v6001_v35 = vmul.f32 0.001953125, %v5985_v48  ;;  %v8330_v48 = vld [vmem:[%s14286_s6 + $0x8] sm:$0xff] }
 0xa78   :  { %v6025_v22 = vpop.xlane.xlu2 %6024 }
 0xa79   :  { %v6045_v46 = vmul.f32 %v6001_v35, %v6001_v35  ;;  %v6041_v54 = vmul.f32 0.001953125, %v6025_v22 }
 0xa7b   :  { %v6049_v19 = vsub.f32 %v6041_v54, %v6045_v46 }
 0xa7d   :  { %v6053_v32 = vadd.f32 1e-05, %v6049_v19 }
 0xa7f   :  { %8297 = vrsqrt.f32 %v6053_v32  ;;  %vm6063_vm15 = vweird.f32 %v6053_v32 }
 0xa80   :  { %v6030_v41 = vpop.xlane.xlu0 %6029  ;;  %v5990_v62 = vpop.xlane.xlu2 %5989 }
 0xa81   :  { %v6002_v28 = vmul.f32 0.001953125, %v5990_v62  ;;  %v6042_v13 = vmul.f32 0.001953125, %v6030_v41 }
 0xa83   :  { %v6046_v20 = vmul.f32 %v6002_v28, %v6002_v28 }
 0xa85   :  { %v8298_v6 = vpop.eup %8297  ;;  %v6050_v56 = vsub.f32 %v6042_v13, %v6046_v20  ;;  %v8331_v20 = vld [vmem:[%s14286_s6 + $0x10] sm:$0xff] }
 0xa86   :  { %v6058_v34 = vmul.f32 %v8298_v6, %v6053_v32  ;;  %vm6064_vm14 = vweird.f32 %v8298_v6 }
 0xa87   :  { %v6054_v52 = vadd.f32 1e-05, %v6050_v56  ;;  %vm6065_vm3 = vmor %vm6063_vm15, %vm6064_vm14 }
 0xa88   :  { %v6059_v16 = vmul.f32 %v8298_v6, %v6058_v34  ;;  %v6035_v39 = vpop.xlane.xlu1 %6034  ;;  %v5995_v21 = vpop.xlane.xlu0 %5994 }
 0xa89   :  { %8299 = vrsqrt.f32 %v6054_v52  ;;  %v13101_v33 = vmul.f32 0.001953125, %v5995_v21  ;;  %v6043_v63 = vmul.f32 0.001953125, %v6035_v39  ;;  %vm6073_vm7 = vweird.f32 %v6054_v52  ;;  %v8332_v39 = vld [vmem:[%s14286_s6 + $0x18] sm:$0xff] }
 0xa8a   :  { %v6060_v40 = vmul.f32 0.5, %v6059_v16 }
 0xa8b   :  { %v6047_v45 = vmul.f32 %v13101_v33, %v13101_v33 }
 0xa8c   :  { %v6061_v53 = vsub.f32 1.5, %v6060_v40 }
 0xa8d   :  { %v6051_v5 = vsub.f32 %v6043_v63, %v6047_v45  ;;  %v8349_v63 = vmov 8  }
 0xa8e   :  { %v6062_v27 = vmul.f32 %v8298_v6, %v6061_v53 }
 0xa8f   :  { %v8300_v24 = vpop.eup %8299  ;;  %v6055_v55 = vadd.f32 1e-05, %v6051_v5 }
 0xa90   :  { %v6068_v23 = vmul.f32 %v8300_v24, %v6054_v52  ;;  %v6040_v9 = vpop.xlane.xlu2 %6039  ;;  %v6000_v38 = vpop.xlane.xlu1 %5999  ;;  %v6066_v3 = vsel %vm6065_vm3, %v8298_v6, %v6062_v27  ;;  %vm6074_vm6 = vweird.f32 %v8300_v24 }
 0xa91   :  { %8301 = vrsqrt.f32 %v6055_v55  ;;  %v6004_v4 = vmul.f32 0.001953125, %v6000_v38  ;;  %v6097_v50 = vmul.f32 %v13108_v30, %v6066_v3  ;;  %v6044_v44 = vmul.f32 0.001953125, %v6040_v9  ;;  %vm6075_vm8 = vmor %vm6073_vm7, %vm6074_vm6 }
 0xa92   :  { %v6069_v36 = vmul.f32 %v8300_v24, %v6068_v23  ;;  %vm6083_vm10 = vweird.f32 %v6055_v55 }
 0xa93   :  { %v6048_v57 = vmul.f32 %v6004_v4, %v6004_v4  ;;  %6127 = vperm.xlu1 %8273, %v6097_v50   ;;  %v6101_v43 = vmul.f32 %v6097_v50, %v6001_v35 }
 0xa94   :  { %v6070_v2 = vmul.f32 0.5, %v6069_v36 }
 0xa95   :  { %v6052_v8 = vsub.f32 %v6044_v44, %v6048_v57  ;;  %6109 = vrot.lane.b32.xlu0 %v6101_v43, %s8336_s30 }
 0xa96   :  { %v6071_v18 = vsub.f32 1.5, %v6070_v2 }
 0xa97   :  { %v8302_v25 = vpop.eup %8301  ;;  %v6056_v49 = vadd.f32 1e-05, %v6052_v8 }
 0xa98   :  { %v6072_v60 = vmul.f32 %v8300_v24, %v6071_v18  ;;  %v6078_v26 = vmul.f32 %v8302_v25, %v6055_v55  ;;  %vm6084_vm9 = vweird.f32 %v8302_v25 }
 0xa99   :  { %8303 = vrsqrt.f32 %v6056_v49  ;;  %vm6085_vm11 = vmor %vm6083_vm10, %vm6084_vm9  ;;  %vm6093_vm13 = vweird.f32 %v6056_v49 }
 0xa9a   :  { %v6076_v42 = vsel %vm6075_vm8, %v8300_v24, %v6072_v60  ;;  %v6079_v47 = vmul.f32 %v8302_v25, %v6078_v26 }
 0xa9b   :  { %v6098_v22 = vmul.f32 %v8330_v48, %v6076_v42 }
 0xa9c   :  { %v6080_v35 = vmul.f32 0.5, %v6079_v47 }
 0xa9d   :  { %v6102_v46 = vmul.f32 %v6098_v22, %v6002_v28  ;;  %6132 = vperm.xlu0 %8274, %v6098_v22  }
 0xa9e   :  { %v6081_v54 = vsub.f32 1.5, %v6080_v35 }
 0xa9f   :  { %v8304_v19 = vpop.eup %8303  ;;  %6111 = vrot.lane.b32.xlu1 %v6102_v46, %s8336_s30 }
 0xaa0   :  { %v6082_v32 = vmul.f32 %v8302_v25, %v6081_v54  ;;  %v6088_v41 = vmul.f32 %v8304_v19, %v6056_v49  ;;  %vm6094_vm12 = vweird.f32 %v8304_v19 }
 0xaa1   :  { %vm6095_vm14 = vmor %vm6093_vm13, %vm6094_vm12 }
 0xaa2   :  { %v6086_v62 = vsel %vm6085_vm11, %v8302_v25, %v6082_v32  ;;  %v6089_v13 = vmul.f32 %v8304_v19, %v6088_v41 }
 0xaa3   :  { %v6099_v6 = vmul.f32 %v8331_v20, %v6086_v62  ;;  %v15043_v62 = vld [vmem:[#allocation2_spill] sm:$0xff] }
 0xaa4   :  { %v6090_v56 = vmul.f32 0.5, %v6089_v13  ;;  %vm15046_vm15 = vcmp.lt.s32.totalorder %v15043_v62, 113  ;;  %vm15049_vm3 = vcmp.lt.s32.totalorder %v15043_v62, 127  ;;  %vm15065_vm12 = vcmp.lt.s32.totalorder %v15043_v62, 112 }
 0xaa5   :  { %6137 = vperm.xlu2 %8275, %v6099_v6   ;;  %v6103_v16 = vmul.f32 %v6099_v6, %v13101_v33  ;;  %8278 = vset.pattern.permute.xlu0 %v8349_v63  ;;  %vm15051_vm6 = vmmov %vm15046_vm15 }
 0xaa6   :  { %v6091_v28 = vsub.f32 1.5, %v6090_v56  ;;  %vm15055_vm7 = vmmov %vm15049_vm3 }
 0xaa7   :  { %vm15057_vm8 = vmmov %vm15049_vm3 }
 0xaa8   :  { %v6092_v34 = vmul.f32 %v8304_v19, %v6091_v28  ;;  %vm15059_vm9 = vmmov %vm15049_vm3 }
 0xaa9   :  { %vm15061_vm10 = vmmov %vm15051_vm6 }
 0xaaa   :  { %v6096_v52 = vsel %vm6095_vm14, %v8304_v19, %v6092_v34  ;;  %vm15063_vm11 = vmmov %vm15051_vm6 }
 0xaab   :  { %v6100_v21 = vmul.f32 %v8332_v39, %v6096_v52  ;;  %vm15067_vm13 = vmmov %vm15065_vm12 }
 0xaac   :  { %vm15069_vm14 = vmmov %vm15065_vm12 }
 0xaad   :  { %v6104_v40 = vmul.f32 %v6100_v21, %v6004_v4  ;;  %6113 = vrot.lane.b32.xlu2 %v6103_v16, %s8336_s30  ;;  %6142 = vperm.xlu1 %8273, %v6100_v21  }
 0xaae   :  { %8276 = vset.pattern.permute.xlu2 %v8349_v63 }
 0xaaf   :  { %6115 = vrot.lane.b32.xlu0 %v6104_v40, %s8336_s30 }
 0xab5   :  { %8277 = vset.pattern.permute.xlu1 %v8349_v63 }
 0xaff   :  { %v13125_v45 = vpop.permute.xlu2 %6137 }
 0xb05   :  { %v6128_v27 = vpop.permute.xlu1 %6127 }
 0xb06   :  { %v6145_v4 = vmul.f32 %v6128_v27, %v12965_v58  ;;  %v6146_v36 = vmul.f32 %v6128_v27, %v12975_v29  ;;  %v6148_v50 = vmul.f32 %v6128_v27, %v12980_v61  ;;  %v6147_v25 = vmul.f32 %v6128_v27, %v12972_v10 }
 0xb07   :  { %v6114_v53 = vpop.permute.xlu2 %6113  ;;  %v6110_v5 = vpop.permute.xlu0 %6109 }
 0xb08   :  { %v6123_v33 = vsub.f32 %v8331_v20, %v6114_v53  ;;  %v6121_v24 = vsub.f32 %v13108_v30, %v6110_v5 }
 0xb0a   :  { %6173 = vperm.xlu0 %8278, %v6123_v33   ;;  %6163 = vperm.xlu2 %8276, %v6121_v24  }
 0xb0f   :  { %v6133_v9 = vpop.permute.xlu0 %6132 }
 0xb10   :  { %v6151_v49 = vmul.f32 %v6133_v9, %v13011_v51  ;;  %v6150_v42 = vmul.f32 %v6133_v9, %v13014_v17  ;;  %v6152_v35 = vmul.f32 %v6133_v9, %v13024_v0 }
 0xb11   :  { %v6112_v55 = vpop.permute.xlu1 %6111 }
 0xb12   :  { %v6122_v23 = vsub.f32 %v8330_v48, %v6112_v55  ;;  %v6149_v48 = vmul.f32 %v6133_v9, %v13006_v11  ;;  %v6154_v9 = vmul.f32 %v13125_v45, %v13053_v14 }
 0xb14   :  { %6168 = vperm.xlu1 %8277, %v6122_v23  }
 0xb1f   :  { %v13176_v10 = vpop.permute.xlu1 %6142 }
 0xb21   :  { %v6116_v38 = vpop.permute.xlu0 %6115 }
 0xb22   :  { %v6124_v3 = vsub.f32 %v8332_v39, %v6116_v38 }
 0xb24   :  { %6178 = vperm.xlu2 %8276, %v6124_v3  }
 0xb64   :  { %v6164_v44 = vpop.permute.xlu2 %6163 }
 0xb65   :  { %v6181_v57 = vadd.f32 %v6164_v44, %v6145_v4  ;;  %v6182_v2 = vadd.f32 %v6164_v44, %v6146_v36  ;;  %v6184_v43 = vadd.f32 %v6164_v44, %v6148_v50  ;;  %v6183_v58 = vadd.f32 %v6164_v44, %v6147_v25 }
 0xb67   :  { %v13131_v30 = vmax.f32 %v6181_v57, 0.0  ;;  %v13133_v8 = vmax.f32 %v6182_v2, 0.0  ;;  %v13135_v18 = vmax.f32 %v6184_v43, 0.0  ;;  %v13144_v29 = vmax.f32 %v6183_v58, 0.0 }
 0xb68   :  { %v6153_v57 = vmul.f32 %v13125_v45, %v13047_v37 }
 0xb69   :  { %15036 = vst [vmem:[#allocation48_spill] sm:$0xff] %v13131_v30  ;;  %6238 = vrot.lane.b32.xlu0 %v13135_v18, %s8333_s28  ;;  %6222 = vrot.lane.b32.xlu2 %v13133_v8, %s8333_s28 }
 0xb6a   :  { %15037 = vst [vmem:[#allocation42_spill] sm:$0xff] %v13133_v8  ;;  %6214 = vrot.lane.b32.xlu1 %v13131_v30, %s8333_s28 }
 0xb6b   :  { %15038 = vst [vmem:[#allocation38_spill] sm:$0xff] %v13135_v18 }
 0xb71   :  { %6295 = vrot.lane.b32.xlu0 %v13144_v29, %s8334_s29  ;;  %6279 = vrot.lane.b32.xlu2 %v13131_v30, %s8334_s29 }
 0xb72   :  { %6230 = vrot.lane.b32.xlu1 %v13144_v29, %s8333_s28 }
 0xb79   :  { %6519 = vrot.lane.b32.xlu0 %v13133_v8, %s8335_s0  ;;  %6303 = vrot.lane.b32.xlu2 %v13135_v18, %s8334_s29 }
 0xb7a   :  { %6287 = vrot.lane.b32.xlu1 %v13133_v8, %s8334_s29 }
 0xb7c   :  { %v6174_v32 = vpop.permute.xlu0 %6173 }
 0xb7d   :  { %v6190_v38 = vadd.f32 %v6174_v32, %v6154_v9  ;;  %v6189_v2 = vadd.f32 %v6174_v32, %v6153_v57 }
 0xb7e   :  { %v13218_v11 = vpop.permute.xlu2 %6178 }
 0xb7f   :  { %v13314_v44 = vmax.f32 %v6190_v38, 0.0 }
 0xb81   :  { %6664 = vrot.lane.b32.xlu0 %v13131_v30, %s8336_s30  ;;  %6527 = vrot.lane.b32.xlu2 %v13144_v29, %s8335_s0  ;;  %15045 = vst [vmem:[#allocation51_spill] sm:$0xff] %v13314_v44 }
 0xb82   :  { %6511 = vrot.lane.b32.xlu1 %v13131_v30, %s8335_s0 }
 0xb86   :  { %v6169_v61 = vpop.permute.xlu1 %6168 }
 0xb87   :  { %v6187_v60 = vadd.f32 %v6169_v61, %v6151_v49  ;;  %v6186_v51 = vadd.f32 %v6169_v61, %v6150_v42  ;;  %v6185_v17 = vadd.f32 %v6169_v61, %v6149_v48  ;;  %v6188_v46 = vadd.f32 %v6169_v61, %v6152_v35 }
 0xb88   :  { %v6155_v42 = vmul.f32 %v13125_v45, %v13050_v1 }
 0xb89   :  { %6906 = vrot.lane.b32.xlu0 %v13131_v30, %s8337_s8  ;;  %6680 = vrot.lane.b32.xlu2 %v13144_v29, %s8336_s30  ;;  %v13191_v26 = vmax.f32 %v6187_v60, 0.0  ;;  %v13200_v47 = vmax.f32 %v6186_v51, 0.0  ;;  %v13209_v22 = vmax.f32 %v6185_v17, 0.0  ;;  %v13220_v54 = vmax.f32 %v6188_v46, 0.0 }
 0xb8a   :  { %6535 = vrot.lane.b32.xlu1 %v13135_v18, %s8335_s0  ;;  %v13336_v60 = vmax.f32 %v6189_v2, 0.0  ;;  %v6156_v51 = vmul.f32 %v13125_v45, %v13062_v59  ;;  %v6191_v48 = vadd.f32 %v6174_v32, %v6155_v42 }
 0xb8b   :  { %15039 = vst [vmem:[#allocation39_spill] sm:$0xff] %v13191_v26 }
 0xb8c   :  { %15040 = vst [vmem:[#allocation37_spill] sm:$0xff] %v13200_v47  ;;  %v6192_v17 = vadd.f32 %v6174_v32, %v6156_v51  ;;  %v13364_v32 = vmax.f32 %v6191_v48, 0.0 }
 0xb8d   :  { %15041 = vst [vmem:[#allocation40_spill] sm:$0xff] %v13209_v22 }
 0xb8e   :  { %15042 = vst [vmem:[#allocation71_spill] sm:$0xff] %v13220_v54 }
 0xb8f   :  { %15048 = vst [vmem:[#allocation50_spill] sm:$0xff] %v13336_v60 }
 0xb90   :  { %15054 = vst [vmem:[#allocation69_spill] sm:$0xff] %v13364_v32 }
 0xb91   :  { %6930 = vrot.lane.b32.xlu0 %v13135_v18, %s8337_s8  ;;  %6672 = vrot.lane.b32.xlu2 %v13133_v8, %s8336_s30 }
 0xb92   :  { %6688 = vrot.lane.b32.xlu1 %v13135_v18, %s8336_s30 }
 0xb99   :  { %6914 = vrot.lane.b32.xlu0 %v13133_v8, %s8337_s8  ;;  %7059 = vrot.lane.b32.xlu2 %v13131_v30, %s8338_s23 }
 0xb9a   :  { %6922 = vrot.lane.b32.xlu1 %v13144_v29, %s8337_s8 }
 0xba1   :  { %7075 = vrot.lane.b32.xlu0 %v13144_v29, %s8338_s23  ;;  %7083 = vrot.lane.b32.xlu2 %v13135_v18, %s8338_s23 }
 0xba2   :  { %7212 = vrot.lane.b32.xlu1 %v13131_v30, %s8339_s13 }
 0xba9   :  { %7067 = vrot.lane.b32.xlu2 %v13133_v8, %s8338_s23  ;;  %6232 = vrot.lane.b32.xlu0 %v13191_v26, %s8333_s28 }
 0xbaa   :  { %7236 = vrot.lane.b32.xlu1 %v13135_v18, %s8339_s13 }
 0xbb1   :  { %7228 = vrot.lane.b32.xlu2 %v13144_v29, %s8339_s13  ;;  %6289 = vrot.lane.b32.xlu0 %v13200_v47, %s8334_s29 }
 0xbb2   :  { %7220 = vrot.lane.b32.xlu1 %v13133_v8, %s8339_s13 }
 0xbb9   :  { %6513 = vrot.lane.b32.xlu0 %v13209_v22, %s8335_s0  ;;  %6216 = vrot.lane.b32.xlu2 %v13209_v22, %s8333_s28 }
 0xbba   :  { %6224 = vrot.lane.b32.xlu1 %v13200_v47, %s8333_s28 }
 0xbc1   :  { %6682 = vrot.lane.b32.xlu0 %v13191_v26, %s8336_s30  ;;  %6240 = vrot.lane.b32.xlu2 %v13220_v54, %s8333_s28 }
 0xbc2   :  { %6281 = vrot.lane.b32.xlu1 %v13209_v22, %s8334_s29 }
 0xbc3   :  { %v6223_v0 = vpop.permute.xlu2 %6222 }
 0xbc9   :  { %6674 = vrot.lane.b32.xlu0 %v13200_v47, %s8336_s30  ;;  %6297 = vrot.lane.b32.xlu2 %v13191_v26, %s8334_s29 }
 0xbca   :  { %6305 = vrot.lane.b32.xlu1 %v13220_v54, %s8334_s29 }
 0xbcb   :  { %v6280_v19 = vpop.permute.xlu2 %6279 }
 0xbd1   :  { %6908 = vrot.lane.b32.xlu0 %v13209_v22, %s8337_s8  ;;  %6521 = vrot.lane.b32.xlu2 %v13200_v47, %s8335_s0 }
 0xbd2   :  { %6529 = vrot.lane.b32.xlu1 %v13191_v26, %s8335_s0 }
 0xbd3   :  { %v6304_v41 = vpop.permute.xlu2 %6303 }
 0xbd4   :  { %v13242_v13 = vsel %vm111_vm0, %v6304_v41, %v6280_v19 }
 0xbd9   :  { %7085 = vrot.lane.b32.xlu0 %v13220_v54, %s8338_s23  ;;  %6537 = vrot.lane.b32.xlu2 %v13220_v54, %s8335_s0 }
 0xbda   :  { %6666 = vrot.lane.b32.xlu1 %v13209_v22, %s8336_s30 }
 0xbdb   :  { %v6239_v20 = vpop.permute.xlu0 %6238  ;;  %v6528_v6 = vpop.permute.xlu2 %6527 }
 0xbdc   :  { %v6215_v56 = vpop.permute.xlu1 %6214 }
 0xbdd   :  { %v13252_v28 = vsel %vm70_vm1, %v6215_v56, %v6223_v0  ;;  %v13256_v34 = vsel %vm70_vm1, %v6239_v20, %v6215_v56 }
 0xbe1   :  { %7077 = vrot.lane.b32.xlu0 %v13191_v26, %s8338_s23  ;;  %6690 = vrot.lane.b32.xlu2 %v13220_v54, %s8336_s30 }
 0xbe2   :  { %6932 = vrot.lane.b32.xlu1 %v13220_v54, %s8337_s8 }
 0xbe3   :  { %v6296_v52 = vpop.permute.xlu0 %6295  ;;  %v6681_v16 = vpop.permute.xlu2 %6680 }
 0xbe4   :  { %v13266_v39 = vsel %vm111_vm0, %v6296_v52, %v6304_v41  ;;  %v6231_v21 = vpop.permute.xlu1 %6230  ;;  %v13366_v41 = vmax.f32 %v6192_v17, 0.0 }
 0xbe5   :  { %v13270_v40 = vsel %vm70_vm1, %v6231_v21, %v6239_v20  ;;  %v13274_v63 = vsel %vm70_vm1, %v6223_v0, %v6231_v21 }
 0xbe9   :  { %7069 = vrot.lane.b32.xlu0 %v13200_v47, %s8338_s23  ;;  %7061 = vrot.lane.b32.xlu2 %v13209_v22, %s8338_s23 }
 0xbea   :  { %6924 = vrot.lane.b32.xlu1 %v13191_v26, %s8337_s8 }
 0xbeb   :  { %v6520_v53 = vpop.permute.xlu0 %6519  ;;  %v6673_v5 = vpop.permute.xlu2 %6672 }
 0xbec   :  { %v13284_v33 = vsel %vm435_vm4, %v6520_v53, %v6528_v6  ;;  %v13288_v27 = vsel %vm633_vm5, %v6673_v5, %v6681_v16  ;;  %v6288_v24 = vpop.permute.xlu1 %6287 }
 0xbed   :  { %v13292_v55 = vsel %vm111_vm0, %v6288_v24, %v6296_v52  ;;  %v13296_v23 = vsel %vm111_vm0, %v6280_v19, %v6288_v24 }
 0xbf1   :  { %7367 = vrot.lane.b32.xlu0 %v13209_v22, %s8340_s22  ;;  %7238 = vrot.lane.b32.xlu2 %v13220_v54, %s8339_s13 }
 0xbf2   :  { %6916 = vrot.lane.b32.xlu1 %v13200_v47, %s8337_s8 }
 0xbf3   :  { %v6665_v3 = vpop.permute.xlu0 %6664  ;;  %v7060_v4 = vpop.permute.xlu2 %7059 }
 0xbf4   :  { %v13308_v36 = vsel %vm633_vm5, %v6665_v3, %v6673_v5  ;;  %v6512_v50 = vpop.permute.xlu1 %6511 }
 0xbf5   :  { %15044 = vst [vmem:[#allocation41_spill] sm:$0xff] %v13308_v36  ;;  %v13312_v14 = vsel %vm435_vm4, %v6512_v50, %v6520_v53 }
 0xbf9   :  { %6226 = vrot.lane.b32.xlu0 %v13314_v44, %s8333_s28  ;;  %7230 = vrot.lane.b32.xlu2 %v13191_v26, %s8339_s13 }
 0xbfa   :  { %7214 = vrot.lane.b32.xlu1 %v13209_v22, %s8339_s13 }
 0xbfb   :  { %v6907_v43 = vpop.permute.xlu0 %6906  ;;  %v7084_v25 = vpop.permute.xlu2 %7083 }
 0xbfc   :  { %v13326_v58 = vsel %vm15046_vm15, %v7084_v25, %v7060_v4  ;;  %v6536_v61 = vpop.permute.xlu1 %6535  ;;  %vm15071_vm15 = vmmov %vm15065_vm12 }
 0xbfd   :  { %15047 = vst [vmem:[#allocation43_spill] sm:$0xff] %v13326_v58  ;;  %v13330_v37 = vsel %vm435_vm4, %v6528_v6, %v6536_v61  ;;  %v13334_v49 = vsel %vm435_vm4, %v6536_v61, %v6512_v50 }
 0xc01   :  { %6283 = vrot.lane.b32.xlu0 %v13336_v60, %s8334_s29  ;;  %7222 = vrot.lane.b32.xlu2 %v13200_v47, %s8339_s13 }
 0xc02   :  { %7391 = vrot.lane.b32.xlu1 %v13220_v54, %s8340_s22 }
 0xc03   :  { %v6931_v35 = vpop.permute.xlu0 %6930  ;;  %v7068_v46 = vpop.permute.xlu2 %7067 }
 0xc04   :  { %v13350_v0 = vsel %vm15049_vm3, %v6931_v35, %v6907_v43  ;;  %v13354_v1 = vsel %vm15051_vm6, %v7060_v4, %v7068_v46  ;;  %v6689_v59 = vpop.permute.xlu1 %6688  ;;  %vm15073_vm3 = vmmov %vm15051_vm6 }
 0xc05   :  { %15050 = vst [vmem:[#allocation66_spill] sm:$0xff] %v13350_v0  ;;  %v13358_v45 = vsel %vm633_vm5, %v6681_v16, %v6689_v59  ;;  %v13362_v19 = vsel %vm633_vm5, %v6689_v59, %v6665_v3  ;;  %vm15079_vm6 = vmmov %vm15073_vm3 }
 0xc06   :  { %15052 = vst [vmem:[#allocation68_spill] sm:$0xff] %v13354_v1  ;;  %v6158_v1 = vmul.f32 %v13176_v10, %v13083_v12 }
 0xc07   :  { %15053 = vst [vmem:[#allocation92_spill] sm:$0xff] %v13362_v19 }
 0xc09   :  { %6307 = vrot.lane.b32.xlu0 %v13366_v41, %s8334_s29  ;;  %6234 = vrot.lane.b32.xlu2 %v13364_v32, %s8333_s28 }
 0xc0a   :  { %6218 = vrot.lane.b32.xlu1 %v13336_v60, %s8333_s28 }
 0xc0b   :  { %v6915_v20 = vpop.permute.xlu0 %6914  ;;  %v7229_v6 = vpop.permute.xlu2 %7228 }
 0xc0c   :  { %v13376_v56 = vsel %vm15055_vm7, %v6907_v43, %v6915_v20  ;;  %v6923_v52 = vpop.permute.xlu1 %6922  ;;  %vm15081_vm7 = vmmov %vm15065_vm12 }
 0xc0d   :  { %15056 = vst [vmem:[#allocation44_spill] sm:$0xff] %v13376_v56  ;;  %v13380_v16 = vsel %vm15057_vm8, %v6923_v52, %v6931_v35  ;;  %v13384_v21 = vsel %vm15059_vm9, %v6915_v20, %v6923_v52  ;;  %vm15084_vm9 = vmmov %vm15073_vm3 }
 0xc0e   :  { %15058 = vst [vmem:[#allocation67_spill] sm:$0xff] %v13380_v16 }
 0xc0f   :  { %15060 = vst [vmem:[#allocation36_spill] sm:$0xff] %v13384_v21 }
 0xc11   :  { %6539 = vrot.lane.b32.xlu0 %v13366_v41, %s8335_s0  ;;  %6291 = vrot.lane.b32.xlu2 %v13314_v44, %s8334_s29 }
 0xc12   :  { %6242 = vrot.lane.b32.xlu1 %v13366_v41, %s8333_s28 }
 0xc13   :  { %v7076_v53 = vpop.permute.xlu0 %7075  ;;  %v6217_v5 = vpop.permute.xlu2 %6216 }
 0xc14   :  { %v13394_v24 = vsel %vm15061_vm10, %v7076_v53, %v7084_v25  ;;  %v13398_v9 = vsel %vm15063_vm11, %v7068_v46, %v7076_v53  ;;  %v7213_v38 = vpop.permute.xlu1 %7212  ;;  %vm15086_vm10 = vmmov %vm15073_vm3 }
 0xc15   :  { %15062 = vst [vmem:[#allocation59_spill] sm:$0xff] %v13394_v24  ;;  %vm15088_vm11 = vmmov %vm15081_vm7 }
 0xc16   :  { %15064 = vst [vmem:[#allocation72_spill] sm:$0xff] %v13398_v9 }
 0xc19   :  { %6684 = vrot.lane.b32.xlu0 %v13364_v32, %s8336_s30  ;;  %6515 = vrot.lane.b32.xlu2 %v13336_v60, %s8335_s0 }
 0xc1a   :  { %6299 = vrot.lane.b32.xlu1 %v13364_v32, %s8334_s29 }
 0xc1b   :  { %v6233_v3 = vpop.permute.xlu0 %6232  ;;  %v6241_v4 = vpop.permute.xlu2 %6240 }
 0xc1c   :  { %v13408_v50 = vsel %vm70_vm1, %v6233_v3, %v6241_v4  ;;  %v13412_v57 = vsel %vm70_vm1, %v6241_v4, %v6217_v5  ;;  %v7237_v2 = vpop.permute.xlu1 %7236 }
 0xc1d   :  { %v13416_v43 = vsel %vm15065_vm12, %v7229_v6, %v7237_v2  ;;  %v13420_v25 = vsel %vm15067_vm13, %v7237_v2, %v7213_v38  ;;  %vm15090_vm12 = vmmov %vm15057_vm8 }
 0xc1e   :  { %15066 = vst [vmem:[#allocation54_spill] sm:$0xff] %v13416_v43  ;;  %vm15093_vm13 = vmmov %vm15057_vm8 }
 0xc1f   :  { %15068 = vst [vmem:[#allocation52_spill] sm:$0xff] %v13420_v25 }
 0xc21   :  { %6668 = vrot.lane.b32.xlu0 %v13336_v60, %s8336_s30  ;;  %6692 = vrot.lane.b32.xlu2 %v13366_v41, %s8336_s30 }
 0xc22   :  { %6523 = vrot.lane.b32.xlu1 %v13314_v44, %s8335_s0 }
 0xc23   :  { %v6290_v61 = vpop.permute.xlu0 %6289  ;;  %v6298_v42 = vpop.permute.xlu2 %6297 }
 0xc24   :  { %v13430_v51 = vsel %vm111_vm0, %v6290_v61, %v6298_v42  ;;  %v7221_v48 = vpop.permute.xlu1 %7220 }
 0xc25   :  { %v13434_v17 = vsel %vm15069_vm14, %v7221_v48, %v7229_v6  ;;  %v13438_v35 = vsel %vm15071_vm15, %v7213_v38, %v7221_v48  ;;  %vm15095_vm14 = vmmov %vm15057_vm8 }
 0xc26   :  { %15070 = vst [vmem:[#allocation87_spill] sm:$0xff] %v13434_v17  ;;  %vm15097_vm15 = vmmov %vm15081_vm7 }
 0xc27   :  { %15072 = vst [vmem:[#allocation45_spill] sm:$0xff] %v13438_v35 }
 0xc29   :  { %6910 = vrot.lane.b32.xlu0 %v13336_v60, %s8337_s8  ;;  %6926 = vrot.lane.b32.xlu2 %v13364_v32, %s8337_s8 }
 0xc2a   :  { %6531 = vrot.lane.b32.xlu1 %v13364_v32, %s8335_s0 }
 0xc2b   :  { %v6514_v46 = vpop.permute.xlu0 %6513  ;;  %v6522_v59 = vpop.permute.xlu2 %6521 }
 0xc2c   :  { %v13448_v20 = vsel %vm435_vm4, %v6514_v46, %v6522_v59  ;;  %v6225_v6 = vpop.permute.xlu1 %6224 }
 0xc2d   :  { %v13452_v52 = vsel %vm70_vm1, %v6225_v6, %v6233_v3  ;;  %v13456_v53 = vsel %vm70_vm1, %v6217_v5, %v6225_v6 }
 0xc31   :  { %7063 = vrot.lane.b32.xlu0 %v13336_v60, %s8338_s23  ;;  %6918 = vrot.lane.b32.xlu2 %v13314_v44, %s8337_s8 }
 0xc32   :  { %6676 = vrot.lane.b32.xlu1 %v13314_v44, %s8336_s30 }
 0xc33   :  { %v6683_v38 = vpop.permute.xlu0 %6682  ;;  %v6538_v4 = vpop.permute.xlu2 %6537 }
 0xc34   :  { %v13466_v2 = vsel %vm435_vm4, %v6538_v4, %v6514_v46  ;;  %v6282_v3 = vpop.permute.xlu1 %6281 }
 0xc35   :  { %v13470_v5 = vsel %vm111_vm0, %v6282_v3, %v6290_v61 }
 0xc39   :  { %7240 = vrot.lane.b32.xlu0 %v13366_v41, %s8339_s13  ;;  %7216 = vrot.lane.b32.xlu2 %v13336_v60, %s8339_s13 }
 0xc3a   :  { %6934 = vrot.lane.b32.xlu1 %v13366_v41, %s8337_s8 }
 0xc3b   :  { %v6675_v48 = vpop.permute.xlu0 %6674  ;;  %v6691_v6 = vpop.permute.xlu2 %6690 }
 0xc3c   :  { %v13480_v46 = vsel %vm633_vm5, %v6675_v48, %v6683_v38  ;;  %v13484_v17 = vsel %vm633_vm5, %v6683_v38, %v6691_v6  ;;  %v6306_v61 = vpop.permute.xlu1 %6305 }
 0xc3d   :  { %v13488_v35 = vsel %vm111_vm0, %v6298_v42, %v6306_v61  ;;  %v13492_v43 = vsel %vm111_vm0, %v6306_v61, %v6282_v3  ;;  %v6157_v61 = vmul.f32 %v13176_v10, %v13077_v15 }
 0xc41   :  { %7232 = vrot.lane.b32.xlu0 %v13364_v32, %s8339_s13  ;;  %7393 = vrot.lane.b32.xlu2 %v13366_v41, %s8340_s22 }
 0xc42   :  { %7087 = vrot.lane.b32.xlu1 %v13366_v41, %s8338_s23 }
 0xc43   :  { %v6909_v38 = vpop.permute.xlu0 %6908  ;;  %v7062_v25 = vpop.permute.xlu2 %7061 }
 0xc44   :  { %v6530_v9 = vpop.permute.xlu1 %6529 }
 0xc45   :  { %v13502_v42 = vsel %vm435_vm4, %v6530_v9, %v6538_v4  ;;  %v13506_v3 = vsel %vm435_vm4, %v6522_v59, %v6530_v9  ;;  %v6193_v4 = vadd.f32 %v13218_v11, %v6157_v61  ;;  %v6194_v9 = vadd.f32 %v13218_v11, %v6158_v1 }
 0xc46   :  { %v6160_v1 = vmul.f32 %v13176_v10, %v13089_v31 }
 0xc47   :  { %v13532_v56 = vmax.f32 %v6193_v4, 0.0  ;;  %v13534_v61 = vmax.f32 %v6194_v9, 0.0 }
 0xc49   :  { %7224 = vrot.lane.b32.xlu0 %v13314_v44, %s8339_s13  ;;  %7385 = vrot.lane.b32.xlu2 %v13364_v32, %s8340_s22  ;;  %15077 = vst [vmem:[#allocation58_spill] sm:$0xff] %v13532_v56 }
 0xc4a   :  { %7079 = vrot.lane.b32.xlu1 %v13364_v32, %s8338_s23  ;;  %15078 = vst [vmem:[#allocation60_spill] sm:$0xff] %v13534_v61 }
 0xc4b   :  { %v7086_v59 = vpop.permute.xlu0 %7085  ;;  %v7239_v58 = vpop.permute.xlu2 %7238 }
 0xc4c   :  { %v13522_v15 = vsel %vm15073_vm3, %v7086_v59, %v7062_v25  ;;  %v6667_v12 = vpop.permute.xlu1 %6666  ;;  %vm15099_vm3 = vmmov %vm15081_vm7 }
 0xc4d   :  { %15074 = vst [vmem:[#allocation55_spill] sm:$0xff] %v13522_v15  ;;  %v13526_v24 = vsel %vm633_vm5, %v6667_v12, %v6675_v48  ;;  %v13530_v21 = vsel %vm633_vm5, %v6691_v6, %v6667_v12  ;;  %v6196_v48 = vadd.f32 %v13218_v11, %v6160_v1  ;;  %v6159_v1 = vmul.f32 %v13176_v10, %v13080_v7 }
 0xc4e   :  { %15075 = vst [vmem:[#allocation57_spill] sm:$0xff] %v13526_v24 }
 0xc4f   :  { %15076 = vst [vmem:[#allocation75_spill] sm:$0xff] %v13530_v21  ;;  %v13557_v0 = vmax.f32 %v6196_v48, 0.0 }
 0xc51   :  { %6220 = vrot.lane.b32.xlu0 %v13532_v56, %s8333_s28  ;;  %6228 = vrot.lane.b32.xlu2 %v13534_v61, %s8333_s28 }
 0xc52   :  { %7071 = vrot.lane.b32.xlu1 %v13314_v44, %s8338_s23 }
 0xc53   :  { %v7078_v6 = vpop.permute.xlu0 %7077  ;;  %v7231_v12 = vpop.permute.xlu2 %7230 }
 0xc54   :  { %v13547_v4 = vsel %vm15079_vm6, %v7078_v6, %v7086_v59  ;;  %v13551_v31 = vsel %vm15081_vm7, %v7231_v12, %v7239_v58  ;;  %v6933_v9 = vpop.permute.xlu1 %6932  ;;  %v6195_v59 = vadd.f32 %v13218_v11, %v6159_v1  ;;  %vm15102_vm6 = vmmov %vm15057_vm8 }
 0xc55   :  { %15080 = vst [vmem:[#allocation70_spill] sm:$0xff] %v13547_v4  ;;  %v13555_v15 = vsel %vm15057_vm8, %v6933_v9, %v6909_v38  ;;  %vm15106_vm7 = vmmov %vm15102_vm6 }
 0xc56   :  { %15082 = vst [vmem:[#allocation81_spill] sm:$0xff] %v13551_v31  ;;  %v13584_v11 = vmax.f32 %v6195_v59, 0.0  ;;  %vm15110_vm8 = vmmov %vm15099_vm3 }
 0xc57   :  { %15083 = vst [vmem:[#allocation91_spill] sm:$0xff] %v13555_v15 }
 0xc59   :  { %6244 = vrot.lane.b32.xlu0 %v13557_v0, %s8333_s28  ;;  %6285 = vrot.lane.b32.xlu2 %v13532_v56, %s8334_s29 }
 0xc5a   :  { %7369 = vrot.lane.b32.xlu1 %v13336_v60, %s8340_s22 }
 0xc5b   :  { %v7070_v31 = vpop.permute.xlu0 %7069  ;;  %v7223_v4 = vpop.permute.xlu2 %7222 }
 0xc5c   :  { %v13570_v48 = vsel %vm15084_vm9, %v7070_v31, %v7078_v6  ;;  %v13574_v7 = vsel %vm15086_vm10, %v7062_v25, %v7070_v31  ;;  %v13578_v10 = vsel %vm15088_vm11, %v7223_v4, %v7231_v12  ;;  %v6925_v16 = vpop.permute.xlu1 %6924  ;;  %vm15112_vm9 = vmmov %vm15102_vm6 }
 0xc5d   :  { %15085 = vst [vmem:[#allocation56_spill] sm:$0xff] %v13570_v48  ;;  %v13582_v22 = vsel %vm15090_vm12, %v6925_v16, %v6933_v9  ;;  %vm15114_vm10 = vmmov %vm15102_vm6  ;;  %vm15118_vm12 = vcmp.lt.s32.totalorder %v15043_v62, 113 }
 0xc5e   :  { %15087 = vst [vmem:[#allocation61_spill] sm:$0xff] %v13574_v7  ;;  %vm15116_vm11 = vmmov %vm15099_vm3 }
 0xc5f   :  { %15089 = vst [vmem:[#allocation79_spill] sm:$0xff] %v13578_v10 }
 0xc60   :  { %15091 = vst [vmem:[#allocation80_spill] sm:$0xff] %v13582_v22 }
 0xc61   :  { %6301 = vrot.lane.b32.xlu0 %v13584_v11, %s8334_s29  ;;  %6309 = vrot.lane.b32.xlu2 %v13557_v0, %s8334_s29 }
 0xc62   :  { %6236 = vrot.lane.b32.xlu1 %v13584_v11, %s8333_s28 }
 0xc63   :  { %v13592_v25 = vpop.permute.xlu0 %7367  ;;  %v6235_v6 = vpop.permute.xlu2 %6234 }
 0xc64   :  { %15092 = vst [vmem:[#allocation77_spill] sm:$0xff] %v13592_v25  ;;  %v6917_v12 = vpop.permute.xlu1 %6916 }
 0xc65   :  { %v13596_v31 = vsel %vm15093_vm13, %v6917_v12, %v6925_v16  ;;  %v13600_v9 = vsel %vm15095_vm14, %v6909_v38, %v6917_v12  ;;  %vm15120_vm13 = vmmov %vm15099_vm3 }
 0xc66   :  { %15094 = vst [vmem:[#allocation78_spill] sm:$0xff] %v13596_v31  ;;  %vm15122_vm14 = vmmov %vm15099_vm3 }
 0xc67   :  { %15096 = vst [vmem:[#allocation62_spill] sm:$0xff] %v13600_v9 }
 0xc69   :  { %6525 = vrot.lane.b32.xlu0 %v13534_v61, %s8335_s0  ;;  %6541 = vrot.lane.b32.xlu2 %v13557_v0, %s8335_s0 }
 0xc6a   :  { %6293 = vrot.lane.b32.xlu1 %v13534_v61, %s8334_s29 }
 0xc6b   :  { %v6227_v1 = vpop.permute.xlu0 %6226  ;;  %v6292_v59 = vpop.permute.xlu2 %6291 }
 0xc6c   :  { %v13610_v25 = vsel %vm70_vm1, %v6227_v1, %v6235_v6  ;;  %v7215_v16 = vpop.permute.xlu1 %7214 }
 0xc6d   :  { %v13614_v38 = vsel %vm15097_vm15, %v7215_v16, %v7223_v4  ;;  %v13618_v12 = vsel %vm15099_vm3, %v7239_v58, %v7215_v16  ;;  %vm15125_vm15 = vmmov %vm15118_vm12 }
 0xc6e   :  { %15098 = vst [vmem:[#allocation64_spill] sm:$0xff] %v13614_v38  ;;  %vm15126_vm3 = vmmov %vm15118_vm12 }
 0xc6f   :  { %15100 = vst [vmem:[#allocation84_spill] sm:$0xff] %v13618_v12 }
 0xc71   :  { %6533 = vrot.lane.b32.xlu0 %v13584_v11, %s8335_s0  ;;  %6694 = vrot.lane.b32.xlu2 %v13557_v0, %s8336_s30 }
 0xc72   :  { %6517 = vrot.lane.b32.xlu1 %v13532_v56, %s8335_s0 }
 0xc73   :  { %v6284_v10 = vpop.permute.xlu0 %6283  ;;  %v6516_v48 = vpop.permute.xlu2 %6515 }
 0xc74   :  { %v13628_v7 = vsel %vm111_vm0, %v6284_v10, %v6292_v59  ;;  %v13630_v4 = vpop.permute.xlu1 %7391 }
 0xc75   :  { %15101 = vst [vmem:[#allocation74_spill] sm:$0xff] %v13630_v4 }
 0xc79   :  { %6686 = vrot.lane.b32.xlu0 %v13584_v11, %s8336_s30  ;;  %6912 = vrot.lane.b32.xlu2 %v13532_v56, %s8337_s8 }
 0xc7a   :  { %7383 = vrot.lane.b32.xlu1 %v13191_v26, %s8340_s22 }
 0xc7b   :  { %v6308_v58 = vpop.permute.xlu0 %6307  ;;  %v6693_v16 = vpop.permute.xlu2 %6692 }
 0xc7c   :  { %v13640_v38 = vsel %vm111_vm0, %v6308_v58, %v6284_v10  ;;  %v6219_v12 = vpop.permute.xlu1 %6218 }
 0xc7d   :  { %v13644_v31 = vsel %vm70_vm1, %v6219_v12, %v6227_v1 }
 0xc81   :  { %7365 = vrot.lane.b32.xlu0 %v13131_v30, %s8340_s22  ;;  %6928 = vrot.lane.b32.xlu2 %v13584_v11, %s8337_s8 }
 0xc82   :  { %6678 = vrot.lane.b32.xlu1 %v13534_v61, %s8336_s30 }
 0xc83   :  { %v6540_v4 = vpop.permute.xlu0 %6539  ;;  %v6927_v9 = vpop.permute.xlu2 %6926 }
 0xc84   :  { %v13654_v10 = vsel %vm435_vm4, %v6540_v4, %v6516_v48  ;;  %v6243_v15 = vpop.permute.xlu1 %6242 }
 0xc85   :  { %v13658_v1 = vsel %vm70_vm1, %v6235_v6, %v6243_v15  ;;  %v13662_v30 = vsel %vm70_vm1, %v6243_v15, %v6219_v12 }
 0xc89   :  { %7389 = vrot.lane.b32.xlu0 %v13135_v18, %s8340_s22  ;;  %6920 = vrot.lane.b32.xlu2 %v13534_v61, %s8337_s8 }
 0xc8a   :  { %6670 = vrot.lane.b32.xlu1 %v13532_v56, %s8336_s30 }
 0xc8b   :  { %v6685_v22 = vpop.permute.xlu0 %6684  ;;  %v6919_v60 = vpop.permute.xlu2 %6918 }
 0xc8c   :  { %v13672_v36 = vsel %vm633_vm5, %v6685_v22, %v6693_v16  ;;  %v13676_v6 = vsel %vm15102_vm6, %v6919_v60, %v6927_v9  ;;  %v6300_v15 = vpop.permute.xlu1 %6299  ;;  %vm15128_vm6 = vmmov %vm15126_vm3 }
 0xc8d   :  { %15103 = vst [vmem:[#allocation90_spill] sm:$0xff] %v13676_v6  ;;  %v13680_v12 = vsel %vm111_vm0, %v6300_v15, %v6308_v58  ;;  %v13684_v19 = vsel %vm111_vm0, %v6292_v59, %v6300_v15 }
 0xc91   :  { %7065 = vrot.lane.b32.xlu0 %v13532_v56, %s8338_s23  ;;  %7089 = vrot.lane.b32.xlu2 %v13557_v0, %s8338_s23 }
 0xc92   :  { %6936 = vrot.lane.b32.xlu1 %v13557_v0, %s8337_s8 }
 0xc93   :  { %v6669_v26 = vpop.permute.xlu0 %6668  ;;  %v7217_v6 = vpop.permute.xlu2 %7216 }
 0xc94   :  { %v13694_v24 = vsel %vm633_vm5, %v6693_v16, %v6669_v26  ;;  %v6524_v58 = vpop.permute.xlu1 %6523 }
 0xc95   :  { %15104 = vst [vmem:[#allocation73_spill] sm:$0xff] %v13694_v24  ;;  %v13698_v59 = vsel %vm435_vm4, %v6516_v48, %v6524_v58 }
 0xc99   :  { %7226 = vrot.lane.b32.xlu0 %v13534_v61, %s8339_s13  ;;  %7081 = vrot.lane.b32.xlu2 %v13584_v11, %s8338_s23 }
 0xc9a   :  { %7073 = vrot.lane.b32.xlu1 %v13534_v61, %s8338_s23 }
 0xc9b   :  { %v6911_v15 = vpop.permute.xlu0 %6910  ;;  %v13706_v21 = vpop.permute.xlu2 %7393 }
 0xc9c   :  { %15105 = vst [vmem:[#allocation49_spill] sm:$0xff] %v13706_v21  ;;  %v13710_v16 = vsel %vm15106_vm7, %v6911_v15, %v6919_v60  ;;  %v6532_v32 = vpop.permute.xlu1 %6531  ;;  %vm15132_vm7 = vcmp.lt.s32.totalorder %v15043_v62, 111 }
 0xc9d   :  { %15107 = vst [vmem:[#allocation46_spill] sm:$0xff] %v13710_v16  ;;  %v13714_v48 = vsel %vm435_vm4, %v6532_v32, %v6540_v4  ;;  %v13718_v24 = vsel %vm435_vm4, %v6524_v58, %v6532_v32 }
 0xca1   :  { %7395 = vrot.lane.b32.xlu0 %v13557_v0, %s8340_s22  ;;  %7218 = vrot.lane.b32.xlu2 %v13532_v56, %s8339_s13 }
 0xca2   :  { %7242 = vrot.lane.b32.xlu1 %v13557_v0, %s8339_s13 }
 0xca3   :  { %v7064_v60 = vpop.permute.xlu0 %7063  ;;  %v13726_v16 = vpop.permute.xlu2 %7385 }
 0xca4   :  { %15108 = vst [vmem:[#allocation47_spill] sm:$0xff] %v13726_v16  ;;  %v6677_v18 = vpop.permute.xlu1 %6676 }
 0xca5   :  { %v13730_v4 = vsel %vm633_vm5, %v6677_v18, %v6685_v22  ;;  %v13734_v32 = vsel %vm633_vm5, %v6669_v26, %v6677_v18 }
 0xca6   :  { %15109 = vst [vmem:[#allocation88_spill] sm:$0xff] %v13734_v32 }
 0xca9   :  { %7387 = vrot.lane.b32.xlu0 %v13584_v11, %s8340_s22  ;;  %7377 = vrot.lane.b32.xlu2 %v13314_v44, %s8340_s22 }
 0xcaa   :  { %7234 = vrot.lane.b32.xlu1 %v13584_v11, %s8339_s13 }
 0xcab   :  { %v7241_v58 = vpop.permute.xlu0 %7240  ;;  %v13742_v16 = vpop.permute.xlu2 %6228 }
 0xcac   :  { %v13746_v22 = vsel %vm15110_vm8, %v7241_v58, %v7217_v6  ;;  %v6935_v54 = vpop.permute.xlu1 %6934  ;;  %vm15177_vm8 = vmmov %vm15126_vm3 }
 0xcad   :  { %15111 = vst [vmem:[#allocation35_spill] sm:$0xff] %v13746_v22  ;;  %v13750_v18 = vsel %vm15112_vm9, %v6927_v9, %v6935_v54  ;;  %v13754_v26 = vsel %vm15114_vm10, %v6935_v54, %v6911_v15  ;;  %vm15188_vm10 = vmmov %vm15126_vm3 }
 0xcae   :  { %15113 = vst [vmem:[#allocation63_spill] sm:$0xff] %v13750_v18  ;;  %v15124_v18 = vld [vmem:[#allocation3_spill] sm:$0xff] }
 0xcaf   :  { %15115 = vst [vmem:[#allocation82_spill] sm:$0xff] %v13754_v26 }
 0xcb1   :  { %7375 = vrot.lane.b32.xlu0 %v13200_v47, %s8340_s22  ;;  %7379 = vrot.lane.b32.xlu2 %v13534_v61, %s8340_s22 }
 0xcb2   :  { %7371 = vrot.lane.b32.xlu1 %v13532_v56, %s8340_s22  ;;  %v6335_v56 = vmul.f32 %v13640_v38, %v15124_v18 }
 0xcb3   :  { %v7233_v44 = vpop.permute.xlu0 %7232  ;;  %v6286_v22 = vpop.permute.xlu2 %6285 }
 0xcb4   :  { %v13764_v32 = vsel %vm15116_vm11, %v7233_v44, %v7241_v58  ;;  %v7088_v9 = vpop.permute.xlu1 %7087  ;;  %vm15191_vm11 = vmmov %vm15126_vm3 }
 0xcb5   :  { %15117 = vst [vmem:[#allocation83_spill] sm:$0xff] %v13764_v32  ;;  %v13768_v54 = vsel %vm15118_vm12, %v7088_v9, %v7064_v60  ;;  %vm15198_vm12 = vmmov %vm15120_vm13 }
 0xcb6   :  { %15119 = vst [vmem:[#allocation86_spill] sm:$0xff] %v13768_v54 }
 0xcb9   :  { %7373 = vrot.lane.b32.xlu2 %v13133_v8, %s8340_s22 }
 0xcba   :  { %7381 = vrot.lane.b32.xlu1 %v13144_v29, %s8340_s22 }
 0xcbb   :  { %v7225_v15 = vpop.permute.xlu0 %7224  ;;  %v6310_v47 = vpop.permute.xlu2 %6309 }
 0xcbc   :  { %v13776_v26 = vsel %vm15120_vm13, %v7225_v15, %v7233_v44  ;;  %v13780_v58 = vsel %vm15122_vm14, %v7217_v6, %v7225_v15  ;;  %v6326_v32 = vsel %vm111_vm0, %v6310_v47, %v6286_v22  ;;  %v7080_v54 = vpop.permute.xlu1 %7079  ;;  %v6331_v44 = vmul.f32 %v13492_v43, %v15124_v18  ;;  %v13806_v43 = vld [vmem:[%s14289_s5 + $0x4] sm:$0xf]  ;;  %vm15201_vm13 = vmmov %vm15198_vm12 }
 0xcbd   :  { %15121 = vst [vmem:[#allocation85_spill] sm:$0xff] %v13776_v26  ;;  %v6339_v61 = vmul.f32 %v6326_v32, %v15124_v18  ;;  %v13787_v8 = vsel %vm15125_vm15, %v7080_v54, %v7088_v9  ;;  %v6327_v6 = vmul.f32 %v13242_v13, %v15124_v18  ;;  %v15131_v18 = vld [vmem:[#allocation10_spill] sm:$0xff]  ;;  %vm15204_vm14 = vmmov %vm15198_vm12 }
 0xcbe   :  { %15123 = vst [vmem:[#allocation53_spill] sm:$0xff] %v13780_v58  ;;  %v6262_v58 = vmul.f32 %v13256_v34, %v15131_v18  ;;  %vm15208_vm15 = vmmov %vm15198_vm12 }
 0xcbf   :  { %6360 = vmatpush.msrb.mxu0 %v6339_v61 }
 0xcc1   :  { %6361 = vmatpush.msrb.mxu0 %v6335_v56 }
 0xcc3   :  { %v6221_v15 = vpop.permute.xlu0 %6220  ;;  %6362 = vmatpush.msrb.mxu0 %v6331_v44  ;;  %v13810_v13 = vpop.permute.xlu2 %6541  ;;  %v6266_v44 = vmul.f32 %v13412_v57, %v15131_v18 }
 0xcc4   :  { %v7072_v26 = vpop.permute.xlu1 %7071 }
 0xcc5   :  { %v13797_v32 = vsel %vm15126_vm3, %v7072_v26, %v7080_v54  ;;  %v13801_v9 = vsel %vm15128_vm6, %v7064_v60, %v7072_v26  ;;  %6363 = vmatpush.msrb.mxu0 %v6327_v6  ;;  %v6270_v54 = vmul.f32 %v13662_v30, %v15131_v18  ;;  %v13837_v30 = vld [vmem:[%s14289_s5] sm:$0xf] }
 0xcc6   :  { %15127 = vst [vmem:[#allocation89_spill] sm:$0xff] %v13797_v32  ;;  %8191 = vmatmul.msk.f32.vlgmr.msrb.gmra.mxu0 %vm2177_vm2, %v13806_v43 }
 0xcc7   :  { %15129 = vst [vmem:[#allocation65_spill] sm:$0xff] %v13801_v9 }
 0xccb   :  { %v6245_v56 = vpop.permute.xlu0 %6244  ;;  %v13827_v6 = vpop.permute.xlu2 %6694 }
 0xccc   :  { %v6261_v61 = vsel %vm70_vm1, %v6245_v56, %v6221_v15  ;;  %v13814_v38 = vpop.permute.xlu1 %7369 }
 0xccd   :  { %15130 = vst [vmem:[#allocation76_spill] sm:$0xff] %v13814_v38  ;;  %v6274_v60 = vmul.f32 %v6261_v61, %v15131_v18  ;;  %v13821_v26 = vsel %vm15132_vm7, %v13706_v21, %v13814_v38 }
 0xcce   :  { %15133 = vst [vmem:[#allocation2_spill] sm:$0xff] %v13821_v26  ;;  %v15134_v26 = vld [vmem:[#allocation6_spill] sm:$0xff] }
 0xccf   :  { %6443 = vmatpush.msra.mxu0 %v6274_v60  ;;  %v6338_v34 = vmul.f32 %v13680_v12, %v15134_v26  ;;  %v6334_v57 = vmul.f32 %v13488_v35, %v15134_v26  ;;  %v15135_v60 = vld [vmem:[#allocation9_spill] sm:$0xff]  ;;  %v15136_v12 = vld [vmem:[#allocation4_spill] sm:$0xff] }
 0xcd1   :  { %6444 = vmatpush.msra.mxu0 %v6270_v54 }
 0xcd3   :  { %v6302_v61 = vpop.permute.xlu0 %6301  ;;  %6445 = vmatpush.msra.mxu0 %v6266_v44  ;;  %v13851_v18 = vpop.permute.xlu2 %6912 }
 0xcd4   :  { %v6314_v32 = vsel %vm111_vm0, %v6302_v61, %v6310_v47  ;;  %v6237_v38 = vpop.permute.xlu1 %6236 }
 0xcd5   :  { %v6342_v21 = vmul.f32 %v6314_v32, %v15134_v26  ;;  %6446 = vmatpush.msra.mxu0 %v6262_v58  ;;  %v6249_v47 = vsel %vm70_vm1, %v6237_v38, %v6245_v56  ;;  %v6330_v58 = vmul.f32 %v13266_v39, %v15134_v26  ;;  %v6273_v39 = vmul.f32 %v13658_v1, %v15135_v60 }
 0xcd6   :  { %8195 = vmatmul.msk.f32.vlgmr.msra.gmra.mxu0 %vm2177_vm2, %v13837_v30  ;;  %v6277_v54 = vmul.f32 %v6249_v47, %v15135_v60  ;;  %v6336_v26 = vmul.f32 %v13628_v7, %v15136_v12  ;;  %v6257_v1 = vsel %vm70_vm1, %v6221_v15, %v13742_v16 }
 0xcd7   :  { %6420 = vmatpush.msrb.mxu3 %v6342_v21 }
 0xcd9   :  { %6421 = vmatpush.msrb.mxu3 %v6338_v34  ;;  %v15137_v34 = vld [vmem:[#allocation5_spill] sm:$0xff] }
 0xcda   :  { %v6333_v7 = vmul.f32 %v13430_v51, %v15137_v34  ;;  %v6329_v51 = vmul.f32 %v13292_v55, %v15137_v34 }
 0xcdb   :  { %v13849_v32 = vpop.permute.xlu0 %6525  ;;  %6422 = vmatpush.msrb.mxu3 %v6334_v57  ;;  %v6332_v57 = vmul.f32 %v13470_v5, %v15136_v12  ;;  %v6253_v5 = vsel %vm70_vm1, %v13742_v16, %v6237_v38  ;;  %v15140_v16 = vld [vmem:[#allocation7_spill] sm:$0xff] }
 0xcdc   :  { %v6294_v44 = vpop.permute.xlu1 %6293  ;;  %v6276_v38 = vmul.f32 %v6253_v5, %v15140_v16 }
 0xcdd   :  { %v6318_v21 = vsel %vm111_vm0, %v6294_v44, %v6302_v61  ;;  %v6322_v35 = vsel %vm111_vm0, %v6286_v22, %v6294_v44  ;;  %6423 = vmatpush.msrb.mxu3 %v6330_v58  ;;  %v6337_v61 = vmul.f32 %v13684_v19, %v15137_v34  ;;  %v6269_v22 = vmul.f32 %v13408_v50, %v15135_v60  ;;  %v15138_v58 = vld [vmem:[#allocation8_spill] sm:$0xff]  ;;  %v15139_v44 = vld [vmem:[#allocation14_spill] sm:$0xff]  ;;  %vm15157_vm0 = vmmov %vm15112_vm9 }
 0xcde   :  { %v6340_v56 = vmul.f32 %v6322_v35, %v15136_v12  ;;  %v6341_v9 = vmul.f32 %v6318_v21, %v15137_v34  ;;  %8194 = vmatmul.msk.f32.vlgmr.msrb.gmra.mxu3 %vm2177_vm2, %v13806_v43  ;;  %v6328_v50 = vmul.f32 %v13296_v23, %v15136_v12  ;;  %v15141_v21 = vld [vmem:[#allocation13_spill] sm:$0xff]  ;;  %v6271_v55 = vmul.f32 %v13644_v31, %v15138_v58  ;;  %vm15158_vm1 = vmmov %vm15157_vm0 }
 0xcdf   :  { %6503 = vmatpush.msra.mxu3 %v6277_v54  ;;  %v6275_v54 = vmul.f32 %v6257_v1, %v15138_v58  ;;  %v6570_v12 = vmul.f32 %v13714_v48, %v15139_v44  ;;  %v6263_v34 = vmul.f32 %v13252_v28, %v15138_v58  ;;  %v6267_v31 = vmul.f32 %v13456_v53, %v15138_v58  ;;  %v15144_v1 = vld [vmem:[#allocation18_spill] sm:$0xff]  ;;  %vm15180_vm9 = vmmov %vm15126_vm3 }
 0xce0   :  { %6380 = vmatpush.msrb.mxu1 %v6340_v56  ;;  %6400 = vmatpush.msrb.mxu2 %v6341_v9  ;;  %v6265_v9 = vmul.f32 %v13270_v40, %v15135_v60  ;;  %v13891_v60 = vpop.permute.xlu2 %6928  ;;  %v6567_v56 = vmul.f32 %v13654_v10, %v15141_v21  ;;  %v6566_v48 = vmul.f32 %v13502_v42, %v15139_v44  ;;  %vm15218_vm3 = vmmov %vm15132_vm7 }
 0xce1   :  { %6504 = vmatpush.msra.mxu3 %v6273_v39  ;;  %v6268_v39 = vmul.f32 %v13452_v52, %v15140_v16  ;;  %v6562_v53 = vmul.f32 %v13330_v37, %v15139_v44  ;;  %v6559_v37 = vmul.f32 %v13334_v49, %v15141_v21  ;;  %vm15219_vm6 = vmmov %vm15218_vm3 }
 0xce2   :  { %6381 = vmatpush.msrb.mxu1 %v6336_v26  ;;  %6401 = vmatpush.msrb.mxu2 %v6337_v61  ;;  %v6264_v26 = vmul.f32 %v13274_v63, %v15140_v16  ;;  %v15142_v61 = vld [vmem:[#allocation12_spill] sm:$0xff]  ;;  %vm15225_vm7 = vmmov %vm15218_vm3 }
 0xce3   :  { %6505 = vmatpush.msra.mxu3 %v6269_v22  ;;  %v6534_v19 = vpop.permute.xlu0 %6533  ;;  %v6568_v63 = vmul.f32 %v13698_v59, %v15142_v61 }
 0xce4   :  { %v6546_v15 = vsel %vm435_vm4, %v6534_v19, %v13810_v13  ;;  %6382 = vmatpush.msrb.mxu1 %v6332_v57  ;;  %v6518_v47 = vpop.permute.xlu1 %6517  ;;  %6402 = vmatpush.msrb.mxu2 %v6333_v7  ;;  %v6550_v42 = vsel %vm435_vm4, %v13849_v32, %v6534_v19 }
 0xce5   :  { %v6574_v40 = vmul.f32 %v6546_v15, %v15139_v44  ;;  %v6558_v23 = vsel %vm435_vm4, %v13810_v13, %v6518_v47  ;;  %6506 = vmatpush.msra.mxu3 %v6265_v9  ;;  %v6272_v13 = vmul.f32 %v13610_v25, %v15140_v16  ;;  %v6563_v25 = vmul.f32 %v13466_v2, %v15141_v21 }
 0xce6   :  { %6383 = vmatpush.msrb.mxu1 %v6328_v50  ;;  %v6571_v35 = vmul.f32 %v6558_v23, %v15141_v21  ;;  %6403 = vmatpush.msrb.mxu2 %v6329_v51  ;;  %v6554_v10 = vsel %vm435_vm4, %v6518_v47, %v13849_v32  ;;  %v15143_v32 = vld [vmem:[#allocation11_spill] sm:$0xff]  ;;  %v6564_v9 = vmul.f32 %v13448_v20, %v15142_v61  ;;  %v8199_v50 = vld [vmem:[%s14289_s5 + $0x8] sm:$0xf]  ;;  %v15148_v23 = vld [vmem:[#allocation16_spill] sm:$0xff] }
 0xce7   :  { %8193 = vmatmul.msk.f32.vlgmr.msrb.gmra.mxu2 %vm2177_vm2, %v13806_v43  ;;  %6652 = vmatpush.msrb.mxu3 %v6574_v40  ;;  %v6572_v22 = vmul.f32 %v6554_v10, %v15142_v61  ;;  %v6573_v57 = vmul.f32 %v6550_v42, %v15143_v32  ;;  %v6569_v49 = vmul.f32 %v13718_v24, %v15143_v32  ;;  %v15145_v47 = vld [vmem:[#allocation15_spill] sm:$0xff]  ;;  %v15151_v21 = vld [vmem:[#allocation88_spill] sm:$0xff]  ;;  %v15159_v42 = vld [vmem:[#allocation41_spill] sm:$0xff] }
 0xce8   :  { %6463 = vmatpush.msra.mxu1 %v6275_v54  ;;  %6483 = vmatpush.msra.mxu2 %v6276_v38  ;;  %v13942_v19 = vpop.permute.xlu2 %6920  ;;  %v6565_v59 = vmul.f32 %v13506_v3, %v15143_v32  ;;  %v6560_v20 = vmul.f32 %v13312_v14, %v15142_v61  ;;  %v6561_v3 = vmul.f32 %v13284_v33, %v15143_v32  ;;  %v15161_v61 = vld [vmem:[#allocation22_spill] sm:$0xff]  ;;  %v8209_v32 = vld [vmem:[%s14289_s5 + $0x10] sm:$0xf]  ;;  %vm15166_vm4 = vmmov %vm15157_vm0 }
 0xce9   :  { %6592 = vmatpush.msrb.mxu0 %v6571_v35  ;;  %6653 = vmatpush.msrb.mxu3 %v6570_v12  ;;  %v6715_v14 = vmul.f32 %v13358_v45, %v15144_v1  ;;  %v6722_v33 = vmul.f32 %v13730_v4, %v15145_v47  ;;  %v6718_v58 = vmul.f32 %v13480_v46, %v15145_v47  ;;  %v15146_v46 = vld [vmem:[#allocation17_spill] sm:$0xff] }
 0xcea   :  { %6464 = vmatpush.msra.mxu1 %v6271_v55  ;;  %6484 = vmatpush.msra.mxu2 %v6272_v13  ;;  %v6714_v54 = vmul.f32 %v13288_v27, %v15145_v47  ;;  %v8204_v27 = vld [vmem:[%s14289_s5 + $0xc] sm:$0xf]  ;;  %v6721_v35 = vmul.f32 %v15151_v21, %v15148_v23  ;;  %v15152_v55 = vld [vmem:[#allocation69_spill] sm:$0xff] }
 0xceb   :  { %6593 = vmatpush.msrb.mxu0 %v6567_v56  ;;  %v6687_v28 = vpop.permute.xlu0 %6686  ;;  %6654 = vmatpush.msrb.mxu3 %v6566_v48 }
 0xcec   :  { %6465 = vmatpush.msra.mxu1 %v6267_v31  ;;  %v6699_v52 = vsel %vm633_vm5, %v6687_v28, %v13827_v6  ;;  %v13929_v2 = vpop.permute.xlu1 %7383  ;;  %6485 = vmatpush.msra.mxu2 %v6268_v39  ;;  %v15154_v31 = vld [vmem:[#allocation57_spill] sm:$0xff]  ;;  %v15155_v39 = vld [vmem:[#allocation39_spill] sm:$0xff] }
 0xced   :  { %6594 = vmatpush.msrb.mxu0 %v6563_v25  ;;  %6655 = vmatpush.msrb.mxu3 %v6562_v53  ;;  %v6727_v7 = vmul.f32 %v6699_v52, %v15144_v1  ;;  %v6717_v48 = vmul.f32 %v15154_v31, %v15148_v23  ;;  %v15156_v25 = vld [vmem:[#allocation92_spill] sm:$0xff]  ;;  %v6713_v52 = vmul.f32 %v15159_v42, %v15148_v23  ;;  %v15186_v31 = vld [vmem:[#allocation62_spill] sm:$0xff] }
 0xcee   :  { %6466 = vmatpush.msra.mxu1 %v6263_v34  ;;  %6486 = vmatpush.msra.mxu2 %v6264_v26  ;;  %v6712_v10 = vmul.f32 %v15156_v25, %v15146_v46  ;;  %v15160_v26 = vld [vmem:[#allocation19_spill] sm:$0xff] }
 0xcef   :  { %8192 = vmatmul.msk.f32.vlgmr.msrb.gmra.mxu1 %vm2177_vm2, %v13806_v43  ;;  %6595 = vmatpush.msrb.mxu0 %v6559_v37  ;;  %v6723_v43 = vmul.f32 %v13672_v36, %v15144_v1  ;;  %v6719_v36 = vmul.f32 %v13484_v17, %v15144_v1  ;;  %v15163_v1 = vld [vmem:[#allocation60_spill] sm:$0xff] }
 0xcf0   :  { %6612 = vmatpush.msrb.mxu1 %v6572_v22  ;;  %6632 = vmatpush.msrb.mxu2 %v6573_v57  ;;  %v13977_v17 = vpop.permute.xlu2 %7089  ;;  %v15162_v57 = vld [vmem:[#allocation58_spill] sm:$0xff] }
 0xcf1   :  { %8198 = vmatmul.msk.f32.vlgmr.msra.gmra.mxu3 %vm2177_vm2, %v13837_v30  ;;  %8197 = vmatmul.msk.f32.vlgmr.msra.gmra.mxu2 %vm2177_vm2, %v13837_v30 }
 0xcf2   :  { %6613 = vmatpush.msrb.mxu1 %v6568_v63  ;;  %6633 = vmatpush.msrb.mxu2 %v6569_v49 }
 0xcf3   :  { %6805 = vmatpush.msra.mxu3 %v6727_v7  ;;  %v13956_v24 = vpop.permute.xlu0 %7365  ;;  %8200 = vmatmul.msk.f32.vlgmr.msrb.gmra.mxu0 %vm2177_vm2, %v8199_v50 }
 0xcf4   :  { %6614 = vmatpush.msrb.mxu1 %v6564_v9  ;;  %v6679_v5 = vpop.permute.xlu1 %6678  ;;  %6634 = vmatpush.msrb.mxu2 %v6565_v59  ;;  %v15165_v9 = vld [vmem:[#allocation82_spill] sm:$0xff] }
 0xcf5   :  { %6806 = vmatpush.msra.mxu3 %v6723_v43  ;;  %v6703_v15 = vsel %vm633_vm5, %v6679_v5, %v6687_v28  ;;  %v6965_v59 = vmul.f32 %v15165_v9, %v15161_v61  ;;  %v6949_v43 = vsel %vm15166_vm4, %v13851_v18, %v13942_v19 }
 0xcf6   :  { %6615 = vmatpush.msrb.mxu1 %v6560_v20  ;;  %v6726_v51 = vmul.f32 %v6703_v15, %v15145_v47  ;;  %6635 = vmatpush.msrb.mxu2 %v6561_v3  ;;  %v15168_v20 = vld [vmem:[#allocation80_spill] sm:$0xff]  ;;  %v15170_v15 = vld [vmem:[#allocation51_spill] sm:$0xff] }
 0xcf7   :  { %6807 = vmatpush.msra.mxu3 %v6719_v36  ;;  %8196 = vmatmul.msk.f32.vlgmr.msra.gmra.mxu1 %vm2177_vm2, %v13837_v30  ;;  %v15171_v47 = vld [vmem:[#allocation91_spill] sm:$0xff] }
 0xcf8   :  { %6785 = vmatpush.msra.mxu2 %v6726_v51  ;;  %v14014_v56 = vpop.permute.xlu2 %7081  ;;  %v6961_v51 = vmul.f32 %v15171_v47, %v15161_v61 }
 0xcf9   :  { %6808 = vmatpush.msra.mxu3 %v6715_v14  ;;  %8202 = vmatmul.msk.f32.vlgmr.msrb.gmra.mxu2 %vm2177_vm2, %v8199_v50  ;;  %v15173_v14 = vld [vmem:[#allocation21_spill] sm:$0xff] }
 0xcfa   :  { %8203 = vmatmul.msk.f32.vlgmr.msrb.gmra.mxu3 %vm2177_vm2, %v8199_v50  ;;  %6786 = vmatpush.msra.mxu2 %v6722_v33  ;;  %v6966_v33 = vmul.f32 %v6949_v43, %v15173_v14  ;;  %v15199_v43 = vld [vmem:[#allocation43_spill] sm:$0xff] }
 0xcfb   :  { %6894 = vmatpush.msrb.mxu3 %v13557_v0  ;;  %v13984_v45 = vpop.permute.xlu0 %7389  ;;  %v15147_v0 = vld [vmem:[#allocation71_spill] sm:$0xff] }
 0xcfc   :  { %v6671_v30 = vpop.permute.xlu1 %6670  ;;  %6787 = vmatpush.msra.mxu2 %v6718_v58  ;;  %v15174_v58 = vld [vmem:[#allocation37_spill] sm:$0xff] }
 0xcfd   :  { %6895 = vmatpush.msrb.mxu3 %v13366_v41  ;;  %v6707_v4 = vsel %vm633_vm5, %v6671_v30, %v6679_v5  ;;  %v6711_v44 = vsel %vm633_vm5, %v13827_v6, %v6671_v30  ;;  %v15149_v41 = vld [vmem:[#allocation38_spill] sm:$0xff]  ;;  %v15150_v6 = vld [vmem:[#allocation73_spill] sm:$0xff]  ;;  %v6960_v5 = vmul.f32 %v15168_v20, %v15160_v26  ;;  %vm15169_vm5 = vmmov %vm15157_vm0 }
 0xcfe   :  { %v6724_v40 = vmul.f32 %v6711_v44, %v15146_v46  ;;  %v6725_v16 = vmul.f32 %v6707_v4, %v15148_v23  ;;  %6788 = vmatpush.msra.mxu2 %v6714_v54  ;;  %v6720_v38 = vmul.f32 %v15150_v6, %v15146_v46  ;;  %v6945_v3 = vsel %vm15169_vm5, %v13942_v19, %v13891_v60  ;;  %v15175_v30 = vld [vmem:[#allocation67_spill] sm:$0xff]  ;;  %v15178_v44 = vld [vmem:[#allocation48_spill] sm:$0xff]  ;;  %v15181_v23 = vld [vmem:[#allocation42_spill] sm:$0xff] }
 0xcff   :  { %6896 = vmatpush.msrb.mxu3 %v15147_v0  ;;  %8201 = vmatmul.msk.f32.vlgmr.msrb.gmra.mxu1 %vm2177_vm2, %v8199_v50  ;;  %v15167_v50 = vld [vmem:[#allocation50_spill] sm:$0xff]  ;;  %v6956_v54 = vmul.f32 %v15175_v30, %v15160_v26  ;;  %v7094_v4 = vsel %vm15177_vm8, %v14014_v56, %v13977_v17  ;;  %v15205_v30 = vld [vmem:[#allocation61_spill] sm:$0xff] }
 0xd00   :  { %6874 = vmatpush.msrb.mxu2 %v13584_v11  ;;  %6745 = vmatpush.msra.mxu0 %v6724_v40  ;;  %v15153_v11 = vld [vmem:[#allocation75_spill] sm:$0xff]  ;;  %v14058_v36 = vpop.permute.xlu2 %7218 }
 0xd01   :  { %6897 = vmatpush.msrb.mxu3 %v15149_v41  ;;  %8207 = vmatmul.msk.f32.vlgmr.msra.gmra.mxu2 %vm2177_vm2, %v8204_v27  ;;  %v6716_v13 = vmul.f32 %v15153_v11, %v15146_v46  ;;  %v15179_v46 = vld [vmem:[#allocation66_spill] sm:$0xff] }
 0xd02   :  { %8208 = vmatmul.msk.f32.vlgmr.msra.gmra.mxu3 %vm2177_vm2, %v8204_v27  ;;  %6765 = vmatpush.msra.mxu1 %v6725_v16  ;;  %v6957_v40 = vmul.f32 %v15179_v46, %v15161_v61  ;;  %v8214_v16 = vld [vmem:[%s14289_s5 + $0x14] sm:$0xf] }
 0xd03   :  { %6875 = vmatpush.msrb.mxu2 %v15152_v55  ;;  %v14010_v12 = vpop.permute.xlu0 %7065  ;;  %6746 = vmatpush.msra.mxu0 %v6720_v38  ;;  %v15183_v38 = vld [vmem:[#allocation46_spill] sm:$0xff] }
 0xd04   :  { %v6937_v34 = vpop.permute.xlu1 %6936  ;;  %6766 = vmatpush.msra.mxu1 %v6721_v35  ;;  %v7106_v0 = vsel %vm15180_vm9, %v13977_v17, %v14010_v12  ;;  %v6962_v21 = vmul.f32 %v15183_v38, %v15173_v14  ;;  %v15184_v35 = vld [vmem:[#allocation26_spill] sm:$0xff]  ;;  %v15212_v38 = vld [vmem:[#allocation35_spill] sm:$0xff] }
 0xd05   :  { %6876 = vmatpush.msrb.mxu2 %v15155_v39  ;;  %6747 = vmatpush.msra.mxu0 %v6716_v13  ;;  %v6941_v28 = vsel %vm15157_vm0, %v13891_v60, %v6937_v34  ;;  %v6953_v53 = vsel %vm15158_vm1, %v6937_v34, %v13851_v18  ;;  %v15172_v18 = vld [vmem:[#allocation40_spill] sm:$0xff]  ;;  %v7122_v17 = vmul.f32 %v7106_v0, %v15184_v35  ;;  %v15185_v55 = vld [vmem:[#allocation90_spill] sm:$0xff]  ;;  %vm15229_vm0 = vmmov %vm15218_vm3 }
 0xd06   :  { %6767 = vmatpush.msra.mxu1 %v6717_v48  ;;  %v6968_v37 = vmul.f32 %v6941_v28, %v15160_v26  ;;  %v6969_v22 = vmul.f32 %v6953_v53, %v15161_v61  ;;  %v15176_v60 = vld [vmem:[#allocation20_spill] sm:$0xff]  ;;  %v6958_v48 = vmul.f32 %v15186_v31, %v15173_v14  ;;  %v15187_v39 = vld [vmem:[#allocation86_spill] sm:$0xff]  ;;  %vm15235_vm1 = vmmov %vm15229_vm0 }
 0xd07   :  { %6877 = vmatpush.msrb.mxu2 %v13144_v29  ;;  %6748 = vmatpush.msra.mxu0 %v6712_v10  ;;  %v15164_v29 = vld [vmem:[#allocation63_spill] sm:$0xff]  ;;  %v6967_v19 = vmul.f32 %v6945_v3, %v15176_v60  ;;  %v6963_v11 = vmul.f32 %v15185_v55, %v15176_v60  ;;  %v7118_v25 = vmul.f32 %v15187_v39, %v15184_v35  ;;  %v15189_v28 = vld [vmem:[#allocation70_spill] sm:$0xff]  ;;  %v15209_v0 = vld [vmem:[#allocation68_spill] sm:$0xff] }
 0xd08   :  { %6768 = vmatpush.msra.mxu1 %v6713_v52  ;;  %8205 = vmatmul.msk.f32.vlgmr.msra.gmra.mxu0 %vm2177_vm2, %v8204_v27  ;;  %v6964_v7 = vmul.f32 %v15164_v29, %v15160_v26  ;;  %v15190_v53 = vld [vmem:[#allocation78_spill] sm:$0xff]  ;;  %v14109_v52 = vpop.permute.xlu2 %7377  ;;  %vm15236_vm4 = vmmov %vm15229_vm0 }
 0xd09   :  { %8206 = vmatmul.msk.f32.vlgmr.msra.gmra.mxu1 %vm2177_vm2, %v8204_v27  ;;  %6834 = vmatpush.msrb.mxu0 %v15162_v57  ;;  %v15182_v27 = vld [vmem:[#allocation23_spill] sm:$0xff]  ;;  %v6959_v42 = vmul.f32 %v15190_v53, %v15176_v60  ;;  %vm15237_vm5 = vmmov %vm15229_vm0 }
 0xd0a   :  { %6854 = vmatpush.msrb.mxu1 %v15163_v1  ;;  %8212 = vmatmul.msk.f32.vlgmr.msrb.gmra.mxu2 %vm2177_vm2, %v8209_v32  ;;  %v7121_v41 = vmul.f32 %v7094_v4, %v15182_v27  ;;  %v7117_v13 = vmul.f32 %v13787_v8, %v15182_v27  ;;  %v7113_v8 = vmul.f32 %v15189_v28, %v15182_v27  ;;  %v15195_v1 = vld [vmem:[#allocation25_spill] sm:$0xff]  ;;  %v15207_v4 = vld [vmem:[#allocation56_spill] sm:$0xff]  ;;  %vm15242_vm8 = vmmov %vm15229_vm0 }
 0xd0b   :  { %8213 = vmatmul.msk.f32.vlgmr.msrb.gmra.mxu3 %vm2177_vm2, %v8209_v32  ;;  %7027 = vmatpush.msra.mxu2 %v6968_v37  ;;  %v14043_v63 = vpop.permute.xlu0 %7226  ;;  %v15192_v37 = vld [vmem:[#allocation44_spill] sm:$0xff]  ;;  %vm15243_vm9 = vmmov %vm15229_vm0 }
 0xd0c   :  { %v7074_v49 = vpop.permute.xlu1 %7073  ;;  %7047 = vmatpush.msra.mxu3 %v6969_v22  ;;  %6835 = vmatpush.msrb.mxu0 %v15167_v50  ;;  %v6954_v61 = vmul.f32 %v15192_v37, %v15173_v14  ;;  %v7110_v50 = vmul.f32 %v15199_v43, %v15184_v35  ;;  %v15203_v14 = vld [vmem:[#allocation30_spill] sm:$0xff]  ;;  %v7255_v46 = vsel %vm15208_vm15, %v14058_v36, %v14043_v63  ;;  %v8224_v28 = vld [vmem:[%s14289_s5 + $0x1c] sm:$0xf]  ;;  %vm15249_vm15 = vmmov %vm15229_vm0 }
 0xd0d   :  { %6855 = vmatpush.msrb.mxu1 %v15170_v15  ;;  %7028 = vmatpush.msra.mxu2 %v6964_v7  ;;  %v7102_v10 = vsel %vm15188_vm10, %v14010_v12, %v7074_v49  ;;  %v7098_v26 = vsel %vm15191_vm11, %v7074_v49, %v14014_v56  ;;  %v15193_v12 = vld [vmem:[#allocation55_spill] sm:$0xff]  ;;  %v15197_v49 = vld [vmem:[#allocation24_spill] sm:$0xff]  ;;  %vm15244_vm10 = vmmov %vm15229_vm0 }
 0xd0e   :  { %7048 = vmatpush.msra.mxu3 %v6965_v59  ;;  %6836 = vmatpush.msrb.mxu0 %v15172_v18  ;;  %v7114_v22 = vmul.f32 %v15193_v12, %v15184_v35  ;;  %v7119_v29 = vmul.f32 %v7102_v10, %v15195_v1  ;;  %v15196_v7 = vld [vmem:[#allocation59_spill] sm:$0xff]  ;;  %v7120_v9 = vmul.f32 %v7098_v26, %v15197_v49  ;;  %v8219_v15 = vld [vmem:[%s14289_s5 + $0x18] sm:$0xf]  ;;  %v15222_v12 = vld [vmem:[#allocation34_spill] sm:$0xff] }
 0xd0f   :  { %6856 = vmatpush.msrb.mxu1 %v15174_v58  ;;  %7029 = vmatpush.msra.mxu2 %v6960_v5  ;;  %v7109_v56 = vmul.f32 %v15196_v7, %v15182_v27  ;;  %v15200_v5 = vld [vmem:[#allocation65_spill] sm:$0xff]  ;;  %v15221_v37 = vld [vmem:[#allocation64_spill] sm:$0xff]  ;;  %vm15245_vm11 = vmmov %vm15229_vm0 }
 0xd10   :  { %7049 = vmatpush.msra.mxu3 %v6961_v51  ;;  %6837 = vmatpush.msrb.mxu0 %v15178_v44  ;;  %v7115_v3 = vmul.f32 %v15200_v5, %v15195_v1  ;;  %v15202_v51 = vld [vmem:[#allocation89_spill] sm:$0xff]  ;;  %v7112_v44 = vmul.f32 %v15207_v4, %v15197_v49  ;;  %v7380_v35 = vpop.permute.xlu2 %7379  ;;  %v15231_v5 = vld [vmem:[#allocation87_spill] sm:$0xff] }
 0xd11   :  { %6857 = vmatpush.msrb.mxu1 %v15181_v23  ;;  %7030 = vmatpush.msra.mxu2 %v6956_v54  ;;  %v7116_v18 = vmul.f32 %v15202_v51, %v15197_v49  ;;  %v7111_v54 = vmul.f32 %v15205_v30, %v15195_v1  ;;  %v7107_v23 = vmul.f32 %v15209_v0, %v15195_v1  ;;  %v15224_v1 = vld [vmem:[#allocation83_spill] sm:$0xff]  ;;  %v15233_v51 = vld [vmem:[#allocation77_spill] sm:$0xff]  ;;  %v15241_v0 = vld [vmem:[#allocation76_spill] sm:$0xff] }
 0xd12   :  { %6987 = vmatpush.msra.mxu0 %v6966_v33  ;;  %7050 = vmatpush.msra.mxu3 %v6957_v40 }
 0xd13   :  { %7007 = vmatpush.msra.mxu1 %v6967_v19  ;;  %8210 = vmatmul.msk.f32.vlgmr.msrb.gmra.mxu0 %vm2177_vm2, %v8209_v32  ;;  %v14096_v34 = vpop.permute.xlu0 %7395 }
 0xd14   :  { %v7243_v6 = vpop.permute.xlu1 %7242  ;;  %8211 = vmatmul.msk.f32.vlgmr.msrb.gmra.mxu1 %vm2177_vm2, %v8209_v32  ;;  %8217 = vmatmul.msk.f32.vlgmr.msra.gmra.mxu2 %vm2177_vm2, %v8214_v16  ;;  %v15194_v32 = vld [vmem:[#allocation36_spill] sm:$0xff] }
 0xd15   :  { %8218 = vmatmul.msk.f32.vlgmr.msra.gmra.mxu3 %vm2177_vm2, %v8214_v16  ;;  %7180 = vmatpush.msrb.mxu2 %v7121_v41  ;;  %v6955_v57 = vmul.f32 %v15194_v32, %v15176_v60  ;;  %v7259_v59 = vsel %vm15198_vm12, %v7243_v6, %v14058_v36  ;;  %v15206_v60 = vld [vmem:[#allocation27_spill] sm:$0xff]  ;;  %v15211_v41 = vld [vmem:[#allocation72_spill] sm:$0xff]  ;;  %vm15246_vm12 = vmmov %vm15229_vm0 }
 0xd16   :  { %7200 = vmatpush.msrb.mxu3 %v7122_v17  ;;  %6988 = vmatpush.msra.mxu0 %v6962_v21  ;;  %v7275_v33 = vmul.f32 %v7259_v59, %v15203_v14  ;;  %v7271_v21 = vmul.f32 %v15212_v38, %v15203_v14  ;;  %v15214_v17 = vld [vmem:[#allocation84_spill] sm:$0xff]  ;;  %v15223_v32 = vld [vmem:[#allocation79_spill] sm:$0xff] }
 0xd17   :  { %7008 = vmatpush.msra.mxu1 %v6963_v11  ;;  %7181 = vmatpush.msrb.mxu2 %v7117_v13  ;;  %v7267_v55 = vmul.f32 %v15214_v17, %v15203_v14  ;;  %v15215_v13 = vld [vmem:[#allocation52_spill] sm:$0xff]  ;;  %v15228_v59 = vld [vmem:[#allocation47_spill] sm:$0xff] }
 0xd18   :  { %7201 = vmatpush.msrb.mxu3 %v7118_v25  ;;  %6989 = vmatpush.msra.mxu0 %v6958_v48  ;;  %v7263_v31 = vmul.f32 %v15215_v13, %v15203_v14  ;;  %v15216_v48 = vld [vmem:[#allocation53_spill] sm:$0xff] }
 0xd19   :  { %7009 = vmatpush.msra.mxu1 %v6959_v42  ;;  %7182 = vmatpush.msrb.mxu2 %v7113_v8  ;;  %v15217_v25 = vld [vmem:[#allocation85_spill] sm:$0xff]  ;;  %v15220_v42 = vld [vmem:[#allocation54_spill] sm:$0xff] }
 0xd1a   :  { %7202 = vmatpush.msrb.mxu3 %v7114_v22  ;;  %6990 = vmatpush.msra.mxu0 %v6954_v61  ;;  %v7262_v26 = vmul.f32 %v15220_v42, %v15206_v60 }
 0xd1b   :  { %7010 = vmatpush.msra.mxu1 %v6955_v57  ;;  %7183 = vmatpush.msrb.mxu2 %v7109_v56  ;;  %v7388_v40 = vpop.permute.xlu0 %7387  ;;  %v15226_v56 = vld [vmem:[#allocation45_spill] sm:$0xff] }
 0xd1c   :  { %7140 = vmatpush.msrb.mxu0 %v7119_v29  ;;  %v7235_v20 = vpop.permute.xlu1 %7234  ;;  %7203 = vmatpush.msrb.mxu3 %v7110_v50  ;;  %v7270_v29 = vmul.f32 %v15224_v1, %v15206_v60  ;;  %v7404_v7 = vsel %vm15225_vm7, %v7380_v35, %v7388_v40  ;;  %v15230_v50 = vld [vmem:[#allocation33_spill] sm:$0xff]  ;;  %v7400_v30 = vsel %vm15237_vm5, %v7388_v40, %v14096_v34 }
 0xd1d   :  { %7160 = vmatpush.msrb.mxu1 %v7120_v9  ;;  %v7247_v47 = vsel %vm15201_vm13, %v7235_v20, %v7243_v6  ;;  %8215 = vmatmul.msk.f32.vlgmr.msra.gmra.mxu0 %vm2177_vm2, %v8214_v16  ;;  %v7251_v58 = vsel %vm15204_vm14, %v14043_v63, %v7235_v20  ;;  %v7108_v6 = vmul.f32 %v15211_v41, %v15197_v49  ;;  %v15213_v63 = vld [vmem:[#allocation29_spill] sm:$0xff]  ;;  %vm15247_vm13 = vmmov %vm15229_vm0 }
 0xd1e   :  { %8216 = vmatmul.msk.f32.vlgmr.msra.gmra.mxu1 %vm2177_vm2, %v8214_v16  ;;  %7141 = vmatpush.msrb.mxu0 %v7115_v3  ;;  %v7274_v19 = vmul.f32 %v7247_v47, %v15206_v60  ;;  %v15210_v16 = vld [vmem:[#allocation28_spill] sm:$0xff]  ;;  %v7272_v36 = vmul.f32 %v7255_v46, %v15213_v63  ;;  %v7268_v39 = vmul.f32 %v15216_v48, %v15213_v63  ;;  %v15227_v9 = vld [vmem:[#allocation49_spill] sm:$0xff]  ;;  %vm15248_vm14 = vmmov %vm15229_vm0 }
 0xd1f   :  { %7161 = vmatpush.msrb.mxu1 %v7116_v18  ;;  %8222 = vmatmul.msk.f32.vlgmr.msrb.gmra.mxu2 %vm2177_vm2, %v8219_v15  ;;  %v7273_v27 = vmul.f32 %v7251_v58, %v15210_v16  ;;  %v7269_v10 = vmul.f32 %v15217_v25, %v15210_v16  ;;  %v7264_v61 = vmul.f32 %v15221_v37, %v15213_v63  ;;  %v15234_v18 = vld [vmem:[#allocation74_spill] sm:$0xff]  ;;  %v6213_v48 = vld [vmem:[%s14286_s6] sm:$0xf] }
 0xd20   :  { %8223 = vmatmul.msk.f32.vlgmr.msrb.gmra.mxu3 %vm2177_vm2, %v8219_v15  ;;  %7142 = vmatpush.msrb.mxu0 %v7111_v54  ;;  %v7265_v57 = vmul.f32 %v15223_v32, %v15210_v16  ;;  %v7260_v49 = vmul.f32 %v15226_v56, %v15213_v63  ;;  %v7399_v43 = vsel %vm15229_vm0, %v15228_v59, %v15227_v9  ;;  %v15238_v54 = vld [vmem:[#allocation32_spill] sm:$0xff] }
 0xd21   :  { %7353 = vmatpush.msra.mxu3 %v7275_v33  ;;  %7162 = vmatpush.msrb.mxu1 %v7112_v44  ;;  %v7261_v3 = vmul.f32 %v15231_v5, %v15210_v16  ;;  %v7410_v14 = vsel %vm15235_vm1, %v15234_v18, %v15233_v51  ;;  %v7403_v58 = vsel %vm15236_vm4, %v14109_v52, %v15228_v59  ;;  %v15240_v44 = vld [vmem:[#allocation2_spill] sm:$0xff]  ;;  %v7374_v16 = vpop.permute.xlu2 %7373 }
 0xd22   :  { %7143 = vmatpush.msrb.mxu0 %v7107_v23  ;;  %7333 = vmatpush.msra.mxu2 %v7274_v19  ;;  %v7426_v19 = vmul.f32 %v7404_v7, %v15238_v54  ;;  %v7424_v46 = vmul.f32 %v15240_v44, %v15222_v12  ;;  %v7407_v23 = vsel %vm15242_vm8, %v15241_v0, %v14109_v52 }
 0xd23   :  { %7354 = vmatpush.msra.mxu3 %v7271_v21  ;;  %7163 = vmatpush.msrb.mxu1 %v7108_v6  ;;  %v7376_v33 = vpop.permute.xlu0 %7375  ;;  %v7422_v52 = vmul.f32 %v7403_v58, %v15238_v54  ;;  %v7421_v21 = vmul.f32 %v7407_v23, %v15230_v50 }
 0xd24   :  { %v7372_v11 = vpop.permute.xlu1 %7371  ;;  %7293 = vmatpush.msra.mxu0 %v7272_v36  ;;  %7334 = vmatpush.msra.mxu2 %v7270_v29  ;;  %v7402_v40 = vsel %vm15244_vm10, %v7376_v33, %v13929_v2  ;;  %v7406_v38 = vsel %vm15246_vm12, %v15233_v51, %v7376_v33  ;;  %vm15252_vm10 = vcmask 1043456  }
 0xd25   :  { %7313 = vmatpush.msra.mxu1 %v7273_v27  ;;  %7355 = vmatpush.msra.mxu3 %v7267_v55  ;;  %v7408_v8 = vsel %vm15218_vm3, %v7372_v11, %v7380_v35  ;;  %v7412_v53 = vsel %vm15219_vm6, %v14096_v34, %v7372_v11  ;;  %v7398_v34 = vsel %vm15243_vm9, %v13929_v2, %v15234_v18 }
 0xd26   :  { %8220 = vmatmul.msk.f32.vlgmr.msrb.gmra.mxu0 %vm2177_vm2, %v8219_v15  ;;  %8221 = vmatmul.msk.f32.vlgmr.msrb.gmra.mxu1 %vm2177_vm2, %v8219_v15  ;;  %v7428_v22 = vmul.f32 %v7412_v53, %v15222_v12  ;;  %v7425_v20 = vmul.f32 %v7408_v8, %v15230_v50  ;;  %v15232_v15 = vld [vmem:[#allocation81_spill] sm:$0xff]  ;;  %v7409_v2 = vsel %vm15247_vm13, %v13984_v45, %v13956_v24 }
 0xd27   :  { %7294 = vmatpush.msra.mxu0 %v7268_v39  ;;  %7356 = vmatpush.msra.mxu3 %v7263_v31  ;;  %v7266_v47 = vmul.f32 %v15232_v15, %v15206_v60  ;;  %v15239_v60 = vld [vmem:[#allocation31_spill] sm:$0xff]  ;;  %v7405_v35 = vsel %vm15248_vm14, %v13956_v24, %v7374_v16  ;;  %v7418_v63 = vmul.f32 %v7402_v40, %v15238_v54  ;;  %v8350_v39 = vmov 9  }
 0xd28   :  { %7314 = vmatpush.msra.mxu1 %v7269_v10  ;;  %8228 = vmatmul.msk.f32.vlgmr.msra.gmra.mxu3 %vm2177_vm2, %v8224_v28  ;;  %v7423_v4 = vmul.f32 %v7399_v43, %v15239_v60  ;;  %v7427_v6 = vmul.f32 %v7400_v30, %v15239_v60  ;;  %v7420_v55 = vmul.f32 %v7410_v14, %v15222_v12 }
 0xd29   :  { %7295 = vmatpush.msra.mxu0 %v7264_v61  ;;  %7506 = vmatpush.msrb.mxu3 %v7428_v22  ;;  %v7417_v11 = vmul.f32 %v7406_v38, %v15230_v50  ;;  %v7419_v24 = vmul.f32 %v7398_v34, %v15239_v60  ;;  %v7416_v13 = vmul.f32 %v7409_v2, %v15222_v12 }
 0xd2a   :  { %7315 = vmatpush.msra.mxu1 %v7265_v57  ;;  %7335 = vmatpush.msra.mxu2 %v7266_v47  ;;  %v7413_v31 = vmul.f32 %v7405_v35, %v15230_v50 }
 0xd2b   :  { %7296 = vmatpush.msra.mxu0 %v7260_v49  ;;  %7507 = vmatpush.msrb.mxu3 %v7424_v46 }
 0xd2c   :  { %7316 = vmatpush.msra.mxu1 %v7261_v3  ;;  %v7382_v27 = vpop.permute.xlu1 %7381  ;;  %7336 = vmatpush.msra.mxu2 %v7262_v26 }
 0xd2d   :  { %7446 = vmatpush.msrb.mxu0 %v7425_v20  ;;  %v7401_v41 = vsel %vm15245_vm11, %v7374_v16, %v7382_v27  ;;  %8227 = vmatmul.msk.f32.vlgmr.msra.gmra.mxu2 %vm2177_vm2, %v8224_v28  ;;  %v7397_v36 = vsel %vm15249_vm15, %v7382_v27, %v13984_v45  ;;  %v8229_v45 = vld [vmem:[%s14289_s5 + $0x20] sm:$0xf] }
 0xd2e   :  { %7466 = vmatpush.msrb.mxu1 %v7426_v19  ;;  %8225 = vmatmul.msk.f32.vlgmr.msra.gmra.mxu0 %vm2177_vm2, %v8224_v28  ;;  %v7414_v17 = vmul.f32 %v7401_v41, %v15238_v54  ;;  %v7415_v62 = vmul.f32 %v7397_v36, %v15239_v60 }
 0xd2f   :  { %8226 = vmatmul.msk.f32.vlgmr.msra.gmra.mxu1 %vm2177_vm2, %v8224_v28  ;;  %7486 = vmatpush.msrb.mxu2 %v7427_v6 }
 0xd30   :  { %7467 = vmatpush.msrb.mxu1 %v7422_v52  ;;  %7447 = vmatpush.msrb.mxu0 %v7421_v21 }
 0xd31   :  { %7487 = vmatpush.msrb.mxu2 %v7423_v4  ;;  %7508 = vmatpush.msrb.mxu3 %v7420_v55 }
 0xd32   :  { %7468 = vmatpush.msrb.mxu1 %v7418_v63  ;;  %7448 = vmatpush.msrb.mxu0 %v7417_v11 }
 0xd33   :  { %7488 = vmatpush.msrb.mxu2 %v7419_v24  ;;  %7509 = vmatpush.msrb.mxu3 %v7416_v13 }
 0xd34   :  { %7469 = vmatpush.msrb.mxu1 %v7414_v17  ;;  %7449 = vmatpush.msrb.mxu0 %v7413_v31 }
 0xd35   :  { %8233 = vmatmul.msk.f32.vlgmr.msrb.gmra.mxu3 %vm2177_vm2, %v8229_v45  ;;  %7489 = vmatpush.msrb.mxu2 %v7415_v62 }
 0xd36   :  { %8230 = vmatmul.msk.f32.vlgmr.msrb.gmra.mxu0 %vm2177_vm2, %v8229_v45  ;;  %8232 = vmatmul.msk.f32.vlgmr.msrb.gmra.mxu2 %vm2177_vm2, %v8229_v45 }
 0xd37   :  { %8231 = vmatmul.msk.f32.vlgmr.msrb.gmra.mxu1 %vm2177_vm2, %v8229_v45  ;;  %8279 = vset.pattern.permute.xlu1 %v8350_v39 }
 0xd38   :  { %7520 = vperm.xlu1 %8279, %v6213_v48   ;;  %8280 = vset.pattern.permute.xlu0 %v8350_v39 }
 0xd43   :  { %v6365_v25 = vpop.f32.mrf.mxu0 }
 0xd53   :  { %v6448_v53 = vpop.f32.mrf.mxu0 }
 0xd54   :  { %v6449_v15 = vadd.f32 %v6448_v53, %v6365_v25 }
 0xd61   :  { %v6425_v28 = vpop.f32.mrf.mxu3 }
 0xd6a   :  { %v6405_v8 = vpop.f32.mrf.mxu2 }
 0xd6c   :  { %v6385_v10 = vpop.f32.mrf.mxu1 }
 0xd70   :  { %v6597_v61 = vpop.f32.mrf.mxu0 }
 0xd71   :  { %v6660_v14 = vadd.f32 %v6597_v61, %v6449_v15 }
 0xd74   :  { %v6468_v42 = vpop.f32.mrf.mxu1  ;;  %v6508_v26 = vpop.f32.mrf.mxu3 }
 0xd75   :  { %v6488_v37 = vpop.f32.mrf.mxu2  ;;  %v6469_v51 = vadd.f32 %v6468_v42, %v6385_v10  ;;  %v6509_v58 = vadd.f32 %v6508_v26, %v6425_v28 }
 0xd76   :  { %v6489_v0 = vadd.f32 %v6488_v37, %v6405_v8 }
 0xd7c   :  { %v6617_v12 = vpop.f32.mrf.mxu1 }
 0xd7d   :  { %v6657_v22 = vpop.f32.mrf.mxu3  ;;  %v6637_v32 = vpop.f32.mrf.mxu2  ;;  %v6661_v33 = vadd.f32 %v6617_v12, %v6469_v51 }
 0xd7e   :  { %v6663_v23 = vadd.f32 %v6657_v22, %v6509_v58  ;;  %v6662_v34 = vadd.f32 %v6637_v32, %v6489_v0 }
 0xd85   :  { %v6750_v57 = vpop.f32.mrf.mxu0  ;;  %v6810_v29 = vpop.f32.mrf.mxu3 }
 0xd86   :  { %v6770_v1 = vpop.f32.mrf.mxu1  ;;  %v6790_v7 = vpop.f32.mrf.mxu2  ;;  %v6813_v30 = vadd.f32 %v6750_v57, %v6660_v14  ;;  %v6816_v40 = vadd.f32 %v6810_v29, %v6663_v23 }
 0xd87   :  { %v6814_v54 = vadd.f32 %v6770_v1, %v6661_v33  ;;  %v6815_v38 = vadd.f32 %v6790_v7, %v6662_v34 }
 0xd8e   :  { %v6899_v9 = vpop.f32.mrf.mxu3  ;;  %v6879_v59 = vpop.f32.mrf.mxu2 }
 0xd8f   :  { %v6905_v2 = vadd.f32 %v6899_v9, %v6816_v40  ;;  %v6904_v55 = vadd.f32 %v6879_v59, %v6815_v38 }
 0xd90   :  { %v6839_v56 = vpop.f32.mrf.mxu0 }
 0xd91   :  { %v6859_v49 = vpop.f32.mrf.mxu1  ;;  %v6902_v4 = vadd.f32 %v6839_v56, %v6813_v30 }
 0xd92   :  { %v6903_v46 = vadd.f32 %v6859_v49, %v6814_v54 }
 0xd97   :  { %v7032_v5 = vpop.f32.mrf.mxu2 }
 0xd98   :  { %v7052_v20 = vpop.f32.mrf.mxu3  ;;  %v7057_v62 = vadd.f32 %v7032_v5, %v6904_v55 }
 0xd99   :  { %v7058_v11 = vadd.f32 %v7052_v20, %v6905_v2 }
 0xd9a   :  { %v6992_v43 = vpop.f32.mrf.mxu0 }
 0xd9b   :  { %v7012_v50 = vpop.f32.mrf.mxu1  ;;  %v7055_v16 = vadd.f32 %v6992_v43, %v6902_v4 }
 0xd9c   :  { %v7056_v27 = vadd.f32 %v7012_v50, %v6903_v46 }
 0xda2   :  { %v7185_v19 = vpop.f32.mrf.mxu2 }
 0xda3   :  { %v7145_v3 = vpop.f32.mrf.mxu0  ;;  %v7165_v47 = vpop.f32.mrf.mxu1  ;;  %v7210_v25 = vadd.f32 %v7185_v19, %v7057_v62 }
 0xda4   :  { %v7205_v18 = vpop.f32.mrf.mxu3  ;;  %v7208_v41 = vadd.f32 %v7145_v3, %v7055_v16  ;;  %v7209_v52 = vadd.f32 %v7165_v47, %v7056_v27 }
 0xda5   :  { %v7211_v45 = vadd.f32 %v7205_v18, %v7058_v11 }
 0xdaa   :  { %v7521_v35 = vpop.permute.xlu1 %7520 }
 0xdab   :  { %v7298_v60 = vpop.f32.mrf.mxu0 }
 0xdac   :  { %v7318_v44 = vpop.f32.mrf.mxu1  ;;  %v7358_v6 = vpop.f32.mrf.mxu3  ;;  %v7361_v21 = vadd.f32 %v7298_v60, %v7208_v41 }
 0xdad   :  { %v7362_v63 = vadd.f32 %v7318_v44, %v7209_v52  ;;  %v7364_v10 = vadd.f32 %v7358_v6, %v7211_v45 }
 0xdb0   :  { %v7338_v36 = vpop.f32.mrf.mxu2 }
 0xdb1   :  { %v7363_v42 = vadd.f32 %v7338_v36, %v7210_v25 }
 0xdb3   :  { %v7451_v17 = vpop.f32.mrf.mxu0 }
 0xdb4   :  { %v7514_v24 = vadd.f32 %v7451_v17, %v7361_v21  ;;  %v7471_v13 = vpop.f32.mrf.mxu1 }
 0xdb5   :  { %v7515_v31 = vadd.f32 %v7471_v13, %v7362_v63 }
 0xdb6   :  { %v7523_v48 = vadd.f32 %v7521_v35, %v7514_v24 }
 0xdb7   :  { %v7524_v39 = vadd.f32 %v7521_v35, %v7515_v31 }
 0xdb8   :  { %v8234_v28 = vmul.f32 -1.442695, %v7523_v48  ;;  %v7511_v53 = vpop.f32.mrf.mxu3 }
 0xdb9   :  { %v8235_v8 = vmul.f32 -1.442695, %v7524_v39  ;;  %v7517_v26 = vadd.f32 %v7511_v53, %v7364_v10  ;;  %v7491_v37 = vpop.f32.mrf.mxu2 }
 0xdba   :  { %8305 = vpow2.f32 %v8234_v28  ;;  %v7516_v12 = vadd.f32 %v7491_v37, %v7363_v42 }
 0xdbb   :  { %8307 = vpow2.f32 %v8235_v8  ;;  %v7526_v61 = vadd.f32 %v7521_v35, %v7517_v26 }
 0xdbc   :  { %v7525_v32 = vadd.f32 %v7521_v35, %v7516_v12 }
 0xdbd   :  { %v8237_v22 = vmul.f32 -1.442695, %v7526_v61 }
 0xdbe   :  { %v8236_v1 = vmul.f32 -1.442695, %v7525_v32 }
 0xdbf   :  { %8309 = vpow2.f32 %v8237_v22 }
 0xdc0   :  { %v8306_v57 = vpop.eup %8305  ;;  %8311 = vpow2.f32 %v8236_v1 }
 0xdc1   :  { %v8308_v29 = vpop.eup %8307  ;;  %v7539_v7 = vadd.f32 1.0, %v8306_v57 }
 0xdc2   :  { %v7540_v56 = vadd.f32 1.0, %v8308_v29 }
 0xdc3   :  { %8313 = vrcp.f32 %v7539_v7  ;;  %v7554_v18 = vand.u32 2147483648, %v7539_v7  ;;  %vm7548_vm6 = vweird.f32 %v7539_v7  ;;  %v7552_v4 = vand.u32 2147483647, %v7539_v7 }
 0xdc4   :  { %8315 = vrcp.f32 %v7540_v56  ;;  %v7569_v14 = vand.u32 2147483648, %v7540_v56  ;;  %v7567_v30 = vand.u32 2147483647, %v7540_v56  ;;  %vm7563_vm0 = vweird.f32 %v7540_v56 }
 0xdc5   :  { %v8310_v49 = vpop.eup %8309  ;;  %v7555_v0 = vor.u32 1.1754944e-38, %v7554_v18  ;;  %vm7553_vm8 = vcmp.eq.f32.partialorder %v7552_v4, 8.507059e+37 }
 0xdc6   :  { %v7542_v9 = vadd.f32 1.0, %v8310_v49  ;;  %v8312_v59 = vpop.eup %8311  ;;  %v7570_v23 = vor.u32 1.1754944e-38, %v7569_v14  ;;  %vm7568_vm4 = vcmp.eq.f32.partialorder %v7567_v30, 8.507059e+37 }
 0xdc7   :  { %v7541_v5 = vadd.f32 1.0, %v8312_v59 }
 0xdc8   :  { %8317 = vrcp.f32 %v7542_v9  ;;  %v7599_v27 = vand.u32 2147483648, %v7542_v9  ;;  %v7597_v38 = vand.u32 2147483647, %v7542_v9  ;;  %vm7593_vm9 = vweird.f32 %v7542_v9 }
 0xdc9   :  { %v8314_v43 = vpop.eup %8313  ;;  %8319 = vrcp.f32 %v7541_v5  ;;  %v7584_v17 = vand.u32 2147483648, %v7541_v5  ;;  %v7582_v24 = vand.u32 2147483647, %v7541_v5  ;;  %vm7578_vm14 = vweird.f32 %v7541_v5 }
 0xdca   :  { %v8316_v50 = vpop.eup %8315  ;;  %v7544_v20 = vmul.f32 %v8314_v43, %v7539_v7  ;;  %vm7549_vm2 = vweird.f32 %v8314_v43  ;;  %v7600_v36 = vor.u32 1.1754944e-38, %v7599_v27  ;;  %vm7598_vm13 = vcmp.eq.f32.partialorder %v7597_v38, 8.507059e+37 }
 0xdcb   :  { %v7559_v3 = vmul.f32 %v8316_v50, %v7540_v56  ;;  %vm7564_vm3 = vweird.f32 %v8316_v50  ;;  %vm14269_vm7 = vmor %vm7548_vm6, %vm7549_vm2  ;;  %v7585_v48 = vor.u32 1.1754944e-38, %v7584_v17  ;;  %vm7583_vm2 = vcmp.eq.f32.partialorder %v7582_v24, 8.507059e+37 }
 0xdcc   :  { %v7545_v15 = vsub.f32 1.0, %v7544_v20  ;;  %vm7565_vm1 = vmor %vm7563_vm0, %vm7564_vm3 }
 0xdcd   :  { %v7560_v47 = vsub.f32 1.0, %v7559_v3  ;;  %vm15253_vm3 = vmmov %vm15252_vm10 }
 0xdce   :  { %v7546_v51 = vmul.f32 %v8314_v43, %v7545_v15  ;;  %v8318_v33 = vpop.eup %8317 }
 0xdcf   :  { %v7561_v58 = vmul.f32 %v8316_v50, %v7560_v47  ;;  %v7589_v19 = vmul.f32 %v8318_v33, %v7542_v9  ;;  %v8320_v46 = vpop.eup %8319  ;;  %vm7594_vm5 = vweird.f32 %v8318_v33 }
 0xdd0   :  { %v7547_v54 = vadd.f32 %v8314_v43, %v7546_v51  ;;  %v7574_v41 = vmul.f32 %v8320_v46, %v7541_v5  ;;  %vm7595_vm11 = vmor %vm7593_vm9, %vm7594_vm5  ;;  %vm7579_vm12 = vweird.f32 %v8320_v46 }
 0xdd1   :  { %v7562_v44 = vadd.f32 %v8316_v50, %v7561_v58  ;;  %v7590_v16 = vsub.f32 1.0, %v7589_v19  ;;  %vm7580_vm15 = vmor %vm7578_vm14, %vm7579_vm12 }
 0xdd2   :  { %v7551_v34 = vsel %vm14269_vm7, %v8314_v43, %v7547_v54  ;;  %v7575_v21 = vsub.f32 1.0, %v7574_v41 }
 0xdd3   :  { %v7566_v40 = vsel %vm7565_vm1, %v8316_v50, %v7562_v44  ;;  %v7591_v6 = vmul.f32 %v8318_v33, %v7590_v16  ;;  %v7556_v35 = vsel %vm7553_vm8, %v7555_v0, %v7551_v34 }
 0xdd4   :  { %v7571_v52 = vsel %vm7568_vm4, %v7570_v23, %v7566_v40  ;;  %v7576_v11 = vmul.f32 %v8320_v46, %v7575_v21 }
 0xdd5   :  { %v7607_v2 = vrot.slane %v7571_v52, 4  ;;  %v7592_v63 = vadd.f32 %v8318_v33, %v7591_v6 }
 0xdd6   :  { %v7577_v62 = vadd.f32 %v8320_v46, %v7576_v11 }
 0xdd7   :  { %v7609_v55 = vsel %vm15252_vm10, %v7556_v35, %v7607_v2  ;;  %v7596_v13 = vsel %vm7595_vm11, %v8318_v33, %v7592_v63 }
 0xdd8   :  { %7613 = vst [vmem:[%s14290_s7] sm:$0xff] %v7609_v55  ;;  %v7601_v31 = vsel %vm7598_vm13, %v7600_v36, %v7596_v13  ;;  %v7581_v39 = vsel %vm7580_vm15, %v8320_v46, %v7577_v62 }
 0xdd9   :  { %v7608_v45 = vrot.slane %v7601_v31, 4  ;;  %v7586_v25 = vsel %vm7583_vm2, %v7585_v48, %v7581_v39 }
 0xddb   :  { %v7610_v10 = vsel %vm15253_vm3, %v7586_v25, %v7608_v45 }
 0xddc   :  { %7614 = vst [vmem:[%s14290_s7 + $0x8] sm:$0xff] %v7610_v10 }

</bundles_post_ra>
